<compile_context>
chip_gen: v7x
topology: tpu7x:2x2x1
jax: 0.10.0
libtpu: 0.0.40
codegen_flags: <defaults>
</compile_context>

<pallas_src>
import functools

import jax
import jax.numpy as jnp
from jax.experimental import pallas as pl
from jax.experimental.pallas import tpu as pltpu

EPS = 1e-5

# Fixed module configuration (defaults of the PyTorch module):
#   in_channels = out_channels = 4, alpha_in = alpha_out = 0.5
LOCAL_IN = 2
GLOBAL_IN = 2
LOCAL_OUT = 2
GLOBAL_OUT = 2
C_IN = LOCAL_IN + GLOBAL_IN
C_OUT = LOCAL_OUT + GLOBAL_OUT

# ---- packed-parameter offsets (1-D f32 vectors living in SMEM) --------------
# kernel A
A_WLOC = 0                                      # (3,3,4,2) fused [l2l|g2l], HWIO
A_BLOC = A_WLOC + 9 * C_IN * LOCAL_OUT          # 72  : b_l2l + b_g2l
A_WL2G = A_BLOC + LOCAL_OUT                     # 74  : (3,3,2,2) l2g weights
A_BL2G = A_WL2G + 9 * LOCAL_IN * GLOBAL_OUT     # 110
A_W1 = A_BL2G + GLOBAL_OUT                      # 112 : SpectralTransform conv1 (2->1)
A_B1 = A_W1 + GLOBAL_IN                         # 114
A_GL = A_B1 + 1                                 # 115 : local BN gamma
A_BL = A_GL + LOCAL_OUT                         # 117 : local BN beta
A_G1 = A_BL + LOCAL_OUT                         # 119 : st conv1 BN gamma
A_BE1 = A_G1 + 1                                # 120 : st conv1 BN beta
A_LEN = A_BE1 + 1                               # 121
# kernel B (FourierUnit inter_conv: 1x1, [real,imag] -> [real,imag])
B_W = 0     # (in, out) flattened, 4 scalars
B_B = 4
B_G = 6
B_BE = 8
B_LEN = 10
# kernel C (SpectralTransform conv2 (1->2) + global BN)
C_W2 = 0
C_B2 = 2
C_G = 4
C_BE = 6
C_LEN = 8


def _sum_all(v):
    """Full reduction of a 2-D slab to a (1, 1) array (two single-axis reductions)."""
    return jnp.sum(jnp.sum(v, axis=-1, keepdims=True), axis=-2, keepdims=True)


# -----------------------------------------------------------------------------
# Kernel A: reflect pad + 3x3 convs + SpectralTransform.conv1 + BNs + ReLUs
# -----------------------------------------------------------------------------
def _kernel_a(x_ref, p_ref, oloc_ref, ol2g_ref, or_ref, *, B, H, W):
    """Fused pre-FFT stage, fully lane-dense.

    x_ref    : (B*C_IN, H*W)      flattened NCHW input planes, row = b*C_IN + ci
    p_ref    : (A_LEN,)           packed scalar params, SMEM
    oloc_ref : (B*LOCAL_OUT, H*W) BN+ReLU(l2l(x_l)+g2l(x_g)), row = b*LOCAL_OUT + co
    ol2g_ref : (GLOBAL_OUT*B, H*W) l2g(x_l), pre-BN (BN in kernel C), row = co*B + b
    or_ref   : (B, H*W)           r = ReLU(BN(conv1x1_{2->1}(x_g)))

    The 3x3 taps are built as lane shifts (jnp.roll, static) of the flattened
    plane, with reflect-padding boundaries fixed via iota-mask selects — no
    jnp.pad, no 2-D sub-tile slices, no in-kernel reshapes.  Convs are
    unrolled scalar-broadcast VPU FMAs (K,N <= 4, MXU would be <1% utilized).
    """
    HW = H * W
    inv_n = 1.0 / float(B * HW)

    # --- boundary masks for fused reflect padding (computed once) -----------
    pos = jax.lax.broadcasted_iota(jnp.int32, (1, HW), 1)
    col = pos % W
    row0 = pos < W                 # output row h == 0
    rowL = pos >= (HW - W)         # output row h == H-1
    col0 = col == 0                # output col w == 0
    colL = col == (W - 1)          # output col w == W-1

    # --- hoist SMEM scalar loads (static indices) out of the loops ----------
    w_loc = [[[p_ref[A_WLOC + (k * C_IN + ci) * LOCAL_OUT + co]
               for co in range(LOCAL_OUT)] for ci in range(C_IN)] for k in range(9)]
    w_l2g = [[[p_ref[A_WL2G + (k * LOCAL_IN + ci) * GLOBAL_OUT + co]
               for co in range(GLOBAL_OUT)] for ci in range(LOCAL_IN)] for k in range(9)]
    b_loc = [p_ref[A_BLOC + co] for co in range(LOCAL_OUT)]
    b_l2g = [p_ref[A_BL2G + co] for co in range(GLOBAL_OUT)]
    w1 = [p_ref[A_W1 + i] for i in range(GLOBAL_IN)]
    b1 = p_ref[A_B1]

    zero11 = jnp.zeros((1, 1), jnp.float32)
    sum_loc = [zero11 for _ in range(LOCAL_OUT)]
    sq_loc = [zero11 for _ in range(LOCAL_OUT)]
    sum_r = zero11
    sq_r = zero11

    def psum(v):                                  # (1, HW) -> (1, 1)
        return jnp.sum(v, axis=-1, keepdims=True)

    for b in range(B):
        planes = [x_ref[b * C_IN + ci:b * C_IN + ci + 1, :] for ci in range(C_IN)]
        acc_loc = [jnp.zeros((1, HW), jnp.float32) for _ in range(LOCAL_OUT)]
        acc_l2g = [jnp.zeros((1, HW), jnp.float32) for _ in range(GLOBAL_OUT)]

        for ci in range(C_IN):
            f = planes[ci]                                        # (1, HW)
            up = jnp.roll(f, W, axis=1)        # source row h-1 (wraps at h=0)
            dn = jnp.roll(f, -W, axis=1)       # source row h+1 (wraps at h=H-1)
            rs = (jnp.where(row0, dn, up),     # dh=0: row h-1, reflect -> row 1
                  f,                           # dh=1: row h
                  jnp.where(rowL, up, dn))     # dh=2: row h+1, reflect -> row H-2
            for dh in range(3):
                s = rs[dh]
                left = jnp.roll(s, 1, axis=1)      # source col w-1 (wraps at w=0)
                right = jnp.roll(s, -1, axis=1)    # source col w+1 (wraps at w=W-1)
                taps = (jnp.where(col0, right, left),   # dw=0: col w-1, reflect
                        s,                               # dw=1: col w
                        jnp.where(colL, left, right))    # dw=2: col w+1, reflect
                for dw in range(3):
                    k = dh * 3 + dw
                    win = taps[dw]
                    for co in range(LOCAL_OUT):
                        acc_loc[co] = acc_loc[co] + w_loc[k][ci][co] * win
                    if ci < LOCAL_IN:                    # l2g only sees x_l
                        for co in range(GLOBAL_OUT):
                            acc_l2g[co] = acc_l2g[co] + w_l2g[k][ci][co] * win

        # ---- write-through pre-BN rows (lane-dense) + BN statistics --------
        for co in range(LOCAL_OUT):
            v = acc_loc[co] + b_loc[co]
            row = b * LOCAL_OUT + co
            oloc_ref[row:row + 1, :] = v
            sum_loc[co] = sum_loc[co] + psum(v)
            sq_loc[co] = sq_loc[co] + psum(v * v)
        for co in range(GLOBAL_OUT):
            row = co * B + b
            ol2g_ref[row:row + 1, :] = acc_l2g[co] + b_l2g[co]    # BN applied in kernel C
        # SpectralTransform.conv1 : 1x1, global_in=2 -> 1 (no padding needed)
        v = w1[0] * planes[LOCAL_IN + 0] + w1[1] * planes[LOCAL_IN + 1] + b1
        or_ref[b:b + 1, :] = v
        sum_r = sum_r + psum(v)
        sq_r = sq_r + psum(v * v)

    # ---- second pass: training-mode BatchNorm (batch stats, biased var) + ReLU
    sc_rows, sh_rows = [], []
    for co in range(LOCAL_OUT):
        mu = sum_loc[co] * inv_n
        var = jnp.maximum(sq_loc[co] * inv_n - mu * mu, 0.0)      # cancellation guard
        sc = jax.lax.rsqrt(var + EPS) * p_ref[A_GL + co]
        sc_rows.append(sc)
        sh_rows.append(p_ref[A_BL + co] - mu * sc)
    sc_v = jnp.concatenate(sc_rows * B, axis=0)    # (B*LOCAL_OUT, 1), matches row order
    sh_v = jnp.concatenate(sh_rows * B, axis=0)
    oloc_ref[...] = jnp.maximum(oloc_ref[...] * sc_v + sh_v, 0.0)

    mu = sum_r * inv_n
    var = jnp.maximum(sq_r * inv_n - mu * mu, 0.0)
    sc = jax.lax.rsqrt(var + EPS) * p_ref[A_G1]
    sh = p_ref[A_BE1] - mu * sc
    or_ref[...] = jnp.maximum(or_ref[...] * sc + sh, 0.0)


# -----------------------------------------------------------------------------
# Kernel B: FourierUnit inter_conv (spectral 1x1 + BN + ReLU), stacked re/im
# -----------------------------------------------------------------------------
def _kernel_b(x_ref, p_ref, o_ref, *, B, n_elems):
    """x_ref / o_ref : (2*B, Ff*W); rows [0:B) = real, [B:2B) = imag channels."""
    re = x_ref[0:B, :]
    im = x_ref[B:2 * B, :]
    inv_n = 1.0 / float(n_elems)
    for o in range(2):
        # NOTE: fu_w is indexed (in, out); transpose when porting PyTorch
        # weights of shape (out, in, 1, 1).
        y = p_ref[B_W + 0 * 2 + o] * re + p_ref[B_W + 1 * 2 + o] * im + p_ref[B_B + o]
        mu = _sum_all(y) * inv_n
        var = jnp.maximum(_sum_all(y * y) * inv_n - mu * mu, 0.0)
        sc = jax.lax.rsqrt(var + EPS) * p_ref[B_G + o]
        sh = p_ref[B_BE + o] - mu * sc
        o_ref[o * B:(o + 1) * B, :] = jnp.maximum(y * sc + sh, 0.0)


# -----------------------------------------------------------------------------
# Kernel C: residual + conv2 + l2g add + BN + ReLU + channel concat (post-FFT)
# -----------------------------------------------------------------------------
def _kernel_c(oloc_ref, l2g_ref, r_ref, fu_ref, p_ref, out_ref, *, B, HW):
    """Lane-dense (rows, H*W) slabs.

    oloc_ref: (B*LOCAL_OUT, HW)  finished local branch, row = b*LOCAL_OUT + co
    l2g_ref : (GLOBAL_OUT*B, HW) l2g(x_l), pre-BN,      row = co*B + b
    r_ref   : (B, HW)            SpectralTransform.conv1 output (residual)
    fu_ref  : (B, HW)            FourierUnit output (irfft)
    out_ref : (B*C_OUT, HW)      final NCHW output,      row = b*C_OUT + c
    """
    inv_n = 1.0 / float(B * HW)
    z = fu_ref[...] + r_ref[...]                          # FourierUnit out + residual
    ys = []
    for co in range(GLOBAL_OUT):
        spec = p_ref[C_W2 + co] * z + p_ref[C_B2 + co]    # conv2 (1x1, 1->2)
        gpre = l2g_ref[co * B:(co + 1) * B, :] + spec     # l2g(x_l) + g2g(x_g)
        mu = _sum_all(gpre) * inv_n
        var = jnp.maximum(_sum_all(gpre * gpre) * inv_n - mu * mu, 0.0)
        sc = jax.lax.rsqrt(var + EPS) * p_ref[C_G + co]
        sh = p_ref[C_BE + co] - mu * sc
        ys.append(jnp.maximum(gpre * sc + sh, 0.0))       # (B, HW)
    # channel concat into NCHW rows: block-copy local channels, lane-dense
    # single-row stores for the two global channels per batch.
    for b in range(B):
        out_ref[b * C_OUT:b * C_OUT + LOCAL_OUT, :] = \
            oloc_ref[b * LOCAL_OUT:(b + 1) * LOCAL_OUT, :]
        for co in range(GLOBAL_OUT):
            row = b * C_OUT + LOCAL_OUT + co
            out_ref[row:row + 1, :] = ys[co][b:b + 1, :]


# -----------------------------------------------------------------------------
# pallas_call wrappers
# -----------------------------------------------------------------------------
def _vmem():
    return pl.BlockSpec(memory_space=pltpu.MemorySpace.VMEM)


def _smem():
    return pl.BlockSpec(memory_space=pltpu.MemorySpace.SMEM)


def _run_kernel_a(x2, p_a, B, H, W):
    HW = H * W
    return pl.pallas_call(
        functools.partial(_kernel_a, B=B, H=H, W=W),
        out_shape=(
            jax.ShapeDtypeStruct((B * LOCAL_OUT, HW), jnp.float32),
            jax.ShapeDtypeStruct((GLOBAL_OUT * B, HW), jnp.float32),
            jax.ShapeDtypeStruct((B, HW), jnp.float32),
        ),
        in_specs=[_vmem(), _smem()],
        out_specs=(_vmem(), _vmem(), _vmem()),
    )(x2, p_a)


def _run_kernel_b(ri, p_b, B):
    return pl.pallas_call(
        functools.partial(_kernel_b, B=B, n_elems=B * ri.shape[1]),
        out_shape=jax.ShapeDtypeStruct(ri.shape, jnp.float32),
        in_specs=[_vmem(), _smem()],
        out_specs=_vmem(),
    )(ri, p_b)


def _run_kernel_c(oloc2, l2g2, r2, fu2, p_c, B, HW):
    return pl.pallas_call(
        functools.partial(_kernel_c, B=B, HW=HW),
        out_shape=jax.ShapeDtypeStruct((B * C_OUT, HW), jnp.float32),
        in_specs=[_vmem(), _vmem(), _vmem(), _vmem(), _smem()],
        out_specs=_vmem(),
    )(oloc2, l2g2, r2, fu2, p_c)


# -----------------------------------------------------------------------------
# FastFourierConvolution forward
# -----------------------------------------------------------------------------
def _pack_params(params):
    # l2l and g2l map into the same local output channels and are summed, so
    # they fuse into one 3x3 conv over the full channel stack [x_l | x_g].
    w_loc = jnp.concatenate([params["w_l2l"], params["w_g2l"]], axis=2)  # (3,3,4,2) HWIO
    b_loc = params["b_l2l"] + params["b_g2l"]
    p_a = jnp.concatenate([
        w_loc.reshape(-1), b_loc.reshape(-1),
        params["w_l2g"].reshape(-1), params["b_l2g"].reshape(-1),
        params["st_w1"].reshape(-1), params["st_b1"].reshape(-1),
        params["bn_l_gamma"].reshape(-1), params["bn_l_beta"].reshape(-1),
        params["st_bn1_gamma"].reshape(-1), params["st_bn1_beta"].reshape(-1),
    ]).astype(jnp.float32)
    p_b = jnp.concatenate([
        params["fu_w"].reshape(-1), params["fu_b"].reshape(-1),
        params["fu_bn_gamma"].reshape(-1), params["fu_bn_beta"].reshape(-1),
    ]).astype(jnp.float32)
    p_c = jnp.concatenate([
        params["st_w2"].reshape(-1), params["st_b2"].reshape(-1),
        params["bn_g_gamma"].reshape(-1), params["bn_g_beta"].reshape(-1),
    ]).astype(jnp.float32)
    return p_a, p_b, p_c


def ffc_forward(x_nchw, params):
    """FFC forward. Input/Output: NCHW float32, matching the PyTorch module."""
    B, C, H, W = x_nchw.shape
    assert C == C_IN
    HW = H * W
    x = x_nchw.astype(jnp.float32)
    p_a, p_b, p_c = _pack_params(params)

    # ---- kernel A: reflect-pad fused + 3x3 convs + conv1 + BNs + ReLUs ------
    o_loc, o_l2g, o_r = _run_kernel_a(x.reshape(B * C_IN, HW), p_a, B, H, W)

    # ---- FourierUnit: rfft along H (use_only_freq=True), spectral conv, irfft
    # TODO(synk): FFT has no Pallas primitive; rfft/irfft stay in plain JAX/XLA.
    fft_c = jnp.fft.rfft(o_r.reshape(B, H, W), axis=1, norm="ortho")   # (B,Ff,W) c64
    Ff = fft_c.shape[1]
    ri = jnp.concatenate([jnp.real(fft_c).reshape(B, Ff * W),
                          jnp.imag(fft_c).reshape(B, Ff * W)], axis=0)  # (2B, Ff*W)
    o_ri = _run_kernel_b(ri, p_b, B)
    spec = jax.lax.complex(o_ri[:B], o_ri[B:]).reshape(B, Ff, W)
    fu = jnp.fft.irfft(spec, n=H, axis=1, norm="ortho")               # (B,H,W) f32

    # ---- kernel C: residual + conv2 + l2g add + BN + ReLU + channel concat --
    out2d = _run_kernel_c(o_loc, o_l2g, o_r, fu.reshape(B, HW), p_c, B, HW)
    return out2d.reshape(B, C_OUT, H, W)                              # NCHW


# -----------------------------------------------------------------------------
# Deterministic parameter init (synthetic — shapes from the module __init__)
# -----------------------------------------------------------------------------
def init_params(key):
    ks = jax.random.split(key, 20)

    def nrm(k, shape, scale=0.1):
        return scale * jax.random.normal(k, shape, jnp.float32)

    p = {}
    # 3x3 convs (HWIO layout: (3, 3, Cin, Cout)), bias=True, reflect padding
    p["w_l2l"] = nrm(ks[0], (3, 3, 2, 2)); p["b_l2l"] = nrm(ks[1], (2,))
    p["w_g2l"] = nrm(ks[2], (3, 3, 2, 2)); p["b_g2l"] = nrm(ks[3], (2,))
    p["w_l2g"] = nrm(ks[4], (3, 3, 2, 2)); p["b_l2g"] = nrm(ks[5], (2,))
    # SpectralTransform: conv1 (2->1), FourierUnit inter_conv (2->2), conv2 (1->2)
    p["st_w1"] = nrm(ks[6], (2, 1)); p["st_b1"] = nrm(ks[7], (1,))
    p["fu_w"] = nrm(ks[8], (2, 2)); p["fu_b"] = nrm(ks[9], (2,))
    p["st_w2"] = nrm(ks[10], (1, 2)); p["st_b2"] = nrm(ks[11], (2,))
    # BatchNorm affine params (gamma, beta)
    p["bn_l_gamma"] = 1.0 + nrm(ks[12], (2,)); p["bn_l_beta"] = nrm(ks[13], (2,))
    p["bn_g_gamma"] = 1.0 + nrm(ks[14], (2,)); p["bn_g_beta"] = nrm(ks[15], (2,))
    p["st_bn1_gamma"] = 1.0 + nrm(ks[16], (1,)); p["st_bn1_beta"] = nrm(ks[17], (1,))
    p["fu_bn_gamma"] = 1.0 + nrm(ks[18], (2,)); p["fu_bn_beta"] = nrm(ks[19], (2,))
    return p


if __name__ == "__main__":
    key = jax.random.PRNGKey(0)
    kx, kp = jax.random.split(key)
    x = jax.random.normal(kx, (2, 4, 16, 16), jnp.float32)  # NCHW, like PyTorch
    params = init_params(kp)

    out = jax.jit(ffc_forward)(x, params)
    out = jax.block_until_ready(out)

    assert out.shape == (2, 4, 16, 16), out.shape
    assert out.dtype == jnp.float32
    assert bool(jnp.all(jnp.isfinite(out)))
    print("KERNEL_OK")
</pallas_src>

<mosaic_0001>
module attributes {stable_mosaic.version = 11 : i64} {
  func.func @_kernel_b(%arg0: memref<4x144xf32, #tpu.memory_space<vmem>>, %arg1: memref<10xf32, #tpu.memory_space<smem>>, %arg2: memref<4x144xf32, #tpu.memory_space<vmem>>) attributes {dimension_semantics = [], scalar_prefetch = 0 : i64, scratch_operands = 0 : i64, tpu.core_type = #tpu.core_type<tc>} {
    %c0 = arith.constant 0 : index
    %c0_0 = arith.constant 0 : index
    %0 = vector.load %arg0[%c0, %c0_0] : memref<4x144xf32, #tpu.memory_space<vmem>>, vector<2x144xf32>
    %c2 = arith.constant 2 : index
    %c0_1 = arith.constant 0 : index
    %1 = vector.load %arg0[%c2, %c0_1] : memref<4x144xf32, #tpu.memory_space<vmem>>, vector<2x144xf32>
    %c0_2 = arith.constant 0 : index
    %2 = memref.load %arg1[%c0_2] : memref<10xf32, #tpu.memory_space<smem>>
    %3 = vector.broadcast %2 : f32 to vector<2x144xf32>
    %4 = arith.mulf %3, %0 : vector<2x144xf32>
    %c2_3 = arith.constant 2 : index
    %5 = memref.load %arg1[%c2_3] : memref<10xf32, #tpu.memory_space<smem>>
    %6 = vector.broadcast %5 : f32 to vector<2x144xf32>
    %7 = arith.mulf %6, %1 : vector<2x144xf32>
    %8 = arith.addf %4, %7 : vector<2x144xf32>
    %c4 = arith.constant 4 : index
    %9 = memref.load %arg1[%c4] : memref<10xf32, #tpu.memory_space<smem>>
    %10 = vector.broadcast %9 : f32 to vector<2x144xf32>
    %11 = arith.addf %8, %10 : vector<2x144xf32>
    %cst = arith.constant dense<0.000000e+00> : vector<2xf32>
    %12 = vector.multi_reduction <add>, %11, %cst [1] : vector<2x144xf32> to vector<2xf32>
    %13 = vector.shape_cast %12 : vector<2xf32> to vector<2x1xf32>
    %cst_4 = arith.constant dense<0.000000e+00> : vector<1xf32>
    %14 = vector.multi_reduction <add>, %13, %cst_4 [0] : vector<2x1xf32> to vector<1xf32>
    %15 = vector.shape_cast %14 : vector<1xf32> to vector<1x1xf32>
    %cst_5 = arith.constant 0.00347222225 : f32
    %16 = vector.broadcast %cst_5 : f32 to vector<1x1xf32>
    %17 = arith.mulf %15, %16 : vector<1x1xf32>
    %18 = arith.mulf %11, %11 : vector<2x144xf32>
    %cst_6 = arith.constant dense<0.000000e+00> : vector<2xf32>
    %19 = vector.multi_reduction <add>, %18, %cst_6 [1] : vector<2x144xf32> to vector<2xf32>
    %20 = vector.shape_cast %19 : vector<2xf32> to vector<2x1xf32>
    %cst_7 = arith.constant dense<0.000000e+00> : vector<1xf32>
    %21 = vector.multi_reduction <add>, %20, %cst_7 [0] : vector<2x1xf32> to vector<1xf32>
    %22 = vector.shape_cast %21 : vector<1xf32> to vector<1x1xf32>
    %cst_8 = arith.constant 0.00347222225 : f32
    %23 = vector.broadcast %cst_8 : f32 to vector<1x1xf32>
    %24 = arith.mulf %22, %23 : vector<1x1xf32>
    %25 = arith.mulf %17, %17 : vector<1x1xf32>
    %26 = arith.subf %24, %25 : vector<1x1xf32>
    %cst_9 = arith.constant 0.000000e+00 : f32
    %27 = vector.broadcast %cst_9 : f32 to vector<1x1xf32>
    %28 = arith.maximumf %26, %27 : vector<1x1xf32>
    %cst_10 = arith.constant 9.99999974E-6 : f32
    %29 = vector.broadcast %cst_10 : f32 to vector<1x1xf32>
    %30 = arith.addf %28, %29 : vector<1x1xf32>
    %31 = math.rsqrt %30 : vector<1x1xf32>
    %c6 = arith.constant 6 : index
    %32 = memref.load %arg1[%c6] : memref<10xf32, #tpu.memory_space<smem>>
    %33 = vector.broadcast %32 : f32 to vector<1x1xf32>
    %34 = arith.mulf %31, %33 : vector<1x1xf32>
    %c8 = arith.constant 8 : index
    %35 = memref.load %arg1[%c8] : memref<10xf32, #tpu.memory_space<smem>>
    %36 = arith.mulf %17, %34 : vector<1x1xf32>
    %37 = vector.broadcast %35 : f32 to vector<1x1xf32>
    %38 = arith.subf %37, %36 : vector<1x1xf32>
    %39 = vector.broadcast %34 : vector<1x1xf32> to vector<2x144xf32>
    %40 = arith.mulf %11, %39 : vector<2x144xf32>
    %41 = vector.broadcast %38 : vector<1x1xf32> to vector<2x144xf32>
    %42 = arith.addf %40, %41 : vector<2x144xf32>
    %cst_11 = arith.constant 0.000000e+00 : f32
    %43 = vector.broadcast %cst_11 : f32 to vector<2x144xf32>
    %44 = arith.maximumf %42, %43 : vector<2x144xf32>
    %c0_12 = arith.constant 0 : index
    %c0_13 = arith.constant 0 : index
    %45 = vector.load %arg2[%c0_12, %c0_13] : memref<4x144xf32, #tpu.memory_space<vmem>>, vector<2x144xf32>
    tpu.vector_store %arg2[%c0_12, %c0_13], %44 {strides = array<i32>} : memref<4x144xf32, #tpu.memory_space<vmem>>, vector<2x144xf32>,
    %c1 = arith.constant 1 : index
    %46 = memref.load %arg1[%c1] : memref<10xf32, #tpu.memory_space<smem>>
    %47 = vector.broadcast %46 : f32 to vector<2x144xf32>
    %48 = arith.mulf %47, %0 : vector<2x144xf32>
    %c3 = arith.constant 3 : index
    %49 = memref.load %arg1[%c3] : memref<10xf32, #tpu.memory_space<smem>>
    %50 = vector.broadcast %49 : f32 to vector<2x144xf32>
    %51 = arith.mulf %50, %1 : vector<2x144xf32>
    %52 = arith.addf %48, %51 : vector<2x144xf32>
    %c5 = arith.constant 5 : index
    %53 = memref.load %arg1[%c5] : memref<10xf32, #tpu.memory_space<smem>>
    %54 = vector.broadcast %53 : f32 to vector<2x144xf32>
    %55 = arith.addf %52, %54 : vector<2x144xf32>
    %cst_14 = arith.constant dense<0.000000e+00> : vector<2xf32>
    %56 = vector.multi_reduction <add>, %55, %cst_14 [1] : vector<2x144xf32> to vector<2xf32>
    %57 = vector.shape_cast %56 : vector<2xf32> to vector<2x1xf32>
    %cst_15 = arith.constant dense<0.000000e+00> : vector<1xf32>
    %58 = vector.multi_reduction <add>, %57, %cst_15 [0] : vector<2x1xf32> to vector<1xf32>
    %59 = vector.shape_cast %58 : vector<1xf32> to vector<1x1xf32>
    %cst_16 = arith.constant 0.00347222225 : f32
    %60 = vector.broadcast %cst_16 : f32 to vector<1x1xf32>
    %61 = arith.mulf %59, %60 : vector<1x1xf32>
    %62 = arith.mulf %55, %55 : vector<2x144xf32>
    %cst_17 = arith.constant dense<0.000000e+00> : vector<2xf32>
    %63 = vector.multi_reduction <add>, %62, %cst_17 [1] : vector<2x144xf32> to vector<2xf32>
    %64 = vector.shape_cast %63 : vector<2xf32> to vector<2x1xf32>
    %cst_18 = arith.constant dense<0.000000e+00> : vector<1xf32>
    %65 = vector.multi_reduction <add>, %64, %cst_18 [0] : vector<2x1xf32> to vector<1xf32>
    %66 = vector.shape_cast %65 : vector<1xf32> to vector<1x1xf32>
    %cst_19 = arith.constant 0.00347222225 : f32
    %67 = vector.broadcast %cst_19 : f32 to vector<1x1xf32>
    %68 = arith.mulf %66, %67 : vector<1x1xf32>
    %69 = arith.mulf %61, %61 : vector<1x1xf32>
    %70 = arith.subf %68, %69 : vector<1x1xf32>
    %cst_20 = arith.constant 0.000000e+00 : f32
    %71 = vector.broadcast %cst_20 : f32 to vector<1x1xf32>
    %72 = arith.maximumf %70, %71 : vector<1x1xf32>
    %cst_21 = arith.constant 9.99999974E-6 : f32
    %73 = vector.broadcast %cst_21 : f32 to vector<1x1xf32>
    %74 = arith.addf %72, %73 : vector<1x1xf32>
    %75 = math.rsqrt %74 : vector<1x1xf32>
    %c7 = arith.constant 7 : index
    %76 = memref.load %arg1[%c7] : memref<10xf32, #tpu.memory_space<smem>>
    %77 = vector.broadcast %76 : f32 to vector<1x1xf32>
    %78 = arith.mulf %75, %77 : vector<1x1xf32>
    %c9 = arith.constant 9 : index
    %79 = memref.load %arg1[%c9] : memref<10xf32, #tpu.memory_space<smem>>
    %80 = arith.mulf %61, %78 : vector<1x1xf32>
    %81 = vector.broadcast %79 : f32 to vector<1x1xf32>
    %82 = arith.subf %81, %80 : vector<1x1xf32>
    %83 = vector.broadcast %78 : vector<1x1xf32> to vector<2x144xf32>
    %84 = arith.mulf %55, %83 : vector<2x144xf32>
    %85 = vector.broadcast %82 : vector<1x1xf32> to vector<2x144xf32>
    %86 = arith.addf %84, %85 : vector<2x144xf32>
    %cst_22 = arith.constant 0.000000e+00 : f32
    %87 = vector.broadcast %cst_22 : f32 to vector<2x144xf32>
    %88 = arith.maximumf %86, %87 : vector<2x144xf32>
    %c2_23 = arith.constant 2 : index
    %c0_24 = arith.constant 0 : index
    %89 = vector.load %arg2[%c2_23, %c0_24] : memref<4x144xf32, #tpu.memory_space<vmem>>, vector<2x144xf32>
    tpu.vector_store %arg2[%c2_23, %c0_24], %88 {strides = array<i32>} : memref<4x144xf32, #tpu.memory_space<vmem>>, vector<2x144xf32>,
    return
  }
}

module attributes {stable_mosaic.version = 11 : i64} {
  func.func @_kernel_a(%arg0: memref<8x256xf32, #tpu.memory_space<vmem>>, %arg1: memref<121xf32, #tpu.memory_space<smem>>, %arg2: memref<4x256xf32, #tpu.memory_space<vmem>>, %arg3: memref<4x256xf32, #tpu.memory_space<vmem>>, %arg4: memref<2x256xf32, #tpu.memory_space<vmem>>) attributes {dimension_semantics = [], scalar_prefetch = 0 : i64, scratch_operands = 0 : i64, tpu.core_type = #tpu.core_type<tc>} {
    %0 = tpu.iota {dimensions = array<i32: 1>} : vector<1x256xi32>
    %c16_i32 = arith.constant 16 : i32
    %c0_i32 = arith.constant 0 : i32
    %1 = arith.cmpi eq, %c16_i32, %c0_i32 : i32
    %c1_i32 = arith.constant 1 : i32
    %2 = arith.select %1, %c1_i32, %c16_i32 : i32
    %3 = vector.broadcast %2 : i32 to vector<1x256xi32>
    %4 = arith.remsi %0, %3 : vector<1x256xi32>
    %c0_i32_0 = arith.constant 0 : i32
    %5 = vector.broadcast %c0_i32_0 : i32 to vector<1x256xi32>
    %6 = arith.cmpi ne, %4, %5 : vector<1x256xi32>
    %c0_i32_1 = arith.constant 0 : i32
    %7 = vector.broadcast %c0_i32_1 : i32 to vector<1x256xi32>
    %8 = arith.cmpi slt, %4, %7 : vector<1x256xi32>
    %c0_i32_2 = arith.constant 0 : i32
    %9 = arith.cmpi slt, %2, %c0_i32_2 : i32
    %10 = vector.broadcast %9 : i1 to vector<1x256xi1>
    %11 = vector.broadcast %10 : vector<1x256xi1> to vector<1x256xi1>
    %12 = arith.xori %8, %11 : vector<1x256xi1>
    %13 = arith.andi %12, %6 : vector<1x256xi1>
    %14 = vector.broadcast %2 : i32 to vector<1x256xi32>
    %15 = arith.addi %4, %14 : vector<1x256xi32>
    %16 = arith.select %13, %15, %4 : vector<1x256xi1>, vector<1x256xi32>
    %c16_i32_3 = arith.constant 16 : i32
    %17 = vector.broadcast %c16_i32_3 : i32 to vector<1x256xi32>
    %18 = arith.cmpi slt, %0, %17 : vector<1x256xi32>
    %c240_i32 = arith.constant 240 : i32
    %19 = vector.broadcast %c240_i32 : i32 to vector<1x256xi32>
    %20 = arith.cmpi sge, %0, %19 : vector<1x256xi32>
    %c0_i32_4 = arith.constant 0 : i32
    %21 = vector.broadcast %c0_i32_4 : i32 to vector<1x256xi32>
    %22 = arith.cmpi eq, %16, %21 : vector<1x256xi32>
    %c15_i32 = arith.constant 15 : i32
    %23 = vector.broadcast %c15_i32 : i32 to vector<1x256xi32>
    %24 = arith.cmpi eq, %16, %23 : vector<1x256xi32>
    %c0 = arith.constant 0 : index
    %25 = memref.load %arg1[%c0] : memref<121xf32, #tpu.memory_space<smem>>
    %c1 = arith.constant 1 : index
    %26 = memref.load %arg1[%c1] : memref<121xf32, #tpu.memory_space<smem>>
    %c2 = arith.constant 2 : index
    %27 = memref.load %arg1[%c2] : memref<121xf32, #tpu.memory_space<smem>>
    %c3 = arith.constant 3 : index
    %28 = memref.load %arg1[%c3] : memref<121xf32, #tpu.memory_space<smem>>
    %c4 = arith.constant 4 : index
    %29 = memref.load %arg1[%c4] : memref<121xf32, #tpu.memory_space<smem>>
    %c5 = arith.constant 5 : index
    %30 = memref.load %arg1[%c5] : memref<121xf32, #tpu.memory_space<smem>>
    %c6 = arith.constant 6 : index
    %31 = memref.load %arg1[%c6] : memref<121xf32, #tpu.memory_space<smem>>
    %c7 = arith.constant 7 : index
    %32 = memref.load %arg1[%c7] : memref<121xf32, #tpu.memory_space<smem>>
    %c8 = arith.constant 8 : index
    %33 = memref.load %arg1[%c8] : memref<121xf32, #tpu.memory_space<smem>>
    %c9 = arith.constant 9 : index
    %34 = memref.load %arg1[%c9] : memref<121xf32, #tpu.memory_space<smem>>
    %c10 = arith.constant 10 : index
    %35 = memref.load %arg1[%c10] : memref<121xf32, #tpu.memory_space<smem>>
    %c11 = arith.constant 11 : index
    %36 = memref.load %arg1[%c11] : memref<121xf32, #tpu.memory_space<smem>>
    %c12 = arith.constant 12 : index
    %37 = memref.load %arg1[%c12] : memref<121xf32, #tpu.memory_space<smem>>
    %c13 = arith.constant 13 : index
    %38 = memref.load %arg1[%c13] : memref<121xf32, #tpu.memory_space<smem>>
    %c14 = arith.constant 14 : index
    %39 = memref.load %arg1[%c14] : memref<121xf32, #tpu.memory_space<smem>>
    %c15 = arith.constant 15 : index
    %40 = memref.load %arg1[%c15] : memref<121xf32, #tpu.memory_space<smem>>
    %c16 = arith.constant 16 : index
    %41 = memref.load %arg1[%c16] : memref<121xf32, #tpu.memory_space<smem>>
    %c17 = arith.constant 17 : index
    %42 = memref.load %arg1[%c17] : memref<121xf32, #tpu.memory_space<smem>>
    %c18 = arith.constant 18 : index
    %43 = memref.load %arg1[%c18] : memref<121xf32, #tpu.memory_space<smem>>
    %c19 = arith.constant 19 : index
    %44 = memref.load %arg1[%c19] : memref<121xf32, #tpu.memory_space<smem>>
    %c20 = arith.constant 20 : index
    %45 = memref.load %arg1[%c20] : memref<121xf32, #tpu.memory_space<smem>>
    %c21 = arith.constant 21 : index
    %46 = memref.load %arg1[%c21] : memref<121xf32, #tpu.memory_space<smem>>
    %c22 = arith.constant 22 : index
    %47 = memref.load %arg1[%c22] : memref<121xf32, #tpu.memory_space<smem>>
    %c23 = arith.constant 23 : index
    %48 = memref.load %arg1[%c23] : memref<121xf32, #tpu.memory_space<smem>>
    %c24 = arith.constant 24 : index
    %49 = memref.load %arg1[%c24] : memref<121xf32, #tpu.memory_space<smem>>
    %c25 = arith.constant 25 : index
    %50 = memref.load %arg1[%c25] : memref<121xf32, #tpu.memory_space<smem>>
    %c26 = arith.constant 26 : index
    %51 = memref.load %arg1[%c26] : memref<121xf32, #tpu.memory_space<smem>>
    %c27 = arith.constant 27 : index
    %52 = memref.load %arg1[%c27] : memref<121xf32, #tpu.memory_space<smem>>
    %c28 = arith.constant 28 : index
    %53 = memref.load %arg1[%c28] : memref<121xf32, #tpu.memory_space<smem>>
    %c29 = arith.constant 29 : index
    %54 = memref.load %arg1[%c29] : memref<121xf32, #tpu.memory_space<smem>>
    %c30 = arith.constant 30 : index
    %55 = memref.load %arg1[%c30] : memref<121xf32, #tpu.memory_space<smem>>
    %c31 = arith.constant 31 : index
    %56 = memref.load %arg1[%c31] : memref<121xf32, #tpu.memory_space<smem>>
    %c32 = arith.constant 32 : index
    %57 = memref.load %arg1[%c32] : memref<121xf32, #tpu.memory_space<smem>>
    %c33 = arith.constant 33 : index
    %58 = memref.load %arg1[%c33] : memref<121xf32, #tpu.memory_space<smem>>
    %c34 = arith.constant 34 : index
    %59 = memref.load %arg1[%c34] : memref<121xf32, #tpu.memory_space<smem>>
    %c35 = arith.constant 35 : index
    %60 = memref.load %arg1[%c35] : memref<121xf32, #tpu.memory_space<smem>>
    %c36 = arith.constant 36 : index
    %61 = memref.load %arg1[%c36] : memref<121xf32, #tpu.memory_space<smem>>
    %c37 = arith.constant 37 : index
    %62 = memref.load %arg1[%c37] : memref<121xf32, #tpu.memory_space<smem>>
    %c38 = arith.constant 38 : index
    %63 = memref.load %arg1[%c38] : memref<121xf32, #tpu.memory_space<smem>>
    %c39 = arith.constant 39 : index
    %64 = memref.load %arg1[%c39] : memref<121xf32, #tpu.memory_space<smem>>
    %c40 = arith.constant 40 : index
    %65 = memref.load %arg1[%c40] : memref<121xf32, #tpu.memory_space<smem>>
    %c41 = arith.constant 41 : index
    %66 = memref.load %arg1[%c41] : memref<121xf32, #tpu.memory_space<smem>>
    %c42 = arith.constant 42 : index
    %67 = memref.load %arg1[%c42] : memref<121xf32, #tpu.memory_space<smem>>
    %c43 = arith.constant 43 : index
    %68 = memref.load %arg1[%c43] : memref<121xf32, #tpu.memory_space<smem>>
    %c44 = arith.constant 44 : index
    %69 = memref.load %arg1[%c44] : memref<121xf32, #tpu.memory_space<smem>>
    %c45 = arith.constant 45 : index
    %70 = memref.load %arg1[%c45] : memref<121xf32, #tpu.memory_space<smem>>
    %c46 = arith.constant 46 : index
    %71 = memref.load %arg1[%c46] : memref<121xf32, #tpu.memory_space<smem>>
    %c47 = arith.constant 47 : index
    %72 = memref.load %arg1[%c47] : memref<121xf32, #tpu.memory_space<smem>>
    %c48 = arith.constant 48 : index
    %73 = memref.load %arg1[%c48] : memref<121xf32, #tpu.memory_space<smem>>
    %c49 = arith.constant 49 : index
    %74 = memref.load %arg1[%c49] : memref<121xf32, #tpu.memory_space<smem>>
    %c50 = arith.constant 50 : index
    %75 = memref.load %arg1[%c50] : memref<121xf32, #tpu.memory_space<smem>>
    %c51 = arith.constant 51 : index
    %76 = memref.load %arg1[%c51] : memref<121xf32, #tpu.memory_space<smem>>
    %c52 = arith.constant 52 : index
    %77 = memref.load %arg1[%c52] : memref<121xf32, #tpu.memory_space<smem>>
    %c53 = arith.constant 53 : index
    %78 = memref.load %arg1[%c53] : memref<121xf32, #tpu.memory_space<smem>>
    %c54 = arith.constant 54 : index
    %79 = memref.load %arg1[%c54] : memref<121xf32, #tpu.memory_space<smem>>
    %c55 = arith.constant 55 : index
    %80 = memref.load %arg1[%c55] : memref<121xf32, #tpu.memory_space<smem>>
    %c56 = arith.constant 56 : index
    %81 = memref.load %arg1[%c56] : memref<121xf32, #tpu.memory_space<smem>>
    %c57 = arith.constant 57 : index
    %82 = memref.load %arg1[%c57] : memref<121xf32, #tpu.memory_space<smem>>
    %c58 = arith.constant 58 : index
    %83 = memref.load %arg1[%c58] : memref<121xf32, #tpu.memory_space<smem>>
    %c59 = arith.constant 59 : index
    %84 = memref.load %arg1[%c59] : memref<121xf32, #tpu.memory_space<smem>>
    %c60 = arith.constant 60 : index
    %85 = memref.load %arg1[%c60] : memref<121xf32, #tpu.memory_space<smem>>
    %c61 = arith.constant 61 : index
    %86 = memref.load %arg1[%c61] : memref<121xf32, #tpu.memory_space<smem>>
    %c62 = arith.constant 62 : index
    %87 = memref.load %arg1[%c62] : memref<121xf32, #tpu.memory_space<smem>>
    %c63 = arith.constant 63 : index
    %88 = memref.load %arg1[%c63] : memref<121xf32, #tpu.memory_space<smem>>
    %c64 = arith.constant 64 : index
    %89 = memref.load %arg1[%c64] : memref<121xf32, #tpu.memory_space<smem>>
    %c65 = arith.constant 65 : index
    %90 = memref.load %arg1[%c65] : memref<121xf32, #tpu.memory_space<smem>>
    %c66 = arith.constant 66 : index
    %91 = memref.load %arg1[%c66] : memref<121xf32, #tpu.memory_space<smem>>
    %c67 = arith.constant 67 : index
    %92 = memref.load %arg1[%c67] : memref<121xf32, #tpu.memory_space<smem>>
    %c68 = arith.constant 68 : index
    %93 = memref.load %arg1[%c68] : memref<121xf32, #tpu.memory_space<smem>>
    %c69 = arith.constant 69 : index
    %94 = memref.load %arg1[%c69] : memref<121xf32, #tpu.memory_space<smem>>
    %c70 = arith.constant 70 : index
    %95 = memref.load %arg1[%c70] : memref<121xf32, #tpu.memory_space<smem>>
    %c71 = arith.constant 71 : index
    %96 = memref.load %arg1[%c71] : memref<121xf32, #tpu.memory_space<smem>>
    %c74 = arith.constant 74 : index
    %97 = memref.load %arg1[%c74] : memref<121xf32, #tpu.memory_space<smem>>
    %c75 = arith.constant 75 : index
    %98 = memref.load %arg1[%c75] : memref<121xf32, #tpu.memory_space<smem>>
    %c76 = arith.constant 76 : index
    %99 = memref.load %arg1[%c76] : memref<121xf32, #tpu.memory_space<smem>>
    %c77 = arith.constant 77 : index
    %100 = memref.load %arg1[%c77] : memref<121xf32, #tpu.memory_space<smem>>
    %c78 = arith.constant 78 : index
    %101 = memref.load %arg1[%c78] : memref<121xf32, #tpu.memory_space<smem>>
    %c79 = arith.constant 79 : index
    %102 = memref.load %arg1[%c79] : memref<121xf32, #tpu.memory_space<smem>>
    %c80 = arith.constant 80 : index
    %103 = memref.load %arg1[%c80] : memref<121xf32, #tpu.memory_space<smem>>
    %c81 = arith.constant 81 : index
    %104 = memref.load %arg1[%c81] : memref<121xf32, #tpu.memory_space<smem>>
    %c82 = arith.constant 82 : index
    %105 = memref.load %arg1[%c82] : memref<121xf32, #tpu.memory_space<smem>>
    %c83 = arith.constant 83 : index
    %106 = memref.load %arg1[%c83] : memref<121xf32, #tpu.memory_space<smem>>
    %c84 = arith.constant 84 : index
    %107 = memref.load %arg1[%c84] : memref<121xf32, #tpu.memory_space<smem>>
    %c85 = arith.constant 85 : index
    %108 = memref.load %arg1[%c85] : memref<121xf32, #tpu.memory_space<smem>>
    %c86 = arith.constant 86 : index
    %109 = memref.load %arg1[%c86] : memref<121xf32, #tpu.memory_space<smem>>
    %c87 = arith.constant 87 : index
    %110 = memref.load %arg1[%c87] : memref<121xf32, #tpu.memory_space<smem>>
    %c88 = arith.constant 88 : index
    %111 = memref.load %arg1[%c88] : memref<121xf32, #tpu.memory_space<smem>>
    %c89 = arith.constant 89 : index
    %112 = memref.load %arg1[%c89] : memref<121xf32, #tpu.memory_space<smem>>
    %c90 = arith.constant 90 : index
    %113 = memref.load %arg1[%c90] : memref<121xf32, #tpu.memory_space<smem>>
    %c91 = arith.constant 91 : index
    %114 = memref.load %arg1[%c91] : memref<121xf32, #tpu.memory_space<smem>>
    %c92 = arith.constant 92 : index
    %115 = memref.load %arg1[%c92] : memref<121xf32, #tpu.memory_space<smem>>
    %c93 = arith.constant 93 : index
    %116 = memref.load %arg1[%c93] : memref<121xf32, #tpu.memory_space<smem>>
    %c94 = arith.constant 94 : index
    %117 = memref.load %arg1[%c94] : memref<121xf32, #tpu.memory_space<smem>>
    %c95 = arith.constant 95 : index
    %118 = memref.load %arg1[%c95] : memref<121xf32, #tpu.memory_space<smem>>
    %c96 = arith.constant 96 : index
    %119 = memref.load %arg1[%c96] : memref<121xf32, #tpu.memory_space<smem>>
    %c97 = arith.constant 97 : index
    %120 = memref.load %arg1[%c97] : memref<121xf32, #tpu.memory_space<smem>>
    %c98 = arith.constant 98 : index
    %121 = memref.load %arg1[%c98] : memref<121xf32, #tpu.memory_space<smem>>
    %c99 = arith.constant 99 : index
    %122 = memref.load %arg1[%c99] : memref<121xf32, #tpu.memory_space<smem>>
    %c100 = arith.constant 100 : index
    %123 = memref.load %arg1[%c100] : memref<121xf32, #tpu.memory_space<smem>>
    %c101 = arith.constant 101 : index
    %124 = memref.load %arg1[%c101] : memref<121xf32, #tpu.memory_space<smem>>
    %c102 = arith.constant 102 : index
    %125 = memref.load %arg1[%c102] : memref<121xf32, #tpu.memory_space<smem>>
    %c103 = arith.constant 103 : index
    %126 = memref.load %arg1[%c103] : memref<121xf32, #tpu.memory_space<smem>>
    %c104 = arith.constant 104 : index
    %127 = memref.load %arg1[%c104] : memref<121xf32, #tpu.memory_space<smem>>
    %c105 = arith.constant 105 : index
    %128 = memref.load %arg1[%c105] : memref<121xf32, #tpu.memory_space<smem>>
    %c106 = arith.constant 106 : index
    %129 = memref.load %arg1[%c106] : memref<121xf32, #tpu.memory_space<smem>>
    %c107 = arith.constant 107 : index
    %130 = memref.load %arg1[%c107] : memref<121xf32, #tpu.memory_space<smem>>
    %c108 = arith.constant 108 : index
    %131 = memref.load %arg1[%c108] : memref<121xf32, #tpu.memory_space<smem>>
    %c109 = arith.constant 109 : index
    %132 = memref.load %arg1[%c109] : memref<121xf32, #tpu.memory_space<smem>>
    %c72 = arith.constant 72 : index
    %133 = memref.load %arg1[%c72] : memref<121xf32, #tpu.memory_space<smem>>
    %c73 = arith.constant 73 : index
    %134 = memref.load %arg1[%c73] : memref<121xf32, #tpu.memory_space<smem>>
    %c110 = arith.constant 110 : index
    %135 = memref.load %arg1[%c110] : memref<121xf32, #tpu.memory_space<smem>>
    %c111 = arith.constant 111 : index
    %136 = memref.load %arg1[%c111] : memref<121xf32, #tpu.memory_space<smem>>
    %c112 = arith.constant 112 : index
    %137 = memref.load %arg1[%c112] : memref<121xf32, #tpu.memory_space<smem>>
    %c113 = arith.constant 113 : index
    %138 = memref.load %arg1[%c113] : memref<121xf32, #tpu.memory_space<smem>>
    %c114 = arith.constant 114 : index
    %139 = memref.load %arg1[%c114] : memref<121xf32, #tpu.memory_space<smem>>
    %cst = arith.constant 0.000000e+00 : f32
    %140 = vector.broadcast %cst : f32 to vector<1x1xf32>
    %c0_5 = arith.constant 0 : index
    %c0_6 = arith.constant 0 : index
    %141 = vector.load %arg0[%c0_5, %c0_6] : memref<8x256xf32, #tpu.memory_space<vmem>>, vector<1x256xf32>
    %c1_7 = arith.constant 1 : index
    %c0_8 = arith.constant 0 : index
    %142 = vector.load %arg0[%c1_7, %c0_8] : memref<8x256xf32, #tpu.memory_space<vmem>>, vector<1x256xf32>
    %c2_9 = arith.constant 2 : index
    %c0_10 = arith.constant 0 : index
    %143 = vector.load %arg0[%c2_9, %c0_10] : memref<8x256xf32, #tpu.memory_space<vmem>>, vector<1x256xf32>
    %c3_11 = arith.constant 3 : index
    %c0_12 = arith.constant 0 : index
    %144 = vector.load %arg0[%c3_11, %c0_12] : memref<8x256xf32, #tpu.memory_space<vmem>>, vector<1x256xf32>
    %cst_13 = arith.constant 0.000000e+00 : f32
    %145 = vector.broadcast %cst_13 : f32 to vector<1x256xf32>
    %cst_14 = arith.constant 0.000000e+00 : f32
    %146 = vector.broadcast %cst_14 : f32 to vector<1x256xf32>
    %cst_15 = arith.constant 0.000000e+00 : f32
    %147 = vector.broadcast %cst_15 : f32 to vector<1x256xf32>
    %cst_16 = arith.constant 0.000000e+00 : f32
    %148 = vector.broadcast %cst_16 : f32 to vector<1x256xf32>
    %149 = vector.extract_strided_slice %141 {offsets = [0, 240], sizes = [1, 16], strides = [1, 1]} : vector<1x256xf32> to vector<1x16xf32>
    %150 = vector.extract_strided_slice %141 {offsets = [0, 0], sizes = [1, 240], strides = [1, 1]} : vector<1x256xf32> to vector<1x240xf32>
    %151 = tpu.concatenate %149, %150 in 1 : vector<1x16xf32>, vector<1x240xf32> -> vector<1x256xf32>
    %152 = vector.extract_strided_slice %141 {offsets = [0, 16], sizes = [1, 240], strides = [1, 1]} : vector<1x256xf32> to vector<1x240xf32>
    %153 = vector.extract_strided_slice %141 {offsets = [0, 0], sizes = [1, 16], strides = [1, 1]} : vector<1x256xf32> to vector<1x16xf32>
    %154 = tpu.concatenate %152, %153 in 1 : vector<1x240xf32>, vector<1x16xf32> -> vector<1x256xf32>
    %155 = arith.select %18, %154, %151 : vector<1x256xi1>, vector<1x256xf32>
    %156 = arith.select %20, %151, %154 : vector<1x256xi1>, vector<1x256xf32>
    %157 = vector.extract_strided_slice %155 {offsets = [0, 255], sizes = [1, 1], strides = [1, 1]} : vector<1x256xf32> to vector<1x1xf32>
    %158 = vector.extract_strided_slice %155 {offsets = [0, 0], sizes = [1, 255], strides = [1, 1]} : vector<1x256xf32> to vector<1x255xf32>
    %159 = tpu.concatenate %157, %158 in 1 : vector<1x1xf32>, vector<1x255xf32> -> vector<1x256xf32>
    %160 = vector.extract_strided_slice %155 {offsets = [0, 1], sizes = [1, 255], strides = [1, 1]} : vector<1x256xf32> to vector<1x255xf32>
    %161 = vector.extract_strided_slice %155 {offsets = [0, 0], sizes = [1, 1], strides = [1, 1]} : vector<1x256xf32> to vector<1x1xf32>
    %162 = tpu.concatenate %160, %161 in 1 : vector<1x255xf32>, vector<1x1xf32> -> vector<1x256xf32>
    %163 = arith.select %22, %162, %159 : vector<1x256xi1>, vector<1x256xf32>
    %164 = arith.select %24, %159, %162 : vector<1x256xi1>, vector<1x256xf32>
    %165 = vector.broadcast %25 : f32 to vector<1x256xf32>
    %166 = arith.mulf %165, %163 : vector<1x256xf32>
    %167 = arith.addf %145, %166 : vector<1x256xf32>
    %168 = vector.broadcast %26 : f32 to vector<1x256xf32>
    %169 = arith.mulf %168, %163 : vector<1x256xf32>
    %170 = arith.addf %146, %169 : vector<1x256xf32>
    %171 = vector.broadcast %97 : f32 to vector<1x256xf32>
    %172 = arith.mulf %171, %163 : vector<1x256xf32>
    %173 = arith.addf %147, %172 : vector<1x256xf32>
    %174 = vector.broadcast %98 : f32 to vector<1x256xf32>
    %175 = arith.mulf %174, %163 : vector<1x256xf32>
    %176 = arith.addf %148, %175 : vector<1x256xf32>
    %177 = vector.broadcast %33 : f32 to vector<1x256xf32>
    %178 = arith.mulf %177, %155 : vector<1x256xf32>
    %179 = arith.addf %167, %178 : vector<1x256xf32>
    %180 = vector.broadcast %34 : f32 to vector<1x256xf32>
    %181 = arith.mulf %180, %155 : vector<1x256xf32>
    %182 = arith.addf %170, %181 : vector<1x256xf32>
    %183 = vector.broadcast %101 : f32 to vector<1x256xf32>
    %184 = arith.mulf %183, %155 : vector<1x256xf32>
    %185 = arith.addf %173, %184 : vector<1x256xf32>
    %186 = vector.broadcast %102 : f32 to vector<1x256xf32>
    %187 = arith.mulf %186, %155 : vector<1x256xf32>
    %188 = arith.addf %176, %187 : vector<1x256xf32>
    %189 = vector.broadcast %41 : f32 to vector<1x256xf32>
    %190 = arith.mulf %189, %164 : vector<1x256xf32>
    %191 = arith.addf %179, %190 : vector<1x256xf32>
    %192 = vector.broadcast %42 : f32 to vector<1x256xf32>
    %193 = arith.mulf %192, %164 : vector<1x256xf32>
    %194 = arith.addf %182, %193 : vector<1x256xf32>
    %195 = vector.broadcast %105 : f32 to vector<1x256xf32>
    %196 = arith.mulf %195, %164 : vector<1x256xf32>
    %197 = arith.addf %185, %196 : vector<1x256xf32>
    %198 = vector.broadcast %106 : f32 to vector<1x256xf32>
    %199 = arith.mulf %198, %164 : vector<1x256xf32>
    %200 = arith.addf %188, %199 : vector<1x256xf32>
    %201 = vector.extract_strided_slice %141 {offsets = [0, 255], sizes = [1, 1], strides = [1, 1]} : vector<1x256xf32> to vector<1x1xf32>
    %202 = vector.extract_strided_slice %141 {offsets = [0, 0], sizes = [1, 255], strides = [1, 1]} : vector<1x256xf32> to vector<1x255xf32>
    %203 = tpu.concatenate %201, %202 in 1 : vector<1x1xf32>, vector<1x255xf32> -> vector<1x256xf32>
    %204 = vector.extract_strided_slice %141 {offsets = [0, 1], sizes = [1, 255], strides = [1, 1]} : vector<1x256xf32> to vector<1x255xf32>
    %205 = vector.extract_strided_slice %141 {offsets = [0, 0], sizes = [1, 1], strides = [1, 1]} : vector<1x256xf32> to vector<1x1xf32>
    %206 = tpu.concatenate %204, %205 in 1 : vector<1x255xf32>, vector<1x1xf32> -> vector<1x256xf32>
    %207 = arith.select %22, %206, %203 : vector<1x256xi1>, vector<1x256xf32>
    %208 = arith.select %24, %203, %206 : vector<1x256xi1>, vector<1x256xf32>
    %209 = vector.broadcast %49 : f32 to vector<1x256xf32>
    %210 = arith.mulf %209, %207 : vector<1x256xf32>
    %211 = arith.addf %191, %210 : vector<1x256xf32>
    %212 = vector.broadcast %50 : f32 to vector<1x256xf32>
    %213 = arith.mulf %212, %207 : vector<1x256xf32>
    %214 = arith.addf %194, %213 : vector<1x256xf32>
    %215 = vector.broadcast %109 : f32 to vector<1x256xf32>
    %216 = arith.mulf %215, %207 : vector<1x256xf32>
    %217 = arith.addf %197, %216 : vector<1x256xf32>
    %218 = vector.broadcast %110 : f32 to vector<1x256xf32>
    %219 = arith.mulf %218, %207 : vector<1x256xf32>
    %220 = arith.addf %200, %219 : vector<1x256xf32>
    %221 = vector.broadcast %57 : f32 to vector<1x256xf32>
    %222 = arith.mulf %221, %141 : vector<1x256xf32>
    %223 = arith.addf %211, %222 : vector<1x256xf32>
    %224 = vector.broadcast %58 : f32 to vector<1x256xf32>
    %225 = arith.mulf %224, %141 : vector<1x256xf32>
    %226 = arith.addf %214, %225 : vector<1x256xf32>
    %227 = vector.broadcast %113 : f32 to vector<1x256xf32>
    %228 = arith.mulf %227, %141 : vector<1x256xf32>
    %229 = arith.addf %217, %228 : vector<1x256xf32>
    %230 = vector.broadcast %114 : f32 to vector<1x256xf32>
    %231 = arith.mulf %230, %141 : vector<1x256xf32>
    %232 = arith.addf %220, %231 : vector<1x256xf32>
    %233 = vector.broadcast %65 : f32 to vector<1x256xf32>
    %234 = arith.mulf %233, %208 : vector<1x256xf32>
    %235 = arith.addf %223, %234 : vector<1x256xf32>
    %236 = vector.broadcast %66 : f32 to vector<1x256xf32>
    %237 = arith.mulf %236, %208 : vector<1x256xf32>
    %238 = arith.addf %226, %237 : vector<1x256xf32>
    %239 = vector.broadcast %117 : f32 to vector<1x256xf32>
    %240 = arith.mulf %239, %208 : vector<1x256xf32>
    %241 = arith.addf %229, %240 : vector<1x256xf32>
    %242 = vector.broadcast %118 : f32 to vector<1x256xf32>
    %243 = arith.mulf %242, %208 : vector<1x256xf32>
    %244 = arith.addf %232, %243 : vector<1x256xf32>
    %245 = vector.extract_strided_slice %156 {offsets = [0, 255], sizes = [1, 1], strides = [1, 1]} : vector<1x256xf32> to vector<1x1xf32>
    %246 = vector.extract_strided_slice %156 {offsets = [0, 0], sizes = [1, 255], strides = [1, 1]} : vector<1x256xf32> to vector<1x255xf32>
    %247 = tpu.concatenate %245, %246 in 1 : vector<1x1xf32>, vector<1x255xf32> -> vector<1x256xf32>
    %248 = vector.extract_strided_slice %156 {offsets = [0, 1], sizes = [1, 255], strides = [1, 1]} : vector<1x256xf32> to vector<1x255xf32>
    %249 = vector.extract_strided_slice %156 {offsets = [0, 0], sizes = [1, 1], strides = [1, 1]} : vector<1x256xf32> to vector<1x1xf32>
    %250 = tpu.concatenate %248, %249 in 1 : vector<1x255xf32>, vector<1x1xf32> -> vector<1x256xf32>
    %251 = arith.select %22, %250, %247 : vector<1x256xi1>, vector<1x256xf32>
    %252 = arith.select %24, %247, %250 : vector<1x256xi1>, vector<1x256xf32>
    %253 = vector.broadcast %73 : f32 to vector<1x256xf32>
    %254 = arith.mulf %253, %251 : vector<1x256xf32>
    %255 = arith.addf %235, %254 : vector<1x256xf32>
    %256 = vector.broadcast %74 : f32 to vector<1x256xf32>
    %257 = arith.mulf %256, %251 : vector<1x256xf32>
    %258 = arith.addf %238, %257 : vector<1x256xf32>
    %259 = vector.broadcast %121 : f32 to vector<1x256xf32>
    %260 = arith.mulf %259, %251 : vector<1x256xf32>
    %261 = arith.addf %241, %260 : vector<1x256xf32>
    %262 = vector.broadcast %122 : f32 to vector<1x256xf32>
    %263 = arith.mulf %262, %251 : vector<1x256xf32>
    %264 = arith.addf %244, %263 : vector<1x256xf32>
    %265 = vector.broadcast %81 : f32 to vector<1x256xf32>
    %266 = arith.mulf %265, %156 : vector<1x256xf32>
    %267 = arith.addf %255, %266 : vector<1x256xf32>
    %268 = vector.broadcast %82 : f32 to vector<1x256xf32>
    %269 = arith.mulf %268, %156 : vector<1x256xf32>
    %270 = arith.addf %258, %269 : vector<1x256xf32>
    %271 = vector.broadcast %125 : f32 to vector<1x256xf32>
    %272 = arith.mulf %271, %156 : vector<1x256xf32>
    %273 = arith.addf %261, %272 : vector<1x256xf32>
    %274 = vector.broadcast %126 : f32 to vector<1x256xf32>
    %275 = arith.mulf %274, %156 : vector<1x256xf32>
    %276 = arith.addf %264, %275 : vector<1x256xf32>
    %277 = vector.broadcast %89 : f32 to vector<1x256xf32>
    %278 = arith.mulf %277, %252 : vector<1x256xf32>
    %279 = arith.addf %267, %278 : vector<1x256xf32>
    %280 = vector.broadcast %90 : f32 to vector<1x256xf32>
    %281 = arith.mulf %280, %252 : vector<1x256xf32>
    %282 = arith.addf %270, %281 : vector<1x256xf32>
    %283 = vector.broadcast %129 : f32 to vector<1x256xf32>
    %284 = arith.mulf %283, %252 : vector<1x256xf32>
    %285 = arith.addf %273, %284 : vector<1x256xf32>
    %286 = vector.broadcast %130 : f32 to vector<1x256xf32>
    %287 = arith.mulf %286, %252 : vector<1x256xf32>
    %288 = arith.addf %276, %287 : vector<1x256xf32>
    %289 = vector.extract_strided_slice %142 {offsets = [0, 240], sizes = [1, 16], strides = [1, 1]} : vector<1x256xf32> to vector<1x16xf32>
    %290 = vector.extract_strided_slice %142 {offsets = [0, 0], sizes = [1, 240], strides = [1, 1]} : vector<1x256xf32> to vector<1x240xf32>
    %291 = tpu.concatenate %289, %290 in 1 : vector<1x16xf32>, vector<1x240xf32> -> vector<1x256xf32>
    %292 = vector.extract_strided_slice %142 {offsets = [0, 16], sizes = [1, 240], strides = [1, 1]} : vector<1x256xf32> to vector<1x240xf32>
    %293 = vector.extract_strided_slice %142 {offsets = [0, 0], sizes = [1, 16], strides = [1, 1]} : vector<1x256xf32> to vector<1x16xf32>
    %294 = tpu.concatenate %292, %293 in 1 : vector<1x240xf32>, vector<1x16xf32> -> vector<1x256xf32>
    %295 = arith.select %18, %294, %291 : vector<1x256xi1>, vector<1x256xf32>
    %296 = arith.select %20, %291, %294 : vector<1x256xi1>, vector<1x256xf32>
    %297 = vector.extract_strided_slice %295 {offsets = [0, 255], sizes = [1, 1], strides = [1, 1]} : vector<1x256xf32> to vector<1x1xf32>
    %298 = vector.extract_strided_slice %295 {offsets = [0, 0], sizes = [1, 255], strides = [1, 1]} : vector<1x256xf32> to vector<1x255xf32>
    %299 = tpu.concatenate %297, %298 in 1 : vector<1x1xf32>, vector<1x255xf32> -> vector<1x256xf32>
    %300 = vector.extract_strided_slice %295 {offsets = [0, 1], sizes = [1, 255], strides = [1, 1]} : vector<1x256xf32> to vector<1x255xf32>
    %301 = vector.extract_strided_slice %295 {offsets = [0, 0], sizes = [1, 1], strides = [1, 1]} : vector<1x256xf32> to vector<1x1xf32>
    %302 = tpu.concatenate %300, %301 in 1 : vector<1x255xf32>, vector<1x1xf32> -> vector<1x256xf32>
    %303 = arith.select %22, %302, %299 : vector<1x256xi1>, vector<1x256xf32>
    %304 = arith.select %24, %299, %302 : vector<1x256xi1>, vector<1x256xf32>
    %305 = vector.broadcast %27 : f32 to vector<1x256xf32>
    %306 = arith.mulf %305, %303 : vector<1x256xf32>
    %307 = arith.addf %279, %306 : vector<1x256xf32>
    %308 = vector.broadcast %28 : f32 to vector<1x256xf32>
    %309 = arith.mulf %308, %303 : vector<1x256xf32>
    %310 = arith.addf %282, %309 : vector<1x256xf32>
    %311 = vector.broadcast %99 : f32 to vector<1x256xf32>
    %312 = arith.mulf %311, %303 : vector<1x256xf32>
    %313 = arith.addf %285, %312 : vector<1x256xf32>
    %314 = vector.broadcast %100 : f32 to vector<1x256xf32>
    %315 = arith.mulf %314, %303 : vector<1x256xf32>
    %316 = arith.addf %288, %315 : vector<1x256xf32>
    %317 = vector.broadcast %35 : f32 to vector<1x256xf32>
    %318 = arith.mulf %317, %295 : vector<1x256xf32>
    %319 = arith.addf %307, %318 : vector<1x256xf32>
    %320 = vector.broadcast %36 : f32 to vector<1x256xf32>
    %321 = arith.mulf %320, %295 : vector<1x256xf32>
    %322 = arith.addf %310, %321 : vector<1x256xf32>
    %323 = vector.broadcast %103 : f32 to vector<1x256xf32>
    %324 = arith.mulf %323, %295 : vector<1x256xf32>
    %325 = arith.addf %313, %324 : vector<1x256xf32>
    %326 = vector.broadcast %104 : f32 to vector<1x256xf32>
    %327 = arith.mulf %326, %295 : vector<1x256xf32>
    %328 = arith.addf %316, %327 : vector<1x256xf32>
    %329 = vector.broadcast %43 : f32 to vector<1x256xf32>
    %330 = arith.mulf %329, %304 : vector<1x256xf32>
    %331 = arith.addf %319, %330 : vector<1x256xf32>
    %332 = vector.broadcast %44 : f32 to vector<1x256xf32>
    %333 = arith.mulf %332, %304 : vector<1x256xf32>
    %334 = arith.addf %322, %333 : vector<1x256xf32>
    %335 = vector.broadcast %107 : f32 to vector<1x256xf32>
    %336 = arith.mulf %335, %304 : vector<1x256xf32>
    %337 = arith.addf %325, %336 : vector<1x256xf32>
    %338 = vector.broadcast %108 : f32 to vector<1x256xf32>
    %339 = arith.mulf %338, %304 : vector<1x256xf32>
    %340 = arith.addf %328, %339 : vector<1x256xf32>
    %341 = vector.extract_strided_slice %142 {offsets = [0, 255], sizes = [1, 1], strides = [1, 1]} : vector<1x256xf32> to vector<1x1xf32>
    %342 = vector.extract_strided_slice %142 {offsets = [0, 0], sizes = [1, 255], strides = [1, 1]} : vector<1x256xf32> to vector<1x255xf32>
    %343 = tpu.concatenate %341, %342 in 1 : vector<1x1xf32>, vector<1x255xf32> -> vector<1x256xf32>
    %344 = vector.extract_strided_slice %142 {offsets = [0, 1], sizes = [1, 255], strides = [1, 1]} : vector<1x256xf32> to vector<1x255xf32>
    %345 = vector.extract_strided_slice %142 {offsets = [0, 0], sizes = [1, 1], strides = [1, 1]} : vector<1x256xf32> to vector<1x1xf32>
    %346 = tpu.concatenate %344, %345 in 1 : vector<1x255xf32>, vector<1x1xf32> -> vector<1x256xf32>
    %347 = arith.select %22, %346, %343 : vector<1x256xi1>, vector<1x256xf32>
    %348 = arith.select %24, %343, %346 : vector<1x256xi1>, vector<1x256xf32>
    %349 = vector.broadcast %51 : f32 to vector<1x256xf32>
    %350 = arith.mulf %349, %347 : vector<1x256xf32>
    %351 = arith.addf %331, %350 : vector<1x256xf32>
    %352 = vector.broadcast %52 : f32 to vector<1x256xf32>
    %353 = arith.mulf %352, %347 : vector<1x256xf32>
    %354 = arith.addf %334, %353 : vector<1x256xf32>
    %355 = vector.broadcast %111 : f32 to vector<1x256xf32>
    %356 = arith.mulf %355, %347 : vector<1x256xf32>
    %357 = arith.addf %337, %356 : vector<1x256xf32>
    %358 = vector.broadcast %112 : f32 to vector<1x256xf32>
    %359 = arith.mulf %358, %347 : vector<1x256xf32>
    %360 = arith.addf %340, %359 : vector<1x256xf32>
    %361 = vector.broadcast %59 : f32 to vector<1x256xf32>
    %362 = arith.mulf %361, %142 : vector<1x256xf32>
    %363 = arith.addf %351, %362 : vector<1x256xf32>
    %364 = vector.broadcast %60 : f32 to vector<1x256xf32>
    %365 = arith.mulf %364, %142 : vector<1x256xf32>
    %366 = arith.addf %354, %365 : vector<1x256xf32>
    %367 = vector.broadcast %115 : f32 to vector<1x256xf32>
    %368 = arith.mulf %367, %142 : vector<1x256xf32>
    %369 = arith.addf %357, %368 : vector<1x256xf32>
    %370 = vector.broadcast %116 : f32 to vector<1x256xf32>
    %371 = arith.mulf %370, %142 : vector<1x256xf32>
    %372 = arith.addf %360, %371 : vector<1x256xf32>
    %373 = vector.broadcast %67 : f32 to vector<1x256xf32>
    %374 = arith.mulf %373, %348 : vector<1x256xf32>
    %375 = arith.addf %363, %374 : vector<1x256xf32>
    %376 = vector.broadcast %68 : f32 to vector<1x256xf32>
    %377 = arith.mulf %376, %348 : vector<1x256xf32>
    %378 = arith.addf %366, %377 : vector<1x256xf32>
    %379 = vector.broadcast %119 : f32 to vector<1x256xf32>
    %380 = arith.mulf %379, %348 : vector<1x256xf32>
    %381 = arith.addf %369, %380 : vector<1x256xf32>
    %382 = vector.broadcast %120 : f32 to vector<1x256xf32>
    %383 = arith.mulf %382, %348 : vector<1x256xf32>
    %384 = arith.addf %372, %383 : vector<1x256xf32>
    %385 = vector.extract_strided_slice %296 {offsets = [0, 255], sizes = [1, 1], strides = [1, 1]} : vector<1x256xf32> to vector<1x1xf32>
    %386 = vector.extract_strided_slice %296 {offsets = [0, 0], sizes = [1, 255], strides = [1, 1]} : vector<1x256xf32> to vector<1x255xf32>
    %387 = tpu.concatenate %385, %386 in 1 : vector<1x1xf32>, vector<1x255xf32> -> vector<1x256xf32>
    %388 = vector.extract_strided_slice %296 {offsets = [0, 1], sizes = [1, 255], strides = [1, 1]} : vector<1x256xf32> to vector<1x255xf32>
    %389 = vector.extract_strided_slice %296 {offsets = [0, 0], sizes = [1, 1], strides = [1, 1]} : vector<1x256xf32> to vector<1x1xf32>
    %390 = tpu.concatenate %388, %389 in 1 : vector<1x255xf32>, vector<1x1xf32> -> vector<1x256xf32>
    %391 = arith.select %22, %390, %387 : vector<1x256xi1>, vector<1x256xf32>
    %392 = arith.select %24, %387, %390 : vector<1x256xi1>, vector<1x256xf32>
    %393 = vector.broadcast %75 : f32 to vector<1x256xf32>
    %394 = arith.mulf %393, %391 : vector<1x256xf32>
    %395 = arith.addf %375, %394 : vector<1x256xf32>
    %396 = vector.broadcast %76 : f32 to vector<1x256xf32>
    %397 = arith.mulf %396, %391 : vector<1x256xf32>
    %398 = arith.addf %378, %397 : vector<1x256xf32>
    %399 = vector.broadcast %123 : f32 to vector<1x256xf32>
    %400 = arith.mulf %399, %391 : vector<1x256xf32>
    %401 = arith.addf %381, %400 : vector<1x256xf32>
    %402 = vector.broadcast %124 : f32 to vector<1x256xf32>
    %403 = arith.mulf %402, %391 : vector<1x256xf32>
    %404 = arith.addf %384, %403 : vector<1x256xf32>
    %405 = vector.broadcast %83 : f32 to vector<1x256xf32>
    %406 = arith.mulf %405, %296 : vector<1x256xf32>
    %407 = arith.addf %395, %406 : vector<1x256xf32>
    %408 = vector.broadcast %84 : f32 to vector<1x256xf32>
    %409 = arith.mulf %408, %296 : vector<1x256xf32>
    %410 = arith.addf %398, %409 : vector<1x256xf32>
    %411 = vector.broadcast %127 : f32 to vector<1x256xf32>
    %412 = arith.mulf %411, %296 : vector<1x256xf32>
    %413 = arith.addf %401, %412 : vector<1x256xf32>
    %414 = vector.broadcast %128 : f32 to vector<1x256xf32>
    %415 = arith.mulf %414, %296 : vector<1x256xf32>
    %416 = arith.addf %404, %415 : vector<1x256xf32>
    %417 = vector.broadcast %91 : f32 to vector<1x256xf32>
    %418 = arith.mulf %417, %392 : vector<1x256xf32>
    %419 = arith.addf %407, %418 : vector<1x256xf32>
    %420 = vector.broadcast %92 : f32 to vector<1x256xf32>
    %421 = arith.mulf %420, %392 : vector<1x256xf32>
    %422 = arith.addf %410, %421 : vector<1x256xf32>
    %423 = vector.broadcast %131 : f32 to vector<1x256xf32>
    %424 = arith.mulf %423, %392 : vector<1x256xf32>
    %425 = arith.addf %413, %424 : vector<1x256xf32>
    %426 = vector.broadcast %132 : f32 to vector<1x256xf32>
    %427 = arith.mulf %426, %392 : vector<1x256xf32>
    %428 = arith.addf %416, %427 : vector<1x256xf32>
    %429 = vector.extract_strided_slice %143 {offsets = [0, 240], sizes = [1, 16], strides = [1, 1]} : vector<1x256xf32> to vector<1x16xf32>
    %430 = vector.extract_strided_slice %143 {offsets = [0, 0], sizes = [1, 240], strides = [1, 1]} : vector<1x256xf32> to vector<1x240xf32>
    %431 = tpu.concatenate %429, %430 in 1 : vector<1x16xf32>, vector<1x240xf32> -> vector<1x256xf32>
    %432 = vector.extract_strided_slice %143 {offsets = [0, 16], sizes = [1, 240], strides = [1, 1]} : vector<1x256xf32> to vector<1x240xf32>
    %433 = vector.extract_strided_slice %143 {offsets = [0, 0], sizes = [1, 16], strides = [1, 1]} : vector<1x256xf32> to vector<1x16xf32>
    %434 = tpu.concatenate %432, %433 in 1 : vector<1x240xf32>, vector<1x16xf32> -> vector<1x256xf32>
    %435 = arith.select %18, %434, %431 : vector<1x256xi1>, vector<1x256xf32>
    %436 = arith.select %20, %431, %434 : vector<1x256xi1>, vector<1x256xf32>
    %437 = vector.extract_strided_slice %435 {offsets = [0, 255], sizes = [1, 1], strides = [1, 1]} : vector<1x256xf32> to vector<1x1xf32>
    %438 = vector.extract_strided_slice %435 {offsets = [0, 0], sizes = [1, 255], strides = [1, 1]} : vector<1x256xf32> to vector<1x255xf32>
    %439 = tpu.concatenate %437, %438 in 1 : vector<1x1xf32>, vector<1x255xf32> -> vector<1x256xf32>
    %440 = vector.extract_strided_slice %435 {offsets = [0, 1], sizes = [1, 255], strides = [1, 1]} : vector<1x256xf32> to vector<1x255xf32>
    %441 = vector.extract_strided_slice %435 {offsets = [0, 0], sizes = [1, 1], strides = [1, 1]} : vector<1x256xf32> to vector<1x1xf32>
    %442 = tpu.concatenate %440, %441 in 1 : vector<1x255xf32>, vector<1x1xf32> -> vector<1x256xf32>
    %443 = arith.select %22, %442, %439 : vector<1x256xi1>, vector<1x256xf32>
    %444 = arith.select %24, %439, %442 : vector<1x256xi1>, vector<1x256xf32>
    %445 = vector.broadcast %29 : f32 to vector<1x256xf32>
    %446 = arith.mulf %445, %443 : vector<1x256xf32>
    %447 = arith.addf %419, %446 : vector<1x256xf32>
    %448 = vector.broadcast %30 : f32 to vector<1x256xf32>
    %449 = arith.mulf %448, %443 : vector<1x256xf32>
    %450 = arith.addf %422, %449 : vector<1x256xf32>
    %451 = vector.broadcast %37 : f32 to vector<1x256xf32>
    %452 = arith.mulf %451, %435 : vector<1x256xf32>
    %453 = arith.addf %447, %452 : vector<1x256xf32>
    %454 = vector.broadcast %38 : f32 to vector<1x256xf32>
    %455 = arith.mulf %454, %435 : vector<1x256xf32>
    %456 = arith.addf %450, %455 : vector<1x256xf32>
    %457 = vector.broadcast %45 : f32 to vector<1x256xf32>
    %458 = arith.mulf %457, %444 : vector<1x256xf32>
    %459 = arith.addf %453, %458 : vector<1x256xf32>
    %460 = vector.broadcast %46 : f32 to vector<1x256xf32>
    %461 = arith.mulf %460, %444 : vector<1x256xf32>
    %462 = arith.addf %456, %461 : vector<1x256xf32>
    %463 = vector.extract_strided_slice %143 {offsets = [0, 255], sizes = [1, 1], strides = [1, 1]} : vector<1x256xf32> to vector<1x1xf32>
    %464 = vector.extract_strided_slice %143 {offsets = [0, 0], sizes = [1, 255], strides = [1, 1]} : vector<1x256xf32> to vector<1x255xf32>
    %465 = tpu.concatenate %463, %464 in 1 : vector<1x1xf32>, vector<1x255xf32> -> vector<1x256xf32>
    %466 = vector.extract_strided_slice %143 {offsets = [0, 1], sizes = [1, 255], strides = [1, 1]} : vector<1x256xf32> to vector<1x255xf32>
    %467 = vector.extract_strided_slice %143 {offsets = [0, 0], sizes = [1, 1], strides = [1, 1]} : vector<1x256xf32> to vector<1x1xf32>
    %468 = tpu.concatenate %466, %467 in 1 : vector<1x255xf32>, vector<1x1xf32> -> vector<1x256xf32>
    %469 = arith.select %22, %468, %465 : vector<1x256xi1>, vector<1x256xf32>
    %470 = arith.select %24, %465, %468 : vector<1x256xi1>, vector<1x256xf32>
    %471 = vector.broadcast %53 : f32 to vector<1x256xf32>
    %472 = arith.mulf %471, %469 : vector<1x256xf32>
    %473 = arith.addf %459, %472 : vector<1x256xf32>
    %474 = vector.broadcast %54 : f32 to vector<1x256xf32>
    %475 = arith.mulf %474, %469 : vector<1x256xf32>
    %476 = arith.addf %462, %475 : vector<1x256xf32>
    %477 = vector.broadcast %61 : f32 to vector<1x256xf32>
    %478 = arith.mulf %477, %143 : vector<1x256xf32>
    %479 = arith.addf %473, %478 : vector<1x256xf32>
    %480 = vector.broadcast %62 : f32 to vector<1x256xf32>
    %481 = arith.mulf %480, %143 : vector<1x256xf32>
    %482 = arith.addf %476, %481 : vector<1x256xf32>
    %483 = vector.broadcast %69 : f32 to vector<1x256xf32>
    %484 = arith.mulf %483, %470 : vector<1x256xf32>
    %485 = arith.addf %479, %484 : vector<1x256xf32>
    %486 = vector.broadcast %70 : f32 to vector<1x256xf32>
    %487 = arith.mulf %486, %470 : vector<1x256xf32>
    %488 = arith.addf %482, %487 : vector<1x256xf32>
    %489 = vector.extract_strided_slice %436 {offsets = [0, 255], sizes = [1, 1], strides = [1, 1]} : vector<1x256xf32> to vector<1x1xf32>
    %490 = vector.extract_strided_slice %436 {offsets = [0, 0], sizes = [1, 255], strides = [1, 1]} : vector<1x256xf32> to vector<1x255xf32>
    %491 = tpu.concatenate %489, %490 in 1 : vector<1x1xf32>, vector<1x255xf32> -> vector<1x256xf32>
    %492 = vector.extract_strided_slice %436 {offsets = [0, 1], sizes = [1, 255], strides = [1, 1]} : vector<1x256xf32> to vector<1x255xf32>
    %493 = vector.extract_strided_slice %436 {offsets = [0, 0], sizes = [1, 1], strides = [1, 1]} : vector<1x256xf32> to vector<1x1xf32>
    %494 = tpu.concatenate %492, %493 in 1 : vector<1x255xf32>, vector<1x1xf32> -> vector<1x256xf32>
    %495 = arith.select %22, %494, %491 : vector<1x256xi1>, vector<1x256xf32>
    %496 = arith.select %24, %491, %494 : vector<1x256xi1>, vector<1x256xf32>
    %497 = vector.broadcast %77 : f32 to vector<1x256xf32>
    %498 = arith.mulf %497, %495 : vector<1x256xf32>
    %499 = arith.addf %485, %498 : vector<1x256xf32>
    %500 = vector.broadcast %78 : f32 to vector<1x256xf32>
    %501 = arith.mulf %500, %495 : vector<1x256xf32>
    %502 = arith.addf %488, %501 : vector<1x256xf32>
    %503 = vector.broadcast %85 : f32 to vector<1x256xf32>
    %504 = arith.mulf %503, %436 : vector<1x256xf32>
    %505 = arith.addf %499, %504 : vector<1x256xf32>
    %506 = vector.broadcast %86 : f32 to vector<1x256xf32>
    %507 = arith.mulf %506, %436 : vector<1x256xf32>
    %508 = arith.addf %502, %507 : vector<1x256xf32>
    %509 = vector.broadcast %93 : f32 to vector<1x256xf32>
    %510 = arith.mulf %509, %496 : vector<1x256xf32>
    %511 = arith.addf %505, %510 : vector<1x256xf32>
    %512 = vector.broadcast %94 : f32 to vector<1x256xf32>
    %513 = arith.mulf %512, %496 : vector<1x256xf32>
    %514 = arith.addf %508, %513 : vector<1x256xf32>
    %515 = vector.extract_strided_slice %144 {offsets = [0, 240], sizes = [1, 16], strides = [1, 1]} : vector<1x256xf32> to vector<1x16xf32>
    %516 = vector.extract_strided_slice %144 {offsets = [0, 0], sizes = [1, 240], strides = [1, 1]} : vector<1x256xf32> to vector<1x240xf32>
    %517 = tpu.concatenate %515, %516 in 1 : vector<1x16xf32>, vector<1x240xf32> -> vector<1x256xf32>
    %518 = vector.extract_strided_slice %144 {offsets = [0, 16], sizes = [1, 240], strides = [1, 1]} : vector<1x256xf32> to vector<1x240xf32>
    %519 = vector.extract_strided_slice %144 {offsets = [0, 0], sizes = [1, 16], strides = [1, 1]} : vector<1x256xf32> to vector<1x16xf32>
    %520 = tpu.concatenate %518, %519 in 1 : vector<1x240xf32>, vector<1x16xf32> -> vector<1x256xf32>
    %521 = arith.select %18, %520, %517 : vector<1x256xi1>, vector<1x256xf32>
    %522 = arith.select %20, %517, %520 : vector<1x256xi1>, vector<1x256xf32>
    %523 = vector.extract_strided_slice %521 {offsets = [0, 255], sizes = [1, 1], strides = [1, 1]} : vector<1x256xf32> to vector<1x1xf32>
    %524 = vector.extract_strided_slice %521 {offsets = [0, 0], sizes = [1, 255], strides = [1, 1]} : vector<1x256xf32> to vector<1x255xf32>
    %525 = tpu.concatenate %523, %524 in 1 : vector<1x1xf32>, vector<1x255xf32> -> vector<1x256xf32>
    %526 = vector.extract_strided_slice %521 {offsets = [0, 1], sizes = [1, 255], strides = [1, 1]} : vector<1x256xf32> to vector<1x255xf32>
    %527 = vector.extract_strided_slice %521 {offsets = [0, 0], sizes = [1, 1], strides = [1, 1]} : vector<1x256xf32> to vector<1x1xf32>
    %528 = tpu.concatenate %526, %527 in 1 : vector<1x255xf32>, vector<1x1xf32> -> vector<1x256xf32>
    %529 = arith.select %22, %528, %525 : vector<1x256xi1>, vector<1x256xf32>
    %530 = arith.select %24, %525, %528 : vector<1x256xi1>, vector<1x256xf32>
    %531 = vector.broadcast %31 : f32 to vector<1x256xf32>
    %532 = arith.mulf %531, %529 : vector<1x256xf32>
    %533 = arith.addf %511, %532 : vector<1x256xf32>
    %534 = vector.broadcast %32 : f32 to vector<1x256xf32>
    %535 = arith.mulf %534, %529 : vector<1x256xf32>
    %536 = arith.addf %514, %535 : vector<1x256xf32>
    %537 = vector.broadcast %39 : f32 to vector<1x256xf32>
    %538 = arith.mulf %537, %521 : vector<1x256xf32>
    %539 = arith.addf %533, %538 : vector<1x256xf32>
    %540 = vector.broadcast %40 : f32 to vector<1x256xf32>
    %541 = arith.mulf %540, %521 : vector<1x256xf32>
    %542 = arith.addf %536, %541 : vector<1x256xf32>
    %543 = vector.broadcast %47 : f32 to vector<1x256xf32>
    %544 = arith.mulf %543, %530 : vector<1x256xf32>
    %545 = arith.addf %539, %544 : vector<1x256xf32>
    %546 = vector.broadcast %48 : f32 to vector<1x256xf32>
    %547 = arith.mulf %546, %530 : vector<1x256xf32>
    %548 = arith.addf %542, %547 : vector<1x256xf32>
    %549 = vector.extract_strided_slice %144 {offsets = [0, 255], sizes = [1, 1], strides = [1, 1]} : vector<1x256xf32> to vector<1x1xf32>
    %550 = vector.extract_strided_slice %144 {offsets = [0, 0], sizes = [1, 255], strides = [1, 1]} : vector<1x256xf32> to vector<1x255xf32>
    %551 = tpu.concatenate %549, %550 in 1 : vector<1x1xf32>, vector<1x255xf32> -> vector<1x256xf32>
    %552 = vector.extract_strided_slice %144 {offsets = [0, 1], sizes = [1, 255], strides = [1, 1]} : vector<1x256xf32> to vector<1x255xf32>
    %553 = vector.extract_strided_slice %144 {offsets = [0, 0], sizes = [1, 1], strides = [1, 1]} : vector<1x256xf32> to vector<1x1xf32>
    %554 = tpu.concatenate %552, %553 in 1 : vector<1x255xf32>, vector<1x1xf32> -> vector<1x256xf32>
    %555 = arith.select %22, %554, %551 : vector<1x256xi1>, vector<1x256xf32>
    %556 = arith.select %24, %551, %554 : vector<1x256xi1>, vector<1x256xf32>
    %557 = vector.broadcast %55 : f32 to vector<1x256xf32>
    %558 = arith.mulf %557, %555 : vector<1x256xf32>
    %559 = arith.addf %545, %558 : vector<1x256xf32>
    %560 = vector.broadcast %56 : f32 to vector<1x256xf32>
    %561 = arith.mulf %560, %555 : vector<1x256xf32>
    %562 = arith.addf %548, %561 : vector<1x256xf32>
    %563 = vector.broadcast %63 : f32 to vector<1x256xf32>
    %564 = arith.mulf %563, %144 : vector<1x256xf32>
    %565 = arith.addf %559, %564 : vector<1x256xf32>
    %566 = vector.broadcast %64 : f32 to vector<1x256xf32>
    %567 = arith.mulf %566, %144 : vector<1x256xf32>
    %568 = arith.addf %562, %567 : vector<1x256xf32>
    %569 = vector.broadcast %71 : f32 to vector<1x256xf32>
    %570 = arith.mulf %569, %556 : vector<1x256xf32>
    %571 = arith.addf %565, %570 : vector<1x256xf32>
    %572 = vector.broadcast %72 : f32 to vector<1x256xf32>
    %573 = arith.mulf %572, %556 : vector<1x256xf32>
    %574 = arith.addf %568, %573 : vector<1x256xf32>
    %575 = vector.extract_strided_slice %522 {offsets = [0, 255], sizes = [1, 1], strides = [1, 1]} : vector<1x256xf32> to vector<1x1xf32>
    %576 = vector.extract_strided_slice %522 {offsets = [0, 0], sizes = [1, 255], strides = [1, 1]} : vector<1x256xf32> to vector<1x255xf32>
    %577 = tpu.concatenate %575, %576 in 1 : vector<1x1xf32>, vector<1x255xf32> -> vector<1x256xf32>
    %578 = vector.extract_strided_slice %522 {offsets = [0, 1], sizes = [1, 255], strides = [1, 1]} : vector<1x256xf32> to vector<1x255xf32>
    %579 = vector.extract_strided_slice %522 {offsets = [0, 0], sizes = [1, 1], strides = [1, 1]} : vector<1x256xf32> to vector<1x1xf32>
    %580 = tpu.concatenate %578, %579 in 1 : vector<1x255xf32>, vector<1x1xf32> -> vector<1x256xf32>
    %581 = arith.select %22, %580, %577 : vector<1x256xi1>, vector<1x256xf32>
    %582 = arith.select %24, %577, %580 : vector<1x256xi1>, vector<1x256xf32>
    %583 = vector.broadcast %79 : f32 to vector<1x256xf32>
    %584 = arith.mulf %583, %581 : vector<1x256xf32>
    %585 = arith.addf %571, %584 : vector<1x256xf32>
    %586 = vector.broadcast %80 : f32 to vector<1x256xf32>
    %587 = arith.mulf %586, %581 : vector<1x256xf32>
    %588 = arith.addf %574, %587 : vector<1x256xf32>
    %589 = vector.broadcast %87 : f32 to vector<1x256xf32>
    %590 = arith.mulf %589, %522 : vector<1x256xf32>
    %591 = arith.addf %585, %590 : vector<1x256xf32>
    %592 = vector.broadcast %88 : f32 to vector<1x256xf32>
    %593 = arith.mulf %592, %522 : vector<1x256xf32>
    %594 = arith.addf %588, %593 : vector<1x256xf32>
    %595 = vector.broadcast %95 : f32 to vector<1x256xf32>
    %596 = arith.mulf %595, %582 : vector<1x256xf32>
    %597 = arith.addf %591, %596 : vector<1x256xf32>
    %598 = vector.broadcast %96 : f32 to vector<1x256xf32>
    %599 = arith.mulf %598, %582 : vector<1x256xf32>
    %600 = arith.addf %594, %599 : vector<1x256xf32>
    %601 = vector.broadcast %133 : f32 to vector<1x256xf32>
    %602 = arith.addf %597, %601 : vector<1x256xf32>
    %c0_17 = arith.constant 0 : index
    %c0_18 = arith.constant 0 : index
    %603 = vector.load %arg2[%c0_17, %c0_18] : memref<4x256xf32, #tpu.memory_space<vmem>>, vector<1x256xf32>
    tpu.vector_store %arg2[%c0_17, %c0_18], %602 {strides = array<i32>} : memref<4x256xf32, #tpu.memory_space<vmem>>, vector<1x256xf32>,
    %cst_19 = arith.constant dense<0.000000e+00> : vector<1xf32>
    %604 = vector.multi_reduction <add>, %602, %cst_19 [1] : vector<1x256xf32> to vector<1xf32>
    %605 = vector.shape_cast %604 : vector<1xf32> to vector<1x1xf32>
    %606 = arith.addf %140, %605 : vector<1x1xf32>
    %607 = arith.mulf %602, %602 : vector<1x256xf32>
    %cst_20 = arith.constant dense<0.000000e+00> : vector<1xf32>
    %608 = vector.multi_reduction <add>, %607, %cst_20 [1] : vector<1x256xf32> to vector<1xf32>
    %609 = vector.shape_cast %608 : vector<1xf32> to vector<1x1xf32>
    %610 = arith.addf %140, %609 : vector<1x1xf32>
    %611 = vector.broadcast %134 : f32 to vector<1x256xf32>
    %612 = arith.addf %600, %611 : vector<1x256xf32>
    %c1_21 = arith.constant 1 : index
    %c0_22 = arith.constant 0 : index
    %613 = vector.load %arg2[%c1_21, %c0_22] : memref<4x256xf32, #tpu.memory_space<vmem>>, vector<1x256xf32>
    tpu.vector_store %arg2[%c1_21, %c0_22], %612 {strides = array<i32>} : memref<4x256xf32, #tpu.memory_space<vmem>>, vector<1x256xf32>,
    %cst_23 = arith.constant dense<0.000000e+00> : vector<1xf32>
    %614 = vector.multi_reduction <add>, %612, %cst_23 [1] : vector<1x256xf32> to vector<1xf32>
    %615 = vector.shape_cast %614 : vector<1xf32> to vector<1x1xf32>
    %616 = arith.addf %140, %615 : vector<1x1xf32>
    %617 = arith.mulf %612, %612 : vector<1x256xf32>
    %cst_24 = arith.constant dense<0.000000e+00> : vector<1xf32>
    %618 = vector.multi_reduction <add>, %617, %cst_24 [1] : vector<1x256xf32> to vector<1xf32>
    %619 = vector.shape_cast %618 : vector<1xf32> to vector<1x1xf32>
    %620 = arith.addf %140, %619 : vector<1x1xf32>
    %621 = vector.broadcast %135 : f32 to vector<1x256xf32>
    %622 = arith.addf %425, %621 : vector<1x256xf32>
    %c0_25 = arith.constant 0 : index
    %c0_26 = arith.constant 0 : index
    %623 = vector.load %arg3[%c0_25, %c0_26] : memref<4x256xf32, #tpu.memory_space<vmem>>, vector<1x256xf32>
    tpu.vector_store %arg3[%c0_25, %c0_26], %622 {strides = array<i32>} : memref<4x256xf32, #tpu.memory_space<vmem>>, vector<1x256xf32>,
    %624 = vector.broadcast %136 : f32 to vector<1x256xf32>
    %625 = arith.addf %428, %624 : vector<1x256xf32>
    %c2_27 = arith.constant 2 : index
    %c0_28 = arith.constant 0 : index
    %626 = vector.load %arg3[%c2_27, %c0_28] : memref<4x256xf32, #tpu.memory_space<vmem>>, vector<1x256xf32>
    tpu.vector_store %arg3[%c2_27, %c0_28], %625 {strides = array<i32>} : memref<4x256xf32, #tpu.memory_space<vmem>>, vector<1x256xf32>,
    %627 = vector.broadcast %137 : f32 to vector<1x256xf32>
    %628 = arith.mulf %627, %143 : vector<1x256xf32>
    %629 = vector.broadcast %138 : f32 to vector<1x256xf32>
    %630 = arith.mulf %629, %144 : vector<1x256xf32>
    %631 = arith.addf %628, %630 : vector<1x256xf32>
    %632 = vector.broadcast %139 : f32 to vector<1x256xf32>
    %633 = arith.addf %631, %632 : vector<1x256xf32>
    %c0_29 = arith.constant 0 : index
    %c0_30 = arith.constant 0 : index
    %634 = vector.load %arg4[%c0_29, %c0_30] : memref<2x256xf32, #tpu.memory_space<vmem>>, vector<1x256xf32>
    tpu.vector_store %arg4[%c0_29, %c0_30], %633 {strides = array<i32>} : memref<2x256xf32, #tpu.memory_space<vmem>>, vector<1x256xf32>,
    %cst_31 = arith.constant dense<0.000000e+00> : vector<1xf32>
    %635 = vector.multi_reduction <add>, %633, %cst_31 [1] : vector<1x256xf32> to vector<1xf32>
    %636 = vector.shape_cast %635 : vector<1xf32> to vector<1x1xf32>
    %637 = arith.addf %140, %636 : vector<1x1xf32>
    %638 = arith.mulf %633, %633 : vector<1x256xf32>
    %cst_32 = arith.constant dense<0.000000e+00> : vector<1xf32>
    %639 = vector.multi_reduction <add>, %638, %cst_32 [1] : vector<1x256xf32> to vector<1xf32>
    %640 = vector.shape_cast %639 : vector<1xf32> to vector<1x1xf32>
    %641 = arith.addf %140, %640 : vector<1x1xf32>
    %c4_33 = arith.constant 4 : index
    %c0_34 = arith.constant 0 : index
    %642 = vector.load %arg0[%c4_33, %c0_34] : memref<8x256xf32, #tpu.memory_space<vmem>>, vector<1x256xf32>
    %c5_35 = arith.constant 5 : index
    %c0_36 = arith.constant 0 : index
    %643 = vector.load %arg0[%c5_35, %c0_36] : memref<8x256xf32, #tpu.memory_space<vmem>>, vector<1x256xf32>
    %c6_37 = arith.constant 6 : index
    %c0_38 = arith.constant 0 : index
    %644 = vector.load %arg0[%c6_37, %c0_38] : memref<8x256xf32, #tpu.memory_space<vmem>>, vector<1x256xf32>
    %c7_39 = arith.constant 7 : index
    %c0_40 = arith.constant 0 : index
    %645 = vector.load %arg0[%c7_39, %c0_40] : memref<8x256xf32, #tpu.memory_space<vmem>>, vector<1x256xf32>
    %cst_41 = arith.constant 0.000000e+00 : f32
    %646 = vector.broadcast %cst_41 : f32 to vector<1x256xf32>
    %cst_42 = arith.constant 0.000000e+00 : f32
    %647 = vector.broadcast %cst_42 : f32 to vector<1x256xf32>
    %cst_43 = arith.constant 0.000000e+00 : f32
    %648 = vector.broadcast %cst_43 : f32 to vector<1x256xf32>
    %cst_44 = arith.constant 0.000000e+00 : f32
    %649 = vector.broadcast %cst_44 : f32 to vector<1x256xf32>
    %650 = vector.extract_strided_slice %642 {offsets = [0, 240], sizes = [1, 16], strides = [1, 1]} : vector<1x256xf32> to vector<1x16xf32>
    %651 = vector.extract_strided_slice %642 {offsets = [0, 0], sizes = [1, 240], strides = [1, 1]} : vector<1x256xf32> to vector<1x240xf32>
    %652 = tpu.concatenate %650, %651 in 1 : vector<1x16xf32>, vector<1x240xf32> -> vector<1x256xf32>
    %653 = vector.extract_strided_slice %642 {offsets = [0, 16], sizes = [1, 240], strides = [1, 1]} : vector<1x256xf32> to vector<1x240xf32>
    %654 = vector.extract_strided_slice %642 {offsets = [0, 0], sizes = [1, 16], strides = [1, 1]} : vector<1x256xf32> to vector<1x16xf32>
    %655 = tpu.concatenate %653, %654 in 1 : vector<1x240xf32>, vector<1x16xf32> -> vector<1x256xf32>
    %656 = arith.select %18, %655, %652 : vector<1x256xi1>, vector<1x256xf32>
    %657 = arith.select %20, %652, %655 : vector<1x256xi1>, vector<1x256xf32>
    %658 = vector.extract_strided_slice %656 {offsets = [0, 255], sizes = [1, 1], strides = [1, 1]} : vector<1x256xf32> to vector<1x1xf32>
    %659 = vector.extract_strided_slice %656 {offsets = [0, 0], sizes = [1, 255], strides = [1, 1]} : vector<1x256xf32> to vector<1x255xf32>
    %660 = tpu.concatenate %658, %659 in 1 : vector<1x1xf32>, vector<1x255xf32> -> vector<1x256xf32>
    %661 = vector.extract_strided_slice %656 {offsets = [0, 1], sizes = [1, 255], strides = [1, 1]} : vector<1x256xf32> to vector<1x255xf32>
    %662 = vector.extract_strided_slice %656 {offsets = [0, 0], sizes = [1, 1], strides = [1, 1]} : vector<1x256xf32> to vector<1x1xf32>
    %663 = tpu.concatenate %661, %662 in 1 : vector<1x255xf32>, vector<1x1xf32> -> vector<1x256xf32>
    %664 = arith.select %22, %663, %660 : vector<1x256xi1>, vector<1x256xf32>
    %665 = arith.select %24, %660, %663 : vector<1x256xi1>, vector<1x256xf32>
    %666 = vector.broadcast %25 : f32 to vector<1x256xf32>
    %667 = arith.mulf %666, %664 : vector<1x256xf32>
    %668 = arith.addf %646, %667 : vector<1x256xf32>
    %669 = vector.broadcast %26 : f32 to vector<1x256xf32>
    %670 = arith.mulf %669, %664 : vector<1x256xf32>
    %671 = arith.addf %647, %670 : vector<1x256xf32>
    %672 = vector.broadcast %97 : f32 to vector<1x256xf32>
    %673 = arith.mulf %672, %664 : vector<1x256xf32>
    %674 = arith.addf %648, %673 : vector<1x256xf32>
    %675 = vector.broadcast %98 : f32 to vector<1x256xf32>
    %676 = arith.mulf %675, %664 : vector<1x256xf32>
    %677 = arith.addf %649, %676 : vector<1x256xf32>
    %678 = vector.broadcast %33 : f32 to vector<1x256xf32>
    %679 = arith.mulf %678, %656 : vector<1x256xf32>
    %680 = arith.addf %668, %679 : vector<1x256xf32>
    %681 = vector.broadcast %34 : f32 to vector<1x256xf32>
    %682 = arith.mulf %681, %656 : vector<1x256xf32>
    %683 = arith.addf %671, %682 : vector<1x256xf32>
    %684 = vector.broadcast %101 : f32 to vector<1x256xf32>
    %685 = arith.mulf %684, %656 : vector<1x256xf32>
    %686 = arith.addf %674, %685 : vector<1x256xf32>
    %687 = vector.broadcast %102 : f32 to vector<1x256xf32>
    %688 = arith.mulf %687, %656 : vector<1x256xf32>
    %689 = arith.addf %677, %688 : vector<1x256xf32>
    %690 = vector.broadcast %41 : f32 to vector<1x256xf32>
    %691 = arith.mulf %690, %665 : vector<1x256xf32>
    %692 = arith.addf %680, %691 : vector<1x256xf32>
    %693 = vector.broadcast %42 : f32 to vector<1x256xf32>
    %694 = arith.mulf %693, %665 : vector<1x256xf32>
    %695 = arith.addf %683, %694 : vector<1x256xf32>
    %696 = vector.broadcast %105 : f32 to vector<1x256xf32>
    %697 = arith.mulf %696, %665 : vector<1x256xf32>
    %698 = arith.addf %686, %697 : vector<1x256xf32>
    %699 = vector.broadcast %106 : f32 to vector<1x256xf32>
    %700 = arith.mulf %699, %665 : vector<1x256xf32>
    %701 = arith.addf %689, %700 : vector<1x256xf32>
    %702 = vector.extract_strided_slice %642 {offsets = [0, 255], sizes = [1, 1], strides = [1, 1]} : vector<1x256xf32> to vector<1x1xf32>
    %703 = vector.extract_strided_slice %642 {offsets = [0, 0], sizes = [1, 255], strides = [1, 1]} : vector<1x256xf32> to vector<1x255xf32>
    %704 = tpu.concatenate %702, %703 in 1 : vector<1x1xf32>, vector<1x255xf32> -> vector<1x256xf32>
    %705 = vector.extract_strided_slice %642 {offsets = [0, 1], sizes = [1, 255], strides = [1, 1]} : vector<1x256xf32> to vector<1x255xf32>
    %706 = vector.extract_strided_slice %642 {offsets = [0, 0], sizes = [1, 1], strides = [1, 1]} : vector<1x256xf32> to vector<1x1xf32>
    %707 = tpu.concatenate %705, %706 in 1 : vector<1x255xf32>, vector<1x1xf32> -> vector<1x256xf32>
    %708 = arith.select %22, %707, %704 : vector<1x256xi1>, vector<1x256xf32>
    %709 = arith.select %24, %704, %707 : vector<1x256xi1>, vector<1x256xf32>
    %710 = vector.broadcast %49 : f32 to vector<1x256xf32>
    %711 = arith.mulf %710, %708 : vector<1x256xf32>
    %712 = arith.addf %692, %711 : vector<1x256xf32>
    %713 = vector.broadcast %50 : f32 to vector<1x256xf32>
    %714 = arith.mulf %713, %708 : vector<1x256xf32>
    %715 = arith.addf %695, %714 : vector<1x256xf32>
    %716 = vector.broadcast %109 : f32 to vector<1x256xf32>
    %717 = arith.mulf %716, %708 : vector<1x256xf32>
    %718 = arith.addf %698, %717 : vector<1x256xf32>
    %719 = vector.broadcast %110 : f32 to vector<1x256xf32>
    %720 = arith.mulf %719, %708 : vector<1x256xf32>
    %721 = arith.addf %701, %720 : vector<1x256xf32>
    %722 = vector.broadcast %57 : f32 to vector<1x256xf32>
    %723 = arith.mulf %722, %642 : vector<1x256xf32>
    %724 = arith.addf %712, %723 : vector<1x256xf32>
    %725 = vector.broadcast %58 : f32 to vector<1x256xf32>
    %726 = arith.mulf %725, %642 : vector<1x256xf32>
    %727 = arith.addf %715, %726 : vector<1x256xf32>
    %728 = vector.broadcast %113 : f32 to vector<1x256xf32>
    %729 = arith.mulf %728, %642 : vector<1x256xf32>
    %730 = arith.addf %718, %729 : vector<1x256xf32>
    %731 = vector.broadcast %114 : f32 to vector<1x256xf32>
    %732 = arith.mulf %731, %642 : vector<1x256xf32>
    %733 = arith.addf %721, %732 : vector<1x256xf32>
    %734 = vector.broadcast %65 : f32 to vector<1x256xf32>
    %735 = arith.mulf %734, %709 : vector<1x256xf32>
    %736 = arith.addf %724, %735 : vector<1x256xf32>
    %737 = vector.broadcast %66 : f32 to vector<1x256xf32>
    %738 = arith.mulf %737, %709 : vector<1x256xf32>
    %739 = arith.addf %727, %738 : vector<1x256xf32>
    %740 = vector.broadcast %117 : f32 to vector<1x256xf32>
    %741 = arith.mulf %740, %709 : vector<1x256xf32>
    %742 = arith.addf %730, %741 : vector<1x256xf32>
    %743 = vector.broadcast %118 : f32 to vector<1x256xf32>
    %744 = arith.mulf %743, %709 : vector<1x256xf32>
    %745 = arith.addf %733, %744 : vector<1x256xf32>
    %746 = vector.extract_strided_slice %657 {offsets = [0, 255], sizes = [1, 1], strides = [1, 1]} : vector<1x256xf32> to vector<1x1xf32>
    %747 = vector.extract_strided_slice %657 {offsets = [0, 0], sizes = [1, 255], strides = [1, 1]} : vector<1x256xf32> to vector<1x255xf32>
    %748 = tpu.concatenate %746, %747 in 1 : vector<1x1xf32>, vector<1x255xf32> -> vector<1x256xf32>
    %749 = vector.extract_strided_slice %657 {offsets = [0, 1], sizes = [1, 255], strides = [1, 1]} : vector<1x256xf32> to vector<1x255xf32>
    %750 = vector.extract_strided_slice %657 {offsets = [0, 0], sizes = [1, 1], strides = [1, 1]} : vector<1x256xf32> to vector<1x1xf32>
    %751 = tpu.concatenate %749, %750 in 1 : vector<1x255xf32>, vector<1x1xf32> -> vector<1x256xf32>
    %752 = arith.select %22, %751, %748 : vector<1x256xi1>, vector<1x256xf32>
    %753 = arith.select %24, %748, %751 : vector<1x256xi1>, vector<1x256xf32>
    %754 = vector.broadcast %73 : f32 to vector<1x256xf32>
    %755 = arith.mulf %754, %752 : vector<1x256xf32>
    %756 = arith.addf %736, %755 : vector<1x256xf32>
    %757 = vector.broadcast %74 : f32 to vector<1x256xf32>
    %758 = arith.mulf %757, %752 : vector<1x256xf32>
    %759 = arith.addf %739, %758 : vector<1x256xf32>
    %760 = vector.broadcast %121 : f32 to vector<1x256xf32>
    %761 = arith.mulf %760, %752 : vector<1x256xf32>
    %762 = arith.addf %742, %761 : vector<1x256xf32>
    %763 = vector.broadcast %122 : f32 to vector<1x256xf32>
    %764 = arith.mulf %763, %752 : vector<1x256xf32>
    %765 = arith.addf %745, %764 : vector<1x256xf32>
    %766 = vector.broadcast %81 : f32 to vector<1x256xf32>
    %767 = arith.mulf %766, %657 : vector<1x256xf32>
    %768 = arith.addf %756, %767 : vector<1x256xf32>
    %769 = vector.broadcast %82 : f32 to vector<1x256xf32>
    %770 = arith.mulf %769, %657 : vector<1x256xf32>
    %771 = arith.addf %759, %770 : vector<1x256xf32>
    %772 = vector.broadcast %125 : f32 to vector<1x256xf32>
    %773 = arith.mulf %772, %657 : vector<1x256xf32>
    %774 = arith.addf %762, %773 : vector<1x256xf32>
    %775 = vector.broadcast %126 : f32 to vector<1x256xf32>
    %776 = arith.mulf %775, %657 : vector<1x256xf32>
    %777 = arith.addf %765, %776 : vector<1x256xf32>
    %778 = vector.broadcast %89 : f32 to vector<1x256xf32>
    %779 = arith.mulf %778, %753 : vector<1x256xf32>
    %780 = arith.addf %768, %779 : vector<1x256xf32>
    %781 = vector.broadcast %90 : f32 to vector<1x256xf32>
    %782 = arith.mulf %781, %753 : vector<1x256xf32>
    %783 = arith.addf %771, %782 : vector<1x256xf32>
    %784 = vector.broadcast %129 : f32 to vector<1x256xf32>
    %785 = arith.mulf %784, %753 : vector<1x256xf32>
    %786 = arith.addf %774, %785 : vector<1x256xf32>
    %787 = vector.broadcast %130 : f32 to vector<1x256xf32>
    %788 = arith.mulf %787, %753 : vector<1x256xf32>
    %789 = arith.addf %777, %788 : vector<1x256xf32>
    %790 = vector.extract_strided_slice %643 {offsets = [0, 240], sizes = [1, 16], strides = [1, 1]} : vector<1x256xf32> to vector<1x16xf32>
    %791 = vector.extract_strided_slice %643 {offsets = [0, 0], sizes = [1, 240], strides = [1, 1]} : vector<1x256xf32> to vector<1x240xf32>
    %792 = tpu.concatenate %790, %791 in 1 : vector<1x16xf32>, vector<1x240xf32> -> vector<1x256xf32>
    %793 = vector.extract_strided_slice %643 {offsets = [0, 16], sizes = [1, 240], strides = [1, 1]} : vector<1x256xf32> to vector<1x240xf32>
    %794 = vector.extract_strided_slice %643 {offsets = [0, 0], sizes = [1, 16], strides = [1, 1]} : vector<1x256xf32> to vector<1x16xf32>
    %795 = tpu.concatenate %793, %794 in 1 : vector<1x240xf32>, vector<1x16xf32> -> vector<1x256xf32>
    %796 = arith.select %18, %795, %792 : vector<1x256xi1>, vector<1x256xf32>
    %797 = arith.select %20, %792, %795 : vector<1x256xi1>, vector<1x256xf32>
    %798 = vector.extract_strided_slice %796 {offsets = [0, 255], sizes = [1, 1], strides = [1, 1]} : vector<1x256xf32> to vector<1x1xf32>
    %799 = vector.extract_strided_slice %796 {offsets = [0, 0], sizes = [1, 255], strides = [1, 1]} : vector<1x256xf32> to vector<1x255xf32>
    %800 = tpu.concatenate %798, %799 in 1 : vector<1x1xf32>, vector<1x255xf32> -> vector<1x256xf32>
    %801 = vector.extract_strided_slice %796 {offsets = [0, 1], sizes = [1, 255], strides = [1, 1]} : vector<1x256xf32> to vector<1x255xf32>
    %802 = vector.extract_strided_slice %796 {offsets = [0, 0], sizes = [1, 1], strides = [1, 1]} : vector<1x256xf32> to vector<1x1xf32>
    %803 = tpu.concatenate %801, %802 in 1 : vector<1x255xf32>, vector<1x1xf32> -> vector<1x256xf32>
    %804 = arith.select %22, %803, %800 : vector<1x256xi1>, vector<1x256xf32>
    %805 = arith.select %24, %800, %803 : vector<1x256xi1>, vector<1x256xf32>
    %806 = vector.broadcast %27 : f32 to vector<1x256xf32>
    %807 = arith.mulf %806, %804 : vector<1x256xf32>
    %808 = arith.addf %780, %807 : vector<1x256xf32>
    %809 = vector.broadcast %28 : f32 to vector<1x256xf32>
    %810 = arith.mulf %809, %804 : vector<1x256xf32>
    %811 = arith.addf %783, %810 : vector<1x256xf32>
    %812 = vector.broadcast %99 : f32 to vector<1x256xf32>
    %813 = arith.mulf %812, %804 : vector<1x256xf32>
    %814 = arith.addf %786, %813 : vector<1x256xf32>
    %815 = vector.broadcast %100 : f32 to vector<1x256xf32>
    %816 = arith.mulf %815, %804 : vector<1x256xf32>
    %817 = arith.addf %789, %816 : vector<1x256xf32>
    %818 = vector.broadcast %35 : f32 to vector<1x256xf32>
    %819 = arith.mulf %818, %796 : vector<1x256xf32>
    %820 = arith.addf %808, %819 : vector<1x256xf32>
    %821 = vector.broadcast %36 : f32 to vector<1x256xf32>
    %822 = arith.mulf %821, %796 : vector<1x256xf32>
    %823 = arith.addf %811, %822 : vector<1x256xf32>
    %824 = vector.broadcast %103 : f32 to vector<1x256xf32>
    %825 = arith.mulf %824, %796 : vector<1x256xf32>
    %826 = arith.addf %814, %825 : vector<1x256xf32>
    %827 = vector.broadcast %104 : f32 to vector<1x256xf32>
    %828 = arith.mulf %827, %796 : vector<1x256xf32>
    %829 = arith.addf %817, %828 : vector<1x256xf32>
    %830 = vector.broadcast %43 : f32 to vector<1x256xf32>
    %831 = arith.mulf %830, %805 : vector<1x256xf32>
    %832 = arith.addf %820, %831 : vector<1x256xf32>
    %833 = vector.broadcast %44 : f32 to vector<1x256xf32>
    %834 = arith.mulf %833, %805 : vector<1x256xf32>
    %835 = arith.addf %823, %834 : vector<1x256xf32>
    %836 = vector.broadcast %107 : f32 to vector<1x256xf32>
    %837 = arith.mulf %836, %805 : vector<1x256xf32>
    %838 = arith.addf %826, %837 : vector<1x256xf32>
    %839 = vector.broadcast %108 : f32 to vector<1x256xf32>
    %840 = arith.mulf %839, %805 : vector<1x256xf32>
    %841 = arith.addf %829, %840 : vector<1x256xf32>
    %842 = vector.extract_strided_slice %643 {offsets = [0, 255], sizes = [1, 1], strides = [1, 1]} : vector<1x256xf32> to vector<1x1xf32>
    %843 = vector.extract_strided_slice %643 {offsets = [0, 0], sizes = [1, 255], strides = [1, 1]} : vector<1x256xf32> to vector<1x255xf32>
    %844 = tpu.concatenate %842, %843 in 1 : vector<1x1xf32>, vector<1x255xf32> -> vector<1x256xf32>
    %845 = vector.extract_strided_slice %643 {offsets = [0, 1], sizes = [1, 255], strides = [1, 1]} : vector<1x256xf32> to vector<1x255xf32>
    %846 = vector.extract_strided_slice %643 {offsets = [0, 0], sizes = [1, 1], strides = [1, 1]} : vector<1x256xf32> to vector<1x1xf32>
    %847 = tpu.concatenate %845, %846 in 1 : vector<1x255xf32>, vector<1x1xf32> -> vector<1x256xf32>
    %848 = arith.select %22, %847, %844 : vector<1x256xi1>, vector<1x256xf32>
    %849 = arith.select %24, %844, %847 : vector<1x256xi1>, vector<1x256xf32>
    %850 = vector.broadcast %51 : f32 to vector<1x256xf32>
    %851 = arith.mulf %850, %848 : vector<1x256xf32>
    %852 = arith.addf %832, %851 : vector<1x256xf32>
    %853 = vector.broadcast %52 : f32 to vector<1x256xf32>
    %854 = arith.mulf %853, %848 : vector<1x256xf32>
    %855 = arith.addf %835, %854 : vector<1x256xf32>
    %856 = vector.broadcast %111 : f32 to vector<1x256xf32>
    %857 = arith.mulf %856, %848 : vector<1x256xf32>
    %858 = arith.addf %838, %857 : vector<1x256xf32>
    %859 = vector.broadcast %112 : f32 to vector<1x256xf32>
    %860 = arith.mulf %859, %848 : vector<1x256xf32>
    %861 = arith.addf %841, %860 : vector<1x256xf32>
    %862 = vector.broadcast %59 : f32 to vector<1x256xf32>
    %863 = arith.mulf %862, %643 : vector<1x256xf32>
    %864 = arith.addf %852, %863 : vector<1x256xf32>
    %865 = vector.broadcast %60 : f32 to vector<1x256xf32>
    %866 = arith.mulf %865, %643 : vector<1x256xf32>
    %867 = arith.addf %855, %866 : vector<1x256xf32>
    %868 = vector.broadcast %115 : f32 to vector<1x256xf32>
    %869 = arith.mulf %868, %643 : vector<1x256xf32>
    %870 = arith.addf %858, %869 : vector<1x256xf32>
    %871 = vector.broadcast %116 : f32 to vector<1x256xf32>
    %872 = arith.mulf %871, %643 : vector<1x256xf32>
    %873 = arith.addf %861, %872 : vector<1x256xf32>
    %874 = vector.broadcast %67 : f32 to vector<1x256xf32>
    %875 = arith.mulf %874, %849 : vector<1x256xf32>
    %876 = arith.addf %864, %875 : vector<1x256xf32>
    %877 = vector.broadcast %68 : f32 to vector<1x256xf32>
    %878 = arith.mulf %877, %849 : vector<1x256xf32>
    %879 = arith.addf %867, %878 : vector<1x256xf32>
    %880 = vector.broadcast %119 : f32 to vector<1x256xf32>
    %881 = arith.mulf %880, %849 : vector<1x256xf32>
    %882 = arith.addf %870, %881 : vector<1x256xf32>
    %883 = vector.broadcast %120 : f32 to vector<1x256xf32>
    %884 = arith.mulf %883, %849 : vector<1x256xf32>
    %885 = arith.addf %873, %884 : vector<1x256xf32>
    %886 = vector.extract_strided_slice %797 {offsets = [0, 255], sizes = [1, 1], strides = [1, 1]} : vector<1x256xf32> to vector<1x1xf32>
    %887 = vector.extract_strided_slice %797 {offsets = [0, 0], sizes = [1, 255], strides = [1, 1]} : vector<1x256xf32> to vector<1x255xf32>
    %888 = tpu.concatenate %886, %887 in 1 : vector<1x1xf32>, vector<1x255xf32> -> vector<1x256xf32>
    %889 = vector.extract_strided_slice %797 {offsets = [0, 1], sizes = [1, 255], strides = [1, 1]} : vector<1x256xf32> to vector<1x255xf32>
    %890 = vector.extract_strided_slice %797 {offsets = [0, 0], sizes = [1, 1], strides = [1, 1]} : vector<1x256xf32> to vector<1x1xf32>
    %891 = tpu.concatenate %889, %890 in 1 : vector<1x255xf32>, vector<1x1xf32> -> vector<1x256xf32>
    %892 = arith.select %22, %891, %888 : vector<1x256xi1>, vector<1x256xf32>
    %893 = arith.select %24, %888, %891 : vector<1x256xi1>, vector<1x256xf32>
    %894 = vector.broadcast %75 : f32 to vector<1x256xf32>
    %895 = arith.mulf %894, %892 : vector<1x256xf32>
    %896 = arith.addf %876, %895 : vector<1x256xf32>
    %897 = vector.broadcast %76 : f32 to vector<1x256xf32>
    %898 = arith.mulf %897, %892 : vector<1x256xf32>
    %899 = arith.addf %879, %898 : vector<1x256xf32>
    %900 = vector.broadcast %123 : f32 to vector<1x256xf32>
    %901 = arith.mulf %900, %892 : vector<1x256xf32>
    %902 = arith.addf %882, %901 : vector<1x256xf32>
    %903 = vector.broadcast %124 : f32 to vector<1x256xf32>
    %904 = arith.mulf %903, %892 : vector<1x256xf32>
    %905 = arith.addf %885, %904 : vector<1x256xf32>
    %906 = vector.broadcast %83 : f32 to vector<1x256xf32>
    %907 = arith.mulf %906, %797 : vector<1x256xf32>
    %908 = arith.addf %896, %907 : vector<1x256xf32>
    %909 = vector.broadcast %84 : f32 to vector<1x256xf32>
    %910 = arith.mulf %909, %797 : vector<1x256xf32>
    %911 = arith.addf %899, %910 : vector<1x256xf32>
    %912 = vector.broadcast %127 : f32 to vector<1x256xf32>
    %913 = arith.mulf %912, %797 : vector<1x256xf32>
    %914 = arith.addf %902, %913 : vector<1x256xf32>
    %915 = vector.broadcast %128 : f32 to vector<1x256xf32>
    %916 = arith.mulf %915, %797 : vector<1x256xf32>
    %917 = arith.addf %905, %916 : vector<1x256xf32>
    %918 = vector.broadcast %91 : f32 to vector<1x256xf32>
    %919 = arith.mulf %918, %893 : vector<1x256xf32>
    %920 = arith.addf %908, %919 : vector<1x256xf32>
    %921 = vector.broadcast %92 : f32 to vector<1x256xf32>
    %922 = arith.mulf %921, %893 : vector<1x256xf32>
    %923 = arith.addf %911, %922 : vector<1x256xf32>
    %924 = vector.broadcast %131 : f32 to vector<1x256xf32>
    %925 = arith.mulf %924, %893 : vector<1x256xf32>
    %926 = arith.addf %914, %925 : vector<1x256xf32>
    %927 = vector.broadcast %132 : f32 to vector<1x256xf32>
    %928 = arith.mulf %927, %893 : vector<1x256xf32>
    %929 = arith.addf %917, %928 : vector<1x256xf32>
    %930 = vector.extract_strided_slice %644 {offsets = [0, 240], sizes = [1, 16], strides = [1, 1]} : vector<1x256xf32> to vector<1x16xf32>
    %931 = vector.extract_strided_slice %644 {offsets = [0, 0], sizes = [1, 240], strides = [1, 1]} : vector<1x256xf32> to vector<1x240xf32>
    %932 = tpu.concatenate %930, %931 in 1 : vector<1x16xf32>, vector<1x240xf32> -> vector<1x256xf32>
    %933 = vector.extract_strided_slice %644 {offsets = [0, 16], sizes = [1, 240], strides = [1, 1]} : vector<1x256xf32> to vector<1x240xf32>
    %934 = vector.extract_strided_slice %644 {offsets = [0, 0], sizes = [1, 16], strides = [1, 1]} : vector<1x256xf32> to vector<1x16xf32>
    %935 = tpu.concatenate %933, %934 in 1 : vector<1x240xf32>, vector<1x16xf32> -> vector<1x256xf32>
    %936 = arith.select %18, %935, %932 : vector<1x256xi1>, vector<1x256xf32>
    %937 = arith.select %20, %932, %935 : vector<1x256xi1>, vector<1x256xf32>
    %938 = vector.extract_strided_slice %936 {offsets = [0, 255], sizes = [1, 1], strides = [1, 1]} : vector<1x256xf32> to vector<1x1xf32>
    %939 = vector.extract_strided_slice %936 {offsets = [0, 0], sizes = [1, 255], strides = [1, 1]} : vector<1x256xf32> to vector<1x255xf32>
    %940 = tpu.concatenate %938, %939 in 1 : vector<1x1xf32>, vector<1x255xf32> -> vector<1x256xf32>
    %941 = vector.extract_strided_slice %936 {offsets = [0, 1], sizes = [1, 255], strides = [1, 1]} : vector<1x256xf32> to vector<1x255xf32>
    %942 = vector.extract_strided_slice %936 {offsets = [0, 0], sizes = [1, 1], strides = [1, 1]} : vector<1x256xf32> to vector<1x1xf32>
    %943 = tpu.concatenate %941, %942 in 1 : vector<1x255xf32>, vector<1x1xf32> -> vector<1x256xf32>
    %944 = arith.select %22, %943, %940 : vector<1x256xi1>, vector<1x256xf32>
    %945 = arith.select %24, %940, %943 : vector<1x256xi1>, vector<1x256xf32>
    %946 = vector.broadcast %29 : f32 to vector<1x256xf32>
    %947 = arith.mulf %946, %944 : vector<1x256xf32>
    %948 = arith.addf %920, %947 : vector<1x256xf32>
    %949 = vector.broadcast %30 : f32 to vector<1x256xf32>
    %950 = arith.mulf %949, %944 : vector<1x256xf32>
    %951 = arith.addf %923, %950 : vector<1x256xf32>
    %952 = vector.broadcast %37 : f32 to vector<1x256xf32>
    %953 = arith.mulf %952, %936 : vector<1x256xf32>
    %954 = arith.addf %948, %953 : vector<1x256xf32>
    %955 = vector.broadcast %38 : f32 to vector<1x256xf32>
    %956 = arith.mulf %955, %936 : vector<1x256xf32>
    %957 = arith.addf %951, %956 : vector<1x256xf32>
    %958 = vector.broadcast %45 : f32 to vector<1x256xf32>
    %959 = arith.mulf %958, %945 : vector<1x256xf32>
    %960 = arith.addf %954, %959 : vector<1x256xf32>
    %961 = vector.broadcast %46 : f32 to vector<1x256xf32>
    %962 = arith.mulf %961, %945 : vector<1x256xf32>
    %963 = arith.addf %957, %962 : vector<1x256xf32>
    %964 = vector.extract_strided_slice %644 {offsets = [0, 255], sizes = [1, 1], strides = [1, 1]} : vector<1x256xf32> to vector<1x1xf32>
    %965 = vector.extract_strided_slice %644 {offsets = [0, 0], sizes = [1, 255], strides = [1, 1]} : vector<1x256xf32> to vector<1x255xf32>
    %966 = tpu.concatenate %964, %965 in 1 : vector<1x1xf32>, vector<1x255xf32> -> vector<1x256xf32>
    %967 = vector.extract_strided_slice %644 {offsets = [0, 1], sizes = [1, 255], strides = [1, 1]} : vector<1x256xf32> to vector<1x255xf32>
    %968 = vector.extract_strided_slice %644 {offsets = [0, 0], sizes = [1, 1], strides = [1, 1]} : vector<1x256xf32> to vector<1x1xf32>
    %969 = tpu.concatenate %967, %968 in 1 : vector<1x255xf32>, vector<1x1xf32> -> vector<1x256xf32>
    %970 = arith.select %22, %969, %966 : vector<1x256xi1>, vector<1x256xf32>
    %971 = arith.select %24, %966, %969 : vector<1x256xi1>, vector<1x256xf32>
    %972 = vector.broadcast %53 : f32 to vector<1x256xf32>
    %973 = arith.mulf %972, %970 : vector<1x256xf32>
    %974 = arith.addf %960, %973 : vector<1x256xf32>
    %975 = vector.broadcast %54 : f32 to vector<1x256xf32>
    %976 = arith.mulf %975, %970 : vector<1x256xf32>
    %977 = arith.addf %963, %976 : vector<1x256xf32>
    %978 = vector.broadcast %61 : f32 to vector<1x256xf32>
    %979 = arith.mulf %978, %644 : vector<1x256xf32>
    %980 = arith.addf %974, %979 : vector<1x256xf32>
    %981 = vector.broadcast %62 : f32 to vector<1x256xf32>
    %982 = arith.mulf %981, %644 : vector<1x256xf32>
    %983 = arith.addf %977, %982 : vector<1x256xf32>
    %984 = vector.broadcast %69 : f32 to vector<1x256xf32>
    %985 = arith.mulf %984, %971 : vector<1x256xf32>
    %986 = arith.addf %980, %985 : vector<1x256xf32>
    %987 = vector.broadcast %70 : f32 to vector<1x256xf32>
    %988 = arith.mulf %987, %971 : vector<1x256xf32>
    %989 = arith.addf %983, %988 : vector<1x256xf32>
    %990 = vector.extract_strided_slice %937 {offsets = [0, 255], sizes = [1, 1], strides = [1, 1]} : vector<1x256xf32> to vector<1x1xf32>
    %991 = vector.extract_strided_slice %937 {offsets = [0, 0], sizes = [1, 255], strides = [1, 1]} : vector<1x256xf32> to vector<1x255xf32>
    %992 = tpu.concatenate %990, %991 in 1 : vector<1x1xf32>, vector<1x255xf32> -> vector<1x256xf32>
    %993 = vector.extract_strided_slice %937 {offsets = [0, 1], sizes = [1, 255], strides = [1, 1]} : vector<1x256xf32> to vector<1x255xf32>
    %994 = vector.extract_strided_slice %937 {offsets = [0, 0], sizes = [1, 1], strides = [1, 1]} : vector<1x256xf32> to vector<1x1xf32>
    %995 = tpu.concatenate %993, %994 in 1 : vector<1x255xf32>, vector<1x1xf32> -> vector<1x256xf32>
    %996 = arith.select %22, %995, %992 : vector<1x256xi1>, vector<1x256xf32>
    %997 = arith.select %24, %992, %995 : vector<1x256xi1>, vector<1x256xf32>
    %998 = vector.broadcast %77 : f32 to vector<1x256xf32>
    %999 = arith.mulf %998, %996 : vector<1x256xf32>
    %1000 = arith.addf %986, %999 : vector<1x256xf32>
    %1001 = vector.broadcast %78 : f32 to vector<1x256xf32>
    %1002 = arith.mulf %1001, %996 : vector<1x256xf32>
    %1003 = arith.addf %989, %1002 : vector<1x256xf32>
    %1004 = vector.broadcast %85 : f32 to vector<1x256xf32>
    %1005 = arith.mulf %1004, %937 : vector<1x256xf32>
    %1006 = arith.addf %1000, %1005 : vector<1x256xf32>
    %1007 = vector.broadcast %86 : f32 to vector<1x256xf32>
    %1008 = arith.mulf %1007, %937 : vector<1x256xf32>
    %1009 = arith.addf %1003, %1008 : vector<1x256xf32>
    %1010 = vector.broadcast %93 : f32 to vector<1x256xf32>
    %1011 = arith.mulf %1010, %997 : vector<1x256xf32>
    %1012 = arith.addf %1006, %1011 : vector<1x256xf32>
    %1013 = vector.broadcast %94 : f32 to vector<1x256xf32>
    %1014 = arith.mulf %1013, %997 : vector<1x256xf32>
    %1015 = arith.addf %1009, %1014 : vector<1x256xf32>
    %1016 = vector.extract_strided_slice %645 {offsets = [0, 240], sizes = [1, 16], strides = [1, 1]} : vector<1x256xf32> to vector<1x16xf32>
    %1017 = vector.extract_strided_slice %645 {offsets = [0, 0], sizes = [1, 240], strides = [1, 1]} : vector<1x256xf32> to vector<1x240xf32>
    %1018 = tpu.concatenate %1016, %1017 in 1 : vector<1x16xf32>, vector<1x240xf32> -> vector<1x256xf32>
    %1019 = vector.extract_strided_slice %645 {offsets = [0, 16], sizes = [1, 240], strides = [1, 1]} : vector<1x256xf32> to vector<1x240xf32>
    %1020 = vector.extract_strided_slice %645 {offsets = [0, 0], sizes = [1, 16], strides = [1, 1]} : vector<1x256xf32> to vector<1x16xf32>
    %1021 = tpu.concatenate %1019, %1020 in 1 : vector<1x240xf32>, vector<1x16xf32> -> vector<1x256xf32>
    %1022 = arith.select %18, %1021, %1018 : vector<1x256xi1>, vector<1x256xf32>
    %1023 = arith.select %20, %1018, %1021 : vector<1x256xi1>, vector<1x256xf32>
    %1024 = vector.extract_strided_slice %1022 {offsets = [0, 255], sizes = [1, 1], strides = [1, 1]} : vector<1x256xf32> to vector<1x1xf32>
    %1025 = vector.extract_strided_slice %1022 {offsets = [0, 0], sizes = [1, 255], strides = [1, 1]} : vector<1x256xf32> to vector<1x255xf32>
    %1026 = tpu.concatenate %1024, %1025 in 1 : vector<1x1xf32>, vector<1x255xf32> -> vector<1x256xf32>
    %1027 = vector.extract_strided_slice %1022 {offsets = [0, 1], sizes = [1, 255], strides = [1, 1]} : vector<1x256xf32> to vector<1x255xf32>
    %1028 = vector.extract_strided_slice %1022 {offsets = [0, 0], sizes = [1, 1], strides = [1, 1]} : vector<1x256xf32> to vector<1x1xf32>
    %1029 = tpu.concatenate %1027, %1028 in 1 : vector<1x255xf32>, vector<1x1xf32> -> vector<1x256xf32>
    %1030 = arith.select %22, %1029, %1026 : vector<1x256xi1>, vector<1x256xf32>
    %1031 = arith.select %24, %1026, %1029 : vector<1x256xi1>, vector<1x256xf32>
    %1032 = vector.broadcast %31 : f32 to vector<1x256xf32>
    %1033 = arith.mulf %1032, %1030 : vector<1x256xf32>
    %1034 = arith.addf %1012, %1033 : vector<1x256xf32>
    %1035 = vector.broadcast %32 : f32 to vector<1x256xf32>
    %1036 = arith.mulf %1035, %1030 : vector<1x256xf32>
    %1037 = arith.addf %1015, %1036 : vector<1x256xf32>
    %1038 = vector.broadcast %39 : f32 to vector<1x256xf32>
    %1039 = arith.mulf %1038, %1022 : vector<1x256xf32>
    %1040 = arith.addf %1034, %1039 : vector<1x256xf32>
    %1041 = vector.broadcast %40 : f32 to vector<1x256xf32>
    %1042 = arith.mulf %1041, %1022 : vector<1x256xf32>
    %1043 = arith.addf %1037, %1042 : vector<1x256xf32>
    %1044 = vector.broadcast %47 : f32 to vector<1x256xf32>
    %1045 = arith.mulf %1044, %1031 : vector<1x256xf32>
    %1046 = arith.addf %1040, %1045 : vector<1x256xf32>
    %1047 = vector.broadcast %48 : f32 to vector<1x256xf32>
    %1048 = arith.mulf %1047, %1031 : vector<1x256xf32>
    %1049 = arith.addf %1043, %1048 : vector<1x256xf32>
    %1050 = vector.extract_strided_slice %645 {offsets = [0, 255], sizes = [1, 1], strides = [1, 1]} : vector<1x256xf32> to vector<1x1xf32>
    %1051 = vector.extract_strided_slice %645 {offsets = [0, 0], sizes = [1, 255], strides = [1, 1]} : vector<1x256xf32> to vector<1x255xf32>
    %1052 = tpu.concatenate %1050, %1051 in 1 : vector<1x1xf32>, vector<1x255xf32> -> vector<1x256xf32>
    %1053 = vector.extract_strided_slice %645 {offsets = [0, 1], sizes = [1, 255], strides = [1, 1]} : vector<1x256xf32> to vector<1x255xf32>
    %1054 = vector.extract_strided_slice %645 {offsets = [0, 0], sizes = [1, 1], strides = [1, 1]} : vector<1x256xf32> to vector<1x1xf32>
    %1055 = tpu.concatenate %1053, %1054 in 1 : vector<1x255xf32>, vector<1x1xf32> -> vector<1x256xf32>
    %1056 = arith.select %22, %1055, %1052 : vector<1x256xi1>, vector<1x256xf32>
    %1057 = arith.select %24, %1052, %1055 : vector<1x256xi1>, vector<1x256xf32>
    %1058 = vector.broadcast %55 : f32 to vector<1x256xf32>
    %1059 = arith.mulf %1058, %1056 : vector<1x256xf32>
    %1060 = arith.addf %1046, %1059 : vector<1x256xf32>
    %1061 = vector.broadcast %56 : f32 to vector<1x256xf32>
    %1062 = arith.mulf %1061, %1056 : vector<1x256xf32>
    %1063 = arith.addf %1049, %1062 : vector<1x256xf32>
    %1064 = vector.broadcast %63 : f32 to vector<1x256xf32>
    %1065 = arith.mulf %1064, %645 : vector<1x256xf32>
    %1066 = arith.addf %1060, %1065 : vector<1x256xf32>
    %1067 = vector.broadcast %64 : f32 to vector<1x256xf32>
    %1068 = arith.mulf %1067, %645 : vector<1x256xf32>
    %1069 = arith.addf %1063, %1068 : vector<1x256xf32>
    %1070 = vector.broadcast %71 : f32 to vector<1x256xf32>
    %1071 = arith.mulf %1070, %1057 : vector<1x256xf32>
    %1072 = arith.addf %1066, %1071 : vector<1x256xf32>
    %1073 = vector.broadcast %72 : f32 to vector<1x256xf32>
    %1074 = arith.mulf %1073, %1057 : vector<1x256xf32>
    %1075 = arith.addf %1069, %1074 : vector<1x256xf32>
    %1076 = vector.extract_strided_slice %1023 {offsets = [0, 255], sizes = [1, 1], strides = [1, 1]} : vector<1x256xf32> to vector<1x1xf32>
    %1077 = vector.extract_strided_slice %1023 {offsets = [0, 0], sizes = [1, 255], strides = [1, 1]} : vector<1x256xf32> to vector<1x255xf32>
    %1078 = tpu.concatenate %1076, %1077 in 1 : vector<1x1xf32>, vector<1x255xf32> -> vector<1x256xf32>
    %1079 = vector.extract_strided_slice %1023 {offsets = [0, 1], sizes = [1, 255], strides = [1, 1]} : vector<1x256xf32> to vector<1x255xf32>
    %1080 = vector.extract_strided_slice %1023 {offsets = [0, 0], sizes = [1, 1], strides = [1, 1]} : vector<1x256xf32> to vector<1x1xf32>
    %1081 = tpu.concatenate %1079, %1080 in 1 : vector<1x255xf32>, vector<1x1xf32> -> vector<1x256xf32>
    %1082 = arith.select %22, %1081, %1078 : vector<1x256xi1>, vector<1x256xf32>
    %1083 = arith.select %24, %1078, %1081 : vector<1x256xi1>, vector<1x256xf32>
    %1084 = vector.broadcast %79 : f32 to vector<1x256xf32>
    %1085 = arith.mulf %1084, %1082 : vector<1x256xf32>
    %1086 = arith.addf %1072, %1085 : vector<1x256xf32>
    %1087 = vector.broadcast %80 : f32 to vector<1x256xf32>
    %1088 = arith.mulf %1087, %1082 : vector<1x256xf32>
    %1089 = arith.addf %1075, %1088 : vector<1x256xf32>
    %1090 = vector.broadcast %87 : f32 to vector<1x256xf32>
    %1091 = arith.mulf %1090, %1023 : vector<1x256xf32>
    %1092 = arith.addf %1086, %1091 : vector<1x256xf32>
    %1093 = vector.broadcast %88 : f32 to vector<1x256xf32>
    %1094 = arith.mulf %1093, %1023 : vector<1x256xf32>
    %1095 = arith.addf %1089, %1094 : vector<1x256xf32>
    %1096 = vector.broadcast %95 : f32 to vector<1x256xf32>
    %1097 = arith.mulf %1096, %1083 : vector<1x256xf32>
    %1098 = arith.addf %1092, %1097 : vector<1x256xf32>
    %1099 = vector.broadcast %96 : f32 to vector<1x256xf32>
    %1100 = arith.mulf %1099, %1083 : vector<1x256xf32>
    %1101 = arith.addf %1095, %1100 : vector<1x256xf32>
    %1102 = vector.broadcast %133 : f32 to vector<1x256xf32>
    %1103 = arith.addf %1098, %1102 : vector<1x256xf32>
    %c2_45 = arith.constant 2 : index
    %c0_46 = arith.constant 0 : index
    %1104 = vector.load %arg2[%c2_45, %c0_46] : memref<4x256xf32, #tpu.memory_space<vmem>>, vector<1x256xf32>
    tpu.vector_store %arg2[%c2_45, %c0_46], %1103 {strides = array<i32>} : memref<4x256xf32, #tpu.memory_space<vmem>>, vector<1x256xf32>,
    %cst_47 = arith.constant dense<0.000000e+00> : vector<1xf32>
    %1105 = vector.multi_reduction <add>, %1103, %cst_47 [1] : vector<1x256xf32> to vector<1xf32>
    %1106 = vector.shape_cast %1105 : vector<1xf32> to vector<1x1xf32>
    %1107 = arith.addf %606, %1106 : vector<1x1xf32>
    %1108 = arith.mulf %1103, %1103 : vector<1x256xf32>
    %cst_48 = arith.constant dense<0.000000e+00> : vector<1xf32>
    %1109 = vector.multi_reduction <add>, %1108, %cst_48 [1] : vector<1x256xf32> to vector<1xf32>
    %1110 = vector.shape_cast %1109 : vector<1xf32> to vector<1x1xf32>
    %1111 = arith.addf %610, %1110 : vector<1x1xf32>
    %1112 = vector.broadcast %134 : f32 to vector<1x256xf32>
    %1113 = arith.addf %1101, %1112 : vector<1x256xf32>
    %c3_49 = arith.constant 3 : index
    %c0_50 = arith.constant 0 : index
    %1114 = vector.load %arg2[%c3_49, %c0_50] : memref<4x256xf32, #tpu.memory_space<vmem>>, vector<1x256xf32>
    tpu.vector_store %arg2[%c3_49, %c0_50], %1113 {strides = array<i32>} : memref<4x256xf32, #tpu.memory_space<vmem>>, vector<1x256xf32>,
    %cst_51 = arith.constant dense<0.000000e+00> : vector<1xf32>
    %1115 = vector.multi_reduction <add>, %1113, %cst_51 [1] : vector<1x256xf32> to vector<1xf32>
    %1116 = vector.shape_cast %1115 : vector<1xf32> to vector<1x1xf32>
    %1117 = arith.addf %616, %1116 : vector<1x1xf32>
    %1118 = arith.mulf %1113, %1113 : vector<1x256xf32>
    %cst_52 = arith.constant dense<0.000000e+00> : vector<1xf32>
    %1119 = vector.multi_reduction <add>, %1118, %cst_52 [1] : vector<1x256xf32> to vector<1xf32>
    %1120 = vector.shape_cast %1119 : vector<1xf32> to vector<1x1xf32>
    %1121 = arith.addf %620, %1120 : vector<1x1xf32>
    %1122 = vector.broadcast %135 : f32 to vector<1x256xf32>
    %1123 = arith.addf %926, %1122 : vector<1x256xf32>
    %c1_53 = arith.constant 1 : index
    %c0_54 = arith.constant 0 : index
    %1124 = vector.load %arg3[%c1_53, %c0_54] : memref<4x256xf32, #tpu.memory_space<vmem>>, vector<1x256xf32>
    tpu.vector_store %arg3[%c1_53, %c0_54], %1123 {strides = array<i32>} : memref<4x256xf32, #tpu.memory_space<vmem>>, vector<1x256xf32>,
    %1125 = vector.broadcast %136 : f32 to vector<1x256xf32>
    %1126 = arith.addf %929, %1125 : vector<1x256xf32>
    %c3_55 = arith.constant 3 : index
    %c0_56 = arith.constant 0 : index
    %1127 = vector.load %arg3[%c3_55, %c0_56] : memref<4x256xf32, #tpu.memory_space<vmem>>, vector<1x256xf32>
    tpu.vector_store %arg3[%c3_55, %c0_56], %1126 {strides = array<i32>} : memref<4x256xf32, #tpu.memory_space<vmem>>, vector<1x256xf32>,
    %1128 = vector.broadcast %137 : f32 to vector<1x256xf32>
    %1129 = arith.mulf %1128, %644 : vector<1x256xf32>
    %1130 = vector.broadcast %138 : f32 to vector<1x256xf32>
    %1131 = arith.mulf %1130, %645 : vector<1x256xf32>
    %1132 = arith.addf %1129, %1131 : vector<1x256xf32>
    %1133 = vector.broadcast %139 : f32 to vector<1x256xf32>
    %1134 = arith.addf %1132, %1133 : vector<1x256xf32>
    %c1_57 = arith.constant 1 : index
    %c0_58 = arith.constant 0 : index
    %1135 = vector.load %arg4[%c1_57, %c0_58] : memref<2x256xf32, #tpu.memory_space<vmem>>, vector<1x256xf32>
    tpu.vector_store %arg4[%c1_57, %c0_58], %1134 {strides = array<i32>} : memref<2x256xf32, #tpu.memory_space<vmem>>, vector<1x256xf32>,
    %cst_59 = arith.constant dense<0.000000e+00> : vector<1xf32>
    %1136 = vector.multi_reduction <add>, %1134, %cst_59 [1] : vector<1x256xf32> to vector<1xf32>
    %1137 = vector.shape_cast %1136 : vector<1xf32> to vector<1x1xf32>
    %1138 = arith.addf %637, %1137 : vector<1x1xf32>
    %1139 = arith.mulf %1134, %1134 : vector<1x256xf32>
    %cst_60 = arith.constant dense<0.000000e+00> : vector<1xf32>
    %1140 = vector.multi_reduction <add>, %1139, %cst_60 [1] : vector<1x256xf32> to vector<1xf32>
    %1141 = vector.shape_cast %1140 : vector<1xf32> to vector<1x1xf32>
    %1142 = arith.addf %641, %1141 : vector<1x1xf32>
    %cst_61 = arith.constant 0.001953125 : f32
    %1143 = vector.broadcast %cst_61 : f32 to vector<1x1xf32>
    %1144 = arith.mulf %1107, %1143 : vector<1x1xf32>
    %cst_62 = arith.constant 0.001953125 : f32
    %1145 = vector.broadcast %cst_62 : f32 to vector<1x1xf32>
    %1146 = arith.mulf %1111, %1145 : vector<1x1xf32>
    %1147 = arith.mulf %1144, %1144 : vector<1x1xf32>
    %1148 = arith.subf %1146, %1147 : vector<1x1xf32>
    %cst_63 = arith.constant 0.000000e+00 : f32
    %1149 = vector.broadcast %cst_63 : f32 to vector<1x1xf32>
    %1150 = arith.maximumf %1148, %1149 : vector<1x1xf32>
    %cst_64 = arith.constant 9.99999974E-6 : f32
    %1151 = vector.broadcast %cst_64 : f32 to vector<1x1xf32>
    %1152 = arith.addf %1150, %1151 : vector<1x1xf32>
    %1153 = math.rsqrt %1152 : vector<1x1xf32>
    %c115 = arith.constant 115 : index
    %1154 = memref.load %arg1[%c115] : memref<121xf32, #tpu.memory_space<smem>>
    %1155 = vector.broadcast %1154 : f32 to vector<1x1xf32>
    %1156 = arith.mulf %1153, %1155 : vector<1x1xf32>
    %c117 = arith.constant 117 : index
    %1157 = memref.load %arg1[%c117] : memref<121xf32, #tpu.memory_space<smem>>
    %1158 = arith.mulf %1144, %1156 : vector<1x1xf32>
    %1159 = vector.broadcast %1157 : f32 to vector<1x1xf32>
    %1160 = arith.subf %1159, %1158 : vector<1x1xf32>
    %cst_65 = arith.constant 0.001953125 : f32
    %1161 = vector.broadcast %cst_65 : f32 to vector<1x1xf32>
    %1162 = arith.mulf %1117, %1161 : vector<1x1xf32>
    %cst_66 = arith.constant 0.001953125 : f32
    %1163 = vector.broadcast %cst_66 : f32 to vector<1x1xf32>
    %1164 = arith.mulf %1121, %1163 : vector<1x1xf32>
    %1165 = arith.mulf %1162, %1162 : vector<1x1xf32>
    %1166 = arith.subf %1164, %1165 : vector<1x1xf32>
    %cst_67 = arith.constant 0.000000e+00 : f32
    %1167 = vector.broadcast %cst_67 : f32 to vector<1x1xf32>
    %1168 = arith.maximumf %1166, %1167 : vector<1x1xf32>
    %cst_68 = arith.constant 9.99999974E-6 : f32
    %1169 = vector.broadcast %cst_68 : f32 to vector<1x1xf32>
    %1170 = arith.addf %1168, %1169 : vector<1x1xf32>
    %1171 = math.rsqrt %1170 : vector<1x1xf32>
    %c116 = arith.constant 116 : index
    %1172 = memref.load %arg1[%c116] : memref<121xf32, #tpu.memory_space<smem>>
    %1173 = vector.broadcast %1172 : f32 to vector<1x1xf32>
    %1174 = arith.mulf %1171, %1173 : vector<1x1xf32>
    %c118 = arith.constant 118 : index
    %1175 = memref.load %arg1[%c118] : memref<121xf32, #tpu.memory_space<smem>>
    %1176 = arith.mulf %1162, %1174 : vector<1x1xf32>
    %1177 = vector.broadcast %1175 : f32 to vector<1x1xf32>
    %1178 = arith.subf %1177, %1176 : vector<1x1xf32>
    %1179 = tpu.concatenate %1156, %1174, %1156, %1174 in 0 : vector<1x1xf32>, vector<1x1xf32>, vector<1x1xf32>, vector<1x1xf32> -> vector<4x1xf32>
    %1180 = tpu.concatenate %1160, %1178, %1160, %1178 in 0 : vector<1x1xf32>, vector<1x1xf32>, vector<1x1xf32>, vector<1x1xf32> -> vector<4x1xf32>
    %c0_69 = arith.constant 0 : index
    %c0_70 = arith.constant 0 : index
    %1181 = vector.load %arg2[%c0_69, %c0_70] : memref<4x256xf32, #tpu.memory_space<vmem>>, vector<4x256xf32>
    %1182 = vector.broadcast %1179 : vector<4x1xf32> to vector<4x256xf32>
    %1183 = arith.mulf %1181, %1182 : vector<4x256xf32>
    %1184 = vector.broadcast %1180 : vector<4x1xf32> to vector<4x256xf32>
    %1185 = arith.addf %1183, %1184 : vector<4x256xf32>
    %cst_71 = arith.constant 0.000000e+00 : f32
    %1186 = vector.broadcast %cst_71 : f32 to vector<4x256xf32>
    %1187 = arith.maximumf %1185, %1186 : vector<4x256xf32>
    %c0_72 = arith.constant 0 : index
    %c0_73 = arith.constant 0 : index
    %1188 = vector.load %arg2[%c0_72, %c0_73] : memref<4x256xf32, #tpu.memory_space<vmem>>, vector<4x256xf32>
    tpu.vector_store %arg2[%c0_72, %c0_73], %1187 {strides = array<i32>} : memref<4x256xf32, #tpu.memory_space<vmem>>, vector<4x256xf32>,
    %cst_74 = arith.constant 0.001953125 : f32
    %1189 = vector.broadcast %cst_74 : f32 to vector<1x1xf32>
    %1190 = arith.mulf %1138, %1189 : vector<1x1xf32>
    %cst_75 = arith.constant 0.001953125 : f32
    %1191 = vector.broadcast %cst_75 : f32 to vector<1x1xf32>
    %1192 = arith.mulf %1142, %1191 : vector<1x1xf32>
    %1193 = arith.mulf %1190, %1190 : vector<1x1xf32>
    %1194 = arith.subf %1192, %1193 : vector<1x1xf32>
    %cst_76 = arith.constant 0.000000e+00 : f32
    %1195 = vector.broadcast %cst_76 : f32 to vector<1x1xf32>
    %1196 = arith.maximumf %1194, %1195 : vector<1x1xf32>
    %cst_77 = arith.constant 9.99999974E-6 : f32
    %1197 = vector.broadcast %cst_77 : f32 to vector<1x1xf32>
    %1198 = arith.addf %1196, %1197 : vector<1x1xf32>
    %1199 = math.rsqrt %1198 : vector<1x1xf32>
    %c119 = arith.constant 119 : index
    %1200 = memref.load %arg1[%c119] : memref<121xf32, #tpu.memory_space<smem>>
    %1201 = vector.broadcast %1200 : f32 to vector<1x1xf32>
    %1202 = arith.mulf %1199, %1201 : vector<1x1xf32>
    %c120 = arith.constant 120 : index
    %1203 = memref.load %arg1[%c120] : memref<121xf32, #tpu.memory_space<smem>>
    %1204 = arith.mulf %1190, %1202 : vector<1x1xf32>
    %1205 = vector.broadcast %1203 : f32 to vector<1x1xf32>
    %1206 = arith.subf %1205, %1204 : vector<1x1xf32>
    %c0_78 = arith.constant 0 : index
    %c0_79 = arith.constant 0 : index
    %1207 = vector.load %arg4[%c0_78, %c0_79] : memref<2x256xf32, #tpu.memory_space<vmem>>, vector<2x256xf32>
    %1208 = vector.broadcast %1202 : vector<1x1xf32> to vector<2x256xf32>
    %1209 = arith.mulf %1207, %1208 : vector<2x256xf32>
    %1210 = vector.broadcast %1206 : vector<1x1xf32> to vector<2x256xf32>
    %1211 = arith.addf %1209, %1210 : vector<2x256xf32>
    %cst_80 = arith.constant 0.000000e+00 : f32
    %1212 = vector.broadcast %cst_80 : f32 to vector<2x256xf32>
    %1213 = arith.maximumf %1211, %1212 : vector<2x256xf32>
    %c0_81 = arith.constant 0 : index
    %c0_82 = arith.constant 0 : index
    %1214 = vector.load %arg4[%c0_81, %c0_82] : memref<2x256xf32, #tpu.memory_space<vmem>>, vector<2x256xf32>
    tpu.vector_store %arg4[%c0_81, %c0_82], %1213 {strides = array<i32>} : memref<2x256xf32, #tpu.memory_space<vmem>>, vector<2x256xf32>,
    return
  }
}

module attributes {stable_mosaic.version = 11 : i64} {
  func.func @_kernel_c(%arg0: memref<4x256xf32, #tpu.memory_space<vmem>>, %arg1: memref<4x256xf32, #tpu.memory_space<vmem>>, %arg2: memref<2x256xf32, #tpu.memory_space<vmem>>, %arg3: memref<2x256xf32, #tpu.memory_space<vmem>>, %arg4: memref<8xf32, #tpu.memory_space<smem>>, %arg5: memref<8x256xf32, #tpu.memory_space<vmem>>) attributes {dimension_semantics = [], scalar_prefetch = 0 : i64, scratch_operands = 0 : i64, tpu.core_type = #tpu.core_type<tc>} {
    %c0 = arith.constant 0 : index
    %c0_0 = arith.constant 0 : index
    %0 = vector.load %arg3[%c0, %c0_0] : memref<2x256xf32, #tpu.memory_space<vmem>>, vector<2x256xf32>
    %c0_1 = arith.constant 0 : index
    %c0_2 = arith.constant 0 : index
    %1 = vector.load %arg2[%c0_1, %c0_2] : memref<2x256xf32, #tpu.memory_space<vmem>>, vector<2x256xf32>
    %2 = arith.addf %0, %1 : vector<2x256xf32>
    %c0_3 = arith.constant 0 : index
    %3 = memref.load %arg4[%c0_3] : memref<8xf32, #tpu.memory_space<smem>>
    %4 = vector.broadcast %3 : f32 to vector<2x256xf32>
    %5 = arith.mulf %4, %2 : vector<2x256xf32>
    %c2 = arith.constant 2 : index
    %6 = memref.load %arg4[%c2] : memref<8xf32, #tpu.memory_space<smem>>
    %7 = vector.broadcast %6 : f32 to vector<2x256xf32>
    %8 = arith.addf %5, %7 : vector<2x256xf32>
    %c0_4 = arith.constant 0 : index
    %c0_5 = arith.constant 0 : index
    %9 = vector.load %arg1[%c0_4, %c0_5] : memref<4x256xf32, #tpu.memory_space<vmem>>, vector<2x256xf32>
    %10 = arith.addf %9, %8 : vector<2x256xf32>
    %cst = arith.constant dense<0.000000e+00> : vector<2xf32>
    %11 = vector.multi_reduction <add>, %10, %cst [1] : vector<2x256xf32> to vector<2xf32>
    %12 = vector.shape_cast %11 : vector<2xf32> to vector<2x1xf32>
    %cst_6 = arith.constant dense<0.000000e+00> : vector<1xf32>
    %13 = vector.multi_reduction <add>, %12, %cst_6 [0] : vector<2x1xf32> to vector<1xf32>
    %14 = vector.shape_cast %13 : vector<1xf32> to vector<1x1xf32>
    %cst_7 = arith.constant 0.001953125 : f32
    %15 = vector.broadcast %cst_7 : f32 to vector<1x1xf32>
    %16 = arith.mulf %14, %15 : vector<1x1xf32>
    %17 = arith.mulf %10, %10 : vector<2x256xf32>
    %cst_8 = arith.constant dense<0.000000e+00> : vector<2xf32>
    %18 = vector.multi_reduction <add>, %17, %cst_8 [1] : vector<2x256xf32> to vector<2xf32>
    %19 = vector.shape_cast %18 : vector<2xf32> to vector<2x1xf32>
    %cst_9 = arith.constant dense<0.000000e+00> : vector<1xf32>
    %20 = vector.multi_reduction <add>, %19, %cst_9 [0] : vector<2x1xf32> to vector<1xf32>
    %21 = vector.shape_cast %20 : vector<1xf32> to vector<1x1xf32>
    %cst_10 = arith.constant 0.001953125 : f32
    %22 = vector.broadcast %cst_10 : f32 to vector<1x1xf32>
    %23 = arith.mulf %21, %22 : vector<1x1xf32>
    %24 = arith.mulf %16, %16 : vector<1x1xf32>
    %25 = arith.subf %23, %24 : vector<1x1xf32>
    %cst_11 = arith.constant 0.000000e+00 : f32
    %26 = vector.broadcast %cst_11 : f32 to vector<1x1xf32>
    %27 = arith.maximumf %25, %26 : vector<1x1xf32>
    %cst_12 = arith.constant 9.99999974E-6 : f32
    %28 = vector.broadcast %cst_12 : f32 to vector<1x1xf32>
    %29 = arith.addf %27, %28 : vector<1x1xf32>
    %30 = math.rsqrt %29 : vector<1x1xf32>
    %c4 = arith.constant 4 : index
    %31 = memref.load %arg4[%c4] : memref<8xf32, #tpu.memory_space<smem>>
    %32 = vector.broadcast %31 : f32 to vector<1x1xf32>
    %33 = arith.mulf %30, %32 : vector<1x1xf32>
    %c6 = arith.constant 6 : index
    %34 = memref.load %arg4[%c6] : memref<8xf32, #tpu.memory_space<smem>>
    %35 = arith.mulf %16, %33 : vector<1x1xf32>
    %36 = vector.broadcast %34 : f32 to vector<1x1xf32>
    %37 = arith.subf %36, %35 : vector<1x1xf32>
    %38 = vector.broadcast %33 : vector<1x1xf32> to vector<2x256xf32>
    %39 = arith.mulf %10, %38 : vector<2x256xf32>
    %40 = vector.broadcast %37 : vector<1x1xf32> to vector<2x256xf32>
    %41 = arith.addf %39, %40 : vector<2x256xf32>
    %cst_13 = arith.constant 0.000000e+00 : f32
    %42 = vector.broadcast %cst_13 : f32 to vector<2x256xf32>
    %43 = arith.maximumf %41, %42 : vector<2x256xf32>
    %c1 = arith.constant 1 : index
    %44 = memref.load %arg4[%c1] : memref<8xf32, #tpu.memory_space<smem>>
    %45 = vector.broadcast %44 : f32 to vector<2x256xf32>
    %46 = arith.mulf %45, %2 : vector<2x256xf32>
    %c3 = arith.constant 3 : index
    %47 = memref.load %arg4[%c3] : memref<8xf32, #tpu.memory_space<smem>>
    %48 = vector.broadcast %47 : f32 to vector<2x256xf32>
    %49 = arith.addf %46, %48 : vector<2x256xf32>
    %c2_14 = arith.constant 2 : index
    %c0_15 = arith.constant 0 : index
    %50 = vector.load %arg1[%c2_14, %c0_15] : memref<4x256xf32, #tpu.memory_space<vmem>>, vector<2x256xf32>
    %51 = arith.addf %50, %49 : vector<2x256xf32>
    %cst_16 = arith.constant dense<0.000000e+00> : vector<2xf32>
    %52 = vector.multi_reduction <add>, %51, %cst_16 [1] : vector<2x256xf32> to vector<2xf32>
    %53 = vector.shape_cast %52 : vector<2xf32> to vector<2x1xf32>
    %cst_17 = arith.constant dense<0.000000e+00> : vector<1xf32>
    %54 = vector.multi_reduction <add>, %53, %cst_17 [0] : vector<2x1xf32> to vector<1xf32>
    %55 = vector.shape_cast %54 : vector<1xf32> to vector<1x1xf32>
    %cst_18 = arith.constant 0.001953125 : f32
    %56 = vector.broadcast %cst_18 : f32 to vector<1x1xf32>
    %57 = arith.mulf %55, %56 : vector<1x1xf32>
    %58 = arith.mulf %51, %51 : vector<2x256xf32>
    %cst_19 = arith.constant dense<0.000000e+00> : vector<2xf32>
    %59 = vector.multi_reduction <add>, %58, %cst_19 [1] : vector<2x256xf32> to vector<2xf32>
    %60 = vector.shape_cast %59 : vector<2xf32> to vector<2x1xf32>
    %cst_20 = arith.constant dense<0.000000e+00> : vector<1xf32>
    %61 = vector.multi_reduction <add>, %60, %cst_20 [0] : vector<2x1xf32> to vector<1xf32>
    %62 = vector.shape_cast %61 : vector<1xf32> to vector<1x1xf32>
    %cst_21 = arith.constant 0.001953125 : f32
    %63 = vector.broadcast %cst_21 : f32 to vector<1x1xf32>
    %64 = arith.mulf %62, %63 : vector<1x1xf32>
    %65 = arith.mulf %57, %57 : vector<1x1xf32>
    %66 = arith.subf %64, %65 : vector<1x1xf32>
    %cst_22 = arith.constant 0.000000e+00 : f32
    %67 = vector.broadcast %cst_22 : f32 to vector<1x1xf32>
    %68 = arith.maximumf %66, %67 : vector<1x1xf32>
    %cst_23 = arith.constant 9.99999974E-6 : f32
    %69 = vector.broadcast %cst_23 : f32 to vector<1x1xf32>
    %70 = arith.addf %68, %69 : vector<1x1xf32>
    %71 = math.rsqrt %70 : vector<1x1xf32>
    %c5 = arith.constant 5 : index
    %72 = memref.load %arg4[%c5] : memref<8xf32, #tpu.memory_space<smem>>
    %73 = vector.broadcast %72 : f32 to vector<1x1xf32>
    %74 = arith.mulf %71, %73 : vector<1x1xf32>
    %c7 = arith.constant 7 : index
    %75 = memref.load %arg4[%c7] : memref<8xf32, #tpu.memory_space<smem>>
    %76 = arith.mulf %57, %74 : vector<1x1xf32>
    %77 = vector.broadcast %75 : f32 to vector<1x1xf32>
    %78 = arith.subf %77, %76 : vector<1x1xf32>
    %79 = vector.broadcast %74 : vector<1x1xf32> to vector<2x256xf32>
    %80 = arith.mulf %51, %79 : vector<2x256xf32>
    %81 = vector.broadcast %78 : vector<1x1xf32> to vector<2x256xf32>
    %82 = arith.addf %80, %81 : vector<2x256xf32>
    %cst_24 = arith.constant 0.000000e+00 : f32
    %83 = vector.broadcast %cst_24 : f32 to vector<2x256xf32>
    %84 = arith.maximumf %82, %83 : vector<2x256xf32>
    %c0_25 = arith.constant 0 : index
    %c0_26 = arith.constant 0 : index
    %85 = vector.load %arg0[%c0_25, %c0_26] : memref<4x256xf32, #tpu.memory_space<vmem>>, vector<2x256xf32>
    %c0_27 = arith.constant 0 : index
    %c0_28 = arith.constant 0 : index
    %86 = vector.load %arg5[%c0_27, %c0_28] : memref<8x256xf32, #tpu.memory_space<vmem>>, vector<2x256xf32>
    tpu.vector_store %arg5[%c0_27, %c0_28], %85 {strides = array<i32>} : memref<8x256xf32, #tpu.memory_space<vmem>>, vector<2x256xf32>,
    %87 = vector.extract_strided_slice %43 {offsets = [0, 0], sizes = [1, 256], strides = [1, 1]} : vector<2x256xf32> to vector<1x256xf32>
    %c2_29 = arith.constant 2 : index
    %c0_30 = arith.constant 0 : index
    %88 = vector.load %arg5[%c2_29, %c0_30] : memref<8x256xf32, #tpu.memory_space<vmem>>, vector<1x256xf32>
    tpu.vector_store %arg5[%c2_29, %c0_30], %87 {strides = array<i32>} : memref<8x256xf32, #tpu.memory_space<vmem>>, vector<1x256xf32>,
    %89 = vector.extract_strided_slice %84 {offsets = [0, 0], sizes = [1, 256], strides = [1, 1]} : vector<2x256xf32> to vector<1x256xf32>
    %c3_31 = arith.constant 3 : index
    %c0_32 = arith.constant 0 : index
    %90 = vector.load %arg5[%c3_31, %c0_32] : memref<8x256xf32, #tpu.memory_space<vmem>>, vector<1x256xf32>
    tpu.vector_store %arg5[%c3_31, %c0_32], %89 {strides = array<i32>} : memref<8x256xf32, #tpu.memory_space<vmem>>, vector<1x256xf32>,
    %c2_33 = arith.constant 2 : index
    %c0_34 = arith.constant 0 : index
    %91 = vector.load %arg0[%c2_33, %c0_34] : memref<4x256xf32, #tpu.memory_space<vmem>>, vector<2x256xf32>
    %c4_35 = arith.constant 4 : index
    %c0_36 = arith.constant 0 : index
    %92 = vector.load %arg5[%c4_35, %c0_36] : memref<8x256xf32, #tpu.memory_space<vmem>>, vector<2x256xf32>
    tpu.vector_store %arg5[%c4_35, %c0_36], %91 {strides = array<i32>} : memref<8x256xf32, #tpu.memory_space<vmem>>, vector<2x256xf32>,
    %93 = vector.extract_strided_slice %43 {offsets = [1, 0], sizes = [1, 256], strides = [1, 1]} : vector<2x256xf32> to vector<1x256xf32>
    %c6_37 = arith.constant 6 : index
    %c0_38 = arith.constant 0 : index
    %94 = vector.load %arg5[%c6_37, %c0_38] : memref<8x256xf32, #tpu.memory_space<vmem>>, vector<1x256xf32>
    tpu.vector_store %arg5[%c6_37, %c0_38], %93 {strides = array<i32>} : memref<8x256xf32, #tpu.memory_space<vmem>>, vector<1x256xf32>,
    %95 = vector.extract_strided_slice %84 {offsets = [1, 0], sizes = [1, 256], strides = [1, 1]} : vector<2x256xf32> to vector<1x256xf32>
    %c7_39 = arith.constant 7 : index
    %c0_40 = arith.constant 0 : index
    %96 = vector.load %arg5[%c7_39, %c0_40] : memref<8x256xf32, #tpu.memory_space<vmem>>, vector<1x256xf32>
    tpu.vector_store %arg5[%c7_39, %c0_40], %95 {strides = array<i32>} : memref<8x256xf32, #tpu.memory_space<vmem>>, vector<1x256xf32>,
    return
  }
}

</mosaic_0001>

<bundles_post_ra>
// kernel: reverse.0
= control target key start
LH: loop header
LB: loop body
LE: loop exit
PB: predicated region body
PF: predicated region fallthrough
CT: control target
= control target key end

     0   :  { %v2_v0 = vlaneseq  ;;  %s160_s0 = inlined_call_operand.vmem [shape: f32[2,16,7], index: 0, kind: input, shape index: {}]   ;;  %s161_s1 = inlined_call_operand.vmem [shape: f32[2,16,7], index: 1, kind: output, shape index: {}]  }
   0x1   :  { %v42_v2 = vld [vmem:[%s160_s0 + $0x10] sm:$0xff]  ;;  %v38_v3 = vld [vmem:[%s160_s0] sm:$0xff]  ;;  %v44_v4 = vld [vmem:[%s160_s0 + $0x18] sm:$0xff] }
   0x2   :  { %v3_v1 = vsub.s32 6, %v2_v0  ;;  %v40_v5 = vld [vmem:[%s160_s0 + $0x8] sm:$0xff] }
   0x4   :  { %4 = vset.pattern.permute.xlu0 %v3_v1  ;;  %125 = vset.pattern.permute.xlu1 %v3_v1 }
   0x5   :  { %62 = vperm.xlu1 %125, %v42_v2   ;;  %50 = vperm.xlu0 %4, %v38_v3  }
   0x9   :  { %68 = vperm.xlu1 %125, %v44_v4   ;;  %56 = vperm.xlu0 %4, %v40_v5  }
  0x84   :  { %v63_v6 = vpop.permute.xlu1 %62  ;;  %v51_v7 = vpop.permute.xlu0 %50 }
  0x85   :  { %109 = vst [vmem:[%s161_s1 + $0x10] sm:$0xff] %v63_v6  ;;  %105 = vst [vmem:[%s161_s1] sm:$0xff] %v51_v7 }
  0x88   :  { %v69_v8 = vpop.permute.xlu1 %68  ;;  %v57_v9 = vpop.permute.xlu0 %56 }
  0x89   :  { %111 = vst [vmem:[%s161_s1 + $0x18] sm:$0xff] %v69_v8  ;;  %107 = vst [vmem:[%s161_s1 + $0x8] sm:$0xff] %v57_v9 }

// kernel: ffc_forward.5
= control target key start
LH: loop header
LB: loop body
LE: loop exit
PB: predicated region body
PF: predicated region fallthrough
CT: control target
= control target key end

     0   :  { %10 = vsyncpa [#allocation3], 0  ;;  %s409_s0 = inlined_call_operand.vmem [shape: f32[4,256], index: 0, kind: input, shape index: {}]   ;;  %s410_s1 = inlined_call_operand.vmem [shape: f32[4,256], index: 1, kind: input, shape index: {}]   ;;  %s411_s2 = inlined_call_operand.vmem [shape: f32[2,256], index: 2, kind: input, shape index: {}]   ;;  %s412_s3 = inlined_call_operand.vmem [shape: f32[2,256], index: 3, kind: input, shape index: {}]   ;;  %s413_s4 = inlined_call_operand.vmem [shape: f32[8], index: 4, kind: input, shape index: {}]   ;;  %s414_s5 = inlined_call_operand.vmem [shape: f32[8,256], index: 5, kind: output, shape index: {}]  }
   0x1   :  { %s25_s20 = sshll.u32 %s413_s4, 4  ;;  %s26_s20 = int_to_ptr.vmem [resolvable:$true] %s25_s20 }
   0x2   :  { %s283_s21 = scalar_lea.vmem %s26_s20, 16  ;;  %p288_p1 = scmp.lt.s32.totalorder %s26_s20, %s26_s20 }
   0x3   :  { %p284_p0 = scmp.ne.s32.totalorder %s26_s20, %s283_s21  ;;  %p289_p2 = scmp.lt.s32.totalorder %s283_s21, %s283_s21 }
   0x5   :  { %p290_p3 = por %p289_p2, %p288_p1 }
   0x7   :  { %p291_p4 = pnand %p290_p3, %p284_p0 }
   0x9   :  { %294 = shalt.err (!%p291_p4)
}
   0xa   :  { %s297_s22 = smov [#allocation2]  }
   0xb   :  { %28 = dma.vmem_to_smem %s26_s20, 16, %s297_s22, [#allocation3]  }
   0xc   :  { %295 = dma.done.wait [#allocation3], 16  }
   0xd   :  { %296 = vsyncadd [#allocation3], 4294967280 }
   0xe   :  { %32 = sfence }
   0xf   :  { %v33_v0 = vld [vmem:[%s412_s3] sm:$0xf]  ;;  %s36_s4 = sld [smem:[#allocation2]]  ;;  %v47_v2 = vlaneseq  ;;  %s263_s27 = sld [smem:[#allocation2 + $0x2]]  ;;  %v298_v3 = vmov 1983009808  }
  0x10   :  { %v34_v1 = vld [vmem:[%s411_s2] sm:$0xf]  ;;  %v45_v4 = vunpack.c.l.s4 %v298_v3  ;;  %s266_s28 = sld [smem:[#allocation2 + $0x1]]  ;;  %s267_s29 = sld [smem:[#allocation2 + $0x3]]  ;;  %vm56_vm0 = vcmask 1041408   ;;  %vm123_vm1 = vcmask 1043458  }
  0x11   :  { %v35_v5 = vadd.f32 %v34_v1, %v33_v0  ;;  %v340_v6 = vshrl.u32 %v47_v2, 7  ;;  %v42_v16 = vld [vmem:[%s410_s1] sm:$0x33]  ;;  %v108_v21 = vld [vmem:[%s410_s1] sm:$0xcc]  ;;  %s265_s18 = sld [smem:[#allocation2 + $0x6]] }
  0x12   :  { %v46_v7 = vunpack.c.0.s8 %v45_v4  ;;  %v224_v42 = vld [vmem:[%s409_s0] sm:$0xcc]  ;;  %v175_v44 = vld [vmem:[%s409_s0] sm:$0x33]  ;;  %s264_s0 = sld [smem:[#allocation2 + $0x4]]  ;;  %s268_s19 = sld [smem:[#allocation2 + $0x5]] }
  0x13   :  { %v226_v43 = vcombine.high %v224_v42, %v224_v42  ;;  %v177_v45 = vcombine.high %v175_v44, %v175_v44  ;;  %179 = vst [vmem:[%s414_s5] sm:$0x3] %v175_v44  ;;  %v227_v46 = vrot.slane %v224_v42, 6  ;;  %s269_s20 = sld [smem:[#allocation2 + $0x7]]  ;;  %vm199_vm2 = vcmp.lt.s32.totalorder %v47_v2, 256 }
  0x14   :  { %v49_v11 = vsub.s32 %v46_v7, %v340_v6 }
  0x15   :  { %v37_v8 = vstv %s36_s4  ;;  %v40_v10 = vstv %s263_s27  ;;  %v228_v47 = vrot.slane %v226_v43, 6  ;;  %180 = vst [vmem:[%s414_s5 + $0x8] sm:$0x3] %v177_v45  ;;  %231 = vst [vmem:[%s414_s5] sm:$0x30] %v227_v46 }
  0x16   :  { %v38_v9 = vmul.f32 %v37_v8, %v35_v5  ;;  %v103_v12 = vstv %s266_s28  ;;  %v106_v15 = vstv %s267_s29 }
  0x17   :  { %v104_v14 = vmul.f32 %v103_v12, %v35_v5  ;;  %232 = vst [vmem:[%s414_s5 + $0x8] sm:$0x30] %v228_v47 }
  0x18   :  { %v41_v13 = vadd.f32 %v40_v10, %v38_v9  ;;  %v166_v42 = vstv %s268_s19 }
  0x19   :  { %v107_v18 = vadd.f32 %v106_v15, %v104_v14 }
  0x1a   :  { %v50_v17 = vrot.slane %v41_v13, %v49_v11 }
  0x1b   :  { %v110_v20 = vcombine.low %v107_v18, %v107_v18 }
  0x1c   :  { %v346_v19 = vadd.f32 %v50_v17, %v42_v16 }
  0x1d   :  { %v117_v24 = vrot.slane %v110_v20, %v49_v11 }
  0x1e   :  { %v54_v22 = vcombine.high %v346_v19, %v346_v19  ;;  %v57_v23 = vsel %vm56_vm0, %v346_v19, 0.0  ;;  %v70_v25 = vmul.f32 %v346_v19, %v346_v19 }
  0x1f   :  { %v358_v27 = vadd.f32 %v117_v24, %v108_v21 }
  0x20   :  { %v58_v26 = vsel %vm56_vm0, %v54_v22, 0.0  ;;  %v72_v28 = vcombine.high %v70_v25, %v70_v25  ;;  %v74_v29 = vsel %vm56_vm0, %v70_v25, 0.0 }
  0x21   :  { %v59_v30 = vadd.f32 %v58_v26, %v57_v23  ;;  %v121_v31 = vcombine.high %v358_v27, %v358_v27  ;;  %v124_v32 = vsel %vm123_vm1, %v358_v27, 0.0  ;;  %v140_v34 = vmul.f32 %v358_v27, %v358_v27 }
  0x22   :  { %v75_v33 = vsel %vm56_vm0, %v72_v28, 0.0 }
  0x23   :  { %60 = vadd.xlane.f32.xlu1 %v59_v30  ;;  %v76_v35 = vadd.f32 %v75_v33, %v74_v29  ;;  %v125_v36 = vsel %vm123_vm1, %v121_v31, 0.0  ;;  %v142_v37 = vcombine.high %v140_v34, %v140_v34  ;;  %v144_v38 = vsel %vm123_vm1, %v140_v34, 0.0 }
  0x24   :  { %v126_v39 = vadd.f32 %v125_v36, %v124_v32  ;;  %v93_v34 = vstv %s264_s0 }
  0x25   :  { %v145_v40 = vsel %vm123_vm1, %v142_v37, 0.0 }
  0x26   :  { %127 = vadd.xlane.f32.xlu0 %v126_v39  ;;  %v146_v41 = vadd.f32 %v145_v40, %v144_v38  ;;  %v97_v39 = vstv %s265_s18 }
  0x27   :  { %77 = vadd.xlane.f32.xlu1 %v76_v35  ;;  %v299_v35 = vmov 1966171168  }
  0x28   :  { %v183_v36 = vunpack.c.l.s4 %v299_v35 }
  0x2a   :  { %147 = vadd.xlane.f32.xlu0 %v146_v41  ;;  %v184_v40 = vunpack.c.0.s8 %v183_v36 }
  0x2c   :  { %v187_v46 = vsub.s32 %v184_v40, %v340_v6 }
  0xb0   :  { %v61_v48 = vpop.xlane.xlu1 %60 }
  0xb1   :  { %v62_v49 = vsel %vm56_vm0, %v61_v48, 0.0 }
  0xb2   :  { %v63_v50 = vrot.slane %v62_v49, 4 }
  0xb3   :  { %v128_v52 = vpop.xlane.xlu0 %127 }
  0xb4   :  { %v64_v51 = vadd.f32 %v63_v50, %v62_v49  ;;  %v78_v53 = vpop.xlane.xlu1 %77  ;;  %v130_v54 = vrot.slane %v128_v52, 2  ;;  %v170_v49 = vstv %s269_s20 }
  0xb5   :  { %v79_v55 = vsel %vm56_vm0, %v78_v53, 0.0 }
  0xb6   :  { %v65_v56 = vrot.slane %v64_v51, 2  ;;  %v80_v57 = vrot.slane %v79_v55, 4  ;;  %v132_v58 = vsel %vm56_vm0, %v130_v54, 0.0 }
  0xb7   :  { %v133_v60 = vrot.slane %v132_v58, 4  ;;  %v148_v62 = vpop.xlane.xlu0 %147 }
  0xb8   :  { %v66_v59 = vadd.f32 %v65_v56, %v64_v51  ;;  %v81_v61 = vadd.f32 %v80_v57, %v79_v55  ;;  %v150_v63 = vrot.slane %v148_v62, 2 }
  0xb9   :  { %v134_v1 = vadd.f32 %v133_v60, %v132_v58 }
  0xba   :  { %v67_v0 = vrot.slane %v66_v59, 1  ;;  %v82_v3 = vrot.slane %v81_v61, 2  ;;  %v152_v4 = vsel %vm56_vm0, %v150_v63, 0.0 }
  0xbb   :  { %v135_v7 = vrot.slane %v134_v1, 2  ;;  %v153_v9 = vrot.slane %v152_v4, 4 }
  0xbc   :  { %v68_v5 = vadd.f32 %v67_v0, %v66_v59  ;;  %v83_v8 = vadd.f32 %v82_v3, %v81_v61 }
  0xbd   :  { %v136_v11 = vadd.f32 %v135_v7, %v134_v1  ;;  %v154_v13 = vadd.f32 %v153_v9, %v152_v4 }
  0xbe   :  { %v69_v10 = vmul.f32 0.001953125, %v68_v5  ;;  %v84_v12 = vrot.slane %v83_v8, 1 }
  0xbf   :  { %v137_v14 = vrot.slane %v136_v11, 1  ;;  %v155_v16 = vrot.slane %v154_v13, 2 }
  0xc0   :  { %v85_v15 = vadd.f32 %v84_v12, %v83_v8  ;;  %v87_v17 = vmul.f32 %v69_v10, %v69_v10 }
  0xc1   :  { %v138_v18 = vadd.f32 %v137_v14, %v136_v11  ;;  %v156_v21 = vadd.f32 %v155_v16, %v154_v13 }
  0xc2   :  { %v86_v20 = vmul.f32 0.001953125, %v85_v15 }
  0xc3   :  { %v139_v22 = vmul.f32 0.001953125, %v138_v18  ;;  %v157_v24 = vrot.slane %v156_v21, 1 }
  0xc4   :  { %v88_v23 = vsub.f32 %v86_v20, %v87_v17 }
  0xc5   :  { %v158_v26 = vadd.f32 %v157_v24, %v156_v21  ;;  %v160_v28 = vmul.f32 %v139_v22, %v139_v22 }
  0xc6   :  { %v89_v25 = vmax.f32 %v88_v23, 0.0 }
  0xc7   :  { %v159_v30 = vmul.f32 0.001953125, %v158_v26 }
  0xc8   :  { %v90_v29 = vadd.f32 1e-05, %v89_v25 }
  0xc9   :  { %v161_v31 = vsub.f32 %v159_v30, %v160_v28 }
  0xca   :  { %279 = vrsqrt.f32 %v90_v29 }
  0xcb   :  { %v162_v32 = vmax.f32 %v161_v31, 0.0 }
  0xcd   :  { %v163_v33 = vadd.f32 1e-05, %v162_v32 }
  0xcf   :  { %281 = vrsqrt.f32 %v163_v33 }
  0xd4   :  { %v280_v37 = vpop.eup %279 }
  0xd5   :  { %v94_v38 = vmul.f32 %v280_v37, %v93_v34 }
  0xd7   :  { %v96_v41 = vmul.f32 %v94_v38, %v69_v10  ;;  %v99_v44 = vmul.f32 %v94_v38, %v346_v19 }
  0xd9   :  { %v98_v43 = vsub.f32 %v97_v39, %v96_v41  ;;  %v282_v45 = vpop.eup %281 }
  0xda   :  { %v167_v48 = vmul.f32 %v282_v45, %v166_v42 }
  0xdb   :  { %v100_v47 = vadd.f32 %v99_v44, %v98_v43 }
  0xdc   :  { %v169_v51 = vmul.f32 %v167_v48, %v139_v22  ;;  %v172_v54 = vmul.f32 %v167_v48, %v358_v27 }
  0xdd   :  { %v101_v50 = vmax.f32 %v100_v47, 0.0 }
  0xde   :  { %v171_v53 = vsub.f32 %v170_v49, %v169_v51 }
  0xdf   :  { %v188_v52 = vrot.slane %v101_v50, %v187_v46 }
  0xe0   :  { %v173_v57 = vadd.f32 %v172_v54, %v171_v53 }
  0xe1   :  { %v195_v55 = vrot.slane %v188_v52, %v187_v46  ;;  %v233_v56 = vcombine.high %v188_v52, %v188_v52 }
  0xe2   :  { %v174_v6 = vmax.f32 %v173_v57, 0.0 }
  0xe3   :  { %270 = vst.msk [vmem:[%s414_s5 + $0x2] ss:$8 sm:$0x3] %vm199_vm2, %v195_v55  ;;  %v240_v19 = vrot.slane %v233_v56, %v187_v46 }
  0xe4   :  { %v211_v58 = vrot.slane %v174_v6, %v187_v46 }
  0xe5   :  { %272 = vst.msk [vmem:[%s414_s5 + $0x6] ss:$8 sm:$0x3] %vm199_vm2, %v240_v19 }
  0xe6   :  { %v218_v59 = vrot.slane %v211_v58, %v187_v46  ;;  %v245_v60 = vcombine.high %v211_v58, %v211_v58 }
  0xe8   :  { %v219_v61 = vcombine.high %v218_v59, %v218_v59  ;;  %v252_v27 = vrot.slane %v245_v60, %v187_v46 }
  0xea   :  { %271 = vst.msk [vmem:[%s414_s5 + $0x3] ss:$8 sm:$0x3] %vm199_vm2, %v219_v61  ;;  %v253_v2 = vcombine.high %v252_v27, %v252_v27 }
  0xec   :  { %273 = vst.msk [vmem:[%s414_s5 + $0x7] ss:$8 sm:$0x3] %vm199_vm2, %v253_v2 }
  0xed   :  { %262 = vsyncpa [#allocation3], 1 }

// kernel: ffc_forward.4
= control target key start
LH: loop header
LB: loop body
LE: loop exit
PB: predicated region body
PF: predicated region fallthrough
CT: control target
= control target key end

     0   :  { %7 = vsyncpa [#allocation3], 0  ;;  %s257_s0 = inlined_call_operand.vmem [shape: f32[4,144], index: 0, kind: input, shape index: {}]   ;;  %s258_s1 = inlined_call_operand.vmem [shape: f32[10], index: 1, kind: input, shape index: {}]   ;;  %s259_s2 = inlined_call_operand.vmem [shape: f32[4,144], index: 2, kind: output, shape index: {}]  }
   0x1   :  { %s16_s11 = sshll.u32 %s258_s1, 4  ;;  %s17_s11 = int_to_ptr.vmem [resolvable:$true] %s16_s11 }
   0x2   :  { %s183_s12 = scalar_lea.vmem %s17_s11, 16  ;;  %p188_p1 = scmp.lt.s32.totalorder %s17_s11, %s17_s11 }
   0x3   :  { %p184_p0 = scmp.ne.s32.totalorder %s17_s11, %s183_s12  ;;  %p189_p2 = scmp.lt.s32.totalorder %s183_s12, %s183_s12 }
   0x5   :  { %p190_p3 = por %p189_p2, %p188_p1 }
   0x7   :  { %p191_p4 = pnand %p190_p3, %p184_p0 }
   0x9   :  { %194 = shalt.err (!%p191_p4)
}
   0xa   :  { %s197_s13 = smov [#allocation2]  }
   0xb   :  { %19 = dma.vmem_to_smem %s17_s11, 16, %s197_s13, [#allocation3]  }
   0xc   :  { %195 = dma.done.wait [#allocation3], 16  }
   0xd   :  { %196 = vsyncadd [#allocation3], 4294967280 }
   0xe   :  { %23 = sfence }
   0xf   :  { %s172_s14 = sld [smem:[#allocation2 + $0x1]]  ;;  %s173_s15 = sld [smem:[#allocation2 + $0x3]]  ;;  %v24_v0 = vld [vmem:[%s257_s0] sm:$0x33]  ;;  %v25_v1 = vld [vmem:[%s257_s0] sm:$0xcc] }
  0x10   :  { %s26_s16 = sld [smem:[#allocation2]]  ;;  %s175_s17 = sld [smem:[#allocation2 + $0x5]]  ;;  %vm43_vm0 = vcmask 1041408   ;;  %vm45_vm1 = vcmask 123904   ;;  %vm158_vm2 = vcmask 1043458   ;;  %vm159_vm3 = vcmask 130054  }
  0x11   :  { %s167_s18 = sld [smem:[#allocation2 + $0x2]]  ;;  %s169_s22 = sld [smem:[#allocation2 + $0x4]]  ;;  %vm90_vm4 = vcmask 128004   ;;  %vm160_vm5 = vmor %vm159_vm3, %vm158_vm2 }
  0x12   :  { %s176_s0 = sld [smem:[#allocation2 + $0x7]]  ;;  %s177_s23 = sld [smem:[#allocation2 + $0x9]]  ;;  %vm91_vm6 = vmor %vm90_vm4, %vm43_vm0 }
  0x13   :  { %s170_s24 = sld [smem:[#allocation2 + $0x6]]  ;;  %s171_s25 = sld [smem:[#allocation2 + $0x8]] }
  0x15   :  { %v94_v2 = vstv %s172_s14  ;;  %v97_v3 = vstv %s173_s15 }
  0x16   :  { %v95_v4 = vmul.f32 %v94_v2, %v24_v0  ;;  %v98_v5 = vmul.f32 %v97_v3, %v25_v1  ;;  %v27_v6 = vstv %s26_s16  ;;  %v105_v11 = vstv %s175_s17 }
  0x17   :  { %v30_v7 = vstv %s167_s18  ;;  %v28_v9 = vmul.f32 %v27_v6, %v24_v0  ;;  %v38_v14 = vstv %s169_s22 }
  0x18   :  { %v174_v8 = vrot.slane %v98_v5, 10  ;;  %v31_v10 = vmul.f32 %v30_v7, %v25_v1 }
  0x1a   :  { %v103_v12 = vadd.f32 %v174_v8, %v95_v4  ;;  %v168_v13 = vrot.slane %v31_v10, 10 }
  0x1c   :  { %v222_v15 = vadd.f32 %v105_v11, %v103_v12  ;;  %v36_v16 = vadd.f32 %v168_v13, %v28_v9 }
  0x1e   :  { %v108_v17 = vcombine.high %v222_v15, %v222_v15  ;;  %v110_v18 = vsel %vm43_vm0, %v222_v15, 0.0  ;;  %v123_v19 = vmul.f32 %v222_v15, %v222_v15  ;;  %v230_v20 = vadd.f32 %v38_v14, %v36_v16 }
  0x20   :  { %v111_v21 = vsel %vm45_vm1, %v108_v17, 0.0  ;;  %v125_v22 = vcombine.high %v123_v19, %v123_v19  ;;  %v127_v23 = vsel %vm43_vm0, %v123_v19, 0.0  ;;  %v41_v24 = vcombine.high %v230_v20, %v230_v20 }
  0x21   :  { %v112_v25 = vadd.f32 %v111_v21, %v110_v18  ;;  %v44_v26 = vsel %vm43_vm0, %v230_v20, 0.0  ;;  %v58_v27 = vmul.f32 %v230_v20, %v230_v20  ;;  %v146_v17 = vstv %s176_s0 }
  0x22   :  { %v128_v28 = vsel %vm45_vm1, %v125_v22, 0.0  ;;  %v46_v29 = vsel %vm45_vm1, %v41_v24, 0.0  ;;  %v150_v21 = vstv %s177_s23  ;;  %v81_v22 = vstv %s170_s24 }
  0x23   :  { %113 = vadd.xlane.f32.xlu0 %v112_v25  ;;  %v129_v30 = vadd.f32 %v128_v28, %v127_v23  ;;  %v47_v31 = vadd.f32 %v46_v29, %v44_v26  ;;  %v60_v32 = vcombine.high %v58_v27, %v58_v27  ;;  %v62_v33 = vsel %vm43_vm0, %v58_v27, 0.0 }
  0x24   :  { %v85_v28 = vstv %s171_s25 }
  0x25   :  { %130 = vadd.xlane.f32.xlu1 %v129_v30  ;;  %v63_v34 = vsel %vm45_vm1, %v60_v32, 0.0 }
  0x26   :  { %v64_v35 = vadd.f32 %v63_v34, %v62_v33 }
  0x27   :  { %48 = vadd.xlane.f32.xlu0 %v47_v31 }
  0x29   :  { %65 = vadd.xlane.f32.xlu1 %v64_v35 }
  0xb0   :  { %v114_v36 = vpop.xlane.xlu0 %113 }
  0xb1   :  { %v115_v37 = vsel %vm43_vm0, %v114_v36, 0.0 }
  0xb2   :  { %v116_v38 = vrot.slane %v115_v37, 4  ;;  %v131_v39 = vpop.xlane.xlu1 %130 }
  0xb3   :  { %v132_v40 = vsel %vm43_vm0, %v131_v39, 0.0 }
  0xb4   :  { %v117_v41 = vadd.f32 %v116_v38, %v115_v37  ;;  %v133_v42 = vrot.slane %v132_v40, 4  ;;  %v49_v43 = vpop.xlane.xlu0 %48 }
  0xb5   :  { %v50_v44 = vsel %vm43_vm0, %v49_v43, 0.0 }
  0xb6   :  { %v118_v45 = vrot.slane %v117_v41, 2  ;;  %v134_v46 = vadd.f32 %v133_v42, %v132_v40  ;;  %v51_v47 = vrot.slane %v50_v44, 4  ;;  %v66_v48 = vpop.xlane.xlu1 %65 }
  0xb7   :  { %v67_v49 = vsel %vm43_vm0, %v66_v48, 0.0 }
  0xb8   :  { %v119_v50 = vadd.f32 %v118_v45, %v117_v41  ;;  %v135_v51 = vrot.slane %v134_v46, 2  ;;  %v52_v52 = vadd.f32 %v51_v47, %v50_v44  ;;  %v68_v53 = vrot.slane %v67_v49, 4 }
  0xba   :  { %v120_v54 = vrot.slane %v119_v50, 1  ;;  %v136_v55 = vadd.f32 %v135_v51, %v134_v46  ;;  %v53_v56 = vrot.slane %v52_v52, 2  ;;  %v69_v57 = vadd.f32 %v68_v53, %v67_v49 }
  0xbc   :  { %v121_v58 = vadd.f32 %v120_v54, %v119_v50  ;;  %v137_v59 = vrot.slane %v136_v55, 1  ;;  %v54_v60 = vadd.f32 %v53_v56, %v52_v52  ;;  %v70_v61 = vrot.slane %v69_v57, 2 }
  0xbe   :  { %v122_v62 = vmul.f32 0.0034722222, %v121_v58  ;;  %v138_v63 = vadd.f32 %v137_v59, %v136_v55  ;;  %v55_v0 = vrot.slane %v54_v60, 1  ;;  %v71_v1 = vadd.f32 %v70_v61, %v69_v57 }
  0xc0   :  { %v140_v2 = vmul.f32 %v122_v62, %v122_v62  ;;  %v139_v3 = vmul.f32 0.0034722222, %v138_v63  ;;  %v56_v4 = vadd.f32 %v55_v0, %v54_v60  ;;  %v72_v5 = vrot.slane %v71_v1, 1 }
  0xc2   :  { %v141_v6 = vsub.f32 %v139_v3, %v140_v2  ;;  %v57_v7 = vmul.f32 0.0034722222, %v56_v4  ;;  %v73_v8 = vadd.f32 %v72_v5, %v71_v1 }
  0xc4   :  { %v142_v9 = vmax.f32 %v141_v6, 0.0  ;;  %v75_v10 = vmul.f32 %v57_v7, %v57_v7  ;;  %v74_v11 = vmul.f32 0.0034722222, %v73_v8 }
  0xc6   :  { %v143_v12 = vadd.f32 1e-05, %v142_v9  ;;  %v76_v13 = vsub.f32 %v74_v11, %v75_v10 }
  0xc8   :  { %179 = vrsqrt.f32 %v143_v12  ;;  %v77_v14 = vmax.f32 %v76_v13, 0.0 }
  0xca   :  { %v78_v16 = vadd.f32 1e-05, %v77_v14 }
  0xcc   :  { %181 = vrsqrt.f32 %v78_v16 }
  0xd2   :  { %v180_v18 = vpop.eup %179 }
  0xd3   :  { %v147_v19 = vmul.f32 %v180_v18, %v146_v17 }
  0xd5   :  { %v149_v23 = vmul.f32 %v147_v19, %v122_v62  ;;  %v152_v26 = vmul.f32 %v147_v19, %v222_v15 }
  0xd6   :  { %v182_v24 = vpop.eup %181 }
  0xd7   :  { %v151_v25 = vsub.f32 %v150_v21, %v149_v23  ;;  %v82_v27 = vmul.f32 %v182_v24, %v81_v22 }
  0xd9   :  { %v153_v29 = vadd.f32 %v152_v26, %v151_v25  ;;  %v84_v30 = vmul.f32 %v82_v27, %v57_v7  ;;  %v87_v33 = vmul.f32 %v82_v27, %v230_v20 }
  0xdb   :  { %v154_v31 = vmax.f32 %v153_v29, 0.0  ;;  %v86_v32 = vsub.f32 %v85_v28, %v84_v30 }
  0xdd   :  { %v156_v34 = vrot.slane %v154_v31, 6  ;;  %v88_v35 = vadd.f32 %v87_v33, %v86_v32 }
  0xdf   :  { %161 = vst.msk [vmem:[%s259_s2] sm:$0xcc] %vm160_vm5, %v156_v34  ;;  %v89_v15 = vmax.f32 %v88_v35, 0.0 }
  0xe1   :  { %92 = vst.msk [vmem:[%s259_s2] sm:$0x33] %vm91_vm6, %v89_v15 }
  0xe2   :  { %166 = vsyncpa [#allocation3], 1 }

// kernel: ffc_forward.3
= control target key start
LH: loop header
LB: loop body
LE: loop exit
PB: predicated region body
PF: predicated region fallthrough
CT: control target
= control target key end

     0   :  { %s6011_s0 = inlined_call_operand.vmem [shape: f32[8,256], index: 0, kind: input, shape index: {}]   ;;  %s6012_s1 = inlined_call_operand.vmem [shape: f32[121], index: 1, kind: input, shape index: {}]   ;;  %s6013_s2 = inlined_call_operand.vmem [shape: f32[4,256], index: 2, kind: output, shape index: {0}]   ;;  %s6014_s3 = inlined_call_operand.vmem [shape: f32[4,256], index: 3, kind: output, shape index: {1}]   ;;  %s6015_s4 = inlined_call_operand.vmem [shape: f32[2,256], index: 4, kind: output, shape index: {2}]  }
   0x1   :  { %6140 = sst [smem:[#allocation185_spill]] %s6011_s0 }
   0x2   :  { %6141 = sst [smem:[#allocation186_spill]] %s6013_s2 }
   0x3   :  { %6142 = sst [smem:[#allocation187_spill]] %s6014_s3 }
   0x4   :  { %6143 = sst [smem:[#allocation188_spill]] %s6015_s4 }
   0x5   :  { %10 = vsyncpa [#allocation3], 0  ;;  %s19_s17 = sshll.u32 %s6012_s1, 4  ;;  %s20_s17 = int_to_ptr.vmem [resolvable:$true] %s19_s17 }
   0x6   :  { %s2816_s18 = scalar_lea.vmem %s20_s17, 16  ;;  %p2821_p1 = scmp.lt.s32.totalorder %s20_s17, %s20_s17 }
   0x7   :  { %p2817_p0 = scmp.ne.s32.totalorder %s20_s17, %s2816_s18  ;;  %p2822_p2 = scmp.lt.s32.totalorder %s2816_s18, %s2816_s18 }
   0x9   :  { %p2823_p3 = por %p2822_p2, %p2821_p1 }
   0xb   :  { %p2824_p4 = pnand %p2823_p3, %p2817_p0 }
   0xd   :  { %2827 = shalt.err (!%p2824_p4)
}
   0xe   :  { %s2830_s19 = smov [#allocation2]  }
   0xf   :  { %22 = dma.vmem_to_smem %s20_s17, 16, %s2830_s19, [#allocation3]  }
  0x10   :  { %2828 = dma.done.wait [#allocation3], 16  }
  0x11   :  { %2829 = vsyncadd [#allocation3], 4294967280 }
  0x12   :  { %26 = sfence }
  0x13   :  { %v6025_v0 = vlaneseq  ;;  %v2872_v2 = vld [vmem:[%s6011_s0] ss:$8 sm:$0x3]  ;;  %s2831_s1 = smov 112   ;;  %s2832_s22 = smov 16   ;;  %vm198_vm0 = vcmask 130048  }
  0x14   :  { %v2889_v7 = vld [vmem:[%s6011_s0 + $0x4] ss:$8 sm:$0x3]  ;;  %v2774_v10 = vld [vmem:[%s6011_s0 + $0x1] ss:$8 sm:$0x3] }
  0x15   :  { %v2867_v1 = vshrl.u32 %v6025_v0, 7  ;;  %v2780_v13 = vld [vmem:[%s6011_s0 + $0x5] ss:$8 sm:$0x3]  ;;  %s6019_s11 = smov 1   ;;  %s6016_s12 = smov 127  }
  0x16   :  { %v2775_v16 = vld [vmem:[%s6011_s0 + $0x2] ss:$8 sm:$0x3]  ;;  %v2781_v19 = vld [vmem:[%s6011_s0 + $0x6] ss:$8 sm:$0x3] }
  0x17   :  { %6144 = vst [vmem:[#allocation5_spill] sm:$0xff] %v2867_v1  ;;  %v2875_v3 = vsub.s32 0, %v2867_v1  ;;  %v2878_v4 = vsub.s32 1, %v2867_v1  ;;  %v2776_v22 = vld [vmem:[%s6011_s0 + $0x3] ss:$8 sm:$0x3] }
  0x18   :  { %v2782_v25 = vld [vmem:[%s6011_s0 + $0x7] ss:$8 sm:$0x3]  ;;  %vm207_vm1 = vcmask 916480   ;;  %v3051_v45 = vand.u32 127, %v6025_v0  ;;  %s3205_s13 = sld [smem:[#allocation2 + $0x8]] }
  0x19   :  { %6145 = vst [vmem:[#allocation6_spill] sm:$0xff] %v2875_v3  ;;  %6146 = vst [vmem:[#allocation7_spill] sm:$0xff] %v2878_v4  ;;  %v195_v5 = vrot.slane %v2872_v2, %v2875_v3  ;;  %v188_v6 = vrot.slane %v2872_v2, %v2878_v4  ;;  %v1437_v8 = vrot.slane %v2889_v7, %v2875_v3  ;;  %s3210_s14 = sld [smem:[#allocation2 + $0x9]]  ;;  %s3212_s15 = sld [smem:[#allocation2 + $0x4e]]  ;;  %vm224_vm4 = vcmask 7168  }
  0x1a   :  { %v1430_v9 = vrot.slane %v2889_v7, %v2878_v4  ;;  %v2905_v11 = vrot.slane %v2774_v10, %v2875_v3  ;;  %v2908_v12 = vrot.slane %v2774_v10, %v2878_v4  ;;  %v2922_v14 = vrot.slane %v2780_v13, %v2875_v3  ;;  %s3218_s16 = sld [smem:[#allocation2 + $0x4f]]  ;;  %s3220_s17 = sld [smem:[#allocation2 + $0x38]] }
  0x1b   :  { %203 = vrot.lane.b32.xlu1 %v195_v5, %s2831_s1  ;;  %189 = vrot.lane.b32.xlu0 %v188_v6, %s2832_s22  ;;  %v2925_v15 = vrot.slane %v2780_v13, %v2878_v4  ;;  %v2939_v17 = vrot.slane %v2775_v16, %v2875_v3  ;;  %v2942_v18 = vrot.slane %v2775_v16, %v2878_v4  ;;  %vm54_vm2 = vcmp.lt.s32.totalorder %v3051_v45, 16  ;;  %s3231_s18 = sld [smem:[#allocation2 + $0x39]]  ;;  %s3233_s19 = sld [smem:[#allocation2 + $0x66]] }
  0x1c   :  { %v2956_v20 = vrot.slane %v2781_v19, %v2875_v3  ;;  %v2959_v21 = vrot.slane %v2781_v19, %v2878_v4  ;;  %v2973_v23 = vrot.slane %v2776_v22, %v2875_v3  ;;  %v2976_v24 = vrot.slane %v2776_v22, %v2878_v4  ;;  %s3235_s20 = sld [smem:[#allocation2 + $0x67]]  ;;  %s3237_s21 = sld [smem:[#allocation2 + $0xa]] }
  0x1d   :  { %v2990_v26 = vrot.slane %v2782_v25, %v2875_v3  ;;  %v2993_v27 = vrot.slane %v2782_v25, %v2878_v4  ;;  %v3072_v53 = vadd.s32 128, %v3051_v45  ;;  %s3248_s23 = sld [smem:[#allocation2 + $0xc]]  ;;  %s3250_s24 = sld [smem:[#allocation2 + $0x51]]  ;;  %vm233_vm5 = vcmask 1039360  }
  0x1e   :  { %6147 = vst [vmem:[#allocation8_spill] sm:$0xff] %v2973_v23  ;;  %6148 = vst [vmem:[#allocation9_spill] sm:$0xff] %v2976_v24  ;;  %s3259_s25 = sld [smem:[#allocation2 + $0xd]]  ;;  %s3261_s26 = sld [smem:[#allocation2 + $0x3c]]  ;;  %vm1278_vm11 = vcmask 1040384   ;;  %vm2576_vm12 = vcmask 1041408  }
  0x1f   :  { %205 = vrot.lane.b32.xlu1 %v188_v6, %s2831_s1  ;;  %196 = vrot.lane.b32.xlu0 %v195_v5, %s2832_s22  ;;  %6149 = vst [vmem:[#allocation10_spill] sm:$0xff] %v2990_v26  ;;  %6150 = vst [vmem:[#allocation11_spill] sm:$0xff] %v2993_v27  ;;  %vm57_vm3 = vcmp.ge.s32.totalorder %v3072_v53, 240  ;;  %s3263_s27 = sld [smem:[#allocation2 + $0x3d]]  ;;  %s3265_s28 = sld [smem:[#allocation2 + $0x68]]  ;;  %vm2578_vm13 = vcmask 1042432  }
  0x20   :  { %s3267_s29 = sld [smem:[#allocation2 + $0xe]]  ;;  %s3269_s30 = sld [smem:[#allocation2 + $0x69]] }
  0x21   :  { %s3276_s5 = sld [smem:[#allocation2 + $0xf]]  ;;  %s3278_s6 = sld [smem:[#allocation2 + $0x3e]] }
  0x22   :  { %s3284_s7 = sld [smem:[#allocation2 + $0x3f]]  ;;  %s3286_s8 = sld [smem:[#allocation2 + $0x3a]] }
  0x23   :  { %1438 = vrot.lane.b32.xlu1 %v1437_v8, %s2832_s22  ;;  %1431 = vrot.lane.b32.xlu0 %v1430_v9, %s2832_s22  ;;  %s3288_s9 = sld [smem:[#allocation2 + $0x18]]  ;;  %s3290_s10 = sld [smem:[#allocation2 + $0x3b]] }
  0x24   :  { %s3294_s4 = sld [smem:[#allocation2 + $0x28]]  ;;  %s3298_s2 = sld [smem:[#allocation2 + $0x56]]  ;;  %v3354_v0 = vstv %s3259_s25 }
  0x25   :  { %s6158_s3 = smov 127   ;;  %s3313_s0 = sld [smem:[#allocation2 + $0x57]] }
  0x26   :  { %v3374_v1 = vstv %s3267_s29  ;;  %s3724_s25 = sld [smem:[#allocation2 + $0x63]] }
  0x27   :  { %1446 = vrot.lane.b32.xlu1 %v1430_v9, %s2831_s1  ;;  %1444 = vrot.lane.b32.xlu0 %v1437_v8, %s2831_s1  ;;  %6160 = vst [vmem:[#allocation19_spill] sm:$0xff] %v3374_v1  ;;  %s3990_s29 = sld [smem:[#allocation2 + $0x6b]] }
  0x2a   :  { %v3404_v1 = vstv %s3294_s4  ;;  %s3430_s4 = sld [smem:[#allocation2]] }
  0x2b   :  { %521 = vrot.lane.b32.xlu1 %v2905_v11, %s2832_s22  ;;  %514 = vrot.lane.b32.xlu0 %v2908_v12, %s2832_s22  ;;  %6164 = vst [vmem:[#allocation23_spill] sm:$0xff] %v3404_v1  ;;  %v3424_v1 = vstv %s3313_s0  ;;  %s3450_s0 = sld [smem:[#allocation2 + $0x10]] }
  0x2f   :  { %529 = vrot.lane.b32.xlu1 %v2908_v12, %s2831_s1  ;;  %527 = vrot.lane.b32.xlu0 %v2905_v11, %s2831_s1 }
  0x33   :  { %1723 = vrot.lane.b32.xlu1 %v2922_v14, %s2832_s22  ;;  %1716 = vrot.lane.b32.xlu0 %v2925_v15, %s2832_s22 }
  0x37   :  { %1731 = vrot.lane.b32.xlu1 %v2925_v15, %s2831_s1  ;;  %1729 = vrot.lane.b32.xlu0 %v2922_v14, %s2831_s1 }
  0x3b   :  { %842 = vrot.lane.b32.xlu1 %v2939_v17, %s2832_s22  ;;  %835 = vrot.lane.b32.xlu0 %v2942_v18, %s2832_s22 }
  0x3f   :  { %850 = vrot.lane.b32.xlu1 %v2942_v18, %s2831_s1  ;;  %848 = vrot.lane.b32.xlu0 %v2939_v17, %s2831_s1 }
  0x43   :  { %2008 = vrot.lane.b32.xlu1 %v2956_v20, %s2832_s22  ;;  %2001 = vrot.lane.b32.xlu0 %v2959_v21, %s2832_s22 }
  0x47   :  { %2016 = vrot.lane.b32.xlu1 %v2959_v21, %s2831_s1  ;;  %2014 = vrot.lane.b32.xlu0 %v2956_v20, %s2831_s1 }
  0x4b   :  { %1053 = vrot.lane.b32.xlu1 %v2973_v23, %s2832_s22  ;;  %1046 = vrot.lane.b32.xlu0 %v2976_v24, %s2832_s22 }
  0x4f   :  { %1061 = vrot.lane.b32.xlu1 %v2976_v24, %s2831_s1  ;;  %1059 = vrot.lane.b32.xlu0 %v2973_v23, %s2831_s1  ;;  %v3362_v23 = vstv %s3263_s27  ;;  %v3380_v24 = vstv %s3278_s6  ;;  %s3857_s27 = sld [smem:[#allocation2 + $0x41]]  ;;  %s4023_s6 = sld [smem:[#allocation2 + $0x12]] }
  0x50   :  { %6162 = vst [vmem:[#allocation21_spill] sm:$0xff] %v3380_v24 }
  0x53   :  { %2201 = vrot.lane.b32.xlu1 %v2990_v26, %s2832_s22  ;;  %2194 = vrot.lane.b32.xlu0 %v2993_v27, %s2832_s22  ;;  %s3246_s22 = sld [smem:[#allocation2 + $0x50]] }
  0x57   :  { %2209 = vrot.lane.b32.xlu1 %v2993_v27, %s2831_s1  ;;  %2207 = vrot.lane.b32.xlu0 %v2990_v26, %s2831_s1  ;;  %s3244_s1 = sld [smem:[#allocation2 + $0xb]]  ;;  %v3357_v27 = vstv %s3261_s26  ;;  %v3377_v26 = vstv %s3276_s5  ;;  %s3781_s26 = sld [smem:[#allocation2 + $0x40]] }
  0x58   :  { %6161 = vst [vmem:[#allocation20_spill] sm:$0xff] %v3377_v26  ;;  %s4021_s5 = sld [smem:[#allocation2 + $0x3]] }
  0x5b   :  { %306 = vrot.lane.b32.xlu1 %v195_v5, %s6019_s11  ;;  %303 = vrot.lane.b32.xlu0 %v188_v6, %s6019_s11 }
  0x5f   :  { %314 = vrot.lane.b32.xlu1 %v188_v6, %s6016_s12  ;;  %312 = vrot.lane.b32.xlu0 %v195_v5, %s6016_s12 }
  0x63   :  { %1532 = vrot.lane.b32.xlu1 %v1437_v8, %s6019_s11  ;;  %1529 = vrot.lane.b32.xlu0 %v1430_v9, %s6019_s11 }
  0x67   :  { %1540 = vrot.lane.b32.xlu1 %v1430_v9, %s6016_s12  ;;  %1538 = vrot.lane.b32.xlu0 %v1437_v8, %s6016_s12 }
  0x8d   :  { %v204_v28 = vpop.permute.xlu1 %203  ;;  %v190_v29 = vpop.permute.xlu0 %189 }
  0x91   :  { %v206_v30 = vpop.permute.xlu1 %205  ;;  %v197_v31 = vpop.permute.xlu0 %196 }
  0x92   :  { %v3012_v32 = vsel %vm198_vm0, %v197_v31, %v190_v29  ;;  %v3026_v38 = vsel %vm207_vm1, %v204_v28, %v206_v30  ;;  %v202_v49 = vsel %vm198_vm0, %v190_v29, %v197_v31  ;;  %v212_v58 = vsel %vm207_vm1, %v206_v30, %v204_v28 }
  0x93   :  { %231 = vrot.lane.b32.xlu1 %v3012_v32, %s6016_s12  ;;  %218 = vrot.lane.b32.xlu0 %v3012_v32, %s6019_s11  ;;  %v3069_v52 = vsel %vm54_vm2, %v3026_v38, %v202_v49  ;;  %v3106_v62 = vsel %vm57_vm3, %v3012_v32, %v212_v58 }
  0x95   :  { %v1439_v33 = vpop.permute.xlu1 %1438  ;;  %v1432_v34 = vpop.permute.xlu0 %1431 }
  0x96   :  { %v3019_v35 = vsel %vm198_vm0, %v1439_v33, %v1432_v34  ;;  %v1443_v54 = vsel %vm198_vm0, %v1432_v34, %v1439_v33 }
  0x97   :  { %1470 = vrot.lane.b32.xlu1 %v3019_v35, %s6016_s12  ;;  %1458 = vrot.lane.b32.xlu0 %v3019_v35, %s6019_s11 }
  0x99   :  { %v1447_v36 = vpop.permute.xlu1 %1446  ;;  %v1445_v37 = vpop.permute.xlu0 %1444 }
  0x9a   :  { %v3033_v41 = vsel %vm207_vm1, %v1445_v37, %v1447_v36  ;;  %v1452_v5 = vsel %vm207_vm1, %v1447_v36, %v1445_v37 }
  0x9b   :  { %430 = vrot.lane.b32.xlu1 %v3026_v38, %s6019_s11  ;;  %436 = vrot.lane.b32.xlu0 %v3026_v38, %s6016_s12  ;;  %v3086_v57 = vsel %vm54_vm2, %v3033_v41, %v1443_v54  ;;  %v3124_v10 = vsel %vm57_vm3, %v3019_v35, %v1452_v5 }
  0x9d   :  { %v522_v39 = vpop.permute.xlu1 %521  ;;  %v515_v40 = vpop.permute.xlu0 %514 }
  0x9e   :  { %v3044_v44 = vsel %vm198_vm0, %v522_v39, %v515_v40  ;;  %v526_v19 = vsel %vm198_vm0, %v515_v40, %v522_v39 }
  0x9f   :  { %1650 = vrot.lane.b32.xlu0 %v3033_v41, %s6016_s12  ;;  %1644 = vrot.lane.b32.xlu1 %v3033_v41, %s6019_s11 }
  0xa1   :  { %v3039_v42 = vpop.permute.xlu1 %529  ;;  %v3041_v43 = vpop.permute.xlu0 %527 }
  0xa2   :  { %v3129_v13 = vsel %vm207_vm1, %v3041_v43, %v3039_v42 }
  0xa3   :  { %553 = vrot.lane.b32.xlu1 %v3044_v44, %s6016_s12  ;;  %541 = vrot.lane.b32.xlu0 %v3044_v44, %s6019_s11  ;;  %v3143_v29 = vsel %vm54_vm2, %v3129_v13, %v526_v19 }
  0xa5   :  { %v1724_v46 = vpop.permute.xlu1 %1723  ;;  %v1717_v47 = vpop.permute.xlu0 %1716 }
  0xa6   :  { %v3054_v48 = vsel %vm198_vm0, %v1724_v46, %v1717_v47  ;;  %v1728_v37 = vsel %vm198_vm0, %v1717_v47, %v1724_v46 }
  0xa7   :  { %1755 = vrot.lane.b32.xlu1 %v3054_v48, %s6016_s12  ;;  %1743 = vrot.lane.b32.xlu0 %v3054_v48, %s6019_s11 }
  0xa9   :  { %v3062_v50 = vpop.permute.xlu1 %1731  ;;  %v3064_v51 = vpop.permute.xlu0 %1729 }
  0xaa   :  { %v3152_v33 = vsel %vm207_vm1, %v3064_v51, %v3062_v50 }
  0xab   :  { %229 = vrot.lane.b32.xlu0 %v3069_v52, %s6016_s12  ;;  %222 = vrot.lane.b32.xlu1 %v3069_v52, %s6019_s11  ;;  %v3172_v49 = vsel %vm54_vm2, %v3152_v33, %v1728_v37 }
  0xad   :  { %v3079_v55 = vpop.permute.xlu1 %842  ;;  %v3081_v56 = vpop.permute.xlu0 %835 }
  0xae   :  { %v3097_v59 = vsel %vm198_vm0, %v3079_v55, %v3081_v56  ;;  %v847_v24 = vsel %vm198_vm0, %v3081_v56, %v3079_v55 }
  0xaf   :  { %1468 = vrot.lane.b32.xlu0 %v3086_v57, %s6016_s12  ;;  %1462 = vrot.lane.b32.xlu1 %v3086_v57, %s6019_s11 }
  0xb1   :  { %v3099_v60 = vpop.permute.xlu1 %850  ;;  %v3101_v61 = vpop.permute.xlu0 %848 }
  0xb2   :  { %v856_v63 = vsel %vm207_vm1, %v3099_v60, %v3101_v61 }
  0xb3   :  { %438 = vrot.lane.b32.xlu1 %v3106_v62, %s6016_s12  ;;  %426 = vrot.lane.b32.xlu0 %v3106_v62, %s6019_s11  ;;  %v3119_v6 = vsel %vm57_vm3, %v3097_v59, %v856_v63 }
  0xb5   :  { %v2009_v8 = vpop.permute.xlu1 %2008  ;;  %v2002_v9 = vpop.permute.xlu0 %2001 }
  0xb6   :  { %v2013_v16 = vsel %vm198_vm0, %v2002_v9, %v2009_v8  ;;  %v3138_v22 = vsel %vm198_vm0, %v2009_v8, %v2002_v9 }
  0xb7   :  { %1652 = vrot.lane.b32.xlu1 %v3124_v10, %s6016_s12  ;;  %1640 = vrot.lane.b32.xlu0 %v3124_v10, %s6019_s11 }
  0xb9   :  { %v2017_v25 = vpop.permute.xlu1 %2016  ;;  %v2015_v28 = vpop.permute.xlu0 %2014 }
  0xba   :  { %v3146_v30 = vsel %vm207_vm1, %v2015_v28, %v2017_v25  ;;  %v2022_v31 = vsel %vm207_vm1, %v2017_v25, %v2015_v28 }
  0xbb   :  { %545 = vrot.lane.b32.xlu1 %v3143_v29, %s6019_s11  ;;  %551 = vrot.lane.b32.xlu0 %v3143_v29, %s6016_s12  ;;  %v3161_v34 = vsel %vm54_vm2, %v3146_v30, %v2013_v16  ;;  %v3166_v36 = vsel %vm57_vm3, %v3138_v22, %v2022_v31 }
  0xbd   :  { %v1054_v39 = vpop.permute.xlu1 %1053  ;;  %v1047_v40 = vpop.permute.xlu0 %1046 }
  0xbe   :  { %v1058_v54 = vsel %vm198_vm0, %v1047_v40, %v1054_v39  ;;  %v3180_v5 = vsel %vm198_vm0, %v1054_v39, %v1047_v40 }
  0xbf   :  { %1747 = vrot.lane.b32.xlu1 %v3172_v49, %s6019_s11  ;;  %1753 = vrot.lane.b32.xlu0 %v3172_v49, %s6016_s12 }
  0xc1   :  { %v1062_v58 = vpop.permute.xlu1 %1061  ;;  %v1060_v63 = vpop.permute.xlu0 %1059 }
  0xc2   :  { %v3183_v46 = vsel %vm207_vm1, %v1060_v63, %v1062_v58  ;;  %v1067_v47 = vsel %vm207_vm1, %v1062_v58, %v1060_v63  ;;  %v3316_v58 = vstv %s3212_s15  ;;  %v3319_v63 = vstv %s3218_s16  ;;  %s3475_s15 = sld [smem:[#allocation2 + $0x4a]]  ;;  %s3477_s16 = sld [smem:[#allocation2 + $0x4b]] }
  0xc3   :  { %6151 = vst [vmem:[#allocation12_spill] sm:$0xff] %v3183_v46  ;;  %627 = vrot.lane.b32.xlu1 %v2905_v11, %s6019_s11  ;;  %624 = vrot.lane.b32.xlu0 %v2908_v12, %s6019_s11  ;;  %v3193_v8 = vsel %vm54_vm2, %v3183_v46, %v1058_v54  ;;  %v3198_v19 = vsel %vm57_vm3, %v3180_v5, %v1067_v47  ;;  %v3322_v47 = vstv %s3220_s17  ;;  %v3401_v46 = vstv %s3298_s2  ;;  %s3421_s2 = sld [smem:[#allocation2 + $0x5f]]  ;;  %s3498_s17 = sld [smem:[#allocation2 + $0x52]] }
  0xc4   :  { %6152 = vst [vmem:[#allocation13_spill] sm:$0xff] %v3193_v8  ;;  %6153 = vst [vmem:[#allocation14_spill] sm:$0xff] %v3198_v19  ;;  %v535_v54 = vsel %vm207_vm1, %v3039_v42, %v3041_v43  ;;  %v3304_v42 = vstv %s3210_s14  ;;  %v1737_v43 = vsel %vm207_vm1, %v3062_v50, %v3064_v51  ;;  %v3328_v50 = vstv %s3233_s19  ;;  %s3368_s14 = sld [smem:[#allocation2 + $0x5e]]  ;;  %s3569_s19 = sld [smem:[#allocation2 + $0x20]] }
  0xc5   :  { %v2202_v9 = vpop.permute.xlu1 %2201  ;;  %v2195_v16 = vpop.permute.xlu0 %2194  ;;  %v3331_v51 = vstv %s3235_s20  ;;  %v3392_v19 = vstv %s3286_s8  ;;  %v3436_v55 = vmul.f32 %v3304_v42, %v3012_v32  ;;  %v3440_v56 = vmul.f32 %v3316_v58, %v3012_v32  ;;  %s3603_s20 = sld [smem:[#allocation2 + $0x21]]  ;;  %s4054_s8 = sld [smem:[#allocation2 + $0x4d]] }
  0xc6   :  { %v2206_v25 = vsel %vm198_vm0, %v2195_v16, %v2202_v9  ;;  %v3208_v28 = vsel %vm198_vm0, %v2202_v9, %v2195_v16  ;;  %v3325_v9 = vstv %s3231_s18  ;;  %v3334_v16 = vstv %s3237_s21  ;;  %s3500_s18 = sld [smem:[#allocation2 + $0x53]]  ;;  %s3619_s21 = sld [smem:[#allocation2 + $0x5a]] }
  0xc7   :  { %635 = vrot.lane.b32.xlu1 %v2908_v12, %s6016_s12  ;;  %633 = vrot.lane.b32.xlu0 %v2905_v11, %s6016_s12  ;;  %6154 = vst [vmem:[#allocation15_spill] sm:$0xff] %v3208_v28  ;;  %6167 = vst [vmem:[#allocation26_spill] sm:$0xff] %v3436_v55  ;;  %v3456_v55 = vmul.f32 %v3304_v42, %v3069_v52 }
  0xc8   :  { %6168 = vst [vmem:[#allocation27_spill] sm:$0xff] %v3440_v56  ;;  %v3460_v56 = vmul.f32 %v3316_v58, %v3069_v52 }
  0xc9   :  { %v2210_v31 = vpop.permute.xlu1 %2209  ;;  %v2208_v37 = vpop.permute.xlu0 %2207  ;;  %6170 = vst [vmem:[#allocation29_spill] sm:$0xff] %v3456_v55  ;;  %v3520_v55 = vmul.f32 %v3322_v47, %v3106_v62 }
  0xca   :  { %v3215_v39 = vsel %vm207_vm1, %v2208_v37, %v2210_v31  ;;  %v2215_v12 = vsel %vm207_vm1, %v2210_v31, %v2208_v37  ;;  %v3340_v31 = vstv %s3246_s22  ;;  %v3343_v37 = vstv %s3250_s24  ;;  %6171 = vst [vmem:[#allocation30_spill] sm:$0xff] %v3460_v56  ;;  %s3705_s22 = sld [smem:[#allocation2 + $0x30]]  ;;  %s3722_s24 = sld [smem:[#allocation2 + $0x62]] }
  0xcb   :  { %6155 = vst [vmem:[#allocation16_spill] sm:$0xff] %v3215_v39  ;;  %1817 = vrot.lane.b32.xlu1 %v2922_v14, %s6019_s11  ;;  %1814 = vrot.lane.b32.xlu0 %v2925_v15, %s6019_s11  ;;  %v3229_v11 = vsel %vm54_vm2, %v3215_v39, %v2206_v25  ;;  %v3242_v40 = vsel %vm57_vm3, %v3208_v28, %v2215_v12  ;;  %v3337_v25 = vstv %s3244_s1  ;;  %v3389_v39 = vstv %s3288_s9  ;;  %s3639_s1 = sld [smem:[#allocation2 + $0x5b]] }
  0xcc   :  { %6156 = vst [vmem:[#allocation17_spill] sm:$0xff] %v3229_v11  ;;  %6157 = vst [vmem:[#allocation18_spill] sm:$0xff] %v3242_v40  ;;  %v3348_v12 = vsel %vm57_vm3, %v3054_v48, %v1737_v43  ;;  %v3371_v43 = vstv %s3265_s28  ;;  %v3383_v40 = vstv %s3269_s30  ;;  %v3386_v11 = vstv %s3284_s7  ;;  %s3930_s28 = sld [smem:[#allocation2 + $0x6a]]  ;;  %s4052_s7 = sld [smem:[#allocation2 + $0x4c]] }
  0xcd   :  { %6163 = vst [vmem:[#allocation22_spill] sm:$0xff] %v3389_v39  ;;  %v3395_v28 = vstv %s3290_s10  ;;  %v3415_v39 = vsel %vm207_vm1, %v3101_v61, %v3099_v60  ;;  %v3444_v60 = vmul.f32 %v3319_v63, %v3012_v32  ;;  %6180 = vst [vmem:[#allocation39_spill] sm:$0xff] %v3520_v55  ;;  %s4015_s30 = sld [smem:[#allocation2 + $0x2]]  ;;  %s4062_s9 = sld [smem:[#allocation2 + $0x13]] }
  0xce   :  { %s4064_s10 = sld [smem:[#allocation2 + $0x54]] }
  0xcf   :  { %1825 = vrot.lane.b32.xlu1 %v2925_v15, %s6016_s12  ;;  %1823 = vrot.lane.b32.xlu0 %v2922_v14, %s6016_s12  ;;  %v3274_v15 = vsel %vm57_vm3, %v3044_v44, %v535_v54  ;;  %s3292_s12 = sld [smem:[#allocation2 + $0x19]]  ;;  %v3301_v14 = vstv %s3205_s13  ;;  %v3351_v54 = vstv %s3248_s23  ;;  %s6159_s13 = smov 1   ;;  %6169 = vst [vmem:[#allocation28_spill] sm:$0xff] %v3444_v60  ;;  %v3468_v60 = vmul.f32 %v3322_v47, %v3026_v38  ;;  %v6373_v4 = vld [vmem:[#allocation27_spill] sm:$0xff] }
  0xd0   :  { %v3448_v61 = vmul.f32 %v3301_v14, %v3069_v52  ;;  %v3481_v56 = vmul.f32 %v3019_v35, %v3301_v14  ;;  %s3707_s23 = sld [smem:[#allocation2 + $0x31]] }
  0xd1   :  { %6173 = vst [vmem:[#allocation32_spill] sm:$0xff] %v3468_v60  ;;  %v3489_v60 = vmul.f32 %v3328_v50, %v3026_v38 }
  0xd2   :  { %6174 = vst [vmem:[#allocation33_spill] sm:$0xff] %v3481_v56  ;;  %v3504_v56 = vmul.f32 %v3019_v35, %v3304_v42 }
  0xd3   :  { %751 = vrot.lane.b32.xlu1 %v3129_v13, %s6019_s11  ;;  %747 = vrot.lane.b32.xlu0 %v3274_v15, %s6019_s11  ;;  %s3296_s11 = sld [smem:[#allocation2 + $0x29]]  ;;  %6176 = vst [vmem:[#allocation35_spill] sm:$0xff] %v3489_v60  ;;  %v3512_v60 = vmul.f32 %v3019_v35, %v3319_v63 }
  0xd4   :  { %6177 = vst [vmem:[#allocation36_spill] sm:$0xff] %v3504_v56  ;;  %v3524_v56 = vmul.f32 %v3325_v9, %v3106_v62 }
  0xd5   :  { %v3398_v8 = vstv %s3292_s12  ;;  %s3452_s12 = sld [smem:[#allocation2 + $0x11]] }
  0xd6   :  { %6181 = vst [vmem:[#allocation40_spill] sm:$0xff] %v3524_v56  ;;  %v3544_v56 = vmul.f32 %v3033_v41, %v3322_v47 }
  0xd7   :  { %759 = vrot.lane.b32.xlu1 %v3274_v15, %s6158_s3  ;;  %757 = vrot.lane.b32.xlu0 %v3129_v13, %s6158_s3 }
  0xd8   :  { %6184 = vst [vmem:[#allocation43_spill] sm:$0xff] %v3544_v56  ;;  %v3591_v56 = vmul.f32 %v3033_v41, %v3331_v51 }
  0xd9   :  { %v3407_v26 = vstv %s3296_s11  ;;  %s3432_s11 = sld [smem:[#allocation2 + $0x1]] }
  0xda   :  { %6165 = vst [vmem:[#allocation24_spill] sm:$0xff] %v3407_v26  ;;  %v3428_v26 = vmul.f32 %v3301_v14, %v3012_v32  ;;  %v3464_v32 = vmul.f32 %v3319_v63, %v3069_v52  ;;  %v3485_v52 = vmul.f32 %v3325_v9, %v3026_v38  ;;  %6190 = vst [vmem:[#allocation49_spill] sm:$0xff] %v3591_v56  ;;  %v3617_v56 = vstv %s3477_s16  ;;  %s4192_s16 = sld [smem:[#allocation2 + $0x2a]] }
  0xdb   :  { %1929 = vrot.lane.b32.xlu1 %v3152_v33, %s6159_s13  ;;  %1925 = vrot.lane.b32.xlu0 %v3348_v12, %s6159_s13 }
  0xdc   :  { %6166 = vst [vmem:[#allocation25_spill] sm:$0xff] %v3428_v26  ;;  %6172 = vst [vmem:[#allocation31_spill] sm:$0xff] %v3464_v32  ;;  %v3473_v26 = vsel %vm54_vm2, %v3415_v39, %v847_v24  ;;  %v3496_v24 = vstv %s3368_s14  ;;  %v3516_v32 = vmul.f32 %v3331_v51, %v3026_v38  ;;  %v3536_v38 = vmul.f32 %v3086_v57, %v3304_v42  ;;  %s4089_s14 = sld [smem:[#allocation2 + $0x55]] }
  0xdd   :  { %6175 = vst [vmem:[#allocation34_spill] sm:$0xff] %v3485_v52  ;;  %v3508_v52 = vmul.f32 %v3019_v35, %v3316_v58  ;;  %v3532_v35 = vmul.f32 %v3086_v57, %v3301_v14  ;;  %v3552_v14 = vmul.f32 %v3086_v57, %v3319_v63  ;;  %v3556_v42 = vmul.f32 %v3124_v10, %v3322_v47 }
  0xde   :  { %6179 = vst [vmem:[#allocation38_spill] sm:$0xff] %v3516_v32  ;;  %v3540_v32 = vmul.f32 %v3331_v51, %v3106_v62  ;;  %v3577_v63 = vmul.f32 %v3033_v41, %v3328_v50  ;;  %v3581_v47 = vmul.f32 %v3124_v10, %v3328_v50 }
  0xdf   :  { %1937 = vrot.lane.b32.xlu1 %v3348_v12, %s6158_s3  ;;  %1935 = vrot.lane.b32.xlu0 %v3152_v33, %s6158_s3  ;;  %6178 = vst [vmem:[#allocation37_spill] sm:$0xff] %v3508_v52  ;;  %v3528_v52 = vmul.f32 %v3328_v50, %v3106_v62  ;;  %6185 = vst [vmem:[#allocation44_spill] sm:$0xff] %v3556_v42  ;;  %v3560_v62 = vmul.f32 %v3033_v41, %v3325_v9  ;;  %v3587_v42 = vstv %s3432_s11  ;;  %s4147_s11 = sld [smem:[#allocation2 + $0x5c]] }
  0xe0   :  { %6183 = vst [vmem:[#allocation42_spill] sm:$0xff] %v3540_v32  ;;  %6188 = vst [vmem:[#allocation47_spill] sm:$0xff] %v3577_v63  ;;  %v3601_v63 = vstv %s3452_s12  ;;  %v3607_v50 = vmul.f32 %v3334_v16, %v3044_v44  ;;  %v3614_v41 = vstv %s3475_s15  ;;  %v3659_v32 = vmul.f32 %v3343_v37, %v3143_v29  ;;  %s4177_s12 = sld [smem:[#allocation2 + $0x1a]]  ;;  %s4179_s15 = sld [smem:[#allocation2 + $0x1b]] }
  0xe1   :  { %6182 = vst [vmem:[#allocation41_spill] sm:$0xff] %v3528_v52  ;;  %v3548_v52 = vmul.f32 %v3086_v57, %v3316_v58  ;;  %6186 = vst [vmem:[#allocation45_spill] sm:$0xff] %v3560_v62  ;;  %v3567_v58 = vstv %s3421_s2  ;;  %v3573_v57 = vmul.f32 %v3124_v10, %v3325_v9  ;;  %v3584_v62 = vstv %s3430_s4  ;;  %s4115_s2 = sld [smem:[#allocation2 + $0x22]]  ;;  %s4129_s4 = sld [smem:[#allocation2 + $0x23]] }
  0xe2   :  { %6189 = vst [vmem:[#allocation48_spill] sm:$0xff] %v3581_v47  ;;  %v3595_v9 = vmul.f32 %v3124_v10, %v3331_v51  ;;  %6192 = vst [vmem:[#allocation51_spill] sm:$0xff] %v3607_v50  ;;  %v3611_v47 = vmul.f32 %v3337_v25, %v3044_v44  ;;  %v3623_v10 = vmul.f32 %v3340_v31, %v3044_v44  ;;  %v3637_v50 = vstv %s3500_s18  ;;  %s4211_s18 = sld [smem:[#allocation2 + $0x58]] }
  0xe3   :  { %866 = vrot.lane.b32.xlu1 %v3473_v26, %s6159_s13  ;;  %862 = vrot.lane.b32.xlu0 %v3097_v59, %s6159_s13  ;;  %6187 = vst [vmem:[#allocation46_spill] sm:$0xff] %v3573_v57  ;;  %v3598_v57 = vstv %s3450_s0  ;;  %v3627_v51 = vmul.f32 %v3343_v37, %v3044_v44  ;;  %v3647_v44 = vmul.f32 %v3371_v43, %v3129_v13  ;;  %6200 = vst [vmem:[#allocation59_spill] sm:$0xff] %v3659_v32  ;;  %s4149_s0 = sld [smem:[#allocation2 + $0x5d]] }
  0xe4   :  { %6191 = vst [vmem:[#allocation50_spill] sm:$0xff] %v3595_v9  ;;  %6193 = vst [vmem:[#allocation52_spill] sm:$0xff] %v3611_v47  ;;  %v3634_v47 = vstv %s3498_s17  ;;  %v3643_v9 = vmul.f32 %v3334_v16, %v3143_v29  ;;  %v3683_v32 = vmul.f32 %v3054_v48, %v3334_v16  ;;  %s4194_s17 = sld [smem:[#allocation2 + $0x2b]] }
  0xe5   :  { %6194 = vst [vmem:[#allocation53_spill] sm:$0xff] %v3623_v10  ;;  %6195 = vst [vmem:[#allocation54_spill] sm:$0xff] %v3627_v51  ;;  %v3651_v51 = vmul.f32 %v3337_v25, %v3143_v29  ;;  %v3655_v10 = vmul.f32 %v3340_v31, %v3143_v29  ;;  %v3679_v29 = vmul.f32 %v3392_v19, %v3274_v15 }
  0xe6   :  { %6196 = vst [vmem:[#allocation55_spill] sm:$0xff] %v3643_v9  ;;  %6197 = vst [vmem:[#allocation56_spill] sm:$0xff] %v3647_v44  ;;  %v3663_v9 = vmul.f32 %v3371_v43, %v3274_v15  ;;  %v3667_v44 = vmul.f32 %v3383_v40, %v3129_v13 }
  0xe7   :  { %874 = vrot.lane.b32.xlu1 %v3097_v59, %s6158_s3  ;;  %872 = vrot.lane.b32.xlu0 %v3473_v26, %s6158_s3  ;;  %6198 = vst [vmem:[#allocation57_spill] sm:$0xff] %v3651_v51  ;;  %6199 = vst [vmem:[#allocation58_spill] sm:$0xff] %v3655_v10  ;;  %v3671_v51 = vmul.f32 %v3383_v40, %v3274_v15  ;;  %v3675_v10 = vmul.f32 %v3392_v19, %v3129_v13 }
  0xe8   :  { %6201 = vst [vmem:[#allocation60_spill] sm:$0xff] %v3663_v9  ;;  %6202 = vst [vmem:[#allocation61_spill] sm:$0xff] %v3667_v44  ;;  %v3687_v9 = vmul.f32 %v3054_v48, %v3337_v25  ;;  %v3691_v44 = vmul.f32 %v3054_v48, %v3340_v31 }
  0xe9   :  { %6203 = vst [vmem:[#allocation62_spill] sm:$0xff] %v3671_v51  ;;  %6204 = vst [vmem:[#allocation63_spill] sm:$0xff] %v3675_v10  ;;  %v3695_v51 = vmul.f32 %v3395_v28, %v3129_v13  ;;  %v3703_v10 = vpop.permute.xlu0 %303  ;;  %v3712_v13 = vmul.f32 %v3054_v48, %v3343_v37  ;;  %v3732_v48 = vmul.f32 %v3172_v49, %v3337_v25 }
  0xea   :  { %6205 = vst [vmem:[#allocation64_spill] sm:$0xff] %v3679_v29  ;;  %6206 = vst [vmem:[#allocation65_spill] sm:$0xff] %v3683_v32  ;;  %v3701_v29 = vpop.permute.xlu1 %306  ;;  %v3728_v32 = vmul.f32 %v3172_v49, %v3334_v16  ;;  %v3749_v16 = vmul.f32 %v3152_v33, %v3383_v40  ;;  %v3753_v25 = vmul.f32 %v3348_v12, %v3383_v40 }
  0xeb   :  { %2032 = vrot.lane.b32.xlu1 %v3161_v34, %s6159_s13  ;;  %2028 = vrot.lane.b32.xlu0 %v3138_v22, %s6159_s13  ;;  %6207 = vst [vmem:[#allocation66_spill] sm:$0xff] %v3687_v9  ;;  %6208 = vst [vmem:[#allocation67_spill] sm:$0xff] %v3691_v44  ;;  %v3720_v9 = vmul.f32 %v3395_v28, %v3274_v15  ;;  %v3736_v44 = vmul.f32 %v3172_v49, %v3340_v31  ;;  %v6220_v31 = vstv %s3569_s19 }
  0xec   :  { %6209 = vst [vmem:[#allocation68_spill] sm:$0xff] %v3695_v51  ;;  %6210 = vst [vmem:[#allocation69_spill] sm:$0xff] %v3712_v13  ;;  %v3716_v51 = vmul.f32 %v3152_v33, %v3371_v43  ;;  %v3740_v15 = vmul.f32 %v3172_v49, %v3343_v37  ;;  %v3758_v13 = vmul.f32 %v6220_v31, %v2872_v2 }
  0xed   :  { %6212 = vst [vmem:[#allocation71_spill] sm:$0xff] %v3720_v9  ;;  %6213 = vst [vmem:[#allocation72_spill] sm:$0xff] %v3728_v32  ;;  %v3763_v37 = vmul.f32 %v3152_v33, %v3392_v19  ;;  %v3771_v9 = vmul.f32 %v3351_v54, %v3097_v59  ;;  %v3775_v40 = vmul.f32 %v3354_v0, %v3097_v59  ;;  %v6278_v32 = vstv %s3619_s21 }
  0xee   :  { %6211 = vst [vmem:[#allocation70_spill] sm:$0xff] %v3716_v51  ;;  %6214 = vst [vmem:[#allocation73_spill] sm:$0xff] %v3732_v48  ;;  %v3745_v51 = vmul.f32 %v3348_v12, %v3371_v43  ;;  %v3767_v43 = vmul.f32 %v3348_v12, %v3392_v19  ;;  %v390_v19 = vstv %s3639_s1  ;;  %v3786_v31 = vmul.f32 %v3152_v33, %v3395_v28  ;;  %v6276_v48 = vld [vmem:[#allocation13_spill] sm:$0xff]  ;;  %s4264_s1 = sld [smem:[#allocation2 + $0x32]] }
  0xef   :  { %2040 = vrot.lane.b32.xlu1 %v3138_v22, %s6158_s3  ;;  %2038 = vrot.lane.b32.xlu0 %v3161_v34, %s6158_s3  ;;  %6215 = vst [vmem:[#allocation74_spill] sm:$0xff] %v3736_v44  ;;  %6216 = vst [vmem:[#allocation75_spill] sm:$0xff] %v3740_v15  ;;  %v3790_v49 = vmul.f32 %v3357_v27, %v3415_v39  ;;  %v3794_v59 = vmul.f32 %v3362_v23, %v3415_v39 }
  0xf0   :  { %6217 = vst [vmem:[#allocation76_spill] sm:$0xff] %v3745_v51  ;;  %6218 = vst [vmem:[#allocation77_spill] sm:$0xff] %v3749_v16  ;;  %v3807_v33 = vmul.f32 %v3351_v54, %v3473_v26  ;;  %v6261_v51 = vstv %s3569_s19  ;;  %s4213_s19 = sld [smem:[#allocation2 + $0x59]] }
  0xf1   :  { %6219 = vst [vmem:[#allocation78_spill] sm:$0xff] %v3753_v25  ;;  %6221 = vst [vmem:[#allocation79_spill] sm:$0xff] %v3758_v13  ;;  %v3883_v25 = vmul.f32 %v3146_v30, %v3357_v27  ;;  %v3912_v16 = vmul.f32 %v2889_v7, %v6261_v51  ;;  %v3935_v51 = vstv %s3781_s26  ;;  %s4282_s26 = sld [smem:[#allocation2 + $0x42]] }
  0xf2   :  { %6222 = vst [vmem:[#allocation80_spill] sm:$0xff] %v3763_v37  ;;  %6223 = vst [vmem:[#allocation81_spill] sm:$0xff] %v3767_v43  ;;  %v6229_v43 = vstv %s3603_s20 }
  0xf3   :  { %6224 = vst [vmem:[#allocation82_spill] sm:$0xff] %v3771_v9  ;;  %6225 = vst [vmem:[#allocation83_spill] sm:$0xff] %v3775_v40  ;;  %918 = vrot.lane.b32.xlu1 %v2939_v17, %s6159_s13  ;;  %915 = vrot.lane.b32.xlu0 %v2942_v18, %s6159_s13  ;;  %v3799_v37 = vmul.f32 %v6229_v43, %v2872_v2  ;;  %v3803_v40 = vmul.f32 %v3348_v12, %v3395_v28  ;;  %v6235_v9 = vstv %s3619_s21  ;;  %s4249_s21 = sld [smem:[#allocation2 + $0x61]] }
  0xf4   :  { %6226 = vst [vmem:[#allocation84_spill] sm:$0xff] %v3786_v31  ;;  %6227 = vst [vmem:[#allocation85_spill] sm:$0xff] %v3790_v49  ;;  %v3811_v49 = vmul.f32 %v3354_v0, %v3473_v26  ;;  %v315_v31 = vpop.permute.xlu1 %314  ;;  %v3815_v43 = vmul.f32 %v3357_v27, %v3119_v6  ;;  %v3820_v28 = vmul.f32 %v6235_v9, %v2872_v2 }
  0xf5   :  { %6228 = vst [vmem:[#allocation86_spill] sm:$0xff] %v3794_v59  ;;  %6230 = vst [vmem:[#allocation87_spill] sm:$0xff] %v3799_v37  ;;  %v313_v59 = vpop.permute.xlu0 %312  ;;  %v3824_v12 = vmul.f32 %v3362_v23, %v3119_v6  ;;  %v3847_v26 = vmul.f32 %v3138_v22, %v3351_v54  ;;  %v4321_v37 = vstv %s4211_s18  ;;  %s5815_s18 = sld [smem:[#allocation2 + $0x37]] }
  0xf6   :  { %6231 = vst [vmem:[#allocation88_spill] sm:$0xff] %v3803_v40  ;;  %6232 = vst [vmem:[#allocation89_spill] sm:$0xff] %v3807_v33  ;;  %v6242_v33 = vand.u32 15, %v3072_v53  ;;  %v3887_v40 = vmul.f32 %v3146_v30, %v3362_v23 }
  0xf7   :  { %6233 = vst [vmem:[#allocation90_spill] sm:$0xff] %v3811_v49  ;;  %6234 = vst [vmem:[#allocation91_spill] sm:$0xff] %v3815_v43  ;;  %v3831_v49 = vmul.f32 %v390_v19, %v2872_v2  ;;  %v6239_v43 = vand.u32 15, %v3051_v45  ;;  %v3851_v2 = vmul.f32 %v3138_v22, %v3354_v0  ;;  %926 = vrot.lane.b32.xlu1 %v2942_v18, %s6158_s3  ;;  %924 = vrot.lane.b32.xlu0 %v2939_v17, %s6158_s3  ;;  %v6266_v22 = vld [vmem:[#allocation19_spill] sm:$0xff] }
  0xf8   :  { %6236 = vst [vmem:[#allocation92_spill] sm:$0xff] %v3820_v28  ;;  %6237 = vst [vmem:[#allocation93_spill] sm:$0xff] %v3824_v12  ;;  %vm3841_vm7 = vcmp.eq.s32.totalorder %v6242_v33, 0  ;;  %v3860_v33 = vstv %s3705_s22  ;;  %v6251_v18 = vand.u32 15, %v3051_v45  ;;  %v6256_v45 = vand.u32 15, %v3072_v53  ;;  %v3914_v53 = vpop.permute.xlu1 %1532  ;;  %s4266_s22 = sld [smem:[#allocation2 + $0x33]] }
  0xf9   :  { %6238 = vst [vmem:[#allocation94_spill] sm:$0xff] %v3831_v49  ;;  %vm3835_vm6 = vcmp.eq.s32.totalorder %v6239_v43, 0  ;;  %6245 = vst [vmem:[#allocation95_spill] sm:$0xff] %v3847_v26  ;;  %v3863_v43 = vstv %s3707_s23  ;;  %v3873_v26 = vstv %s3724_s25  ;;  %v4172_v49 = vstv %s4052_s7  ;;  %s6336_s25 = sld [smem:[#allocation185_spill]]  ;;  %s5447_s23 = sld [smem:[#allocation2 + $0x2d]] }
  0xfa   :  { %6246 = vst [vmem:[#allocation96_spill] sm:$0xff] %v3851_v2  ;;  %6247 = vst [vmem:[#allocation97_spill] sm:$0xff] %v3860_v33  ;;  %v3870_v2 = vstv %s3722_s24  ;;  %vm3877_vm8 = vcmp.eq.s32.totalorder %v6251_v18, 15  ;;  %vm3895_vm9 = vcmp.eq.s32.totalorder %v6256_v45, 15  ;;  %v3916_v45 = vpop.permute.xlu0 %1529  ;;  %v4175_v28 = vstv %s4054_s8  ;;  %s4333_s8 = sld [smem:[#allocation2 + $0x6e]]  ;;  %s6593_s24 = sld [smem:[#allocation186_spill]] }
  0xfb   :  { %6248 = vst [vmem:[#allocation98_spill] sm:$0xff] %v3863_v43  ;;  %6249 = vst [vmem:[#allocation99_spill] sm:$0xff] %v3870_v2  ;;  %2078 = vrot.lane.b32.xlu1 %v2956_v20, %s6159_s13  ;;  %2075 = vrot.lane.b32.xlu0 %v2959_v21, %s6159_s13  ;;  %s5643_s7 = sld [smem:[#allocation2 + $0x6]] }
  0xfc   :  { %6250 = vst [vmem:[#allocation100_spill] sm:$0xff] %v3873_v26  ;;  %6254 = vst [vmem:[#allocation101_spill] sm:$0xff] %v3883_v25  ;;  %v3901_v25 = vmul.f32 %v3161_v34, %v3351_v54 }
  0xfd   :  { %6255 = vst [vmem:[#allocation102_spill] sm:$0xff] %v3887_v40  ;;  %v3905_v40 = vmul.f32 %v3161_v34, %v3354_v0  ;;  %6262 = vst [vmem:[#allocation105_spill] sm:$0xff] %v3912_v16  ;;  %v3924_v0 = vmul.f32 %v3166_v36, %v3357_v27  ;;  %v3928_v34 = vmul.f32 %v3166_v36, %v3362_v23  ;;  %v6270_v27 = vld [vmem:[#allocation12_spill] sm:$0xff]  ;;  %v6273_v23 = vstv %s3603_s20  ;;  %s4240_s20 = sld [smem:[#allocation2 + $0x60]] }
  0xfe   :  { %6259 = vst [vmem:[#allocation103_spill] sm:$0xff] %v3901_v25  ;;  %6265 = vst [vmem:[#allocation108_spill] sm:$0xff] %v3935_v51  ;;  %v6268_v25 = vld [vmem:[#allocation20_spill] sm:$0xff]  ;;  %v3956_v54 = vmul.f32 %v3386_v11, %v6270_v27  ;;  %v3968_v51 = vmul.f32 %v2889_v7, %v390_v19  ;;  %v320_v19 = vsel %vm233_vm5, %v315_v31, %v313_v59 }
  0xff   :  { %6260 = vst [vmem:[#allocation104_spill] sm:$0xff] %v3905_v40  ;;  %6263 = vst [vmem:[#allocation106_spill] sm:$0xff] %v3924_v0  ;;  %v3939_v40 = vmul.f32 %v6266_v22, %v3180_v5  ;;  %v3943_v15 = vmul.f32 %v6268_v25, %v3180_v5  ;;  %v6271_v0 = vld [vmem:[#allocation21_spill] sm:$0xff]  ;;  %2086 = vrot.lane.b32.xlu1 %v2959_v21, %s6158_s3  ;;  %2084 = vrot.lane.b32.xlu0 %v2956_v20, %s6158_s3  ;;  %v1539_v20 = vpop.permute.xlu0 %1538 }
 0x100   :  { %6264 = vst [vmem:[#allocation107_spill] sm:$0xff] %v3928_v34  ;;  %v3947_v44 = vmul.f32 %v6271_v0, %v6270_v27  ;;  %v3952_v34 = vmul.f32 %v2889_v7, %v6273_v23  ;;  %6275 = vst [vmem:[#allocation109_spill] sm:$0xff] %v3956_v54  ;;  %v308_v23 = vsel %vm224_vm4, %v3701_v29, %v3703_v10  ;;  %v3993_v54 = vstv %s3857_s27  ;;  %s4284_s27 = sld [smem:[#allocation2 + $0x43]] }
 0x101   :  { %6267 = vst [vmem:[#allocation19_spill] sm:$0xff] %v3939_v40  ;;  %6269 = vst [vmem:[#allocation20_spill] sm:$0xff] %v3943_v15  ;;  %v3960_v40 = vmul.f32 %v6266_v22, %v6276_v48  ;;  %v3965_v15 = vmul.f32 %v2889_v7, %v6278_v32  ;;  %v311_v32 = vsel %vm224_vm4, %v3703_v10, %v3701_v29 }
 0x102   :  { %6272 = vst [vmem:[#allocation12_spill] sm:$0xff] %v3947_v44  ;;  %6274 = vst [vmem:[#allocation21_spill] sm:$0xff] %v3952_v34  ;;  %v3975_v44 = vmul.f32 %v6268_v25, %v6276_v48  ;;  %v316_v7 = vsel %vm233_vm5, %v313_v59, %v315_v31  ;;  %v1541_v31 = vpop.permute.xlu1 %1540  ;;  %v322_v29 = vsel %vm3841_vm7, %v320_v19, %v308_v23  ;;  %v6286_v59 = vld [vmem:[#allocation14_spill] sm:$0xff] }
 0x103   :  { %6277 = vst [vmem:[#allocation13_spill] sm:$0xff] %v3960_v40  ;;  %6279 = vst [vmem:[#allocation110_spill] sm:$0xff] %v3965_v15  ;;  %v6283_v40 = vld [vmem:[#allocation15_spill] sm:$0xff]  ;;  %v321_v21 = vsel %vm3835_vm6, %v316_v7, %v311_v32  ;;  %v4027_v16 = vmul.f32 %v6271_v0, %v6286_v59  ;;  %992 = vrot.lane.b32.xlu1 %v3415_v39, %s6159_s13  ;;  %988 = vrot.lane.b32.xlu0 %v3119_v6, %s6159_s13 }
 0x104   :  { %6280 = vst [vmem:[#allocation111_spill] sm:$0xff] %v3968_v51  ;;  %6281 = vst [vmem:[#allocation112_spill] sm:$0xff] %v3975_v44  ;;  %v3997_v44 = vmul.f32 %v6283_v40, %v6266_v22  ;;  %v4001_v10 = vmul.f32 %v6283_v40, %v6268_v25  ;;  %v1542_v26 = vsel %vm233_vm5, %v1539_v20, %v1541_v31 }
 0x105   :  { %6282 = vst [vmem:[#allocation113_spill] sm:$0xff] %v3993_v54  ;;  %6287 = vst [vmem:[#allocation115_spill] sm:$0xff] %v4027_v16  ;;  %v6292_v16 = vld [vmem:[#allocation17_spill] sm:$0xff]  ;;  %v4050_v54 = vstv %s3930_s28  ;;  %v1546_v2 = vsel %vm233_vm5, %v1541_v31, %v1539_v20  ;;  %v4118_v43 = vmul.f32 %v3424_v1, %v321_v21  ;;  %s4298_s28 = sld [smem:[#allocation2 + $0x64]] }
 0x106   :  { %6284 = vst [vmem:[#allocation15_spill] sm:$0xff] %v3997_v44  ;;  %6285 = vst [vmem:[#allocation114_spill] sm:$0xff] %v4001_v10  ;;  %v4031_v44 = vmul.f32 %v3386_v11, %v6286_v59  ;;  %v6289_v10 = vld [vmem:[#allocation16_spill] sm:$0xff]  ;;  %v4047_v34 = vmul.f32 %v6292_v16, %v6266_v22  ;;  %v6296_v22 = vld [vmem:[#allocation18_spill] sm:$0xff]  ;;  %v4085_v55 = vpop.permute.xlu1 %231 }
 0x107   :  { %v4035_v51 = vmul.f32 %v6289_v10, %v6271_v0  ;;  %v4039_v15 = vmul.f32 %v6289_v10, %v3386_v11  ;;  %6294 = vst [vmem:[#allocation119_spill] sm:$0xff] %v4050_v54  ;;  %v324_v54 = vsel %vm3895_vm9, %v308_v23, %v320_v19  ;;  %v4095_v23 = vmul.f32 %v3401_v46, %v321_v21 }
 0x108   :  { %6288 = vst [vmem:[#allocation116_spill] sm:$0xff] %v4031_v44  ;;  %6293 = vst [vmem:[#allocation17_spill] sm:$0xff] %v4047_v34  ;;  %v4068_v44 = vmul.f32 %v6296_v22, %v6271_v0  ;;  %v4072_v34 = vmul.f32 %v6296_v22, %v3386_v11  ;;  %v4087_v0 = vpop.permute.xlu0 %218  ;;  %v4092_v11 = vmul.f32 %v3398_v8, %v322_v29  ;;  %1000 = vrot.lane.b32.xlu1 %v3119_v6, %s6158_s3 }
 0x109   :  { %6290 = vst [vmem:[#allocation117_spill] sm:$0xff] %v4035_v51  ;;  %6291 = vst [vmem:[#allocation118_spill] sm:$0xff] %v4039_v15  ;;  %v323_v51 = vsel %vm3877_vm8, %v311_v32, %v316_v7  ;;  %v4060_v15 = vmul.f32 %v6292_v16, %v6268_v25  ;;  %v6299_v32 = vld [vmem:[#allocation22_spill] sm:$0xff]  ;;  %v4098_v19 = vmul.f32 %v3401_v46, %v322_v29  ;;  %998 = vrot.lane.b32.xlu0 %v3415_v39, %s6158_s3  ;;  %v6304_v39 = vld [vmem:[#allocation24_spill] sm:$0xff] }
 0x10a   :  { %6297 = vst [vmem:[#allocation121_spill] sm:$0xff] %v4068_v44  ;;  %6298 = vst [vmem:[#allocation122_spill] sm:$0xff] %v4072_v34  ;;  %v4077_v7 = vmul.f32 %v6299_v32, %v321_v21  ;;  %v4080_v25 = vmul.f32 %v6299_v32, %v322_v29  ;;  %v1534_v34 = vsel %vm224_vm4, %v3914_v53, %v3916_v45  ;;  %v4113_v22 = vstv %s3990_s29  ;;  %v4143_v33 = vpop.permute.xlu1 %1470  ;;  %s4300_s29 = sld [smem:[#allocation2 + $0x65]] }
 0x10b   :  { %6295 = vst [vmem:[#allocation120_spill] sm:$0xff] %v4060_v15  ;;  %v4083_v15 = vmul.f32 %v3398_v8, %v321_v21  ;;  %v1537_v44 = vsel %vm224_vm4, %v3916_v45, %v3914_v53  ;;  %6300 = vst [vmem:[#allocation22_spill] sm:$0xff] %v4113_v22  ;;  %v4121_v53 = vmul.f32 %v3424_v1, %v322_v29  ;;  %v6301_v45 = vld [vmem:[#allocation23_spill] sm:$0xff] }
 0x10c   :  { %v4124_v31 = vmul.f32 %v6301_v45, %v323_v51  ;;  %v4127_v6 = vmul.f32 %v6301_v45, %v324_v54  ;;  %v4132_v20 = vmul.f32 %v6304_v39, %v323_v51  ;;  %v4135_v22 = vmul.f32 %v6304_v39, %v324_v54  ;;  %v4145_v10 = vpop.permute.xlu0 %1458  ;;  %2146 = vrot.lane.b32.xlu1 %v3146_v30, %s6159_s13 }
 0x10d   :  { %v4138_v21 = vmul.f32 %v3496_v24, %v323_v51  ;;  %v4141_v29 = vmul.f32 %v3496_v24, %v324_v54  ;;  %2142 = vrot.lane.b32.xlu0 %v3166_v36, %s6159_s13  ;;  %6313 = vst [vmem:[#allocation131_spill] sm:$0xff] %v4172_v49  ;;  %6314 = vst [vmem:[#allocation132_spill] sm:$0xff] %v4175_v28  ;;  %v1550_v28 = vsel %vm3895_vm9, %v1534_v34, %v1546_v2 }
 0x10e   :  { %6302 = vst [vmem:[#allocation23_spill] sm:$0xff] %v4124_v31  ;;  %6303 = vst [vmem:[#allocation123_spill] sm:$0xff] %v4127_v6  ;;  %v1548_v6 = vsel %vm3841_vm7, %v1546_v2, %v1534_v34  ;;  %v4165_v31 = vmul.f32 %v3567_v58, %v324_v54  ;;  %v4184_v54 = vstv %s4023_s6  ;;  %s5573_s6 = sld [smem:[#allocation2 + $0x45]] }
 0x10f   :  { %6305 = vst [vmem:[#allocation24_spill] sm:$0xff] %v4132_v20  ;;  %6306 = vst [vmem:[#allocation124_spill] sm:$0xff] %v4135_v22  ;;  %v1547_v22 = vsel %vm3835_vm6, %v1542_v26, %v1537_v44  ;;  %v4162_v20 = vmul.f32 %v3567_v58, %v323_v51  ;;  %v1549_v51 = vsel %vm3877_vm8, %v1537_v44, %v1542_v26  ;;  %v4204_v44 = vpop.permute.xlu1 %430 }
 0x110   :  { %6307 = vst [vmem:[#allocation125_spill] sm:$0xff] %v4138_v21  ;;  %6308 = vst [vmem:[#allocation126_spill] sm:$0xff] %v4141_v29  ;;  %v4156_v21 = vstv %s4015_s30  ;;  %v4159_v29 = vstv %s4021_s5  ;;  %v4199_v49 = vmul.f32 %v1547_v22, %v6299_v32  ;;  %v4206_v26 = vpop.permute.xlu0 %436  ;;  %v4216_v2 = vmul.f32 %v1547_v22, %v3398_v8  ;;  %2154 = vrot.lane.b32.xlu1 %v3166_v36, %s6158_s3  ;;  %s4312_s30 = sld [smem:[#allocation2 + $0x6c]]  ;;  %s4314_s5 = sld [smem:[#allocation2 + $0x6d]] }
 0x111   :  { %6309 = vst [vmem:[#allocation127_spill] sm:$0xff] %v4156_v21  ;;  %6310 = vst [vmem:[#allocation128_spill] sm:$0xff] %v4159_v29  ;;  %v4187_v29 = vstv %s4062_s9  ;;  %v4190_v21 = vstv %s4064_s10  ;;  %v4219_v34 = vmul.f32 %v1548_v6, %v3398_v8  ;;  %2152 = vrot.lane.b32.xlu0 %v3146_v30, %s6158_s3  ;;  %v4244_v8 = vmul.f32 %v1550_v28, %v6301_v45  ;;  %s4335_s9 = sld [smem:[#allocation2 + $0x6f]]  ;;  %s5295_s10 = sld [smem:[#allocation2 + $0x14]] }
 0x112   :  { %6311 = vst [vmem:[#allocation129_spill] sm:$0xff] %v4162_v20  ;;  %6312 = vst [vmem:[#allocation130_spill] sm:$0xff] %v4165_v31  ;;  %v4202_v31 = vmul.f32 %v1548_v6, %v6299_v32  ;;  %v4222_v32 = vmul.f32 %v1547_v22, %v3401_v46  ;;  %v4256_v36 = vmul.f32 %v1549_v51, %v3496_v24  ;;  %v4310_v20 = vstv %s4194_s17  ;;  %s5813_s17 = sld [smem:[#allocation2 + $0x36]] }
 0x113   :  { %6315 = vst [vmem:[#allocation133_spill] sm:$0xff] %v4184_v54  ;;  %6316 = vst [vmem:[#allocation134_spill] sm:$0xff] %v4187_v29  ;;  %v4209_v29 = vstv %s4089_s14  ;;  %v4231_v54 = vmul.f32 %v1548_v6, %v3424_v1  ;;  %v4258_v30 = vpop.permute.xlu1 %1644  ;;  %s5297_s14 = sld [smem:[#allocation2 + $0x15]] }
 0x114   :  { %6317 = vst [vmem:[#allocation135_spill] sm:$0xff] %v4190_v21  ;;  %6318 = vst [vmem:[#allocation136_spill] sm:$0xff] %v4204_v44  ;;  %v4225_v21 = vmul.f32 %v1548_v6, %v3401_v46  ;;  %v4234_v44 = vmul.f32 %v1549_v51, %v6301_v45  ;;  %v666_v46 = vstv %s4115_s2  ;;  %v4253_v6 = vmul.f32 %v1550_v28, %v6304_v39  ;;  %s5717_s2 = sld [smem:[#allocation2 + $0x27]] }
 0x115   :  { %6319 = vst [vmem:[#allocation137_spill] sm:$0xff] %v4206_v26  ;;  %6320 = vst [vmem:[#allocation138_spill] sm:$0xff] %v4209_v29  ;;  %v4228_v29 = vmul.f32 %v1547_v22, %v3424_v1  ;;  %v4247_v22 = vmul.f32 %v1549_v51, %v6304_v39  ;;  %v681_v1 = vstv %s4129_s4  ;;  %v696_v45 = vstv %s4147_s11  ;;  %1077 = vrot.lane.b32.xlu1 %v6276_v48, %s6159_s13  ;;  %v6374_v26 = vld [vmem:[#allocation31_spill] sm:$0xff]  ;;  %s6547_s11 = sld [smem:[#allocation187_spill]] }
 0x116   :  { %6321 = vst [vmem:[#allocation139_spill] sm:$0xff] %v4219_v34  ;;  %6322 = vst [vmem:[#allocation140_spill] sm:$0xff] %v4222_v32  ;;  %v4272_v39 = vmul.f32 %v1549_v51, %v3567_v58  ;;  %1073 = vrot.lane.b32.xlu0 %v3180_v5, %s6159_s13  ;;  %v2835_v51 = vmov 1966171168   ;;  %s5731_s4 = sld [smem:[#allocation2 + $0x2e]] }
 0x117   :  { %6323 = vst [vmem:[#allocation141_spill] sm:$0xff] %v4225_v21  ;;  %6324 = vst [vmem:[#allocation142_spill] sm:$0xff] %v4228_v29  ;;  %v6375_v29 = vld [vmem:[#allocation28_spill] sm:$0xff] }
 0x118   :  { %6325 = vst [vmem:[#allocation143_spill] sm:$0xff] %v4231_v54  ;;  %6326 = vst [vmem:[#allocation144_spill] sm:$0xff] %v4234_v44  ;;  %v4260_v44 = vpop.permute.xlu0 %1650 }
 0x119   :  { %6327 = vst [vmem:[#allocation145_spill] sm:$0xff] %v4244_v8  ;;  %6328 = vst [vmem:[#allocation146_spill] sm:$0xff] %v4247_v22  ;;  %v711_v8 = vstv %s4149_s0  ;;  %v4269_v22 = vmul.f32 %v1550_v28, %v3496_v24  ;;  %v4291_v24 = vstv %s4177_s12  ;;  %1085 = vrot.lane.b32.xlu1 %v3180_v5, %s6158_s3  ;;  %v6359_v5 = vld [vmem:[#allocation5_spill] sm:$0xff]  ;;  %s2792_s0 = sld [smem:[#allocation2 + $0x77]]  ;;  %s2793_s12 = sld [smem:[#allocation2 + $0x78]] }
 0x11a   :  { %6329 = vst [vmem:[#allocation147_spill] sm:$0xff] %v4253_v6  ;;  %6330 = vst [vmem:[#allocation148_spill] sm:$0xff] %v4256_v36  ;;  %v4275_v6 = vmul.f32 %v1550_v28, %v3567_v58  ;;  %v4294_v58 = vstv %s4179_s15  ;;  %1083 = vrot.lane.b32.xlu0 %v6276_v48, %s6158_s3  ;;  %v4363_v48 = vstv %s4249_s21  ;;  %s5435_s21 = sld [smem:[#allocation2 + $0x24]] }
 0x11b   :  { %6331 = vst [vmem:[#allocation149_spill] sm:$0xff] %v4258_v30  ;;  %6332 = vst [vmem:[#allocation150_spill] sm:$0xff] %v4260_v44  ;;  %v2810_v30 = vld [vmem:[%s6336_s25 + $0x1] ss:$8 sm:$0x3]  ;;  %v4307_v44 = vstv %s4192_s16 }
 0x11c   :  { %6333 = vst [vmem:[#allocation151_spill] sm:$0xff] %v4269_v22  ;;  %6334 = vst [vmem:[#allocation152_spill] sm:$0xff] %v4272_v39  ;;  %v4280_v36 = vmul.f32 %v2810_v30, %v666_v46  ;;  %v4296_v28 = vmul.f32 %v2810_v30, %v681_v1  ;;  %v4302_v22 = vmul.f32 %v2810_v30, %v696_v45 }
 0x11d   :  { %6335 = vst [vmem:[#allocation153_spill] sm:$0xff] %v4275_v6  ;;  %6338 = vst [vmem:[#allocation155_spill] sm:$0xff] %v4291_v24  ;;  %v1259_v6 = vunpack.c.l.s4 %v2835_v51  ;;  %v4304_v39 = vmul.f32 %v2810_v30, %v711_v8  ;;  %v4318_v24 = vpop.permute.xlu0 %541  ;;  %v4324_v51 = vstv %s4213_s19  ;;  %v2811_v30 = vld [vmem:[%s6336_s25 + $0x5] ss:$8 sm:$0x3]  ;;  %2225 = vrot.lane.b32.xlu1 %v6292_v16, %s6159_s13  ;;  %s5423_s19 = sld [smem:[#allocation2 + $0x1c]] }
 0x11e   :  { %6337 = vst [vmem:[#allocation154_spill] sm:$0xff] %v4280_v36  ;;  %6339 = vst [vmem:[#allocation156_spill] sm:$0xff] %v4294_v58  ;;  %v4316_v58 = vpop.permute.xlu1 %553  ;;  %2221 = vrot.lane.b32.xlu0 %v6283_v40, %s6159_s13  ;;  %v6371_v36 = vld [vmem:[#allocation26_spill] sm:$0xff] }
 0x11f   :  { %6340 = vst [vmem:[#allocation157_spill] sm:$0xff] %v4296_v28  ;;  %6341 = vst [vmem:[#allocation158_spill] sm:$0xff] %v4302_v22  ;;  %v1260_v13 = vunpack.c.0.s8 %v1259_v6  ;;  %v6370_v22 = vld [vmem:[#allocation29_spill] sm:$0xff] }
 0x120   :  { %6342 = vst [vmem:[#allocation159_spill] sm:$0xff] %v4304_v39  ;;  %6343 = vst [vmem:[#allocation160_spill] sm:$0xff] %v4307_v44  ;;  %v4329_v44 = vmul.f32 %v2811_v30, %v666_v46  ;;  %v4413_v39 = vstv %s4312_s30  ;;  %v4416_v46 = vstv %s4314_s5  ;;  %s5569_s30 = sld [smem:[#allocation2 + $0x35]]  ;;  %s5571_s5 = sld [smem:[#allocation2 + $0x44]] }
 0x121   :  { %6344 = vst [vmem:[#allocation161_spill] sm:$0xff] %v4310_v20  ;;  %6345 = vst [vmem:[#allocation162_spill] sm:$0xff] %v4316_v58  ;;  %v4331_v20 = vmul.f32 %v2811_v30, %v681_v1  ;;  %v4354_v58 = vstv %s4240_s20  ;;  %v4367_v1 = vpop.permute.xlu0 %1743  ;;  %v4398_v6 = vsub.s32 %v1260_v13, %v6359_v5  ;;  %2233 = vrot.lane.b32.xlu1 %v6283_v40, %s6158_s3  ;;  %s5425_s20 = sld [smem:[#allocation2 + $0x1d]] }
 0x122   :  { %6346 = vst [vmem:[#allocation163_spill] sm:$0xff] %v4318_v24  ;;  %6347 = vst [vmem:[#allocation164_spill] sm:$0xff] %v4321_v37  ;;  %v4343_v24 = vmul.f32 %v2811_v30, %v711_v8  ;;  %v4395_v37 = vstv %s4266_s22  ;;  %v4404_v8 = vstv %s4300_s29  ;;  %2231 = vrot.lane.b32.xlu0 %v6292_v16, %s6158_s3  ;;  %s5445_s22 = sld [smem:[#allocation2 + $0x2c]] }
 0x123   :  { %6348 = vst [vmem:[#allocation165_spill] sm:$0xff] %v4324_v51  ;;  %6349 = vst [vmem:[#allocation166_spill] sm:$0xff] %v4329_v44  ;;  %v4341_v51 = vmul.f32 %v2811_v30, %v696_v45  ;;  %v4365_v30 = vpop.permute.xlu1 %1755  ;;  %v4392_v45 = vstv %s4264_s1  ;;  %v4410_v44 = vstv %s4284_s27  ;;  %s5437_s1 = sld [smem:[#allocation2 + $0x25]]  ;;  %s5567_s29 = sld [smem:[#allocation2 + $0x34]] }
 0x124   :  { %6350 = vst [vmem:[#allocation167_spill] sm:$0xff] %v4331_v20  ;;  %6352 = vst [vmem:[#allocation169_spill] sm:$0xff] %v4343_v24  ;;  %v4407_v20 = vstv %s4282_s26 }
 0x125   :  { %6351 = vst [vmem:[#allocation168_spill] sm:$0xff] %v4341_v51  ;;  %6353 = vst [vmem:[#allocation170_spill] sm:$0xff] %v4354_v58  ;;  %v4401_v51 = vstv %s4298_s28  ;;  %s5926_s28 = sld [smem:[#allocation2 + $0x71]] }
 0x126   :  { %6354 = vst [vmem:[#allocation171_spill] sm:$0xff] %v4363_v48  ;;  %6355 = vst [vmem:[#allocation172_spill] sm:$0xff] %v4365_v30  ;;  %v230_v48 = vpop.permute.xlu0 %229 }
 0x127   :  { %6356 = vst [vmem:[#allocation173_spill] sm:$0xff] %v4367_v1  ;;  %6357 = vst [vmem:[#allocation174_spill] sm:$0xff] %v4392_v45  ;;  %v223_v58 = vpop.permute.xlu1 %222  ;;  %v4419_v45 = vstv %s4333_s8  ;;  %v234_v13 = vsel %vm233_vm5, %v230_v48, %v4085_v55  ;;  %v238_v5 = vsel %vm233_vm5, %v4085_v55, %v230_v48  ;;  %v6372_v1 = vld [vmem:[#allocation30_spill] sm:$0xff]  ;;  %s5645_s8 = sld [smem:[#allocation2 + $0x7]] }
 0x128   :  { %6358 = vst [vmem:[#allocation175_spill] sm:$0xff] %v4395_v37  ;;  %6360 = vst [vmem:[#allocation176_spill] sm:$0xff] %v4398_v6  ;;  %v4422_v37 = vstv %s4335_s9  ;;  %v225_v6 = vsel %vm224_vm4, %v223_v58, %v4087_v0  ;;  %s5651_s9 = sld [smem:[#allocation2 + $0x16]] }
 0x129   :  { %6361 = vst [vmem:[#allocation177_spill] sm:$0xff] %v4401_v51  ;;  %6362 = vst [vmem:[#allocation178_spill] sm:$0xff] %v4404_v8  ;;  %v6369_v51 = vld [vmem:[#allocation25_spill] sm:$0xff] }
 0x12a   :  { %6363 = vst [vmem:[#allocation179_spill] sm:$0xff] %v4407_v20  ;;  %6364 = vst [vmem:[#allocation180_spill] sm:$0xff] %v4410_v44  ;;  %v228_v44 = vsel %vm224_vm4, %v4087_v0, %v223_v58  ;;  %v1469_v40 = vpop.permute.xlu0 %1468 }
 0x12b   :  { %6365 = vst [vmem:[#allocation181_spill] sm:$0xff] %v4413_v39  ;;  %6366 = vst [vmem:[#allocation182_spill] sm:$0xff] %v4416_v46  ;;  %v239_v39 = vsel %vm3835_vm6, %v234_v13, %v228_v44  ;;  %v242_v46 = vsel %vm3895_vm9, %v225_v6, %v238_v5 }
 0x12c   :  { %6367 = vst [vmem:[#allocation183_spill] sm:$0xff] %v4419_v45  ;;  %6368 = vst [vmem:[#allocation184_spill] sm:$0xff] %v4422_v37  ;;  %v240_v45 = vsel %vm3841_vm7, %v238_v5, %v225_v6  ;;  %v241_v37 = vsel %vm3877_vm8, %v228_v44, %v234_v13  ;;  %v244_v55 = vmul.f32 %v3584_v62, %v239_v39  ;;  %v1463_v13 = vpop.permute.xlu1 %1462 }
 0x12d   :  { %v245_v48 = vmul.f32 %v3584_v62, %v240_v45  ;;  %v249_v0 = vmul.f32 %v3587_v42, %v239_v39  ;;  %v250_v58 = vmul.f32 %v3587_v42, %v240_v45  ;;  %v254_v20 = vmul.f32 %v3614_v41, %v239_v39 }
 0x12e   :  { %v255_v44 = vmul.f32 %v3614_v41, %v240_v45  ;;  %v259_v5 = vmul.f32 %v3617_v56, %v239_v39  ;;  %v260_v6 = vmul.f32 %v3617_v56, %v240_v45  ;;  %v266_v8 = vadd.f32 %v3448_v61, %v244_v55  ;;  %v6376_v45 = vld [vmem:[#allocation8_spill] sm:$0xff]  ;;  %v4474_v59 = vpop.permute.xlu0 %426 }
 0x12f   :  { %v267_v24 = vadd.f32 %v6369_v51, %v245_v48  ;;  %v271_v28 = vadd.f32 %v6370_v22, %v249_v0  ;;  %v272_v30 = vadd.f32 %v6371_v36, %v250_v58  ;;  %v276_v16 = vadd.f32 %v6372_v1, %v254_v20  ;;  %1129 = vrot.lane.b32.xlu1 %v6376_v45, %s6159_s13  ;;  %v6377_v36 = vld [vmem:[#allocation9_spill] sm:$0xff] }
 0x130   :  { %v277_v3 = vadd.f32 %v6373_v4, %v255_v44  ;;  %v281_v54 = vadd.f32 %v6374_v26, %v259_v5  ;;  %v282_v39 = vadd.f32 %v6375_v29, %v260_v6  ;;  %v284_v21 = vmul.f32 %v3598_v57, %v241_v37  ;;  %1126 = vrot.lane.b32.xlu0 %v6377_v36, %s6159_s13  ;;  %v4472_v32 = vpop.permute.xlu1 %438 }
 0x131   :  { %v285_v61 = vmul.f32 %v3598_v57, %v242_v46  ;;  %v289_v51 = vmul.f32 %v3601_v63, %v241_v37  ;;  %v290_v22 = vmul.f32 %v3601_v63, %v242_v46  ;;  %v294_v4 = vmul.f32 %v3634_v47, %v241_v37 }
 0x132   :  { %v295_v20 = vmul.f32 %v3634_v47, %v242_v46  ;;  %v299_v29 = vmul.f32 %v3637_v50, %v241_v37  ;;  %v300_v26 = vmul.f32 %v3637_v50, %v242_v46  ;;  %v286_v1 = vadd.f32 %v284_v21, %v266_v8 }
 0x133   :  { %v287_v55 = vadd.f32 %v285_v61, %v267_v24  ;;  %v291_v48 = vadd.f32 %v289_v51, %v271_v28  ;;  %v292_v0 = vadd.f32 %v290_v22, %v272_v30  ;;  %v296_v58 = vadd.f32 %v294_v4, %v276_v16  ;;  %1137 = vrot.lane.b32.xlu1 %v6377_v36, %s6158_s3  ;;  %v4534_v22 = vpop.permute.xlu0 %1640  ;;  %v6380_v36 = vld [vmem:[#allocation33_spill] sm:$0xff] }
 0x134   :  { %v297_v44 = vadd.f32 %v295_v20, %v277_v3  ;;  %v301_v5 = vadd.f32 %v299_v29, %v281_v54  ;;  %v302_v6 = vadd.f32 %v300_v26, %v282_v39  ;;  %v4479_v34 = vadd.f32 %v4077_v7, %v286_v1  ;;  %1135 = vrot.lane.b32.xlu0 %v6376_v45, %s6158_s3  ;;  %v4532_v51 = vpop.permute.xlu1 %1652  ;;  %v6381_v20 = vld [vmem:[#allocation36_spill] sm:$0xff]  ;;  %v6382_v1 = vld [vmem:[#allocation37_spill] sm:$0xff] }
 0x135   :  { %v4482_v37 = vadd.f32 %v4080_v25, %v287_v55  ;;  %v4485_v21 = vadd.f32 %v4083_v15, %v291_v48  ;;  %v4488_v3 = vadd.f32 %v4092_v11, %v292_v0  ;;  %v4493_v54 = vadd.f32 %v4095_v23, %v296_v58 }
 0x136   :  { %v4496_v24 = vadd.f32 %v4098_v19, %v297_v44  ;;  %v4499_v7 = vadd.f32 %v4118_v43, %v301_v5  ;;  %v4502_v25 = vadd.f32 %v4121_v53, %v302_v6  ;;  %v1472_v15 = vsel %vm233_vm5, %v1469_v40, %v4143_v33 }
 0x137   :  { %v1476_v11 = vsel %vm233_vm5, %v4143_v33, %v1469_v40  ;;  %v1464_v28 = vsel %vm224_vm4, %v1463_v13, %v4145_v10  ;;  %v1467_v23 = vsel %vm224_vm4, %v4145_v10, %v1463_v13  ;;  %v6378_v33 = vld [vmem:[#allocation10_spill] sm:$0xff]  ;;  %v6379_v13 = vld [vmem:[#allocation11_spill] sm:$0xff] }
 0x138   :  { %v1477_v19 = vsel %vm3835_vm6, %v1472_v15, %v1467_v23  ;;  %v1478_v43 = vsel %vm3841_vm7, %v1476_v11, %v1464_v28  ;;  %v1479_v53 = vsel %vm3877_vm8, %v1467_v23, %v1472_v15  ;;  %v1480_v46 = vsel %vm3895_vm9, %v1464_v28, %v1476_v11  ;;  %2271 = vrot.lane.b32.xlu1 %v6378_v33, %s6159_s13 }
 0x139   :  { %v1481_v8 = vmul.f32 %v1477_v19, %v3584_v62  ;;  %v1482_v30 = vmul.f32 %v1478_v43, %v3584_v62  ;;  %v1485_v10 = vmul.f32 %v1477_v19, %v3587_v42  ;;  %v1486_v40 = vmul.f32 %v1478_v43, %v3587_v42  ;;  %2268 = vrot.lane.b32.xlu0 %v6379_v13, %s6159_s13 }
 0x13a   :  { %v1489_v16 = vmul.f32 %v1477_v19, %v3614_v41  ;;  %v1490_v39 = vmul.f32 %v1478_v43, %v3614_v41  ;;  %v1493_v45 = vmul.f32 %v1477_v19, %v3617_v56  ;;  %v1494_v61 = vmul.f32 %v1478_v43, %v3617_v56  ;;  %v4558_v19 = vpop.permute.xlu0 %551 }
 0x13b   :  { %v1499_v62 = vadd.f32 %v3532_v35, %v1481_v8  ;;  %v1500_v4 = vadd.f32 %v6380_v36, %v1482_v30  ;;  %v1503_v42 = vadd.f32 %v3536_v38, %v1485_v10  ;;  %v1504_v29 = vadd.f32 %v6381_v20, %v1486_v40  ;;  %v6385_v8 = vld [vmem:[#allocation140_spill] sm:$0xff]  ;;  %v6386_v10 = vld [vmem:[#allocation141_spill] sm:$0xff] }
 0x13c   :  { %v1507_v26 = vadd.f32 %v3548_v52, %v1489_v16  ;;  %v1508_v41 = vadd.f32 %v6382_v1, %v1490_v39  ;;  %v1511_v55 = vadd.f32 %v3552_v14, %v1493_v45  ;;  %v1512_v56 = vadd.f32 %v3512_v60, %v1494_v61  ;;  %2279 = vrot.lane.b32.xlu1 %v6379_v13, %s6158_s3  ;;  %v6390_v61 = vld [vmem:[#allocation79_spill] sm:$0xff] }
 0x13d   :  { %v1513_v48 = vmul.f32 %v1479_v53, %v3598_v57  ;;  %v1514_v35 = vmul.f32 %v1480_v46, %v3598_v57  ;;  %v1517_v0 = vmul.f32 %v1479_v53, %v3601_v63  ;;  %v1518_v38 = vmul.f32 %v1480_v46, %v3601_v63  ;;  %2277 = vrot.lane.b32.xlu0 %v6378_v33, %s6158_s3  ;;  %v4556_v63 = vpop.permute.xlu1 %545  ;;  %v6384_v33 = vld [vmem:[#allocation14_spill] sm:$0xff] }
 0x13e   :  { %v1521_v52 = vmul.f32 %v1479_v53, %v3634_v47  ;;  %v1522_v14 = vmul.f32 %v1480_v46, %v3634_v47  ;;  %v1525_v60 = vmul.f32 %v1479_v53, %v3637_v50  ;;  %v1526_v58 = vmul.f32 %v1480_v46, %v3637_v50  ;;  %v6383_v53 = vld [vmem:[#allocation139_spill] sm:$0xff] }
 0x13f   :  { %v1515_v44 = vadd.f32 %v1513_v48, %v1499_v62  ;;  %v1516_v5 = vadd.f32 %v1514_v35, %v1500_v4  ;;  %v1519_v6 = vadd.f32 %v1517_v0, %v1503_v42  ;;  %v1520_v15 = vadd.f32 %v1518_v38, %v1504_v29  ;;  %v6391_v62 = vld [vmem:[#allocation6_spill] sm:$0xff]  ;;  %v6393_v42 = vld [vmem:[#allocation87_spill] sm:$0xff] }
 0x140   :  { %v1523_v57 = vadd.f32 %v1521_v52, %v1507_v26  ;;  %v1524_v11 = vadd.f32 %v1522_v14, %v1508_v41  ;;  %v1527_v28 = vadd.f32 %v1525_v60, %v1511_v55  ;;  %v1528_v23 = vadd.f32 %v1526_v58, %v1512_v56  ;;  %1203 = vrot.lane.b32.xlu1 %v6270_v27, %s6159_s13  ;;  %v6395_v26 = vld [vmem:[#allocation92_spill] sm:$0xff]  ;;  %v6397_v55 = vld [vmem:[#allocation94_spill] sm:$0xff]  ;;  %v6399_v48 = vld [vmem:[#allocation7_spill] sm:$0xff] }
 0x141   :  { %v4563_v47 = vadd.f32 %v4199_v49, %v1515_v44  ;;  %v4566_v50 = vadd.f32 %v4202_v31, %v1516_v5  ;;  %v4569_v43 = vadd.f32 %v4216_v2, %v1519_v6  ;;  %v4572_v46 = vadd.f32 %v6383_v53, %v1520_v15  ;;  %1199 = vrot.lane.b32.xlu0 %v6384_v33, %s6159_s13  ;;  %v6387_v49 = vld [vmem:[#allocation142_spill] sm:$0xff]  ;;  %v6388_v31 = vld [vmem:[#allocation143_spill] sm:$0xff]  ;;  %v6389_v2 = vld [vmem:[#allocation137_spill] sm:$0xff]  ;;  %v4638_v53 = vpop.permute.xlu0 %1753 }
 0x142   :  { %v4577_v30 = vadd.f32 %v6385_v8, %v1523_v57  ;;  %v4580_v40 = vadd.f32 %v6386_v10, %v1524_v11  ;;  %v4583_v13 = vadd.f32 %v6387_v49, %v1527_v28  ;;  %v4586_v16 = vadd.f32 %v6388_v31, %v1528_v23  ;;  %v6402_v38 = vld [vmem:[#allocation23_spill] sm:$0xff]  ;;  %v6403_v52 = vld [vmem:[#allocation24_spill] sm:$0xff]  ;;  %v6407_v5 = vld [vmem:[#allocation129_spill] sm:$0xff]  ;;  %v4636_v23 = vpop.permute.xlu1 %1747 }
 0x143   :  { %v440_v39 = vsel %vm233_vm5, %v6389_v2, %v4472_v32  ;;  %v444_v45 = vsel %vm233_vm5, %v4472_v32, %v6389_v2  ;;  %v6392_v36 = vrot.slane %v6390_v61, %v6391_v62  ;;  %v6394_v20 = vrot.slane %v6393_v42, %v6391_v62  ;;  %v6408_v15 = vld [vmem:[#allocation123_spill] sm:$0xff]  ;;  %v6409_v11 = vld [vmem:[#allocation124_spill] sm:$0xff]  ;;  %v6411_v8 = vld [vmem:[#allocation130_spill] sm:$0xff] }
 0x144   :  { %v6396_v1 = vrot.slane %v6395_v26, %v6391_v62  ;;  %v6398_v56 = vrot.slane %v6397_v55, %v6391_v62  ;;  %v6400_v35 = vrot.slane %v6390_v61, %v6399_v48  ;;  %v6401_v0 = vrot.slane %v6393_v42, %v6399_v48  ;;  %1211 = vrot.lane.b32.xlu1 %v6384_v33, %s6158_s3  ;;  %v6414_v42 = vld [vmem:[#allocation97_spill] sm:$0xff] }
 0x145   :  { %v358_v4 = vadd.f32 %v6392_v36, %v4479_v34  ;;  %v373_v29 = vadd.f32 %v6394_v20, %v4485_v21  ;;  %1209 = vrot.lane.b32.xlu0 %v6270_v27, %s6158_s3 }
 0x146   :  { %v388_v41 = vadd.f32 %v6396_v1, %v4493_v54  ;;  %v403_v32 = vadd.f32 %v6398_v56, %v4499_v7  ;;  %v359_v34 = vadd.f32 %v6400_v35, %v4482_v37  ;;  %v374_v21 = vadd.f32 %v6401_v0, %v4488_v3  ;;  %v6406_v3 = vld [vmem:[#allocation125_spill] sm:$0xff] }
 0x147   :  { %v408_v54 = vadd.f32 %v6402_v38, %v358_v4  ;;  %v413_v14 = vadd.f32 %v6403_v52, %v373_v29  ;;  %v6404_v7 = vrot.slane %v6395_v26, %v6399_v48  ;;  %v6405_v37 = vrot.slane %v6397_v55, %v6399_v48  ;;  %v6413_v4 = vld [vmem:[#allocation16_spill] sm:$0xff]  ;;  %v6417_v55 = vld [vmem:[#allocation99_spill] sm:$0xff] }
 0x148   :  { %v418_v44 = vadd.f32 %v6406_v3, %v388_v41  ;;  %v423_v6 = vadd.f32 %v6407_v5, %v403_v32  ;;  %v409_v57 = vadd.f32 %v6408_v15, %v359_v34  ;;  %v414_v28 = vadd.f32 %v6409_v11, %v374_v21  ;;  %2339 = vrot.lane.b32.xlu1 %v6413_v4, %s6159_s13  ;;  %v6416_v41 = vld [vmem:[#allocation18_spill] sm:$0xff]  ;;  %v6418_v32 = vld [vmem:[#allocation100_spill] sm:$0xff]  ;;  %v4670_v3 = vpop.permute.xlu0 %624  ;;  %v6420_v11 = vld [vmem:[#allocation39_spill] sm:$0xff] }
 0x149   :  { %v389_v60 = vadd.f32 %v6404_v7, %v4496_v24  ;;  %v404_v58 = vadd.f32 %v6405_v37, %v4502_v25  ;;  %v6410_v24 = vld [vmem:[#allocation126_spill] sm:$0xff]  ;;  %v6412_v25 = vld [vmem:[#allocation136_spill] sm:$0xff]  ;;  %2335 = vrot.lane.b32.xlu0 %v6416_v41, %s6159_s13  ;;  %s5281_s13 = sld [smem:[#allocation2 + $0x5]] }
 0x14a   :  { %v432_v27 = vsel %vm224_vm4, %v6412_v25, %v4474_v59  ;;  %v435_v49 = vsel %vm224_vm4, %v4474_v59, %v6412_v25  ;;  %v6415_v59 = vld [vmem:[#allocation98_spill] sm:$0xff]  ;;  %v6419_v5 = vld [vmem:[#allocation32_spill] sm:$0xff] }
 0x14b   :  { %v419_v33 = vadd.f32 %v6410_v24, %v389_v60  ;;  %v424_v10 = vadd.f32 %v6411_v8, %v404_v58  ;;  %v445_v31 = vsel %vm3835_vm6, %v440_v39, %v435_v49  ;;  %v446_v2 = vsel %vm3841_vm7, %v444_v45, %v432_v27  ;;  %v4668_v58 = vpop.permute.xlu1 %627  ;;  %v6421_v8 = vld [vmem:[#allocation34_spill] sm:$0xff] }
 0x14c   :  { %v447_v61 = vsel %vm3877_vm8, %v435_v49, %v440_v39  ;;  %v448_v36 = vsel %vm3895_vm9, %v432_v27, %v444_v45  ;;  %v450_v20 = vmul.f32 %v6414_v42, %v445_v31  ;;  %v451_v29 = vmul.f32 %v6414_v42, %v446_v2  ;;  %2347 = vrot.lane.b32.xlu1 %v6416_v41, %s6158_s3  ;;  %v6426_v27 = vld [vmem:[#allocation42_spill] sm:$0xff]  ;;  %v6429_v41 = vld [vmem:[#allocation119_spill] sm:$0xff] }
 0x14d   :  { %v455_v26 = vmul.f32 %v6415_v59, %v445_v31  ;;  %v456_v1 = vmul.f32 %v6415_v59, %v446_v2  ;;  %v460_v56 = vmul.f32 %v6417_v55, %v445_v31  ;;  %v461_v39 = vmul.f32 %v6417_v55, %v446_v2  ;;  %2345 = vrot.lane.b32.xlu0 %v6413_v4, %s6158_s3  ;;  %s5279_s3 = sld [smem:[#allocation2 + $0x4]] }
 0x14e   :  { %v465_v45 = vmul.f32 %v6418_v32, %v445_v31  ;;  %v466_v35 = vmul.f32 %v6418_v32, %v446_v2  ;;  %v452_v34 = vadd.f32 %v450_v20, %v408_v54  ;;  %v453_v0 = vadd.f32 %v451_v29, %v409_v57  ;;  %v6422_v57 = vld [vmem:[#allocation40_spill] sm:$0xff]  ;;  %v6428_v29 = vld [vmem:[#allocation113_spill] sm:$0xff] }
 0x14f   :  { %v457_v21 = vadd.f32 %v455_v26, %v413_v14  ;;  %v458_v38 = vadd.f32 %v456_v1, %v414_v28  ;;  %v462_v52 = vadd.f32 %v460_v56, %v418_v44  ;;  %v463_v7 = vadd.f32 %v461_v39, %v419_v33  ;;  %v6423_v44 = vld [vmem:[#allocation35_spill] sm:$0xff]  ;;  %v6424_v28 = vld [vmem:[#allocation41_spill] sm:$0xff]  ;;  %v6427_v31 = vld [vmem:[#allocation108_spill] sm:$0xff] }
 0x150   :  { %v467_v60 = vadd.f32 %v465_v45, %v423_v6  ;;  %v468_v37 = vadd.f32 %v466_v35, %v424_v10  ;;  %v472_v15 = vadd.f32 %v6419_v5, %v452_v34  ;;  %v473_v24 = vadd.f32 %v6420_v11, %v453_v0  ;;  %v6425_v10 = vld [vmem:[#allocation38_spill] sm:$0xff]  ;;  %v4708_v5 = vpop.permute.xlu1 %635 }
 0x151   :  { %v477_v54 = vadd.f32 %v6421_v8, %v457_v21  ;;  %v478_v14 = vadd.f32 %v6422_v57, %v458_v38  ;;  %v482_v6 = vadd.f32 %v6423_v44, %v462_v52  ;;  %v483_v33 = vadd.f32 %v6424_v28, %v463_v7  ;;  %v6430_v39 = vld [vmem:[#allocation22_spill] sm:$0xff]  ;;  %v6434_v57 = vld [vmem:[#allocation21_spill] sm:$0xff] }
 0x152   :  { %v487_v25 = vadd.f32 %v6425_v10, %v467_v60  ;;  %v488_v49 = vadd.f32 %v6426_v27, %v468_v37  ;;  %v490_v2 = vmul.f32 %v6427_v31, %v447_v61  ;;  %v491_v20 = vmul.f32 %v6427_v31, %v448_v36  ;;  %v6438_v10 = vld [vmem:[#allocation111_spill] sm:$0xff] }
 0x153   :  { %v495_v26 = vmul.f32 %v6428_v29, %v447_v61  ;;  %v496_v1 = vmul.f32 %v6428_v29, %v448_v36  ;;  %v500_v56 = vmul.f32 %v6429_v41, %v447_v61  ;;  %v501_v4 = vmul.f32 %v6429_v41, %v448_v36 }
 0x154   :  { %v505_v45 = vmul.f32 %v6430_v39, %v447_v61  ;;  %v506_v35 = vmul.f32 %v6430_v39, %v448_v36  ;;  %v4692_v34 = vadd.f32 %v490_v2, %v472_v15  ;;  %v4694_v0 = vadd.f32 %v491_v20, %v473_v24  ;;  %v4710_v61 = vpop.permute.xlu0 %633  ;;  %v6431_v36 = vld [vmem:[#allocation150_spill] sm:$0xff]  ;;  %v6432_v24 = vld [vmem:[#allocation105_spill] sm:$0xff]  ;;  %v6442_v2 = vld [vmem:[#allocation144_spill] sm:$0xff] }
 0x155   :  { %v4696_v21 = vadd.f32 %v495_v26, %v477_v54  ;;  %v4698_v38 = vadd.f32 %v496_v1, %v478_v14  ;;  %v4700_v52 = vadd.f32 %v500_v56, %v482_v6  ;;  %v4702_v7 = vadd.f32 %v501_v4, %v483_v33  ;;  %v6436_v6 = vld [vmem:[#allocation110_spill] sm:$0xff] }
 0x156   :  { %v4704_v60 = vadd.f32 %v505_v45, %v487_v25  ;;  %v4706_v37 = vadd.f32 %v506_v35, %v488_v49  ;;  %v1654_v15 = vsel %vm233_vm5, %v6431_v36, %v4532_v51  ;;  %v1658_v11 = vsel %vm233_vm5, %v4532_v51, %v6431_v36  ;;  %v6443_v26 = vld [vmem:[#allocation146_spill] sm:$0xff]  ;;  %v6447_v35 = vld [vmem:[#allocation152_spill] sm:$0xff] }
 0x157   :  { %v6433_v8 = vrot.slane %v6432_v24, %v6391_v62  ;;  %v6435_v14 = vrot.slane %v6434_v57, %v6391_v62  ;;  %v6437_v28 = vrot.slane %v6436_v6, %v6391_v62  ;;  %v6439_v25 = vrot.slane %v6438_v10, %v6391_v62 }
 0x158   :  { %v6440_v27 = vrot.slane %v6432_v24, %v6399_v48  ;;  %v6441_v49 = vrot.slane %v6434_v57, %v6399_v48  ;;  %v6448_v24 = vld [vmem:[#allocation145_spill] sm:$0xff]  ;;  %v6450_v57 = vld [vmem:[#allocation151_spill] sm:$0xff] }
 0x159   :  { %v1579_v54 = vadd.f32 %v6433_v8, %v4563_v47  ;;  %v1593_v44 = vadd.f32 %v6435_v14, %v4569_v43  ;;  %v1607_v33 = vadd.f32 %v6437_v28, %v4577_v30  ;;  %v1621_v51 = vadd.f32 %v6439_v25, %v4583_v13  ;;  %v6449_v8 = vld [vmem:[#allocation147_spill] sm:$0xff] }
 0x15a   :  { %v1580_v47 = vadd.f32 %v6440_v27, %v4566_v50  ;;  %v1594_v43 = vadd.f32 %v6441_v49, %v4572_v46  ;;  %v6444_v30 = vrot.slane %v6436_v6, %v6399_v48  ;;  %v6445_v13 = vrot.slane %v6438_v10, %v6399_v48  ;;  %v6446_v50 = vld [vmem:[#allocation148_spill] sm:$0xff]  ;;  %v6452_v6 = vld [vmem:[#allocation149_spill] sm:$0xff]  ;;  %v4772_v27 = vpop.permute.xlu1 %1817 }
 0x15b   :  { %v1625_v20 = vadd.f32 %v6442_v2, %v1579_v54  ;;  %v1629_v1 = vadd.f32 %v6443_v26, %v1593_v44  ;;  %v1633_v45 = vadd.f32 %v6446_v50, %v1607_v33  ;;  %v1637_v36 = vadd.f32 %v6447_v35, %v1621_v51  ;;  %v6451_v44 = vld [vmem:[#allocation153_spill] sm:$0xff]  ;;  %6453 = vst [vmem:[#allocation25_spill] sm:$0xff] %v4772_v27  ;;  %v6458_v27 = vld [vmem:[#allocation46_spill] sm:$0xff]  ;;  %v6460_v48 = vld [vmem:[#allocation48_spill] sm:$0xff] }
 0x15c   :  { %v1608_v56 = vadd.f32 %v6444_v30, %v4580_v40  ;;  %v1622_v4 = vadd.f32 %v6445_v13, %v4586_v16  ;;  %v1626_v46 = vadd.f32 %v6448_v24, %v1580_v47  ;;  %v1630_v54 = vadd.f32 %v6449_v8, %v1594_v43  ;;  %v4774_v47 = vpop.permute.xlu0 %1814 }
 0x15d   :  { %v1646_v40 = vsel %vm224_vm4, %v6452_v6, %v4534_v22  ;;  %v1649_v16 = vsel %vm224_vm4, %v4534_v22, %v6452_v6  ;;  %6454 = vst [vmem:[#allocation29_spill] sm:$0xff] %v4774_v47  ;;  %v6456_v6 = vld [vmem:[#allocation44_spill] sm:$0xff]  ;;  %v6459_v47 = vld [vmem:[#allocation47_spill] sm:$0xff] }
 0x15e   :  { %v1634_v14 = vadd.f32 %v6450_v57, %v1608_v56  ;;  %v1638_v28 = vadd.f32 %v6451_v44, %v1622_v4  ;;  %v1659_v33 = vsel %vm3835_vm6, %v1654_v15, %v1649_v16  ;;  %v1660_v10 = vsel %vm3841_vm7, %v1658_v11, %v1646_v40  ;;  %v6455_v57 = vld [vmem:[#allocation43_spill] sm:$0xff] }
 0x15f   :  { %v1661_v25 = vsel %vm3877_vm8, %v1649_v16, %v1654_v15  ;;  %v1662_v51 = vsel %vm3895_vm9, %v1646_v40, %v1658_v11  ;;  %v1663_v49 = vmul.f32 %v1659_v33, %v6414_v42  ;;  %v1664_v22 = vmul.f32 %v1660_v10, %v6414_v42  ;;  %v6457_v40 = vld [vmem:[#allocation45_spill] sm:$0xff] }
 0x160   :  { %v1667_v43 = vmul.f32 %v1659_v33, %v6415_v59  ;;  %v1668_v2 = vmul.f32 %v1660_v10, %v6415_v59  ;;  %v1671_v26 = vmul.f32 %v1659_v33, %v6417_v55  ;;  %v1672_v30 = vmul.f32 %v1660_v10, %v6417_v55 }
 0x161   :  { %v1675_v15 = vmul.f32 %v1659_v33, %v6418_v32  ;;  %v1676_v11 = vmul.f32 %v1660_v10, %v6418_v32  ;;  %v1665_v56 = vadd.f32 %v1663_v49, %v1625_v20  ;;  %v1666_v13 = vadd.f32 %v1664_v22, %v1626_v46  ;;  %v6461_v20 = vld [vmem:[#allocation49_spill] sm:$0xff] }
 0x162   :  { %v1669_v4 = vadd.f32 %v1667_v43, %v1629_v1  ;;  %v1670_v50 = vadd.f32 %v1668_v2, %v1630_v54  ;;  %v1673_v35 = vadd.f32 %v1671_v26, %v1633_v45  ;;  %v1674_v24 = vadd.f32 %v1672_v30, %v1634_v14  ;;  %v6462_v1 = vld [vmem:[#allocation50_spill] sm:$0xff]  ;;  %v4792_v45 = vpop.permute.xlu1 %1825 }
 0x163   :  { %v1677_v8 = vadd.f32 %v1675_v15, %v1637_v36  ;;  %v1678_v42 = vadd.f32 %v1676_v11, %v1638_v28  ;;  %v1681_v44 = vadd.f32 %v6455_v57, %v1665_v56  ;;  %v1682_v59 = vadd.f32 %v6456_v6, %v1666_v13  ;;  %v4794_v36 = vpop.permute.xlu0 %1823 }
 0x164   :  { %v1685_v16 = vadd.f32 %v6457_v40, %v1669_v4  ;;  %v1686_v55 = vadd.f32 %v6458_v27, %v1670_v50  ;;  %v1689_v33 = vadd.f32 %v6459_v47, %v1673_v35  ;;  %v1690_v32 = vadd.f32 %v6460_v48, %v1674_v24  ;;  %v6467_v40 = vld [vmem:[#allocation131_spill] sm:$0xff] }
 0x165   :  { %v1693_v46 = vadd.f32 %v6461_v20, %v1677_v8  ;;  %v1694_v54 = vadd.f32 %v6462_v1, %v1678_v42  ;;  %v1695_v14 = vmul.f32 %v1661_v25, %v6427_v31  ;;  %v1696_v28 = vmul.f32 %v1662_v51, %v6427_v31  ;;  %v6465_v42 = vld [vmem:[#allocation127_spill] sm:$0xff] }
 0x166   :  { %v1699_v10 = vmul.f32 %v1661_v25, %v6428_v29  ;;  %v1700_v27 = vmul.f32 %v1662_v51, %v6428_v29  ;;  %v1703_v47 = vmul.f32 %v1661_v25, %v6429_v41  ;;  %v1704_v48 = vmul.f32 %v1662_v51, %v6429_v41  ;;  %v6463_v41 = vld [vmem:[#allocation163_spill] sm:$0xff]  ;;  %v4840_v24 = vpop.permute.xlu1 %751 }
 0x167   :  { %v1707_v49 = vmul.f32 %v1661_v25, %v6430_v39  ;;  %v1708_v22 = vmul.f32 %v1662_v51, %v6430_v39  ;;  %v4804_v43 = vadd.f32 %v1695_v14, %v1681_v44  ;;  %v4806_v2 = vadd.f32 %v1696_v28, %v1682_v59  ;;  %v6464_v51 = vld [vmem:[#allocation162_spill] sm:$0xff]  ;;  %v4842_v8 = vpop.permute.xlu0 %747  ;;  %v6466_v44 = vld [vmem:[#allocation128_spill] sm:$0xff] }
 0x168   :  { %v4808_v26 = vadd.f32 %v1699_v10, %v1685_v16  ;;  %v4810_v30 = vadd.f32 %v1700_v27, %v1686_v55  ;;  %v4812_v31 = vadd.f32 %v1703_v47, %v1689_v33  ;;  %v4814_v15 = vadd.f32 %v1704_v48, %v1690_v32  ;;  %v6468_v33 = vld [vmem:[#allocation132_spill] sm:$0xff]  ;;  %v6469_v48 = vld [vmem:[#allocation55_spill] sm:$0xff] }
 0x169   :  { %v4816_v29 = vadd.f32 %v1707_v49, %v1693_v46  ;;  %v4818_v11 = vadd.f32 %v1708_v22, %v1694_v54  ;;  %v547_v39 = vsel %vm224_vm4, %v4556_v63, %v6463_v41  ;;  %v550_v25 = vsel %vm224_vm4, %v6463_v41, %v4556_v63  ;;  %v6470_v22 = vld [vmem:[#allocation51_spill] sm:$0xff] }
 0x16a   :  { %v555_v56 = vsel %vm233_vm5, %v4558_v19, %v6464_v51  ;;  %v559_v13 = vsel %vm233_vm5, %v6464_v51, %v4558_v19  ;;  %v6473_v51 = vld [vmem:[#allocation58_spill] sm:$0xff] }
 0x16b   :  { %v560_v4 = vsel %vm3835_vm6, %v555_v56, %v550_v25  ;;  %v561_v50 = vsel %vm3841_vm7, %v559_v13, %v547_v39  ;;  %v562_v35 = vsel %vm3877_vm8, %v550_v25, %v555_v56  ;;  %v563_v63 = vsel %vm3895_vm9, %v547_v39, %v559_v13  ;;  %v6471_v39 = vld [vmem:[#allocation57_spill] sm:$0xff]  ;;  %v6472_v25 = vld [vmem:[#allocation52_spill] sm:$0xff]  ;;  %v6475_v13 = vld [vmem:[#allocation59_spill] sm:$0xff] }
 0x16c   :  { %v565_v57 = vmul.f32 %v6465_v42, %v560_v4  ;;  %v566_v19 = vmul.f32 %v6465_v42, %v561_v50  ;;  %v570_v6 = vmul.f32 %v6466_v44, %v560_v4  ;;  %v571_v59 = vmul.f32 %v6466_v44, %v561_v50  ;;  %v6474_v56 = vld [vmem:[#allocation53_spill] sm:$0xff] }
 0x16d   :  { %v575_v16 = vmul.f32 %v6467_v40, %v560_v4  ;;  %v576_v55 = vmul.f32 %v6467_v40, %v561_v50  ;;  %v580_v32 = vmul.f32 %v6468_v33, %v560_v4  ;;  %v581_v20 = vmul.f32 %v6468_v33, %v561_v50  ;;  %v6476_v4 = vld [vmem:[#allocation54_spill] sm:$0xff]  ;;  %v4868_v50 = vpop.permute.xlu1 %759 }
 0x16e   :  { %v567_v46 = vadd.f32 %v565_v57, %v4692_v34  ;;  %v568_v1 = vadd.f32 %v566_v19, %v4694_v0  ;;  %v572_v54 = vadd.f32 %v570_v6, %v4696_v21  ;;  %v573_v14 = vadd.f32 %v571_v59, %v4698_v38  ;;  %v6478_v6 = vld [vmem:[#allocation134_spill] sm:$0xff] }
 0x16f   :  { %v577_v28 = vadd.f32 %v575_v16, %v4700_v52  ;;  %v578_v10 = vadd.f32 %v576_v55, %v4702_v7  ;;  %v582_v27 = vadd.f32 %v580_v32, %v4704_v60  ;;  %v583_v47 = vadd.f32 %v581_v20, %v4706_v37  ;;  %v4870_v60 = vpop.permute.xlu0 %757  ;;  %v6477_v37 = vld [vmem:[#allocation133_spill] sm:$0xff]  ;;  %v6479_v55 = vld [vmem:[#allocation135_spill] sm:$0xff] }
 0x170   :  { %v587_v49 = vadd.f32 %v6469_v48, %v567_v46  ;;  %v588_v41 = vadd.f32 %v6470_v22, %v568_v1  ;;  %v592_v34 = vadd.f32 %v6471_v39, %v572_v54  ;;  %v593_v0 = vadd.f32 %v6472_v25, %v573_v14  ;;  %v6480_v46 = vld [vmem:[#allocation138_spill] sm:$0xff]  ;;  %v6481_v25 = vld [vmem:[#allocation173_spill] sm:$0xff] }
 0x171   :  { %v597_v21 = vadd.f32 %v6473_v51, %v577_v28  ;;  %v598_v38 = vadd.f32 %v6474_v56, %v578_v10  ;;  %v602_v52 = vadd.f32 %v6475_v13, %v582_v27  ;;  %v603_v7 = vadd.f32 %v6476_v4, %v583_v47  ;;  %v4916_v56 = vpop.permute.xlu1 %1929 }
 0x172   :  { %v605_v57 = vmul.f32 %v6477_v37, %v562_v35  ;;  %v606_v19 = vmul.f32 %v6477_v37, %v563_v63  ;;  %v610_v59 = vmul.f32 %v6478_v6, %v562_v35  ;;  %v611_v16 = vmul.f32 %v6478_v6, %v563_v63 }
 0x173   :  { %v615_v32 = vmul.f32 %v6479_v55, %v562_v35  ;;  %v616_v20 = vmul.f32 %v6479_v55, %v563_v63  ;;  %v620_v1 = vmul.f32 %v6480_v46, %v562_v35  ;;  %v621_v54 = vmul.f32 %v6480_v46, %v563_v63 }
 0x174   :  { %v4880_v14 = vadd.f32 %v605_v57, %v587_v49  ;;  %v4882_v28 = vadd.f32 %v606_v19, %v588_v41  ;;  %v4884_v10 = vadd.f32 %v610_v59, %v592_v34  ;;  %v4886_v27 = vadd.f32 %v611_v16, %v593_v0  ;;  %v6482_v49 = vld [vmem:[#allocation172_spill] sm:$0xff] }
 0x175   :  { %v4888_v47 = vadd.f32 %v615_v32, %v597_v21  ;;  %v4890_v48 = vadd.f32 %v616_v20, %v598_v38  ;;  %v4892_v22 = vadd.f32 %v620_v1, %v602_v52  ;;  %v4894_v39 = vadd.f32 %v621_v54, %v603_v7  ;;  %v4918_v38 = vpop.permute.xlu0 %1925 }
 0x176   :  { %v1749_v35 = vsel %vm224_vm4, %v4636_v23, %v6481_v25  ;;  %v1752_v63 = vsel %vm224_vm4, %v6481_v25, %v4636_v23  ;;  %v1757_v41 = vsel %vm233_vm5, %v4638_v53, %v6482_v49  ;;  %v1761_v34 = vsel %vm233_vm5, %v6482_v49, %v4638_v53  ;;  %v6483_v25 = vld [vmem:[#allocation72_spill] sm:$0xff]  ;;  %v6485_v49 = vld [vmem:[#allocation73_spill] sm:$0xff] }
 0x177   :  { %v1762_v0 = vsel %vm3835_vm6, %v1757_v41, %v1752_v63  ;;  %v1763_v51 = vsel %vm3841_vm7, %v1761_v34, %v1749_v35  ;;  %v1764_v21 = vsel %vm3877_vm8, %v1752_v63, %v1757_v41  ;;  %v1765_v23 = vsel %vm3895_vm9, %v1749_v35, %v1761_v34  ;;  %v6484_v63 = vld [vmem:[#allocation65_spill] sm:$0xff]  ;;  %v6486_v41 = vld [vmem:[#allocation66_spill] sm:$0xff] }
 0x178   :  { %v1766_v13 = vmul.f32 %v1762_v0, %v6465_v42  ;;  %v1767_v53 = vmul.f32 %v1763_v51, %v6465_v42  ;;  %v1770_v52 = vmul.f32 %v1762_v0, %v6466_v44  ;;  %v1771_v4 = vmul.f32 %v1763_v51, %v6466_v44  ;;  %v6487_v34 = vld [vmem:[#allocation74_spill] sm:$0xff] }
 0x179   :  { %v1774_v7 = vmul.f32 %v1762_v0, %v6467_v40  ;;  %v1775_v57 = vmul.f32 %v1763_v51, %v6467_v40  ;;  %v1778_v19 = vmul.f32 %v1762_v0, %v6468_v33  ;;  %v1779_v59 = vmul.f32 %v1763_v51, %v6468_v33  ;;  %v6488_v0 = vld [vmem:[#allocation67_spill] sm:$0xff] }
 0x17a   :  { %v1768_v16 = vadd.f32 %v1766_v13, %v4804_v43  ;;  %v1769_v32 = vadd.f32 %v1767_v53, %v4806_v2  ;;  %v1772_v20 = vadd.f32 %v1770_v52, %v4808_v26  ;;  %v1773_v42 = vadd.f32 %v1771_v4, %v4810_v30  ;;  %v6489_v51 = vld [vmem:[#allocation75_spill] sm:$0xff]  ;;  %v6490_v13 = vld [vmem:[#allocation69_spill] sm:$0xff]  ;;  %v4944_v53 = vpop.permute.xlu1 %1937 }
 0x17b   :  { %v1776_v1 = vadd.f32 %v1774_v7, %v4812_v31  ;;  %v1777_v44 = vadd.f32 %v1775_v57, %v4814_v15  ;;  %v1780_v54 = vadd.f32 %v1778_v19, %v4816_v29  ;;  %v1781_v40 = vadd.f32 %v1779_v59, %v4818_v11  ;;  %v4946_v29 = vpop.permute.xlu0 %1935 }
 0x17c   :  { %v1784_v35 = vadd.f32 %v6483_v25, %v1768_v16  ;;  %v1785_v33 = vadd.f32 %v6484_v63, %v1769_v32  ;;  %v1788_v43 = vadd.f32 %v6485_v49, %v1772_v20  ;;  %v1789_v2 = vadd.f32 %v6486_v41, %v1773_v42 }
 0x17d   :  { %v1792_v26 = vadd.f32 %v6487_v34, %v1776_v1  ;;  %v1793_v30 = vadd.f32 %v6488_v0, %v1777_v44  ;;  %v1796_v31 = vadd.f32 %v6489_v51, %v1780_v54  ;;  %v1797_v15 = vadd.f32 %v6490_v13, %v1781_v40  ;;  %v6494_v0 = vld [vmem:[#allocation165_spill] sm:$0xff] }
 0x17e   :  { %v1798_v11 = vmul.f32 %v1764_v21, %v6477_v37  ;;  %v1799_v52 = vmul.f32 %v1765_v23, %v6477_v37  ;;  %v1802_v4 = vmul.f32 %v1764_v21, %v6478_v6  ;;  %v1803_v7 = vmul.f32 %v1765_v23, %v6478_v6 }
 0x17f   :  { %v1806_v57 = vmul.f32 %v1764_v21, %v6479_v55  ;;  %v1807_v19 = vmul.f32 %v1765_v23, %v6479_v55  ;;  %v1810_v59 = vmul.f32 %v1764_v21, %v6480_v46  ;;  %v1811_v16 = vmul.f32 %v1765_v23, %v6480_v46  ;;  %v4994_v63 = vpop.permute.xlu0 %862 }
 0x180   :  { %v4956_v32 = vadd.f32 %v1798_v11, %v1784_v35  ;;  %v4958_v20 = vadd.f32 %v1799_v52, %v1785_v33  ;;  %v4960_v42 = vadd.f32 %v1802_v4, %v1788_v43  ;;  %v4962_v1 = vadd.f32 %v1803_v7, %v1789_v2  ;;  %v6491_v33 = vld [vmem:[#allocation155_spill] sm:$0xff]  ;;  %v6493_v2 = vld [vmem:[#allocation164_spill] sm:$0xff] }
 0x181   :  { %v4964_v37 = vadd.f32 %v1806_v57, %v1792_v26  ;;  %v4966_v44 = vadd.f32 %v1807_v19, %v1793_v30  ;;  %v4968_v6 = vadd.f32 %v1810_v59, %v1796_v31  ;;  %v4970_v54 = vadd.f32 %v1811_v16, %v1797_v15  ;;  %v6495_v19 = vld [vmem:[#allocation154_spill] sm:$0xff] }
 0x182   :  { %v629_v55 = vsel %vm224_vm4, %v4668_v58, %v4670_v3  ;;  %v632_v46 = vsel %vm224_vm4, %v4670_v3, %v4668_v58  ;;  %v637_v21 = vsel %vm233_vm5, %v4710_v61, %v4708_v5  ;;  %v641_v23 = vsel %vm233_vm5, %v4708_v5, %v4710_v61  ;;  %v4992_v3 = vpop.permute.xlu1 %866  ;;  %v6492_v61 = vld [vmem:[#allocation156_spill] sm:$0xff] }
 0x183   :  { %v642_v40 = vsel %vm3835_vm6, %v637_v21, %v632_v46  ;;  %v643_v25 = vsel %vm3841_vm7, %v641_v23, %v629_v55  ;;  %v644_v35 = vsel %vm3877_vm8, %v632_v46, %v637_v21  ;;  %v645_v58 = vsel %vm3895_vm9, %v629_v55, %v641_v23  ;;  %v6499_v46 = vld [vmem:[#allocation157_spill] sm:$0xff]  ;;  %v6502_v21 = vld [vmem:[#allocation158_spill] sm:$0xff] }
 0x184   :  { %v647_v49 = vmul.f32 %v6491_v33, %v642_v40  ;;  %v648_v5 = vmul.f32 %v6491_v33, %v643_v25  ;;  %v652_v43 = vmul.f32 %v6492_v61, %v642_v40  ;;  %v653_v41 = vmul.f32 %v6492_v61, %v643_v25 }
 0x185   :  { %v657_v34 = vmul.f32 %v6493_v2, %v642_v40  ;;  %v658_v26 = vmul.f32 %v6493_v2, %v643_v25  ;;  %v662_v30 = vmul.f32 %v6494_v0, %v642_v40  ;;  %v663_v51 = vmul.f32 %v6494_v0, %v643_v25  ;;  %v6505_v25 = vld [vmem:[#allocation159_spill] sm:$0xff] }
 0x186   :  { %v649_v31 = vadd.f32 %v647_v49, %v4880_v14  ;;  %v650_v13 = vadd.f32 %v648_v5, %v4882_v28  ;;  %v654_v15 = vadd.f32 %v652_v43, %v4884_v10  ;;  %v655_v11 = vadd.f32 %v653_v41, %v4886_v27  ;;  %v6497_v14 = vld [vmem:[#allocation7_spill] sm:$0xff] }
 0x187   :  { %v659_v52 = vadd.f32 %v657_v34, %v4888_v47  ;;  %v660_v4 = vadd.f32 %v658_v26, %v4890_v48  ;;  %v664_v7 = vadd.f32 %v662_v30, %v4892_v22  ;;  %v665_v57 = vadd.f32 %v663_v51, %v4894_v39  ;;  %v5036_v34 = vpop.permute.xlu1 %874  ;;  %v5038_v26 = vpop.permute.xlu0 %872  ;;  %v6508_v30 = vld [vmem:[#allocation160_spill] sm:$0xff] }
 0x188   :  { %v6496_v59 = vrot.slane %v6495_v19, %v6391_v62  ;;  %v6498_v55 = vrot.slane %v6495_v19, %v6497_v14  ;;  %v6500_v10 = vrot.slane %v6499_v46, %v6391_v62  ;;  %v6501_v47 = vrot.slane %v6499_v46, %v6497_v14  ;;  %v6511_v19 = vld [vmem:[#allocation171_spill] sm:$0xff] }
 0x189   :  { %v6503_v22 = vrot.slane %v6502_v21, %v6391_v62  ;;  %v6504_v23 = vrot.slane %v6502_v21, %v6497_v14  ;;  %v6506_v49 = vrot.slane %v6505_v25, %v6391_v62  ;;  %v6507_v43 = vrot.slane %v6505_v25, %v6497_v14 }
 0x18a   :  { %v679_v16 = vadd.f32 %v6496_v59, %v649_v31  ;;  %v680_v28 = vadd.f32 %v6498_v55, %v650_v13  ;;  %v694_v27 = vadd.f32 %v6500_v10, %v654_v15  ;;  %v695_v48 = vadd.f32 %v6501_v47, %v655_v11  ;;  %v6509_v13 = vld [vmem:[#allocation161_spill] sm:$0xff] }
 0x18b   :  { %v709_v39 = vadd.f32 %v6503_v22, %v659_v52  ;;  %v710_v40 = vadd.f32 %v6504_v23, %v660_v4  ;;  %v724_v5 = vadd.f32 %v6506_v49, %v664_v7  ;;  %v725_v41 = vadd.f32 %v6507_v43, %v665_v57  ;;  %v6510_v52 = vld [vmem:[#allocation170_spill] sm:$0xff]  ;;  %v6512_v49 = vld [vmem:[#allocation29_spill] sm:$0xff]  ;;  %v5084_v43 = vpop.permute.xlu1 %2032 }
 0x18c   :  { %v727_v51 = vmul.f32 %v6508_v30, %v644_v35  ;;  %v728_v31 = vmul.f32 %v6508_v30, %v645_v58  ;;  %v732_v15 = vmul.f32 %v6509_v13, %v644_v35  ;;  %v733_v11 = vmul.f32 %v6509_v13, %v645_v58 }
 0x18d   :  { %v737_v4 = vmul.f32 %v6510_v52, %v644_v35  ;;  %v738_v7 = vmul.f32 %v6510_v52, %v645_v58  ;;  %v742_v59 = vmul.f32 %v6511_v19, %v644_v35  ;;  %v743_v57 = vmul.f32 %v6511_v19, %v645_v58  ;;  %v6513_v35 = vld [vmem:[#allocation25_spill] sm:$0xff] }
 0x18e   :  { %v5048_v55 = vadd.f32 %v727_v51, %v679_v16  ;;  %v5050_v46 = vadd.f32 %v728_v31, %v680_v28  ;;  %v5052_v10 = vadd.f32 %v732_v15, %v694_v27  ;;  %v5054_v47 = vadd.f32 %v733_v11, %v695_v48 }
 0x18f   :  { %v5056_v21 = vadd.f32 %v737_v4, %v709_v39  ;;  %v5058_v22 = vadd.f32 %v738_v7, %v710_v40  ;;  %v5060_v23 = vadd.f32 %v742_v59, %v724_v5  ;;  %v5062_v25 = vadd.f32 %v743_v57, %v725_v41  ;;  %v5086_v41 = vpop.permute.xlu0 %2028 }
 0x190   :  { %v1819_v58 = vsel %vm224_vm4, %v6513_v35, %v6512_v49  ;;  %v1822_v16 = vsel %vm224_vm4, %v6512_v49, %v6513_v35  ;;  %v1827_v28 = vsel %vm233_vm5, %v4794_v36, %v4792_v45  ;;  %v1831_v27 = vsel %vm233_vm5, %v4792_v45, %v4794_v36 }
 0x191   :  { %v1832_v48 = vsel %vm3835_vm6, %v1827_v28, %v1822_v16  ;;  %v1833_v39 = vsel %vm3841_vm7, %v1831_v27, %v1819_v58  ;;  %v1834_v40 = vsel %vm3877_vm8, %v1822_v16, %v1827_v28  ;;  %v1835_v5 = vsel %vm3895_vm9, %v1819_v58, %v1831_v27  ;;  %v6514_v16 = vld [vmem:[#allocation166_spill] sm:$0xff]  ;;  %v6517_v27 = vld [vmem:[#allocation167_spill] sm:$0xff] }
 0x192   :  { %v1836_v51 = vmul.f32 %v1832_v48, %v6491_v33  ;;  %v1837_v45 = vmul.f32 %v1833_v39, %v6491_v33  ;;  %v1840_v36 = vmul.f32 %v1832_v48, %v6492_v61  ;;  %v1841_v31 = vmul.f32 %v1833_v39, %v6492_v61 }
 0x193   :  { %v1844_v15 = vmul.f32 %v1832_v48, %v6493_v2  ;;  %v1845_v11 = vmul.f32 %v1833_v39, %v6493_v2  ;;  %v1848_v4 = vmul.f32 %v1832_v48, %v6494_v0  ;;  %v1849_v7 = vmul.f32 %v1833_v39, %v6494_v0  ;;  %v6520_v48 = vld [vmem:[#allocation168_spill] sm:$0xff] }
 0x194   :  { %v1838_v59 = vadd.f32 %v1836_v51, %v4956_v32  ;;  %v1839_v57 = vadd.f32 %v1837_v45, %v4958_v20  ;;  %v1842_v49 = vadd.f32 %v1840_v36, %v4960_v42  ;;  %v1843_v33 = vadd.f32 %v1841_v31, %v4962_v1  ;;  %v6523_v45 = vld [vmem:[#allocation169_spill] sm:$0xff] }
 0x195   :  { %v1846_v35 = vadd.f32 %v1844_v15, %v4964_v37  ;;  %v1847_v61 = vadd.f32 %v1845_v11, %v4966_v44  ;;  %v1850_v58 = vadd.f32 %v1848_v4, %v4968_v6  ;;  %v1851_v2 = vadd.f32 %v1849_v7, %v4970_v54  ;;  %v5128_v4 = vpop.permute.xlu1 %2040  ;;  %v5130_v7 = vpop.permute.xlu0 %2038 }
 0x196   :  { %v6515_v28 = vrot.slane %v6514_v16, %v6391_v62  ;;  %v6516_v32 = vrot.slane %v6514_v16, %v6497_v14  ;;  %v6518_v42 = vrot.slane %v6517_v27, %v6391_v62  ;;  %v6519_v37 = vrot.slane %v6517_v27, %v6497_v14 }
 0x197   :  { %v6521_v6 = vrot.slane %v6520_v48, %v6391_v62  ;;  %v6522_v39 = vrot.slane %v6520_v48, %v6497_v14  ;;  %v6524_v36 = vrot.slane %v6523_v45, %v6391_v62  ;;  %v6525_v15 = vrot.slane %v6523_v45, %v6497_v14  ;;  %v6526_v48 = vld [vmem:[#allocation174_spill] sm:$0xff]  ;;  %v6542_v62 = vld [vmem:[#allocation183_spill] sm:$0xff] }
 0x198   :  { %v1864_v0 = vadd.f32 %v6515_v28, %v1838_v59  ;;  %v1865_v20 = vadd.f32 %v6516_v32, %v1839_v57  ;;  %v1878_v1 = vadd.f32 %v6518_v42, %v1842_v49  ;;  %v1879_v44 = vadd.f32 %v6519_v37, %v1843_v33 }
 0x199   :  { %v1892_v54 = vadd.f32 %v6521_v6, %v1846_v35  ;;  %v1893_v51 = vadd.f32 %v6522_v39, %v1847_v61  ;;  %v1906_v31 = vadd.f32 %v6524_v36, %v1850_v58  ;;  %v1907_v11 = vadd.f32 %v6525_v15, %v1851_v2 }
 0x19a   :  { %v1908_v59 = vmul.f32 %v1834_v40, %v6508_v30  ;;  %v1909_v57 = vmul.f32 %v1835_v5, %v6508_v30  ;;  %v1912_v49 = vmul.f32 %v1834_v40, %v6509_v13  ;;  %v1913_v33 = vmul.f32 %v1835_v5, %v6509_v13 }
 0x19b   :  { %v1916_v35 = vmul.f32 %v1834_v40, %v6510_v52  ;;  %v1917_v61 = vmul.f32 %v1835_v5, %v6510_v52  ;;  %v1920_v58 = vmul.f32 %v1834_v40, %v6511_v19  ;;  %v1921_v2 = vmul.f32 %v1835_v5, %v6511_v19 }
 0x19c   :  { %v5140_v16 = vadd.f32 %v1908_v59, %v1864_v0  ;;  %v5142_v28 = vadd.f32 %v1909_v57, %v1865_v20  ;;  %v5144_v32 = vadd.f32 %v1912_v49, %v1878_v1  ;;  %v5146_v27 = vadd.f32 %v1913_v33, %v1879_v44  ;;  %v5178_v44 = vpop.permute.xlu0 %915 }
 0x19d   :  { %v5148_v30 = vadd.f32 %v1916_v35, %v1892_v54  ;;  %v5150_v42 = vadd.f32 %v1917_v61, %v1893_v51  ;;  %v5152_v13 = vadd.f32 %v1920_v58, %v1906_v31  ;;  %v5154_v37 = vadd.f32 %v1921_v2, %v1907_v11  ;;  %v6528_v51 = vld [vmem:[#allocation177_spill] sm:$0xff]  ;;  %v6529_v31 = vld [vmem:[#allocation178_spill] sm:$0xff] }
 0x19e   :  { %v753_v52 = vsel %vm224_vm4, %v4840_v24, %v4842_v8  ;;  %v756_v19 = vsel %vm224_vm4, %v4842_v8, %v4840_v24  ;;  %v761_v40 = vsel %vm233_vm5, %v4870_v60, %v4868_v50  ;;  %v765_v5 = vsel %vm233_vm5, %v4868_v50, %v4870_v60  ;;  %v5176_v8 = vpop.permute.xlu1 %918  ;;  %v6527_v60 = vld [vmem:[#allocation175_spill] sm:$0xff] }
 0x19f   :  { %v766_v0 = vsel %vm3835_vm6, %v761_v40, %v756_v19  ;;  %v767_v20 = vsel %vm3841_vm7, %v765_v5, %v753_v52  ;;  %v768_v1 = vsel %vm3877_vm8, %v756_v19, %v761_v40  ;;  %v769_v24 = vsel %vm3895_vm9, %v753_v52, %v765_v5  ;;  %v6530_v52 = vld [vmem:[#allocation179_spill] sm:$0xff]  ;;  %v6531_v19 = vld [vmem:[#allocation180_spill] sm:$0xff] }
 0x1a0   :  { %v771_v6 = vmul.f32 %v6526_v48, %v766_v0  ;;  %v772_v50 = vmul.f32 %v6526_v48, %v767_v20  ;;  %v776_v54 = vmul.f32 %v6527_v60, %v766_v0  ;;  %v777_v39 = vmul.f32 %v6527_v60, %v767_v20  ;;  %v6532_v40 = vld [vmem:[#allocation56_spill] sm:$0xff] }
 0x1a1   :  { %v781_v45 = vmul.f32 %v6528_v51, %v766_v0  ;;  %v782_v36 = vmul.f32 %v6528_v51, %v767_v20  ;;  %v786_v15 = vmul.f32 %v6529_v31, %v766_v0  ;;  %v787_v11 = vmul.f32 %v6529_v31, %v767_v20  ;;  %v6533_v5 = vld [vmem:[#allocation60_spill] sm:$0xff]  ;;  %v6534_v0 = vld [vmem:[#allocation61_spill] sm:$0xff]  ;;  %v6535_v20 = vld [vmem:[#allocation62_spill] sm:$0xff] }
 0x1a2   :  { %v5189_v59 = vadd.f32 %v771_v6, %v5048_v55  ;;  %v5192_v57 = vadd.f32 %v772_v50, %v5050_v46  ;;  %v5195_v49 = vadd.f32 %v776_v54, %v5052_v10  ;;  %v5198_v33 = vadd.f32 %v777_v39, %v5054_v47  ;;  %v5220_v6 = vpop.permute.xlu1 %926  ;;  %v5222_v50 = vpop.permute.xlu0 %924  ;;  %v6537_v54 = vld [vmem:[#allocation181_spill] sm:$0xff] }
 0x1a3   :  { %v783_v35 = vadd.f32 %v781_v45, %v5056_v21  ;;  %v784_v61 = vadd.f32 %v782_v36, %v5058_v22  ;;  %v788_v58 = vadd.f32 %v786_v15, %v5060_v23  ;;  %v789_v2 = vadd.f32 %v787_v11, %v5062_v25  ;;  %6536 = vst [vmem:[#allocation26_spill] sm:$0xff] %v5222_v50  ;;  %v6538_v36 = vld [vmem:[#allocation182_spill] sm:$0xff] }
 0x1a4   :  { %v5205_v55 = vmul.f32 %v6530_v52, %v768_v1  ;;  %v5208_v46 = vmul.f32 %v6530_v52, %v769_v24  ;;  %v5211_v10 = vmul.f32 %v6531_v19, %v768_v1  ;;  %v5214_v47 = vmul.f32 %v6531_v19, %v769_v24 }
 0x1a5   :  { %v803_v21 = vadd.f32 %v6532_v40, %v783_v35  ;;  %v804_v22 = vadd.f32 %v6533_v5, %v784_v61  ;;  %v808_v23 = vadd.f32 %v6534_v0, %v788_v58  ;;  %v809_v25 = vadd.f32 %v6535_v20, %v789_v2 }
 0x1a6   :  { %v821_v39 = vmul.f32 %v6537_v54, %v768_v1  ;;  %v822_v45 = vmul.f32 %v6537_v54, %v769_v24  ;;  %v826_v15 = vmul.f32 %v6538_v36, %v768_v1  ;;  %v827_v11 = vmul.f32 %v6538_v36, %v769_v24 }
 0x1a7   :  { %v6539_v14 = vlaneseq  ;;  %v1931_v61 = vsel %vm224_vm4, %v4916_v56, %v4918_v38  ;;  %v1934_v58 = vsel %vm224_vm4, %v4918_v38, %v4916_v56  ;;  %v1939_v2 = vsel %vm233_vm5, %v4946_v29, %v4944_v53 }
 0x1a8   :  { %v1943_v1 = vsel %vm233_vm5, %v4944_v53, %v4946_v29  ;;  %v824_v24 = vadd.f32 %v822_v45, %v804_v22  ;;  %v828_v40 = vadd.f32 %v826_v15, %v808_v23  ;;  %v829_v5 = vadd.f32 %v827_v11, %v809_v25  ;;  %v6543_v29 = vld [vmem:[#allocation184_spill] sm:$0xff]  ;;  %v5261_v15 = vpop.permute.xlu1 %2078  ;;  %v5263_v11 = vpop.permute.xlu0 %2075 }
 0x1a9   :  { %vm5229_vm10 = vcmp.lt.s32.totalorder %v6539_v14, 256  ;;  %v823_v14 = vadd.f32 %v821_v39, %v803_v21  ;;  %v1944_v0 = vsel %vm3835_vm6, %v1939_v2, %v1934_v58  ;;  %v1945_v20 = vsel %vm3841_vm7, %v1943_v1, %v1931_v61 }
 0x1aa   :  { %v1946_v56 = vsel %vm3877_vm8, %v1934_v58, %v1939_v2  ;;  %v1947_v38 = vsel %vm3895_vm9, %v1931_v61, %v1943_v1  ;;  %v1332_v53 = vadd.f32 %v6542_v62, %v824_v24  ;;  %v1353_v21 = vadd.f32 %v6543_v29, %v828_v40 }
 0x1ab   :  { %v1331_v50 = vadd.f32 %v6542_v62, %v823_v14  ;;  %v1354_v22 = vadd.f32 %v6543_v29, %v829_v5  ;;  %v1948_v23 = vmul.f32 %v1944_v0, %v6526_v48  ;;  %v1949_v25 = vmul.f32 %v1945_v20, %v6526_v48 }
 0x1ac   :  { %v1952_v39 = vmul.f32 %v1944_v0, %v6527_v60  ;;  %v1953_v45 = vmul.f32 %v1945_v20, %v6527_v60  ;;  %v1956_v2 = vmul.f32 %v1944_v0, %v6528_v51  ;;  %v1957_v1 = vmul.f32 %v1945_v20, %v6528_v51 }
 0x1ad   :  { %v1335_v61 = vcombine.low %v1331_v50, %v1332_v53  ;;  %v1357_v58 = vcombine.low %v1353_v21, %v1354_v22  ;;  %v5268_v14 = vadd.f32 %v1948_v23, %v5140_v16  ;;  %v5271_v24 = vadd.f32 %v1949_v25, %v5142_v28  ;;  %v6544_v50 = vld [vmem:[#allocation176_spill] sm:$0xff]  ;;  %v6545_v22 = vld [vmem:[#allocation70_spill] sm:$0xff] }
 0x1ae   :  { %v5274_v48 = vadd.f32 %v1952_v39, %v5144_v32  ;;  %v5277_v60 = vadd.f32 %v1953_v45, %v5146_v27  ;;  %v1958_v16 = vadd.f32 %v1956_v2, %v5148_v30  ;;  %v1959_v5 = vadd.f32 %v1957_v1, %v5150_v42  ;;  %v6546_v23 = vld [vmem:[#allocation76_spill] sm:$0xff]  ;;  %v5311_v39 = vpop.permute.xlu1 %2086  ;;  %v5313_v45 = vpop.permute.xlu0 %2084  ;;  %v6549_v1 = vld [vmem:[#allocation78_spill] sm:$0xff] }
 0x1af   :  { %v1342_v40 = vrot.slane %v1335_v61, %v6544_v50  ;;  %v1364_v51 = vrot.slane %v1357_v58, %v6544_v50  ;;  %v1960_v28 = vmul.f32 %v1944_v0, %v6529_v31  ;;  %v1961_v32 = vmul.f32 %v1945_v20, %v6529_v31  ;;  %v6548_v58 = vld [vmem:[#allocation77_spill] sm:$0xff] }
 0x1b0   :  { %v5290_v53 = vmul.f32 %v1946_v56, %v6530_v52  ;;  %v5293_v27 = vmul.f32 %v1947_v38, %v6530_v52  ;;  %v1974_v42 = vadd.f32 %v6545_v22, %v1958_v16  ;;  %v1975_v0 = vadd.f32 %v6546_v23, %v1959_v5 }
 0x1b1   :  { %v1349_v21 = vrot.slane %v1342_v40, %v6544_v50  ;;  %v1371_v30 = vrot.slane %v1364_v51, %v6544_v50  ;;  %v1962_v31 = vadd.f32 %v1960_v28, %v5152_v13  ;;  %v1963_v20 = vadd.f32 %v1961_v32, %v5154_v37 }
 0x1b2   :  { %v5306_v25 = vmul.f32 %v1946_v56, %v6531_v19  ;;  %v5309_v52 = vmul.f32 %v1947_v38, %v6531_v19  ;;  %v1988_v13 = vmul.f32 %v1946_v56, %v6537_v54  ;;  %v1989_v37 = vmul.f32 %v1947_v38, %v6537_v54 }
 0x1b3   :  { %1351 = vst.msk [vmem:[%s6547_s11] ss:$4 sm:$0x3] %vm5229_vm10, %v1349_v21  ;;  %2778 = vst.msk [vmem:[%s6547_s11 + $0x2] ss:$4 sm:$0x3] %vm5229_vm10, %v1371_v30  ;;  %v1992_v19 = vmul.f32 %v1946_v56, %v6538_v36  ;;  %v1993_v61 = vmul.f32 %v1947_v38, %v6538_v36  ;;  %v1978_v2 = vadd.f32 %v6548_v58, %v1962_v31  ;;  %v5342_v30 = vstv %s5279_s3 }
 0x1b4   :  { %v1979_v40 = vadd.f32 %v6549_v1, %v1963_v20  ;;  %v868_v51 = vsel %vm224_vm4, %v4992_v3, %v4994_v63  ;;  %v871_v16 = vsel %vm224_vm4, %v4994_v63, %v4992_v3  ;;  %v1990_v5 = vadd.f32 %v1988_v13, %v1974_v42  ;;  %v6550_v56 = vld [vmem:[#allocation63_spill] sm:$0xff]  ;;  %v6551_v36 = vld [vmem:[#allocation68_spill] sm:$0xff]  ;;  %v5359_v20 = vpop.permute.xlu1 %992  ;;  %v5361_v13 = vpop.permute.xlu0 %988  ;;  %s5653_s3 = sld [smem:[#allocation2 + $0x17]] }
 0x1b5   :  { %v1991_v54 = vadd.f32 %v1989_v37, %v1975_v0  ;;  %v793_v28 = vadd.f32 %v6550_v56, %v5189_v59  ;;  %v798_v38 = vadd.f32 %v6551_v36, %v5195_v49  ;;  %v1994_v32 = vadd.f32 %v1992_v19, %v1978_v2  ;;  %v6552_v19 = vld [vmem:[#allocation64_spill] sm:$0xff] }
 0x1b6   :  { %v1995_v21 = vadd.f32 %v1993_v61, %v1979_v40  ;;  %v5345_v22 = vstv %s5281_s13  ;;  %v2454_v23 = vadd.f32 %v1990_v5, %v6542_v62  ;;  %v5354_v0 = vstv %s5295_s10  ;;  %s5711_s13 = sld [smem:[#allocation2 + $0x1e]]  ;;  %s5713_s10 = sld [smem:[#allocation2 + $0x1f]] }
 0x1b7   :  { %v2455_v31 = vadd.f32 %v1991_v54, %v6542_v62  ;;  %v813_v3 = vadd.f32 %v5205_v55, %v793_v28  ;;  %v818_v63 = vadd.f32 %v5211_v10, %v798_v38  ;;  %v2476_v42 = vadd.f32 %v1994_v32, %v6543_v29  ;;  %v6553_v55 = vld [vmem:[#allocation71_spill] sm:$0xff] }
 0x1b8   :  { %v2477_v59 = vadd.f32 %v1995_v21, %v6543_v29  ;;  %v5357_v49 = vstv %s5297_s14  ;;  %v794_v62 = vadd.f32 %v6552_v19, %v5192_v57  ;;  %v799_v61 = vadd.f32 %v6553_v55, %v5198_v33  ;;  %s5715_s14 = sld [smem:[#allocation2 + $0x26]] }
 0x1b9   :  { %v2458_v37 = vcombine.low %v2454_v23, %v2455_v31  ;;  %v876_v10 = vsel %vm233_vm5, %v5038_v26, %v5036_v34  ;;  %v880_v58 = vsel %vm233_vm5, %v5036_v34, %v5038_v26  ;;  %v5393_v23 = vpop.permute.xlu1 %1000 }
 0x1ba   :  { %v2480_v29 = vcombine.low %v2476_v42, %v2477_v59  ;;  %v881_v2 = vsel %vm3835_vm6, %v876_v10, %v871_v16  ;;  %v883_v1 = vsel %vm3877_vm8, %v871_v16, %v876_v10  ;;  %v814_v40 = vadd.f32 %v5208_v46, %v794_v62  ;;  %v6555_v62 = vld [vmem:[#allocation82_spill] sm:$0xff] }
 0x1bb   :  { %v2465_v57 = vrot.slane %v2458_v37, %v6544_v50  ;;  %v819_v33 = vadd.f32 %v5214_v47, %v799_v61  ;;  %v882_v5 = vsel %vm3841_vm7, %v880_v58, %v868_v51  ;;  %v884_v34 = vsel %vm3895_vm9, %v868_v51, %v880_v58  ;;  %v5395_v51 = vpop.permute.xlu0 %998  ;;  %v6556_v10 = vld [vmem:[#allocation90_spill] sm:$0xff]  ;;  %v6557_v58 = vld [vmem:[#allocation83_spill] sm:$0xff] }
 0x1bc   :  { %v2487_v54 = vrot.slane %v2480_v29, %v6544_v50  ;;  %v886_v26 = vmul.f32 %v5342_v30, %v881_v2  ;;  %v887_v56 = vmul.f32 %v5342_v30, %v882_v5  ;;  %v891_v28 = vmul.f32 %v5345_v22, %v881_v2 }
 0x1bd   :  { %v2472_v16 = vrot.slane %v2465_v57, %v6544_v50  ;;  %v892_v46 = vmul.f32 %v5345_v22, %v882_v5  ;;  %v906_v47 = vmul.f32 %v5354_v0, %v883_v1  ;;  %v907_v21 = vmul.f32 %v5354_v0, %v884_v34 }
 0x1be   :  { %v2494_v36 = vrot.slane %v2487_v54, %v6544_v50  ;;  %v888_v38 = vadd.f32 %v886_v26, %v813_v3  ;;  %v889_v32 = vadd.f32 %v887_v56, %v814_v40  ;;  %v893_v31 = vadd.f32 %v891_v28, %v818_v63  ;;  %v6554_v3 = vld [vmem:[#allocation89_spill] sm:$0xff]  ;;  %v6559_v40 = vld [vmem:[#allocation84_spill] sm:$0xff] }
 0x1bf   :  { %2785 = vst.msk [vmem:[%s6547_s11 + $0x1] ss:$4 sm:$0x3] %vm5229_vm10, %v2472_v16  ;;  %v894_v42 = vadd.f32 %v892_v46, %v819_v33  ;;  %v911_v59 = vmul.f32 %v5357_v49, %v883_v1  ;;  %v912_v37 = vmul.f32 %v5357_v49, %v884_v34  ;;  %v2034_v61 = vsel %vm224_vm4, %v5084_v43, %v5086_v41  ;;  %v6558_v1 = vld [vmem:[#allocation80_spill] sm:$0xff] }
 0x1c0   :  { %2786 = vst.msk [vmem:[%s6547_s11 + $0x3] ss:$4 sm:$0x3] %vm5229_vm10, %v2494_v36  ;;  %v898_v19 = vadd.f32 %v6554_v3, %v888_v38  ;;  %v899_v55 = vadd.f32 %v6555_v62, %v889_v32  ;;  %v2037_v63 = vsel %vm224_vm4, %v5086_v41, %v5084_v43  ;;  %v903_v29 = vadd.f32 %v6556_v10, %v893_v31  ;;  %v6560_v43 = vld [vmem:[#allocation81_spill] sm:$0xff]  ;;  %v6561_v34 = vld [vmem:[#allocation88_spill] sm:$0xff]  ;;  %s5733_s11 = sld [smem:[#allocation2 + $0x2f]] }
 0x1c1   :  { %v904_v2 = vadd.f32 %v6557_v58, %v894_v42  ;;  %v1966_v57 = vadd.f32 %v6558_v1, %v5268_v14  ;;  %v1970_v33 = vadd.f32 %v6559_v40, %v5274_v48  ;;  %v1967_v41 = vadd.f32 %v6560_v43, %v5271_v24 }
 0x1c2   :  { %v5427_v5 = vadd.f32 %v906_v47, %v898_v19  ;;  %v5429_v54 = vadd.f32 %v907_v21, %v899_v55  ;;  %v1971_v26 = vadd.f32 %v6561_v34, %v5277_v60  ;;  %v5439_v14 = vadd.f32 %v911_v59, %v903_v29  ;;  %v5457_v47 = vpop.permute.xlu1 %2146  ;;  %v6564_v29 = vld [vmem:[#allocation104_spill] sm:$0xff] }
 0x1c3   :  { %v5441_v48 = vadd.f32 %v912_v37, %v904_v2  ;;  %v1982_v56 = vadd.f32 %v5290_v53, %v1966_v57  ;;  %v1986_v16 = vadd.f32 %v5306_v25, %v1970_v33  ;;  %v1983_v24 = vadd.f32 %v5293_v27, %v1967_v41  ;;  %v5459_v53 = vpop.permute.xlu0 %2142  ;;  %v6565_v2 = vld [vmem:[#allocation96_spill] sm:$0xff] }
 0x1c4   :  { %v1987_v60 = vadd.f32 %v5309_v52, %v1971_v26  ;;  %v2042_v28 = vsel %vm233_vm5, %v5130_v7, %v5128_v4  ;;  %v2046_v46 = vsel %vm233_vm5, %v5128_v4, %v5130_v7  ;;  %v5484_v62 = vstv %s5423_s19  ;;  %s5817_s19 = sld [smem:[#allocation2 + $0x46]] }
 0x1c5   :  { %v2047_v25 = vsel %vm3835_vm6, %v2042_v28, %v2037_v63  ;;  %v2048_v27 = vsel %vm3841_vm7, %v2046_v46, %v2034_v61  ;;  %v2049_v52 = vsel %vm3877_vm8, %v2037_v63, %v2042_v28  ;;  %v2050_v36 = vsel %vm3895_vm9, %v2034_v61, %v2046_v46  ;;  %v6563_v63 = vld [vmem:[#allocation95_spill] sm:$0xff]  ;;  %v6566_v28 = vld [vmem:[#allocation26_spill] sm:$0xff] }
 0x1c6   :  { %v2051_v4 = vmul.f32 %v2047_v25, %v5342_v30  ;;  %v2052_v7 = vmul.f32 %v2048_v27, %v5342_v30  ;;  %v2055_v38 = vmul.f32 %v2047_v25, %v5345_v22  ;;  %v2056_v32 = vmul.f32 %v2048_v27, %v5345_v22  ;;  %v5493_v57 = vpop.permute.xlu1 %2154 }
 0x1c7   :  { %v2067_v21 = vmul.f32 %v2049_v52, %v5354_v0  ;;  %v2068_v31 = vmul.f32 %v2050_v36, %v5354_v0  ;;  %v2071_v42 = vmul.f32 %v2049_v52, %v5357_v49  ;;  %v2072_v59 = vmul.f32 %v2050_v36, %v5357_v49  ;;  %v6562_v49 = vld [vmem:[#allocation103_spill] sm:$0xff]  ;;  %v5495_v40 = vpop.permute.xlu0 %2152 }
 0x1c8   :  { %v2053_v37 = vadd.f32 %v2051_v4, %v1982_v56  ;;  %v2054_v3 = vadd.f32 %v2052_v7, %v1983_v24  ;;  %v2057_v19 = vadd.f32 %v2055_v38, %v1986_v16  ;;  %v2058_v30 = vadd.f32 %v2056_v32, %v1987_v60  ;;  %v5516_v16 = vld [vmem:[%s6336_s25 + $0x2] ss:$8 sm:$0x3]  ;;  %v6568_v32 = vld [vmem:[#allocation7_spill] sm:$0xff] }
 0x1c9   :  { %v920_v22 = vsel %vm224_vm4, %v5176_v8, %v5178_v44  ;;  %v923_v0 = vsel %vm224_vm4, %v5178_v44, %v5176_v8  ;;  %v5487_v55 = vstv %s5425_s20  ;;  %v947_v33 = vstv %s5435_s21  ;;  %v6567_v7 = vld [vmem:[#allocation6_spill] sm:$0xff]  ;;  %s5825_s20 = sld [smem:[#allocation2 + $0x48]]  ;;  %s5827_s21 = sld [smem:[#allocation2 + $0x49]] }
 0x1ca   :  { %v2061_v61 = vadd.f32 %v6562_v49, %v2053_v37  ;;  %v2062_v10 = vadd.f32 %v6563_v63, %v2054_v3  ;;  %v2065_v58 = vadd.f32 %v6564_v29, %v2057_v19  ;;  %v2066_v1 = vadd.f32 %v6565_v2, %v2058_v30  ;;  %v5542_v19 = vpop.permute.xlu1 %1077 }
 0x1cb   :  { %v962_v43 = vstv %s5437_s1  ;;  %v5500_v41 = vstv %s5445_s22  ;;  %v5503_v8 = vstv %s5447_s23  ;;  %v948_v24 = vmul.f32 %v5516_v16, %v947_v33  ;;  %v5544_v30 = vpop.permute.xlu0 %1073  ;;  %s5853_s1 = sld [smem:[#allocation2 + $0x70]] }
 0x1cc   :  { %v5505_v44 = vadd.f32 %v2067_v21, %v2061_v61  ;;  %v5507_v34 = vadd.f32 %v2068_v31, %v2062_v10  ;;  %v5509_v26 = vadd.f32 %v2071_v42, %v2065_v58  ;;  %v5511_v56 = vadd.f32 %v2072_v59, %v2066_v1 }
 0x1cd   :  { %v963_v60 = vmul.f32 %v5516_v16, %v962_v43  ;;  %v928_v46 = vsel %vm233_vm5, %v6566_v28, %v5220_v6  ;;  %v932_v25 = vsel %vm233_vm5, %v5220_v6, %v6566_v28  ;;  %v953_v38 = vrot.slane %v948_v24, %v6567_v7 }
 0x1ce   :  { %v933_v27 = vsel %vm3835_vm6, %v928_v46, %v923_v0  ;;  %v934_v52 = vsel %vm3841_vm7, %v932_v25, %v920_v22  ;;  %v935_v36 = vsel %vm3877_vm8, %v923_v0, %v928_v46  ;;  %v936_v4 = vsel %vm3895_vm9, %v920_v22, %v932_v25 }
 0x1cf   :  { %v957_v21 = vrot.slane %v948_v24, %v6568_v32  ;;  %v968_v31 = vrot.slane %v963_v60, %v6567_v7  ;;  %v972_v6 = vrot.slane %v963_v60, %v6568_v32  ;;  %v938_v42 = vmul.f32 %v5484_v62, %v933_v27  ;;  %v5563_v24 = vld [vmem:[%s6336_s25 + $0x6] ss:$8 sm:$0x3] }
 0x1d0   :  { %v939_v59 = vmul.f32 %v5484_v62, %v934_v52  ;;  %v943_v37 = vmul.f32 %v5487_v55, %v933_v27  ;;  %v944_v3 = vmul.f32 %v5487_v55, %v934_v52  ;;  %v978_v22 = vmul.f32 %v5500_v41, %v935_v36 }
 0x1d1   :  { %v979_v0 = vmul.f32 %v5500_v41, %v936_v4  ;;  %v983_v49 = vmul.f32 %v5503_v8, %v935_v36  ;;  %v984_v61 = vmul.f32 %v5503_v8, %v936_v4  ;;  %v940_v63 = vadd.f32 %v938_v42, %v5427_v5  ;;  %v5579_v36 = vpop.permute.xlu1 %1085  ;;  %v5581_v4 = vpop.permute.xlu0 %1083 }
 0x1d2   :  { %v941_v10 = vadd.f32 %v939_v59, %v5429_v54  ;;  %v945_v29 = vadd.f32 %v943_v37, %v5439_v14  ;;  %v946_v58 = vadd.f32 %v944_v3, %v5441_v48  ;;  %v2080_v2 = vsel %vm224_vm4, %v5261_v15, %v5263_v11 }
 0x1d3   :  { %v2083_v1 = vsel %vm224_vm4, %v5263_v11, %v5261_v15  ;;  %v2105_v5 = vmul.f32 %v5563_v24, %v947_v33  ;;  %v2119_v54 = vmul.f32 %v5563_v24, %v962_v43  ;;  %v960_v14 = vadd.f32 %v953_v38, %v940_v63 }
 0x1d4   :  { %v961_v48 = vadd.f32 %v957_v21, %v941_v10  ;;  %v975_v60 = vadd.f32 %v968_v31, %v945_v29  ;;  %v976_v28 = vadd.f32 %v972_v6, %v946_v58  ;;  %v2088_v38 = vsel %vm233_vm5, %v5313_v45, %v5311_v39 }
 0x1d5   :  { %v2110_v15 = vrot.slane %v2105_v5, %v6567_v7  ;;  %v2114_v11 = vrot.slane %v2105_v5, %v6568_v32  ;;  %v2124_v33 = vrot.slane %v2119_v54, %v6567_v7  ;;  %v2128_v43 = vrot.slane %v2119_v54, %v6568_v32  ;;  %v5619_v5 = vpop.permute.xlu1 %2225  ;;  %v5621_v54 = vpop.permute.xlu0 %2221 }
 0x1d6   :  { %v980_v46 = vadd.f32 %v978_v22, %v960_v14  ;;  %v981_v25 = vadd.f32 %v979_v0, %v961_v48  ;;  %v985_v27 = vadd.f32 %v983_v49, %v975_v60  ;;  %v986_v52 = vadd.f32 %v984_v61, %v976_v28 }
 0x1d7   :  { %v2092_v21 = vsel %vm233_vm5, %v5311_v39, %v5313_v45  ;;  %v994_v31 = vsel %vm224_vm4, %v5359_v20, %v5361_v13  ;;  %v997_v6 = vsel %vm224_vm4, %v5361_v13, %v5359_v20  ;;  %v2093_v42 = vsel %vm3835_vm6, %v2088_v38, %v2083_v1 }
 0x1d8   :  { %v2094_v59 = vsel %vm3841_vm7, %v2092_v21, %v2080_v2  ;;  %v2095_v37 = vsel %vm3877_vm8, %v2083_v1, %v2088_v38  ;;  %v2096_v39 = vsel %vm3895_vm9, %v2080_v2, %v2092_v21  ;;  %v2097_v45 = vmul.f32 %v2093_v42, %v5484_v62 }
 0x1d9   :  { %v2098_v20 = vmul.f32 %v2094_v59, %v5484_v62  ;;  %v2101_v13 = vmul.f32 %v2093_v42, %v5487_v55  ;;  %v2102_v3 = vmul.f32 %v2094_v59, %v5487_v55  ;;  %v2133_v22 = vmul.f32 %v2095_v37, %v5500_v41 }
 0x1da   :  { %v2134_v0 = vmul.f32 %v2096_v39, %v5500_v41  ;;  %v2137_v49 = vmul.f32 %v2095_v37, %v5503_v8  ;;  %v2138_v61 = vmul.f32 %v2096_v39, %v5503_v8  ;;  %v2099_v63 = vadd.f32 %v2097_v45, %v5505_v44  ;;  %v5647_v45 = vpop.permute.xlu1 %2233 }
 0x1db   :  { %v2100_v10 = vadd.f32 %v2098_v20, %v5507_v34  ;;  %v2103_v29 = vadd.f32 %v2101_v13, %v5509_v26  ;;  %v2104_v62 = vadd.f32 %v2102_v3, %v5511_v56  ;;  %v1011_v58 = vstv %s5567_s29  ;;  %v5649_v20 = vpop.permute.xlu0 %2231  ;;  %s5932_s29 = sld [smem:[#allocation2 + $0x72]] }
 0x1dc   :  { %v1016_v2 = vstv %s5569_s30  ;;  %v1031_v1 = vstv %s5571_s5  ;;  %v1036_v55 = vstv %s5573_s6  ;;  %v2117_v41 = vadd.f32 %v2110_v15, %v2099_v63  ;;  %v6571_v63 = vld [vmem:[#allocation86_spill] sm:$0xff] }
 0x1dd   :  { %v2118_v14 = vadd.f32 %v2114_v11, %v2100_v10  ;;  %v2131_v48 = vadd.f32 %v2124_v33, %v2103_v29  ;;  %v2132_v8 = vadd.f32 %v2128_v43, %v2104_v62  ;;  %v1002_v44 = vsel %vm233_vm5, %v5395_v51, %v5393_v23  ;;  %v6572_v29 = vld [vmem:[#allocation93_spill] sm:$0xff] }
 0x1de   :  { %v1006_v34 = vsel %vm233_vm5, %v5393_v23, %v5395_v51  ;;  %v2148_v26 = vsel %vm224_vm4, %v5457_v47, %v5459_v53  ;;  %v2151_v56 = vsel %vm224_vm4, %v5459_v53, %v5457_v47  ;;  %v2135_v60 = vadd.f32 %v2133_v22, %v2117_v41 }
 0x1df   :  { %v2136_v28 = vadd.f32 %v2134_v0, %v2118_v14  ;;  %v2139_v15 = vadd.f32 %v2137_v49, %v2131_v48  ;;  %v2140_v11 = vadd.f32 %v2138_v61, %v2132_v8  ;;  %v1007_v33 = vsel %vm3835_vm6, %v1002_v44, %v997_v6 }
 0x1e0   :  { %v1008_v43 = vsel %vm3841_vm7, %v1006_v34, %v994_v31  ;;  %v1009_v23 = vsel %vm3877_vm8, %v997_v6, %v1002_v44  ;;  %v1010_v51 = vsel %vm3895_vm9, %v994_v31, %v1006_v34  ;;  %v1012_v38 = vmul.f32 %v1011_v58, %v1007_v33 }
 0x1e1   :  { %v1013_v21 = vmul.f32 %v1011_v58, %v1008_v43  ;;  %v1017_v42 = vmul.f32 %v1016_v2, %v1007_v33  ;;  %v1018_v47 = vmul.f32 %v1016_v2, %v1008_v43  ;;  %v1032_v53 = vmul.f32 %v1031_v1, %v1009_v23 }
 0x1e2   :  { %v1033_v59 = vmul.f32 %v1031_v1, %v1010_v51  ;;  %v1037_v37 = vmul.f32 %v1036_v55, %v1009_v23  ;;  %v1038_v39 = vmul.f32 %v1036_v55, %v1010_v51  ;;  %v1014_v6 = vadd.f32 %v1012_v38, %v980_v46  ;;  %v1130_v23 = vpop.permute.xlu1 %1129  ;;  %v1127_v51 = vpop.permute.xlu0 %1126 }
 0x1e3   :  { %v1015_v13 = vadd.f32 %v1013_v21, %v981_v25  ;;  %v1019_v3 = vadd.f32 %v1017_v42, %v985_v27  ;;  %v1020_v31 = vadd.f32 %v1018_v47, %v986_v52  ;;  %v2156_v22 = vsel %vm233_vm5, %v5495_v40, %v5493_v57  ;;  %v6569_v25 = vld [vmem:[#allocation85_spill] sm:$0xff]  ;;  %v6570_v52 = vld [vmem:[#allocation91_spill] sm:$0xff] }
 0x1e4   :  { %v2160_v0 = vsel %vm233_vm5, %v5493_v57, %v5495_v40  ;;  %v1079_v49 = vsel %vm224_vm4, %v5542_v19, %v5544_v30  ;;  %v1082_v46 = vsel %vm224_vm4, %v5544_v30, %v5542_v19  ;;  %v1024_v27 = vadd.f32 %v6569_v25, %v1014_v6  ;;  %v6576_v25 = vld [vmem:[#allocation107_spill] sm:$0xff] }
 0x1e5   :  { %v1025_v61 = vadd.f32 %v6570_v52, %v1015_v13  ;;  %v1029_v10 = vadd.f32 %v6571_v63, %v1019_v3  ;;  %v1030_v62 = vadd.f32 %v6572_v29, %v1020_v31  ;;  %v2161_v41 = vsel %vm3835_vm6, %v2156_v22, %v2151_v56  ;;  %v6573_v3 = vld [vmem:[#allocation101_spill] sm:$0xff] }
 0x1e6   :  { %v2162_v57 = vsel %vm3841_vm7, %v2160_v0, %v2148_v26  ;;  %v2163_v40 = vsel %vm3877_vm8, %v2151_v56, %v2156_v22  ;;  %v2164_v19 = vsel %vm3895_vm9, %v2148_v26, %v2160_v0  ;;  %v1034_v30 = vadd.f32 %v1032_v53, %v1024_v27  ;;  %v6575_v0 = vld [vmem:[#allocation102_spill] sm:$0xff]  ;;  %v5699_v63 = vpop.permute.xlu1 %1137 }
 0x1e7   :  { %v1035_v14 = vadd.f32 %v1033_v59, %v1025_v61  ;;  %v1039_v48 = vadd.f32 %v1037_v37, %v1029_v10  ;;  %v1040_v8 = vadd.f32 %v1038_v39, %v1030_v62  ;;  %v2165_v44 = vmul.f32 %v2161_v41, %v1011_v58  ;;  %v5701_v10 = vpop.permute.xlu0 %1135 }
 0x1e8   :  { %v2166_v34 = vmul.f32 %v2162_v57, %v1011_v58  ;;  %v2169_v33 = vmul.f32 %v2161_v41, %v1016_v2  ;;  %v2170_v43 = vmul.f32 %v2162_v57, %v1016_v2  ;;  %v2181_v38 = vmul.f32 %v2163_v40, %v1031_v1  ;;  %v6574_v58 = vld [vmem:[#allocation106_spill] sm:$0xff] }
 0x1e9   :  { %v2182_v21 = vmul.f32 %v2164_v19, %v1031_v1  ;;  %v2185_v56 = vmul.f32 %v2163_v40, %v1036_v55  ;;  %v2186_v42 = vmul.f32 %v2164_v19, %v1036_v55  ;;  %v2167_v47 = vadd.f32 %v2165_v44, %v2135_v60 }
 0x1ea   :  { %v2168_v26 = vadd.f32 %v2166_v34, %v2136_v28  ;;  %v2171_v53 = vadd.f32 %v2169_v33, %v2139_v15  ;;  %v2172_v59 = vadd.f32 %v2170_v43, %v2140_v11  ;;  %v1096_v37 = vstv %s5643_s7 }
 0x1eb   :  { %v1101_v6 = vstv %s5645_s8  ;;  %v1116_v39 = vstv %s5651_s9  ;;  %v1121_v13 = vstv %s5653_s3  ;;  %v2175_v31 = vadd.f32 %v6573_v3, %v2167_v47  ;;  %v6579_v47 = vld [vmem:[#allocation112_spill] sm:$0xff]  ;;  %v2272_v3 = vpop.permute.xlu1 %2271  ;;  %s6594_s3 = sld [smem:[#allocation188_spill]] }
 0x1ec   :  { %v2176_v22 = vadd.f32 %v6574_v58, %v2168_v26  ;;  %v2179_v2 = vadd.f32 %v6575_v0, %v2171_v53  ;;  %v2180_v27 = vadd.f32 %v6576_v25, %v2172_v59  ;;  %v1087_v1 = vsel %vm233_vm5, %v5581_v4, %v5579_v36  ;;  %v6580_v53 = vld [vmem:[#allocation20_spill] sm:$0xff] }
 0x1ed   :  { %v1091_v55 = vsel %vm233_vm5, %v5579_v36, %v5581_v4  ;;  %v2227_v60 = vsel %vm224_vm4, %v5619_v5, %v5621_v54  ;;  %v2230_v28 = vsel %vm224_vm4, %v5621_v54, %v5619_v5  ;;  %v2183_v15 = vadd.f32 %v2181_v38, %v2175_v31  ;;  %v2269_v31 = vpop.permute.xlu0 %2268 }
 0x1ee   :  { %v2184_v11 = vadd.f32 %v2182_v21, %v2176_v22  ;;  %v2187_v52 = vadd.f32 %v2185_v56, %v2179_v2  ;;  %v2188_v61 = vadd.f32 %v2186_v42, %v2180_v27  ;;  %v1092_v29 = vsel %vm3835_vm6, %v1087_v1, %v1082_v46 }
 0x1ef   :  { %v1093_v36 = vsel %vm3841_vm7, %v1091_v55, %v1079_v49  ;;  %v1094_v4 = vsel %vm3877_vm8, %v1082_v46, %v1087_v1  ;;  %v1095_v5 = vsel %vm3895_vm9, %v1079_v49, %v1091_v55  ;;  %v1097_v54 = vmul.f32 %v1096_v37, %v1092_v29 }
 0x1f0   :  { %v1098_v62 = vmul.f32 %v1096_v37, %v1093_v36  ;;  %v1102_v41 = vmul.f32 %v1101_v6, %v1092_v29  ;;  %v1103_v57 = vmul.f32 %v1101_v6, %v1093_v36  ;;  %v1117_v40 = vmul.f32 %v1116_v39, %v1094_v4 }
 0x1f1   :  { %v1118_v19 = vmul.f32 %v1116_v39, %v1095_v5  ;;  %v1122_v44 = vmul.f32 %v1121_v13, %v1094_v4  ;;  %v1123_v34 = vmul.f32 %v1121_v13, %v1095_v5  ;;  %v1099_v33 = vadd.f32 %v1097_v54, %v1034_v30  ;;  %v6577_v30 = vld [vmem:[#allocation13_spill] sm:$0xff] }
 0x1f2   :  { %v1100_v43 = vadd.f32 %v1098_v62, %v1035_v14  ;;  %v1104_v38 = vadd.f32 %v1102_v41, %v1039_v48  ;;  %v1105_v21 = vadd.f32 %v1103_v57, %v1040_v8  ;;  %v2235_v49 = vsel %vm233_vm5, %v5649_v20, %v5647_v45  ;;  %v6578_v48 = vld [vmem:[#allocation19_spill] sm:$0xff] }
 0x1f3   :  { %v2239_v46 = vsel %vm233_vm5, %v5647_v45, %v5649_v20  ;;  %v1131_v56 = vsel %vm224_vm4, %v1130_v23, %v1127_v51  ;;  %v1134_v42 = vsel %vm224_vm4, %v1127_v51, %v1130_v23  ;;  %v1109_v14 = vadd.f32 %v6577_v30, %v1099_v33  ;;  %v6582_v33 = vld [vmem:[#allocation15_spill] sm:$0xff] }
 0x1f4   :  { %v1110_v8 = vadd.f32 %v6578_v48, %v1100_v43  ;;  %v1114_v26 = vadd.f32 %v6579_v47, %v1104_v38  ;;  %v1115_v59 = vadd.f32 %v6580_v53, %v1105_v21  ;;  %v2240_v45 = vsel %vm3835_vm6, %v2235_v49, %v2230_v28  ;;  %v6583_v43 = vld [vmem:[#allocation120_spill] sm:$0xff] }
 0x1f5   :  { %v2241_v20 = vsel %vm3841_vm7, %v2239_v46, %v2227_v60  ;;  %v2242_v23 = vsel %vm3877_vm8, %v2230_v28, %v2235_v49  ;;  %v2243_v51 = vsel %vm3895_vm9, %v2227_v60, %v2239_v46  ;;  %v1119_v58 = vadd.f32 %v1117_v40, %v1109_v14 }
 0x1f6   :  { %v1120_v22 = vadd.f32 %v1118_v19, %v1110_v8  ;;  %v1124_v0 = vadd.f32 %v1122_v44, %v1114_v26  ;;  %v1125_v2 = vadd.f32 %v1123_v34, %v1115_v59  ;;  %v2244_v25 = vmul.f32 %v2240_v45, %v1096_v37  ;;  %v2280_v44 = vpop.permute.xlu1 %2279  ;;  %v6581_v34 = vld [vmem:[#allocation17_spill] sm:$0xff] }
 0x1f7   :  { %v2245_v27 = vmul.f32 %v2241_v20, %v1096_v37  ;;  %v2248_v1 = vmul.f32 %v2240_v45, %v1101_v6  ;;  %v2249_v55 = vmul.f32 %v2241_v20, %v1101_v6  ;;  %v2260_v29 = vmul.f32 %v2242_v23, %v1116_v39  ;;  %v2278_v37 = vpop.permute.xlu0 %2277 }
 0x1f8   :  { %v2261_v36 = vmul.f32 %v2243_v51, %v1116_v39  ;;  %v2264_v4 = vmul.f32 %v2242_v23, %v1121_v13  ;;  %v2265_v5 = vmul.f32 %v2243_v51, %v1121_v13  ;;  %v2246_v28 = vadd.f32 %v2244_v25, %v2183_v15  ;;  %v6584_v15 = vld [vmem:[#allocation114_spill] sm:$0xff] }
 0x1f9   :  { %v2247_v54 = vadd.f32 %v2245_v27, %v2184_v11  ;;  %v2250_v60 = vadd.f32 %v2248_v1, %v2187_v52  ;;  %v2251_v62 = vadd.f32 %v2249_v55, %v2188_v61  ;;  %v5744_v41 = vstv %s5711_s13  ;;  %v5758_v52 = vld [vmem:[%s6336_s25 + $0x3] ss:$8 sm:$0x3] }
 0x1fa   :  { %v5747_v57 = vstv %s5713_s10  ;;  %v1158_v40 = vstv %s5715_s14  ;;  %v1173_v19 = vstv %s5717_s2  ;;  %v2254_v6 = vadd.f32 %v6581_v34, %v2246_v28  ;;  %v1204_v55 = vpop.permute.xlu1 %1203  ;;  %s2790_s14 = sld [smem:[#allocation2 + $0x74]]  ;;  %s2788_s2 = sld [smem:[#allocation2 + $0x73]] }
 0x1fb   :  { %v2255_v39 = vadd.f32 %v6582_v33, %v2247_v54  ;;  %v2258_v13 = vadd.f32 %v6583_v43, %v2250_v60  ;;  %v2259_v11 = vadd.f32 %v6584_v15, %v2251_v62  ;;  %v1159_v61 = vmul.f32 %v5758_v52, %v1158_v40  ;;  %v5807_v62 = vld [vmem:[%s6336_s25 + $0x7] ss:$8 sm:$0x3]  ;;  %s5819_s25 = sld [smem:[#allocation2 + $0x47]] }
 0x1fc   :  { %v1174_v38 = vmul.f32 %v5758_v52, %v1173_v19  ;;  %v5763_v21 = vstv %s5731_s4  ;;  %v5766_v49 = vstv %s5733_s11  ;;  %v5768_v46 = vadd.f32 %v2260_v29, %v2254_v6  ;;  %v1200_v29 = vpop.permute.xlu0 %1199  ;;  %s2791_s4 = sld [smem:[#allocation2 + $0x76]]  ;;  %s2789_s11 = sld [smem:[#allocation2 + $0x75]] }
 0x1fd   :  { %v5770_v30 = vadd.f32 %v2261_v36, %v2255_v39  ;;  %v5772_v14 = vadd.f32 %v2264_v4, %v2258_v13  ;;  %v5774_v48 = vadd.f32 %v2265_v5, %v2259_v11  ;;  %v1164_v8 = vrot.slane %v1159_v61, %v6567_v7 }
 0x1fe   :  { %v1168_v47 = vrot.slane %v1159_v61, %v6568_v32  ;;  %v1179_v26 = vrot.slane %v1174_v38, %v6567_v7  ;;  %v1183_v53 = vrot.slane %v1174_v38, %v6568_v32  ;;  %v1139_v59 = vsel %vm233_vm5, %v5701_v10, %v5699_v63 }
 0x1ff   :  { %v1143_v45 = vsel %vm233_vm5, %v5699_v63, %v5701_v10  ;;  %v2273_v20 = vsel %vm224_vm4, %v2272_v3, %v2269_v31  ;;  %v2276_v23 = vsel %vm224_vm4, %v2269_v31, %v2272_v3  ;;  %v1144_v51 = vsel %vm3835_vm6, %v1139_v59, %v1134_v42 }
 0x200   :  { %v1145_v25 = vsel %vm3841_vm7, %v1143_v45, %v1131_v56  ;;  %v1146_v27 = vsel %vm3877_vm8, %v1134_v42, %v1139_v59  ;;  %v1147_v1 = vsel %vm3895_vm9, %v1131_v56, %v1143_v45  ;;  %v1149_v63 = vmul.f32 %v5744_v41, %v1144_v51  ;;  %v1210_v13 = vpop.permute.xlu0 %1209 }
 0x201   :  { %v1150_v10 = vmul.f32 %v5744_v41, %v1145_v25  ;;  %v1154_v3 = vmul.f32 %v5747_v57, %v1144_v51  ;;  %v1155_v31 = vmul.f32 %v5747_v57, %v1145_v25  ;;  %v1189_v36 = vmul.f32 %v5763_v21, %v1146_v27 }
 0x202   :  { %v1190_v4 = vmul.f32 %v5763_v21, %v1147_v1  ;;  %v1194_v5 = vmul.f32 %v5766_v49, %v1146_v27  ;;  %v1195_v42 = vmul.f32 %v5766_v49, %v1147_v1  ;;  %v1151_v28 = vadd.f32 %v1149_v63, %v1119_v58 }
 0x203   :  { %v1152_v56 = vadd.f32 %v1150_v10, %v1120_v22  ;;  %v1156_v54 = vadd.f32 %v1154_v3, %v1124_v0  ;;  %v1157_v60 = vadd.f32 %v1155_v31, %v1125_v2  ;;  %v2298_v34 = vmul.f32 %v5807_v62, %v1158_v40 }
 0x204   :  { %v2312_v6 = vmul.f32 %v5807_v62, %v1173_v19  ;;  %v2281_v33 = vsel %vm233_vm5, %v2278_v37, %v2280_v44  ;;  %v2285_v39 = vsel %vm233_vm5, %v2280_v44, %v2278_v37  ;;  %v1171_v58 = vadd.f32 %v1164_v8, %v1151_v28  ;;  %v1212_v37 = vpop.permute.xlu1 %1211 }
 0x205   :  { %v1172_v22 = vadd.f32 %v1168_v47, %v1152_v56  ;;  %v1186_v0 = vadd.f32 %v1179_v26, %v1156_v54  ;;  %v1187_v2 = vadd.f32 %v1183_v53, %v1157_v60  ;;  %v2303_v40 = vrot.slane %v2298_v34, %v6567_v7 }
 0x206   :  { %v2307_v19 = vrot.slane %v2298_v34, %v6568_v32  ;;  %v2317_v43 = vrot.slane %v2312_v6, %v6567_v7  ;;  %v2321_v44 = vrot.slane %v2312_v6, %v6568_v32  ;;  %v1191_v15 = vadd.f32 %v1189_v36, %v1171_v58 }
 0x207   :  { %v1192_v11 = vadd.f32 %v1190_v4, %v1172_v22  ;;  %v1196_v61 = vadd.f32 %v1194_v5, %v1186_v0  ;;  %v1197_v38 = vadd.f32 %v1195_v42, %v1187_v2  ;;  %v2286_v8 = vsel %vm3835_vm6, %v2281_v33, %v2276_v23 }
 0x208   :  { %v2287_v47 = vsel %vm3841_vm7, %v2285_v39, %v2273_v20  ;;  %v2288_v26 = vsel %vm3877_vm8, %v2276_v23, %v2281_v33  ;;  %v2289_v53 = vsel %vm3895_vm9, %v2273_v20, %v2285_v39  ;;  %v2290_v59 = vmul.f32 %v2286_v8, %v5744_v41  ;;  %v2340_v4 = vpop.permute.xlu1 %2339 }
 0x209   :  { %v2291_v45 = vmul.f32 %v2287_v47, %v5744_v41  ;;  %v2294_v51 = vmul.f32 %v2286_v8, %v5747_v57  ;;  %v2295_v25 = vmul.f32 %v2287_v47, %v5747_v57  ;;  %v2326_v27 = vmul.f32 %v2288_v26, %v5763_v21 }
 0x20a   :  { %v2327_v1 = vmul.f32 %v2289_v53, %v5763_v21  ;;  %v2330_v63 = vmul.f32 %v2288_v26, %v5766_v49  ;;  %v2331_v23 = vmul.f32 %v2289_v53, %v5766_v49  ;;  %v2292_v20 = vadd.f32 %v2290_v59, %v5768_v46  ;;  %v2336_v49 = vpop.permute.xlu0 %2335 }
 0x20b   :  { %v2293_v10 = vadd.f32 %v2291_v45, %v5770_v30  ;;  %v2296_v41 = vadd.f32 %v2294_v51, %v5772_v14  ;;  %v2297_v57 = vadd.f32 %v2295_v25, %v5774_v48  ;;  %v1205_v3 = vsel %vm224_vm4, %v1204_v55, %v1200_v29 }
 0x20c   :  { %v1208_v21 = vsel %vm224_vm4, %v1200_v29, %v1204_v55  ;;  %v1222_v31 = vstv %s5813_s17  ;;  %v1227_v36 = vstv %s5815_s18  ;;  %v2310_v5 = vadd.f32 %v2303_v40, %v2292_v20 }
 0x20d   :  { %v2311_v42 = vadd.f32 %v2307_v19, %v2293_v10  ;;  %v2324_v46 = vadd.f32 %v2317_v43, %v2296_v41  ;;  %v2325_v28 = vadd.f32 %v2321_v44, %v2297_v57  ;;  %v1242_v30 = vstv %s5817_s19  ;;  %v6586_v10 = vld [vmem:[#allocation115_spill] sm:$0xff]  ;;  %v6587_v57 = vld [vmem:[#allocation109_spill] sm:$0xff] }
 0x20e   :  { %v5857_v56 = vstv %s5819_s25  ;;  %v5860_v14 = vstv %s5825_s20  ;;  %v5863_v48 = vstv %s5827_s21  ;;  %v2328_v54 = vadd.f32 %v2326_v27, %v2310_v5 }
 0x20f   :  { %v2329_v60 = vadd.f32 %v2327_v1, %v2311_v42  ;;  %v2332_v55 = vadd.f32 %v2330_v63, %v2324_v46  ;;  %v2333_v29 = vadd.f32 %v2331_v23, %v2325_v28  ;;  %v1213_v34 = vsel %vm233_vm5, %v1210_v13, %v1212_v37  ;;  %v6585_v23 = vld [vmem:[#allocation12_spill] sm:$0xff] }
 0x210   :  { %v1217_v6 = vsel %vm233_vm5, %v1212_v37, %v1210_v13  ;;  %v2341_v33 = vsel %vm224_vm4, %v2340_v4, %v2336_v49  ;;  %v2344_v39 = vsel %vm224_vm4, %v2336_v49, %v2340_v4  ;;  %v1218_v58 = vsel %vm3835_vm6, %v1213_v34, %v1208_v21  ;;  %v2348_v37 = vpop.permute.xlu1 %2347  ;;  %v2346_v13 = vpop.permute.xlu0 %2345 }
 0x211   :  { %v1219_v22 = vsel %vm3841_vm7, %v1217_v6, %v1205_v3  ;;  %v1220_v0 = vsel %vm3877_vm8, %v1208_v21, %v1213_v34  ;;  %v1221_v2 = vsel %vm3895_vm9, %v1205_v3, %v1217_v6  ;;  %v1223_v40 = vmul.f32 %v1222_v31, %v1218_v58  ;;  %v6588_v21 = vld [vmem:[#allocation116_spill] sm:$0xff] }
 0x212   :  { %v1224_v19 = vmul.f32 %v1222_v31, %v1219_v22  ;;  %v1228_v43 = vmul.f32 %v1227_v36, %v1218_v58  ;;  %v1229_v44 = vmul.f32 %v1227_v36, %v1219_v22  ;;  %v1243_v8 = vmul.f32 %v1242_v30, %v1220_v0 }
 0x213   :  { %v1244_v47 = vmul.f32 %v1242_v30, %v1221_v2  ;;  %v1248_v26 = vmul.f32 %v5857_v56, %v1220_v0  ;;  %v1249_v53 = vmul.f32 %v5857_v56, %v1221_v2  ;;  %v1225_v59 = vadd.f32 %v1223_v40, %v1191_v15 }
 0x214   :  { %v1226_v45 = vadd.f32 %v1224_v19, %v1192_v11  ;;  %v1230_v51 = vadd.f32 %v1228_v43, %v1196_v61  ;;  %v1231_v25 = vadd.f32 %v1229_v44, %v1197_v38  ;;  %v2349_v27 = vsel %vm233_vm5, %v2346_v13, %v2348_v37  ;;  %v6589_v44 = vld [vmem:[#allocation117_spill] sm:$0xff] }
 0x215   :  { %v2353_v1 = vsel %vm233_vm5, %v2348_v37, %v2346_v13  ;;  %v1375_v63 = vstv %s5853_s1  ;;  %v1235_v20 = vadd.f32 %v6585_v23, %v1225_v59  ;;  %v2354_v15 = vsel %vm3835_vm6, %v2349_v27, %v2344_v39  ;;  %v6590_v37 = vld [vmem:[#allocation121_spill] sm:$0xff]  ;;  %v6591_v13 = vld [vmem:[#allocation118_spill] sm:$0xff] }
 0x216   :  { %v1236_v41 = vadd.f32 %v6586_v10, %v1226_v45  ;;  %v1240_v3 = vadd.f32 %v6587_v57, %v1230_v51  ;;  %v1241_v4 = vadd.f32 %v6588_v21, %v1231_v25  ;;  %v2355_v11 = vsel %vm3841_vm7, %v2353_v1, %v2341_v33 }
 0x217   :  { %v2356_v61 = vsel %vm3877_vm8, %v2344_v39, %v2349_v27  ;;  %v2357_v38 = vsel %vm3895_vm9, %v2341_v33, %v2353_v1  ;;  %v1245_v49 = vadd.f32 %v1243_v8, %v1235_v20  ;;  %v2358_v28 = vmul.f32 %v2354_v15, %v1222_v31 }
 0x218   :  { %v1246_v5 = vadd.f32 %v1244_v47, %v1236_v41  ;;  %v1250_v42 = vadd.f32 %v1248_v26, %v1240_v3  ;;  %v1251_v46 = vadd.f32 %v1249_v53, %v1241_v4  ;;  %v2359_v34 = vmul.f32 %v2355_v11, %v1222_v31  ;;  %v6592_v47 = vld [vmem:[#allocation122_spill] sm:$0xff] }
 0x219   :  { %v2362_v6 = vmul.f32 %v2354_v15, %v1227_v36  ;;  %v2363_v58 = vmul.f32 %v2355_v11, %v1227_v36  ;;  %v1253_v9 = vadd.f32 %v5860_v14, %v1245_v49  ;;  %v2360_v39 = vadd.f32 %v2358_v28, %v2328_v54 }
 0x21a   :  { %v1254_v22 = vadd.f32 %v5860_v14, %v1246_v5  ;;  %v1294_v12 = vadd.f32 %v5863_v48, %v1250_v42  ;;  %v1295_v17 = vadd.f32 %v5863_v48, %v1251_v46  ;;  %v2361_v0 = vadd.f32 %v2359_v34, %v2329_v60 }
 0x21b   :  { %v2364_v18 = vadd.f32 %v2362_v6, %v2332_v55  ;;  %v2365_v33 = vadd.f32 %v2363_v58, %v2333_v29  ;;  %v2374_v19 = vmul.f32 %v2356_v61, %v1242_v30  ;;  %v2375_v43 = vmul.f32 %v2357_v38, %v1242_v30 }
 0x21c   :  { %v1257_v2 = vcombine.low %v1253_v9, %v1254_v22  ;;  %v1298_v40 = vcombine.low %v1294_v12, %v1295_v17  ;;  %v2368_v31 = vadd.f32 %v6589_v44, %v2360_v39  ;;  %v2369_v36 = vadd.f32 %v6590_v37, %v2361_v0 }
 0x21d   :  { %v2372_v8 = vadd.f32 %v6591_v13, %v2364_v18  ;;  %v2373_v26 = vadd.f32 %v6592_v47, %v2365_v33  ;;  %v2378_v54 = vmul.f32 %v2356_v61, %v5857_v56  ;;  %v2379_v60 = vmul.f32 %v2357_v38, %v5857_v56 }
 0x21e   :  { %v1264_v53 = vrot.slane %v1257_v2, %v6544_v50  ;;  %v1305_v59 = vrot.slane %v1298_v40, %v6544_v50  ;;  %v2376_v55 = vadd.f32 %v2374_v19, %v2368_v31  ;;  %v2377_v29 = vadd.f32 %v2375_v43, %v2369_v36 }
 0x21f   :  { %v1316_v30 = vsel %vm1278_vm11, %v1294_v12, 0.0  ;;  %v1317_v45 = vsel %vm1278_vm11, %v1295_v17, 0.0  ;;  %v2380_v27 = vadd.f32 %v2378_v54, %v2372_v8  ;;  %v2381_v1 = vadd.f32 %v2379_v60, %v2373_v26 }
 0x220   :  { %v1271_v51 = vrot.slane %v1264_v53, %v6544_v50  ;;  %v1312_v25 = vrot.slane %v1305_v59, %v6544_v50  ;;  %v2382_v23 = vadd.f32 %v2376_v55, %v5860_v14  ;;  %v2383_v20 = vadd.f32 %v2377_v29, %v5860_v14 }
 0x221   :  { %v1318_v10 = vadd.f32 %v1317_v45, %v1316_v30  ;;  %v1279_v41 = vsel %vm1278_vm11, %v1253_v9, 0.0  ;;  %v2418_v56 = vadd.f32 %v2380_v27, %v5863_v48  ;;  %v2419_v57 = vadd.f32 %v2381_v1, %v5863_v48 }
 0x222   :  { %1277 = vst.msk [vmem:[%s6593_s24] ss:$4 sm:$0x3] %vm5229_vm10, %v1271_v51  ;;  %2777 = vst.msk [vmem:[%s6593_s24 + $0x1] ss:$4 sm:$0x3] %vm5229_vm10, %v1312_v25  ;;  %v1322_v3 = vmul.f32 %v1294_v12, %v1294_v12  ;;  %v2386_v21 = vcombine.low %v2382_v23, %v2383_v20  ;;  %v1323_v46 = vmul.f32 %v1295_v17, %v1295_v17  ;;  %v1377_v36 = vstv %s5926_s28 }
 0x223   :  { %v1280_v14 = vsel %vm1278_vm11, %v1254_v22, 0.0  ;;  %1319 = vadd.xlane.f32.xlu0 %v1318_v10  ;;  %v2404_v15 = vsel %vm1278_vm11, %v2382_v23, 0.0  ;;  %v2405_v11 = vsel %vm1278_vm11, %v2383_v20, 0.0  ;;  %v2422_v61 = vcombine.low %v2418_v56, %v2419_v57 }
 0x224   :  { %v1281_v4 = vadd.f32 %v1280_v14, %v1279_v41  ;;  %v2440_v38 = vsel %vm1278_vm11, %v2418_v56, 0.0  ;;  %v2441_v49 = vsel %vm1278_vm11, %v2419_v57, 0.0  ;;  %v2406_v5 = vadd.f32 %v2405_v11, %v2404_v15 }
 0x225   :  { %v2393_v48 = vrot.slane %v2386_v21, %v6544_v50  ;;  %v2442_v42 = vadd.f32 %v2441_v49, %v2440_v38  ;;  %v1324_v28 = vsel %vm1278_vm11, %v1322_v3, 0.0  ;;  %v2429_v34 = vrot.slane %v2422_v61, %v6544_v50 }
 0x226   :  { %v2446_v6 = vmul.f32 %v2418_v56, %v2418_v56  ;;  %v2447_v58 = vmul.f32 %v2419_v57, %v2419_v57  ;;  %v1285_v12 = vmul.f32 %v1253_v9, %v1253_v9  ;;  %v1325_v0 = vsel %vm1278_vm11, %v1323_v46, 0.0 }
 0x227   :  { %v2400_v39 = vrot.slane %v2393_v48, %v6544_v50  ;;  %1282 = vadd.xlane.f32.xlu0 %v1281_v4  ;;  %2443 = vadd.xlane.f32.xlu1 %v2442_v42  ;;  %v1286_v18 = vmul.f32 %v1254_v22, %v1254_v22  ;;  %v2410_v33 = vmul.f32 %v2382_v23, %v2382_v23  ;;  %v1380_v53 = vstv %s5932_s29 }
 0x228   :  { %v2436_v2 = vrot.slane %v2429_v34, %v6544_v50  ;;  %v1326_v17 = vadd.f32 %v1325_v0, %v1324_v28  ;;  %v2448_v40 = vsel %vm1278_vm11, %v2446_v6, 0.0  ;;  %v2449_v19 = vsel %vm1278_vm11, %v2447_v58, 0.0 }
 0x229   :  { %2783 = vst.msk [vmem:[%s6593_s24 + $0x2] ss:$4 sm:$0x3] %vm5229_vm10, %v2400_v39  ;;  %v2450_v9 = vadd.f32 %v2449_v19, %v2448_v40  ;;  %v1287_v43 = vsel %vm1278_vm11, %v1285_v12, 0.0  ;;  %v1288_v22 = vsel %vm1278_vm11, %v1286_v18, 0.0  ;;  %v2411_v44 = vmul.f32 %v2383_v20, %v2383_v20 }
 0x22a   :  { %2784 = vst.msk [vmem:[%s6593_s24 + $0x3] ss:$4 sm:$0x3] %vm5229_vm10, %v2436_v2  ;;  %v1289_v50 = vadd.f32 %v1288_v22, %v1287_v43  ;;  %v2412_v31 = vsel %vm1278_vm11, %v2410_v33, 0.0  ;;  %v1376_v37 = vmul.f32 %v5516_v16, %v1375_v63  ;;  %v1378_v8 = vmul.f32 %v5758_v52, %v1377_v36 }
 0x22b   :  { %2407 = vadd.xlane.f32.xlu0 %v2406_v5  ;;  %1327 = vadd.xlane.f32.xlu1 %v1326_v17  ;;  %v2413_v13 = vsel %vm1278_vm11, %v2411_v44, 0.0  ;;  %v2498_v47 = vmul.f32 %v5563_v24, %v1375_v63  ;;  %v2499_v59 = vmul.f32 %v5807_v62, %v1377_v36  ;;  %v2836_v15 = vmov 0  }
 0x22c   :  { %v2414_v26 = vadd.f32 %v2413_v13, %v2412_v31  ;;  %v1379_v54 = vadd.f32 %v1378_v8, %v1376_v37  ;;  %2802 = vset.pattern.permute.xlu1 %v2836_v15  ;;  %2803 = vset.pattern.permute.xlu0 %v2836_v15 }
 0x22d   :  { %v2500_v60 = vadd.f32 %v2499_v59, %v2498_v47 }
 0x22e   :  { %v1381_v55 = vadd.f32 %v1380_v53, %v1379_v54 }
 0x22f   :  { %2451 = vadd.xlane.f32.xlu0 %v2450_v9  ;;  %1290 = vadd.xlane.f32.xlu1 %v1289_v50  ;;  %v2501_v16 = vadd.f32 %v2500_v60, %v1380_v53  ;;  %v2561_v53 = vstv %s2790_s14 }
 0x230   :  { %1382 = vst.msk [vmem:[%s6594_s3] ss:$2 sm:$0x3] %vm5229_vm10, %v1381_v55  ;;  %v1387_v52 = vrot.slane %v1381_v55, %v6567_v7  ;;  %v1391_v24 = vrot.slane %v1381_v55, %v6568_v32  ;;  %v1400_v63 = vmul.f32 %v1381_v55, %v1381_v55 }
 0x231   :  { %2787 = vst.msk [vmem:[%s6594_s3 + $0x1] ss:$2 sm:$0x3] %vm5229_vm10, %v2501_v16  ;;  %v2508_v62 = vrot.slane %v2501_v16, %v6567_v7  ;;  %v2512_v29 = vrot.slane %v2501_v16, %v6568_v32  ;;  %v2521_v30 = vmul.f32 %v2501_v16, %v2501_v16  ;;  %v2547_v16 = vstv %s2788_s2 }
 0x232   :  { %v1394_v45 = vsel %vm1278_vm11, %v1387_v52, 0.0  ;;  %v1395_v51 = vsel %vm1278_vm11, %v1391_v24, 0.0  ;;  %v1405_v25 = vrot.slane %v1400_v63, %v6567_v7  ;;  %v1409_v27 = vrot.slane %v1400_v63, %v6568_v32 }
 0x233   :  { %2415 = vadd.xlane.f32.xlu0 %v2414_v26  ;;  %v1396_v1 = vadd.f32 %v1395_v51, %v1394_v45  ;;  %v2515_v35 = vsel %vm1278_vm11, %v2508_v62, 0.0  ;;  %v2516_v23 = vsel %vm1278_vm11, %v2512_v29, 0.0  ;;  %v2526_v20 = vrot.slane %v2521_v30, %v6567_v7 }
 0x234   :  { %v2517_v10 = vadd.f32 %v2516_v23, %v2515_v35  ;;  %v1412_v41 = vsel %vm1278_vm11, %v1405_v25, 0.0  ;;  %v1413_v56 = vsel %vm1278_vm11, %v1409_v27, 0.0  ;;  %v2530_v57 = vrot.slane %v2521_v30, %v6568_v32 }
 0x235   :  { %1397 = vadd.xlane.f32.xlu1 %v1396_v1  ;;  %v1414_v14 = vadd.f32 %v1413_v56, %v1412_v41  ;;  %v2533_v3 = vsel %vm1278_vm11, %v2526_v20, 0.0  ;;  %v2565_v52 = vstv %s2791_s4  ;;  %v2551_v45 = vstv %s2789_s11 }
 0x236   :  { %v2534_v21 = vsel %vm1278_vm11, %v2530_v57, 0.0  ;;  %v2628_v41 = vstv %s2792_s0 }
 0x237   :  { %2518 = vadd.xlane.f32.xlu0 %v2517_v10  ;;  %v2535_v4 = vadd.f32 %v2534_v21, %v2533_v3 }
 0x239   :  { %1415 = vadd.xlane.f32.xlu1 %v1414_v14 }
 0x23b   :  { %2536 = vadd.xlane.f32.xlu0 %v2535_v4 }
 0x2b0   :  { %v1320_v11 = vpop.xlane.xlu0 %1319 }
 0x2b4   :  { %v1283_v61 = vpop.xlane.xlu0 %1282  ;;  %v2444_v38 = vpop.xlane.xlu1 %2443 }
 0x2b5   :  { %v2445_v49 = vadd.f32 %v2444_v38, %v1320_v11  ;;  %v2632_v11 = vstv %s2793_s12 }
 0x2b7   :  { %v2553_v32 = vmul.f32 0.001953125, %v2445_v49 }
 0x2b8   :  { %v2408_v5 = vpop.xlane.xlu0 %2407  ;;  %v1328_v48 = vpop.xlane.xlu1 %1327 }
 0x2b9   :  { %v2409_v42 = vadd.f32 %v2408_v5, %v1283_v61  ;;  %v2555_v6 = vmul.f32 %v2553_v32, %v2553_v32  ;;  %v2634_v61 = vld [vmem:[%s6594_s3] sm:$0xf] }
 0x2bb   :  { %v2539_v58 = vmul.f32 0.001953125, %v2409_v42 }
 0x2bc   :  { %v2452_v46 = vpop.xlane.xlu0 %2451  ;;  %v1291_v34 = vpop.xlane.xlu1 %1290 }
 0x2bd   :  { %v2453_v28 = vadd.f32 %v2452_v46, %v1328_v48  ;;  %v2541_v33 = vmul.f32 %v2539_v58, %v2539_v58 }
 0x2bf   :  { %v2554_v12 = vmul.f32 0.001953125, %v2453_v28  ;;  %v2837_v28 = vmov 839922192  }
 0x2c0   :  { %v2416_v39 = vpop.xlane.xlu0 %2415 }
 0x2c1   :  { %v2556_v0 = vsub.f32 %v2554_v12, %v2555_v6  ;;  %v2417_v18 = vadd.f32 %v2416_v39, %v1291_v34  ;;  %v2597_v34 = vunpack.c.l.s4 %v2837_v28 }
 0x2c2   :  { %v1398_v40 = vpop.xlane.xlu1 %1397 }
 0x2c3   :  { %v2557_v2 = vmax.f32 %v2556_v0, 0.0  ;;  %v2540_v17 = vmul.f32 0.001953125, %v2417_v18  ;;  %v2598_v6 = vunpack.c.0.s8 %v2597_v34  ;;  %v2591_v18 = vld [vmem:[%s6593_s24] sm:$0xff] }
 0x2c4   :  { %v2519_v19 = vpop.xlane.xlu0 %2518 }
 0x2c5   :  { %v2558_v9 = vadd.f32 1e-05, %v2557_v2  ;;  %v2542_v43 = vsub.f32 %v2540_v17, %v2541_v33  ;;  %v2520_v22 = vadd.f32 %v2519_v19, %v1398_v40 }
 0x2c6   :  { %v1416_v31 = vpop.xlane.xlu1 %1415 }
 0x2c7   :  { %2804 = vrsqrt.f32 %v2558_v9  ;;  %v2543_v44 = vmax.f32 %v2542_v43, 0.0  ;;  %v2620_v50 = vmul.f32 0.001953125, %v2520_v22 }
 0x2c8   :  { %v2537_v37 = vpop.xlane.xlu0 %2536 }
 0x2c9   :  { %v2544_v36 = vadd.f32 1e-05, %v2543_v44  ;;  %v2622_v13 = vmul.f32 %v2620_v50, %v2620_v50  ;;  %v2538_v8 = vadd.f32 %v2537_v37, %v1416_v31 }
 0x2cb   :  { %2806 = vrsqrt.f32 %v2544_v36  ;;  %v2621_v47 = vmul.f32 0.001953125, %v2538_v8 }
 0x2cd   :  { %v2623_v26 = vsub.f32 %v2621_v47, %v2622_v13 }
 0x2cf   :  { %v2624_v59 = vmax.f32 %v2623_v26, 0.0 }
 0x2d1   :  { %v2805_v54 = vpop.eup %2804  ;;  %v2625_v60 = vadd.f32 1e-05, %v2624_v59 }
 0x2d2   :  { %v2562_v55 = vmul.f32 %v2805_v54, %v2561_v53 }
 0x2d3   :  { %2808 = vrsqrt.f32 %v2625_v60 }
 0x2d4   :  { %v2564_v24 = vmul.f32 %v2562_v55, %v2553_v32  ;;  %v2568_v29 = vrot.slane %v2562_v55, 7  ;;  %v2573_v1 = vrot.slane %v2562_v55, 5 }
 0x2d5   :  { %v2807_v63 = vpop.eup %2806 }
 0x2d6   :  { %v2548_v62 = vmul.f32 %v2807_v63, %v2547_v16  ;;  %v2566_v30 = vsub.f32 %v2565_v52, %v2564_v24 }
 0x2d8   :  { %v2571_v51 = vrot.slane %v2548_v62, 6  ;;  %v2575_v25 = vsel %vm1278_vm11, %v2548_v62, %v2568_v29  ;;  %v2550_v27 = vmul.f32 %v2548_v62, %v2539_v58  ;;  %v2581_v20 = vrot.slane %v2566_v30, 7  ;;  %v6595_v58 = vld [vmem:[#allocation5_spill] sm:$0xff] }
 0x2d9   :  { %v2586_v3 = vrot.slane %v2566_v30, 5  ;;  %v2601_v12 = vsub.s32 %v2598_v6, %v6595_v58 }
 0x2da   :  { %v2577_v35 = vsel %vm2576_vm12, %v2575_v25, %v2571_v51  ;;  %v2552_v23 = vsub.f32 %v2551_v45, %v2550_v27 }
 0x2db   :  { %v2579_v10 = vsel %vm2578_vm13, %v2577_v35, %v2573_v1 }
 0x2dc   :  { %2594 = vperm.xlu1 %2802, %v2579_v10   ;;  %v2584_v56 = vrot.slane %v2552_v23, 6  ;;  %v2588_v57 = vsel %vm1278_vm11, %v2552_v23, %v2581_v20 }
 0x2dd   :  { %v2809_v14 = vpop.eup %2808 }
 0x2de   :  { %v2589_v21 = vsel %vm2576_vm12, %v2588_v57, %v2584_v56  ;;  %v2629_v4 = vmul.f32 %v2809_v14, %v2628_v41 }
 0x2df   :  { %v2590_v15 = vsel %vm2578_vm13, %v2589_v21, %v2586_v3 }
 0x2e0   :  { %2607 = vperm.xlu0 %2803, %v2590_v15   ;;  %v2631_v38 = vmul.f32 %v2629_v4, %v2620_v50  ;;  %v2638_v49 = vrot.slane %v2629_v4, %v6567_v7 }
 0x2e2   :  { %v2633_v5 = vsub.f32 %v2632_v11, %v2631_v38  ;;  %v2639_v48 = vmul.f32 %v2638_v49, %v2634_v61 }
 0x2e4   :  { %v2643_v32 = vrot.slane %v2633_v5, %v6567_v7 }
 0x2e6   :  { %v2644_v42 = vadd.f32 %v2643_v32, %v2639_v48 }
 0x2e8   :  { %v2645_v46 = vmax.f32 %v2644_v42, 0.0 }
 0x2ea   :  { %2646 = vst [vmem:[%s6594_s3] sm:$0xf] %v2645_v46 }
 0x35b   :  { %v2595_v39 = vpop.permute.xlu1 %2594 }
 0x35c   :  { %v2602_v0 = vrot.slane %v2595_v39, %v2601_v12 }
 0x35e   :  { %v2604_v2 = vmul.f32 %v2602_v0, %v2591_v18 }
 0x35f   :  { %v2608_v33 = vpop.permute.xlu0 %2607 }
 0x360   :  { %v2615_v7 = vrot.slane %v2608_v33, %v2601_v12 }
 0x362   :  { %v2617_v17 = vadd.f32 %v2615_v7, %v2604_v2 }
 0x364   :  { %v2618_v40 = vmax.f32 %v2617_v17, 0.0 }
 0x366   :  { %2619 = vst [vmem:[%s6593_s24] sm:$0xff] %v2618_v40 }
 0x367   :  { %2659 = vsyncpa [#allocation3], 1 }

</bundles_post_ra>
